<compile_context>
chip_gen: v6e
topology: v6e:2x2x1
jax: 0.10.0
libtpu: 0.0.40
codegen_flags: <defaults>
</compile_context>

<pallas_src>
import functools

import jax
import jax.numpy as jnp
from jax.experimental import pallas as pl
from jax.experimental.pallas import tpu as pltpu

NEG_SLOPE = 0.2
BN_EPS = 1e-5


# ---------------- Pallas kernels ----------------

def _conv_leaky_kernel(p_ref, w_ref, o_ref, *, slope):
    # (C, K) @ (K, bm) -> (C, bm), fused LeakyReLU, bf16 store.
    y = jnp.dot(w_ref[...], p_ref[...], preferred_element_type=jnp.float32)
    o_ref[...] = jnp.where(y >= 0.0, y, slope * y).astype(o_ref.dtype)


def _conv_bn_leaky_kernel(p_ref, w_ref, g_ref, b_ref, o_ref, *, slope, eps):
    # Fused conv-as-GEMM + training-mode BatchNorm (biased batch stats) + LeakyReLU.
    # y stays VMEM-resident: no HBM round trips between matmul, stats and normalize.
    y = jnp.dot(w_ref[...], p_ref[...], preferred_element_type=jnp.float32)   # (C, M) f32
    inv_m = 1.0 / y.shape[1]
    mean = jnp.sum(y, axis=1, keepdims=True) * inv_m                          # (C, 1)
    yc = y - mean
    var = jnp.sum(yc * yc, axis=1, keepdims=True) * inv_m                     # two-pass var
    scale = g_ref[...] * jax.lax.rsqrt(var + eps)
    z = yc * scale + b_ref[...]
    o_ref[...] = jnp.where(z >= 0.0, z, slope * z).astype(o_ref.dtype)


def _tail_kernel(p_ref, w_ref, c_ref, o_ref):
    # final_layers_conv (1 output channel, batch element 0 only) + Linear(13,1) +
    # Transpose + Linear(13,1) + Sigmoid, collapsed into a bilinear form:
    #   out = sigmoid( sum_m (w5 @ patchesT)[0, m] * c[m] ),  c[i*13+j] = wl2[i]*wl1[j]
    y = jnp.dot(w_ref[...], p_ref[...], preferred_element_type=jnp.float32)   # (1, Mpad)
    s = jnp.sum(y * c_ref[...], axis=1, keepdims=True)                        # (1, 1)
    o_ref[...] = jax.nn.sigmoid(s)


# ---------------- Pallas wrappers ----------------

def conv_leaky(patches_t, w_t, bm=8192):
    """(C, K) @ (K, M) with fused LeakyReLU; tiled over the lane (M) axis."""
    K, M = patches_t.shape
    C, Kw = w_t.shape
    assert K == Kw
    bm = min(bm, pl.cdiv(M, 128) * 128)
    m_pad = pl.cdiv(M, bm) * bm
    if m_pad != M:
        patches_t = jnp.pad(patches_t, ((0, 0), (0, m_pad - M)))
    out = pl.pallas_call(
        functools.partial(_conv_leaky_kernel, slope=NEG_SLOPE),
        out_shape=jax.ShapeDtypeStruct((C, m_pad), jnp.bfloat16),
        grid=(m_pad // bm,),
        in_specs=[pl.BlockSpec((K, bm), lambda i: (0, i)),
                  pl.BlockSpec((C, K), lambda i: (0, 0))],
        out_specs=pl.BlockSpec((C, bm), lambda i: (0, i)),
        compiler_params=pltpu.CompilerParams(dimension_semantics=("parallel",)),
    )(patches_t, w_t)
    return out[:, :M]


def conv_bn_leaky(patches_t, w_t, gamma, beta):
    """One fused kernel: conv GEMM + BatchNorm (batch stats) + LeakyReLU.

    The whole layer fits comfortably in VMEM (patches <= ~1 MiB bf16, y <= 256 KiB f32),
    so a single grid step keeps y resident and needs no cross-step stat accumulation.
    """
    K, M = patches_t.shape
    C, Kw = w_t.shape
    assert K == Kw
    return pl.pallas_call(
        functools.partial(_conv_bn_leaky_kernel, slope=NEG_SLOPE, eps=BN_EPS),
        out_shape=jax.ShapeDtypeStruct((C, M), jnp.bfloat16),
        grid=(1,),
        in_specs=[pl.BlockSpec((K, M), lambda i: (0, 0)),
                  pl.BlockSpec((C, K), lambda i: (0, 0)),
                  pl.BlockSpec((C, 1), lambda i: (0, 0)),
                  pl.BlockSpec((C, 1), lambda i: (0, 0))],
        out_specs=pl.BlockSpec((C, M), lambda i: (0, 0)),
        compiler_params=pltpu.CompilerParams(dimension_semantics=("arbitrary",)),
    )(patches_t, w_t, gamma, beta)


def tail(patches_t0, w5_t, coeff):
    """Final conv + both Linear(13,1) layers + sigmoid in one tiny kernel."""
    K, M = patches_t0.shape
    m_pad = pl.cdiv(M, 128) * 128
    if m_pad != M:
        patches_t0 = jnp.pad(patches_t0, ((0, 0), (0, m_pad - M)))
        coeff = jnp.pad(coeff, ((0, 0), (0, m_pad - M)))
    return pl.pallas_call(
        _tail_kernel,
        out_shape=jax.ShapeDtypeStruct((1, 1), jnp.float32),
        grid=(1,),
        in_specs=[pl.BlockSpec((K, m_pad), lambda i: (0, 0)),
                  pl.BlockSpec((1, K), lambda i: (0, 0)),
                  pl.BlockSpec((1, m_pad), lambda i: (0, 0))],
        out_specs=pl.BlockSpec((1, 1), lambda i: (0, 0)),
        compiler_params=pltpu.CompilerParams(dimension_semantics=("arbitrary",)),
    )(patches_t0, w5_t, coeff)


# ---------------- plain-JAX glue ----------------

def im2col_t(x_t, k, stride, pad):
    """x_t: (C, N, H, W) -> transposed patches (k*k*C, N*OH*OW); K idx = (dh*k+dw)*C + c."""
    C, N, H, W = x_t.shape
    if pad:
        x_t = jnp.pad(x_t, ((0, 0), (0, 0), (pad, pad), (pad, pad)))
    OH = (H + 2 * pad - k) // stride + 1
    OW = (W + 2 * pad - k) // stride + 1
    taps = []
    for dh in range(k):
        for dw in range(k):
            taps.append(x_t[:, :, dh:dh + stride * OH:stride,
                            dw:dw + stride * OW:stride])
    p = jnp.stack(taps, axis=0)                       # (k*k, C, N, OH, OW)
    return p.reshape(k * k * C, N * OH * OW), OH, OW


def conv_weight_t(w_oihw):
    """PyTorch (Cout, Cin, kh, kw) -> (Cout, kh*kw*Cin) matching im2col_t's K layout."""
    cout, cin, kh, kw = w_oihw.shape
    return jnp.transpose(w_oihw, (0, 2, 3, 1)).reshape(cout, kh * kw * cin)


def discriminator_forward(x_nchw, params):
    n = x_nchw.shape[0]
    # channels-major (C, N, H, W) bf16 activations: the spatial axis lands in lanes.
    x_t = jnp.transpose(x_nchw, (1, 0, 2, 3)).astype(jnp.bfloat16)

    # block 1: Conv(nc->ndf, 4, 2, 1, bias=False) + LeakyReLU(0.2)   (one fused kernel)
    p, oh, ow = im2col_t(x_t, 4, 2, 1)
    y = conv_leaky(p, params["w1"])                       # (ndf, n*oh*ow) bf16
    x_t = y.reshape(-1, n, oh, ow)

    # blocks 2-4: Conv + BatchNorm(training-mode batch stats) + LeakyReLU, ONE kernel each.
    for wk, gk, bk in (("w2", "g2", "b2"), ("w3", "g3", "b3"), ("w4", "g4", "b4")):
        p, oh, ow = im2col_t(x_t, 4, 2, 1)
        y = conv_bn_leaky(p, params[wk], params[gk], params[bk])
        x_t = y.reshape(-1, n, oh, ow)

    # tail: final_layers_conv (ndf*8 -> 1, 4, 1, 0) + Linear(13,1) + Transpose +
    # Linear(13,1) + Sigmoid fused into one kernel. The reference consumes only
    # input[0][0], so only batch element 0's patches are needed (value-identical).
    # TODO(synk): the [0][0] selection faithfully mirrors a likely bug in the reference.
    p0, oh, ow = im2col_t(x_t[:, :1], 4, 1, 0)            # (k*k*ndf*8, oh*ow)
    assert oh == params["wl2"].shape[0] and ow == params["wl1"].shape[0]
    coeff = (params["wl2"].reshape(-1, 1) *
             params["wl1"].reshape(1, -1)).reshape(1, oh * ow).astype(jnp.float32)
    out = tail(p0, params["w5"], coeff)                   # (1, 1) f32

    # output.view(-1, 1)[0]  -> shape (1,)
    return out.reshape(-1, 1)[0]


def init_params(key, nc, ndf):
    ks = jax.random.split(key, 7)

    def conv_w(k, cout, cin):
        w = 0.02 * jax.random.normal(k, (cout, cin, 4, 4), jnp.float32)
        return conv_weight_t(w).astype(jnp.bfloat16)

    def bn(c):
        return jnp.ones((c, 1), jnp.float32), jnp.zeros((c, 1), jnp.float32)

    g2, b2 = bn(ndf * 2)
    g3, b3 = bn(ndf * 4)
    g4, b4 = bn(ndf * 8)
    return {
        "w1": conv_w(ks[0], ndf, nc),
        "w2": conv_w(ks[1], ndf * 2, ndf), "g2": g2, "b2": b2,
        "w3": conv_w(ks[2], ndf * 4, ndf * 2), "g3": g3, "b3": b3,
        "w4": conv_w(ks[3], ndf * 8, ndf * 4), "g4": g4, "b4": b4,
        "w5": conv_w(ks[4], 1, ndf * 8),
        # PyTorch Linear weight is (out,in)=(1,13); stored here as the 13-vector W[0,:].
        "wl1": 0.1 * jax.random.normal(ks[5], (13,), jnp.float32),
        "wl2": 0.1 * jax.random.normal(ks[6], (13,), jnp.float32),
    }


if __name__ == "__main__":
    # Spatial size 256 is forced by the architecture: four stride-2 convs followed by a
    # 4x4 valid conv must produce 13 so the Linear(13, 1) layers type-check.
    batch, nc, ndf = 2, 3, 4
    key = jax.random.PRNGKey(0)
    kx, kp = jax.random.split(key)
    x = jax.random.normal(kx, (batch, nc, 256, 256), jnp.float32)
    params = init_params(kp, nc, ndf)

    fwd = jax.jit(discriminator_forward)
    out = fwd(x, params)
    jax.block_until_ready(out)
    assert out.shape == (1,)
    assert bool(jnp.all(jnp.isfinite(out)))
    print("KERNEL_OK")
</pallas_src>

<mosaic_0001>
module attributes {stable_mosaic.version = 11 : i64} {
  func.func @_conv_leaky_kernel(%arg0: i32, %arg1: memref<48x8192xbf16, #tpu.memory_space<vmem>>, %arg2: memref<4x48xbf16, #tpu.memory_space<vmem>>, %arg3: memref<4x8192xbf16, #tpu.memory_space<vmem>>) attributes {dimension_semantics = [#tpu.dimension_semantics<parallel>], iteration_bounds = array<i64: 4>, scalar_prefetch = 0 : i64, scratch_operands = 0 : i64, tpu.core_type = #tpu.core_type<tc>, window_params = [{transform_indices = @transform_0, window_bounds = array<i64: 48, 8192>}, {pipeline_mode = #tpu.pipeline_mode<synchronous>, transform_indices = @transform_1, window_bounds = array<i64: 4, 48>}, {transform_indices = @transform_2, window_bounds = array<i64: 4, 8192>}]} {
    %c0 = arith.constant 0 : index
    %c0_0 = arith.constant 0 : index
    %0 = vector.load %arg2[%c0, %c0_0] : memref<4x48xbf16, #tpu.memory_space<vmem>>, vector<4x48xbf16>
    %c0_1 = arith.constant 0 : index
    %c0_2 = arith.constant 0 : index
    %1 = vector.load %arg1[%c0_1, %c0_2] : memref<48x8192xbf16, #tpu.memory_space<vmem>>, vector<48x8192xbf16>
    %cst = arith.constant dense<0.000000e+00> : vector<4x8192xf32>
    %2 = tpu.matmul %0, %1, %cst {dimension_numbers = #tpu.dot_dimension_numbers<[1], [0], [0], [1], [0, 0, 1, 1], [], []>} : vector<4x48xbf16>, vector<48x8192xbf16>, vector<4x8192xf32> -> vector<4x8192xf32>
    %cst_3 = arith.constant 0.000000e+00 : f32
    %3 = vector.broadcast %cst_3 : f32 to vector<4x8192xf32>
    %4 = arith.cmpf oge, %2, %3 : vector<4x8192xf32>
    %cst_4 = arith.constant 2.000000e-01 : f32
    %5 = vector.broadcast %cst_4 : f32 to vector<4x8192xf32>
    %6 = arith.mulf %5, %2 : vector<4x8192xf32>
    %7 = arith.select %4, %2, %6 : vector<4x8192xi1>, vector<4x8192xf32>
    %8 = arith.truncf %7 : vector<4x8192xf32> to vector<4x8192xbf16>
    %c0_5 = arith.constant 0 : index
    %c0_6 = arith.constant 0 : index
    %9 = vector.load %arg3[%c0_5, %c0_6] : memref<4x8192xbf16, #tpu.memory_space<vmem>>, vector<4x8192xbf16>
    tpu.vector_store %arg3[%c0_5, %c0_6], %8 {strides = array<i32>} : memref<4x8192xbf16, #tpu.memory_space<vmem>>, vector<4x8192xbf16>,
    return
  }
  func.func @transform_0(%arg0: i32) -> (i32, i32) {
    %c0_i32 = arith.constant 0 : i32
    %c0_i32_0 = arith.constant 0 : i32
    return %c0_i32, %arg0 : i32, i32
  }
  func.func @transform_1(%arg0: i32) -> (i32, i32) {
    %c0_i32 = arith.constant 0 : i32
    %c0_i32_0 = arith.constant 0 : i32
    %c0_i32_1 = arith.constant 0 : i32
    return %c0_i32, %c0_i32_0 : i32, i32
  }
  func.func @transform_2(%arg0: i32) -> (i32, i32) {
    %c0_i32 = arith.constant 0 : i32
    %c0_i32_0 = arith.constant 0 : i32
    return %c0_i32, %arg0 : i32, i32
  }
}

module attributes {stable_mosaic.version = 11 : i64} {
  func.func @_conv_bn_leaky_kernel(%arg0: i32, %arg1: memref<64x8192xbf16, #tpu.memory_space<vmem>>, %arg2: memref<8x64xbf16, #tpu.memory_space<vmem>>, %arg3: memref<8x1xf32, #tpu.memory_space<vmem>>, %arg4: memref<8x1xf32, #tpu.memory_space<vmem>>, %arg5: memref<8x8192xbf16, #tpu.memory_space<vmem>>) attributes {dimension_semantics = [#tpu.dimension_semantics<arbitrary>], iteration_bounds = array<i64: 1>, scalar_prefetch = 0 : i64, scratch_operands = 0 : i64, tpu.core_type = #tpu.core_type<tc>, window_params = [{pipeline_mode = #tpu.pipeline_mode<synchronous>, transform_indices = @transform_0, window_bounds = array<i64: 64, 8192>}, {pipeline_mode = #tpu.pipeline_mode<synchronous>, transform_indices = @transform_1, window_bounds = array<i64: 8, 64>}, {pipeline_mode = #tpu.pipeline_mode<synchronous>, transform_indices = @transform_2, window_bounds = array<i64: 8, 1>}, {pipeline_mode = #tpu.pipeline_mode<synchronous>, transform_indices = @transform_3, window_bounds = array<i64: 8, 1>}, {pipeline_mode = #tpu.pipeline_mode<synchronous>, transform_indices = @transform_4, window_bounds = array<i64: 8, 8192>}]} {
    %c0 = arith.constant 0 : index
    %c0_0 = arith.constant 0 : index
    %0 = vector.load %arg2[%c0, %c0_0] : memref<8x64xbf16, #tpu.memory_space<vmem>>, vector<8x64xbf16>
    %c0_1 = arith.constant 0 : index
    %c0_2 = arith.constant 0 : index
    %1 = vector.load %arg1[%c0_1, %c0_2] : memref<64x8192xbf16, #tpu.memory_space<vmem>>, vector<64x8192xbf16>
    %cst = arith.constant dense<0.000000e+00> : vector<8x8192xf32>
    %2 = tpu.matmul %0, %1, %cst {dimension_numbers = #tpu.dot_dimension_numbers<[1], [0], [0], [1], [0, 0, 1, 1], [], []>} : vector<8x64xbf16>, vector<64x8192xbf16>, vector<8x8192xf32> -> vector<8x8192xf32>
    %cst_3 = arith.constant dense<0.000000e+00> : vector<8xf32>
    %3 = vector.multi_reduction <add>, %2, %cst_3 [1] : vector<8x8192xf32> to vector<8xf32>
    %4 = vector.shape_cast %3 : vector<8xf32> to vector<8x1xf32>
    %cst_4 = arith.constant 1.22070313E-4 : f32
    %5 = vector.broadcast %cst_4 : f32 to vector<8x1xf32>
    %6 = arith.mulf %4, %5 : vector<8x1xf32>
    %7 = vector.broadcast %6 : vector<8x1xf32> to vector<8x8192xf32>
    %8 = arith.subf %2, %7 : vector<8x8192xf32>
    %9 = arith.mulf %8, %8 : vector<8x8192xf32>
    %cst_5 = arith.constant dense<0.000000e+00> : vector<8xf32>
    %10 = vector.multi_reduction <add>, %9, %cst_5 [1] : vector<8x8192xf32> to vector<8xf32>
    %11 = vector.shape_cast %10 : vector<8xf32> to vector<8x1xf32>
    %cst_6 = arith.constant 1.22070313E-4 : f32
    %12 = vector.broadcast %cst_6 : f32 to vector<8x1xf32>
    %13 = arith.mulf %11, %12 : vector<8x1xf32>
    %c0_7 = arith.constant 0 : index
    %c0_8 = arith.constant 0 : index
    %14 = vector.load %arg3[%c0_7, %c0_8] : memref<8x1xf32, #tpu.memory_space<vmem>>, vector<8x1xf32>
    %cst_9 = arith.constant 9.99999974E-6 : f32
    %15 = vector.broadcast %cst_9 : f32 to vector<8x1xf32>
    %16 = arith.addf %13, %15 : vector<8x1xf32>
    %17 = math.rsqrt %16 : vector<8x1xf32>
    %18 = arith.mulf %14, %17 : vector<8x1xf32>
    %19 = vector.broadcast %18 : vector<8x1xf32> to vector<8x8192xf32>
    %20 = arith.mulf %8, %19 : vector<8x8192xf32>
    %c0_10 = arith.constant 0 : index
    %c0_11 = arith.constant 0 : index
    %21 = vector.load %arg4[%c0_10, %c0_11] : memref<8x1xf32, #tpu.memory_space<vmem>>, vector<8x1xf32>
    %22 = vector.broadcast %21 : vector<8x1xf32> to vector<8x8192xf32>
    %23 = arith.addf %20, %22 : vector<8x8192xf32>
    %cst_12 = arith.constant 0.000000e+00 : f32
    %24 = vector.broadcast %cst_12 : f32 to vector<8x8192xf32>
    %25 = arith.cmpf oge, %23, %24 : vector<8x8192xf32>
    %cst_13 = arith.constant 2.000000e-01 : f32
    %26 = vector.broadcast %cst_13 : f32 to vector<8x8192xf32>
    %27 = arith.mulf %26, %23 : vector<8x8192xf32>
    %28 = arith.select %25, %23, %27 : vector<8x8192xi1>, vector<8x8192xf32>
    %29 = arith.truncf %28 : vector<8x8192xf32> to vector<8x8192xbf16>
    %c0_14 = arith.constant 0 : index
    %c0_15 = arith.constant 0 : index
    %30 = vector.load %arg5[%c0_14, %c0_15] : memref<8x8192xbf16, #tpu.memory_space<vmem>>, vector<8x8192xbf16>
    tpu.vector_store %arg5[%c0_14, %c0_15], %29 {strides = array<i32>} : memref<8x8192xbf16, #tpu.memory_space<vmem>>, vector<8x8192xbf16>,
    return
  }
  func.func @transform_0(%arg0: i32) -> (i32, i32) {
    %c0_i32 = arith.constant 0 : i32
    %c0_i32_0 = arith.constant 0 : i32
    %c0_i32_1 = arith.constant 0 : i32
    return %c0_i32, %c0_i32_0 : i32, i32
  }
  func.func @transform_1(%arg0: i32) -> (i32, i32) {
    %c0_i32 = arith.constant 0 : i32
    %c0_i32_0 = arith.constant 0 : i32
    %c0_i32_1 = arith.constant 0 : i32
    return %c0_i32, %c0_i32_0 : i32, i32
  }
  func.func @transform_2(%arg0: i32) -> (i32, i32) {
    %c0_i32 = arith.constant 0 : i32
    %c0_i32_0 = arith.constant 0 : i32
    %c0_i32_1 = arith.constant 0 : i32
    return %c0_i32, %c0_i32_0 : i32, i32
  }
  func.func @transform_3(%arg0: i32) -> (i32, i32) {
    %c0_i32 = arith.constant 0 : i32
    %c0_i32_0 = arith.constant 0 : i32
    %c0_i32_1 = arith.constant 0 : i32
    return %c0_i32, %c0_i32_0 : i32, i32
  }
  func.func @transform_4(%arg0: i32) -> (i32, i32) {
    %c0_i32 = arith.constant 0 : i32
    %c0_i32_0 = arith.constant 0 : i32
    %c0_i32_1 = arith.constant 0 : i32
    return %c0_i32, %c0_i32_0 : i32, i32
  }
}

module attributes {stable_mosaic.version = 11 : i64} {
  func.func @_conv_bn_leaky_kernel(%arg0: i32, %arg1: memref<128x2048xbf16, #tpu.memory_space<vmem>>, %arg2: memref<16x128xbf16, #tpu.memory_space<vmem>>, %arg3: memref<16x1xf32, #tpu.memory_space<vmem>>, %arg4: memref<16x1xf32, #tpu.memory_space<vmem>>, %arg5: memref<16x2048xbf16, #tpu.memory_space<vmem>>) attributes {dimension_semantics = [#tpu.dimension_semantics<arbitrary>], iteration_bounds = array<i64: 1>, scalar_prefetch = 0 : i64, scratch_operands = 0 : i64, tpu.core_type = #tpu.core_type<tc>, window_params = [{pipeline_mode = #tpu.pipeline_mode<synchronous>, transform_indices = @transform_0, window_bounds = array<i64: 128, 2048>}, {pipeline_mode = #tpu.pipeline_mode<synchronous>, transform_indices = @transform_1, window_bounds = array<i64: 16, 128>}, {pipeline_mode = #tpu.pipeline_mode<synchronous>, transform_indices = @transform_2, window_bounds = array<i64: 16, 1>}, {pipeline_mode = #tpu.pipeline_mode<synchronous>, transform_indices = @transform_3, window_bounds = array<i64: 16, 1>}, {pipeline_mode = #tpu.pipeline_mode<synchronous>, transform_indices = @transform_4, window_bounds = array<i64: 16, 2048>}]} {
    %c0 = arith.constant 0 : index
    %c0_0 = arith.constant 0 : index
    %0 = vector.load %arg2[%c0, %c0_0] : memref<16x128xbf16, #tpu.memory_space<vmem>>, vector<16x128xbf16>
    %c0_1 = arith.constant 0 : index
    %c0_2 = arith.constant 0 : index
    %1 = vector.load %arg1[%c0_1, %c0_2] : memref<128x2048xbf16, #tpu.memory_space<vmem>>, vector<128x2048xbf16>
    %cst = arith.constant dense<0.000000e+00> : vector<16x2048xf32>
    %2 = tpu.matmul %0, %1, %cst {dimension_numbers = #tpu.dot_dimension_numbers<[1], [0], [0], [1], [0, 0, 1, 1], [], []>} : vector<16x128xbf16>, vector<128x2048xbf16>, vector<16x2048xf32> -> vector<16x2048xf32>
    %cst_3 = arith.constant dense<0.000000e+00> : vector<16xf32>
    %3 = vector.multi_reduction <add>, %2, %cst_3 [1] : vector<16x2048xf32> to vector<16xf32>
    %4 = vector.shape_cast %3 : vector<16xf32> to vector<16x1xf32>
    %cst_4 = arith.constant 4.8828125E-4 : f32
    %5 = vector.broadcast %cst_4 : f32 to vector<16x1xf32>
    %6 = arith.mulf %4, %5 : vector<16x1xf32>
    %7 = vector.broadcast %6 : vector<16x1xf32> to vector<16x2048xf32>
    %8 = arith.subf %2, %7 : vector<16x2048xf32>
    %9 = arith.mulf %8, %8 : vector<16x2048xf32>
    %cst_5 = arith.constant dense<0.000000e+00> : vector<16xf32>
    %10 = vector.multi_reduction <add>, %9, %cst_5 [1] : vector<16x2048xf32> to vector<16xf32>
    %11 = vector.shape_cast %10 : vector<16xf32> to vector<16x1xf32>
    %cst_6 = arith.constant 4.8828125E-4 : f32
    %12 = vector.broadcast %cst_6 : f32 to vector<16x1xf32>
    %13 = arith.mulf %11, %12 : vector<16x1xf32>
    %c0_7 = arith.constant 0 : index
    %c0_8 = arith.constant 0 : index
    %14 = vector.load %arg3[%c0_7, %c0_8] : memref<16x1xf32, #tpu.memory_space<vmem>>, vector<16x1xf32>
    %cst_9 = arith.constant 9.99999974E-6 : f32
    %15 = vector.broadcast %cst_9 : f32 to vector<16x1xf32>
    %16 = arith.addf %13, %15 : vector<16x1xf32>
    %17 = math.rsqrt %16 : vector<16x1xf32>
    %18 = arith.mulf %14, %17 : vector<16x1xf32>
    %19 = vector.broadcast %18 : vector<16x1xf32> to vector<16x2048xf32>
    %20 = arith.mulf %8, %19 : vector<16x2048xf32>
    %c0_10 = arith.constant 0 : index
    %c0_11 = arith.constant 0 : index
    %21 = vector.load %arg4[%c0_10, %c0_11] : memref<16x1xf32, #tpu.memory_space<vmem>>, vector<16x1xf32>
    %22 = vector.broadcast %21 : vector<16x1xf32> to vector<16x2048xf32>
    %23 = arith.addf %20, %22 : vector<16x2048xf32>
    %cst_12 = arith.constant 0.000000e+00 : f32
    %24 = vector.broadcast %cst_12 : f32 to vector<16x2048xf32>
    %25 = arith.cmpf oge, %23, %24 : vector<16x2048xf32>
    %cst_13 = arith.constant 2.000000e-01 : f32
    %26 = vector.broadcast %cst_13 : f32 to vector<16x2048xf32>
    %27 = arith.mulf %26, %23 : vector<16x2048xf32>
    %28 = arith.select %25, %23, %27 : vector<16x2048xi1>, vector<16x2048xf32>
    %29 = arith.truncf %28 : vector<16x2048xf32> to vector<16x2048xbf16>
    %c0_14 = arith.constant 0 : index
    %c0_15 = arith.constant 0 : index
    %30 = vector.load %arg5[%c0_14, %c0_15] : memref<16x2048xbf16, #tpu.memory_space<vmem>>, vector<16x2048xbf16>
    tpu.vector_store %arg5[%c0_14, %c0_15], %29 {strides = array<i32>} : memref<16x2048xbf16, #tpu.memory_space<vmem>>, vector<16x2048xbf16>,
    return
  }
  func.func @transform_0(%arg0: i32) -> (i32, i32) {
    %c0_i32 = arith.constant 0 : i32
    %c0_i32_0 = arith.constant 0 : i32
    %c0_i32_1 = arith.constant 0 : i32
    return %c0_i32, %c0_i32_0 : i32, i32
  }
  func.func @transform_1(%arg0: i32) -> (i32, i32) {
    %c0_i32 = arith.constant 0 : i32
    %c0_i32_0 = arith.constant 0 : i32
    %c0_i32_1 = arith.constant 0 : i32
    return %c0_i32, %c0_i32_0 : i32, i32
  }
  func.func @transform_2(%arg0: i32) -> (i32, i32) {
    %c0_i32 = arith.constant 0 : i32
    %c0_i32_0 = arith.constant 0 : i32
    %c0_i32_1 = arith.constant 0 : i32
    return %c0_i32, %c0_i32_0 : i32, i32
  }
  func.func @transform_3(%arg0: i32) -> (i32, i32) {
    %c0_i32 = arith.constant 0 : i32
    %c0_i32_0 = arith.constant 0 : i32
    %c0_i32_1 = arith.constant 0 : i32
    return %c0_i32, %c0_i32_0 : i32, i32
  }
  func.func @transform_4(%arg0: i32) -> (i32, i32) {
    %c0_i32 = arith.constant 0 : i32
    %c0_i32_0 = arith.constant 0 : i32
    %c0_i32_1 = arith.constant 0 : i32
    return %c0_i32, %c0_i32_0 : i32, i32
  }
}

module attributes {stable_mosaic.version = 11 : i64} {
  func.func @_conv_bn_leaky_kernel(%arg0: i32, %arg1: memref<256x512xbf16, #tpu.memory_space<vmem>>, %arg2: memref<32x256xbf16, #tpu.memory_space<vmem>>, %arg3: memref<32x1xf32, #tpu.memory_space<vmem>>, %arg4: memref<32x1xf32, #tpu.memory_space<vmem>>, %arg5: memref<32x512xbf16, #tpu.memory_space<vmem>>) attributes {dimension_semantics = [#tpu.dimension_semantics<arbitrary>], iteration_bounds = array<i64: 1>, scalar_prefetch = 0 : i64, scratch_operands = 0 : i64, tpu.core_type = #tpu.core_type<tc>, window_params = [{pipeline_mode = #tpu.pipeline_mode<synchronous>, transform_indices = @transform_0, window_bounds = array<i64: 256, 512>}, {pipeline_mode = #tpu.pipeline_mode<synchronous>, transform_indices = @transform_1, window_bounds = array<i64: 32, 256>}, {pipeline_mode = #tpu.pipeline_mode<synchronous>, transform_indices = @transform_2, window_bounds = array<i64: 32, 1>}, {pipeline_mode = #tpu.pipeline_mode<synchronous>, transform_indices = @transform_3, window_bounds = array<i64: 32, 1>}, {pipeline_mode = #tpu.pipeline_mode<synchronous>, transform_indices = @transform_4, window_bounds = array<i64: 32, 512>}]} {
    %c0 = arith.constant 0 : index
    %c0_0 = arith.constant 0 : index
    %0 = vector.load %arg2[%c0, %c0_0] : memref<32x256xbf16, #tpu.memory_space<vmem>>, vector<32x256xbf16>
    %c0_1 = arith.constant 0 : index
    %c0_2 = arith.constant 0 : index
    %1 = vector.load %arg1[%c0_1, %c0_2] : memref<256x512xbf16, #tpu.memory_space<vmem>>, vector<256x512xbf16>
    %cst = arith.constant dense<0.000000e+00> : vector<32x512xf32>
    %2 = tpu.matmul %0, %1, %cst {dimension_numbers = #tpu.dot_dimension_numbers<[1], [0], [0], [1], [0, 0, 1, 1], [], []>} : vector<32x256xbf16>, vector<256x512xbf16>, vector<32x512xf32> -> vector<32x512xf32>
    %cst_3 = arith.constant dense<0.000000e+00> : vector<32xf32>
    %3 = vector.multi_reduction <add>, %2, %cst_3 [1] : vector<32x512xf32> to vector<32xf32>
    %4 = vector.shape_cast %3 : vector<32xf32> to vector<32x1xf32>
    %cst_4 = arith.constant 0.001953125 : f32
    %5 = vector.broadcast %cst_4 : f32 to vector<32x1xf32>
    %6 = arith.mulf %4, %5 : vector<32x1xf32>
    %7 = vector.broadcast %6 : vector<32x1xf32> to vector<32x512xf32>
    %8 = arith.subf %2, %7 : vector<32x512xf32>
    %9 = arith.mulf %8, %8 : vector<32x512xf32>
    %cst_5 = arith.constant dense<0.000000e+00> : vector<32xf32>
    %10 = vector.multi_reduction <add>, %9, %cst_5 [1] : vector<32x512xf32> to vector<32xf32>
    %11 = vector.shape_cast %10 : vector<32xf32> to vector<32x1xf32>
    %cst_6 = arith.constant 0.001953125 : f32
    %12 = vector.broadcast %cst_6 : f32 to vector<32x1xf32>
    %13 = arith.mulf %11, %12 : vector<32x1xf32>
    %c0_7 = arith.constant 0 : index
    %c0_8 = arith.constant 0 : index
    %14 = vector.load %arg3[%c0_7, %c0_8] : memref<32x1xf32, #tpu.memory_space<vmem>>, vector<32x1xf32>
    %cst_9 = arith.constant 9.99999974E-6 : f32
    %15 = vector.broadcast %cst_9 : f32 to vector<32x1xf32>
    %16 = arith.addf %13, %15 : vector<32x1xf32>
    %17 = math.rsqrt %16 : vector<32x1xf32>
    %18 = arith.mulf %14, %17 : vector<32x1xf32>
    %19 = vector.broadcast %18 : vector<32x1xf32> to vector<32x512xf32>
    %20 = arith.mulf %8, %19 : vector<32x512xf32>
    %c0_10 = arith.constant 0 : index
    %c0_11 = arith.constant 0 : index
    %21 = vector.load %arg4[%c0_10, %c0_11] : memref<32x1xf32, #tpu.memory_space<vmem>>, vector<32x1xf32>
    %22 = vector.broadcast %21 : vector<32x1xf32> to vector<32x512xf32>
    %23 = arith.addf %20, %22 : vector<32x512xf32>
    %cst_12 = arith.constant 0.000000e+00 : f32
    %24 = vector.broadcast %cst_12 : f32 to vector<32x512xf32>
    %25 = arith.cmpf oge, %23, %24 : vector<32x512xf32>
    %cst_13 = arith.constant 2.000000e-01 : f32
    %26 = vector.broadcast %cst_13 : f32 to vector<32x512xf32>
    %27 = arith.mulf %26, %23 : vector<32x512xf32>
    %28 = arith.select %25, %23, %27 : vector<32x512xi1>, vector<32x512xf32>
    %29 = arith.truncf %28 : vector<32x512xf32> to vector<32x512xbf16>
    %c0_14 = arith.constant 0 : index
    %c0_15 = arith.constant 0 : index
    %30 = vector.load %arg5[%c0_14, %c0_15] : memref<32x512xbf16, #tpu.memory_space<vmem>>, vector<32x512xbf16>
    tpu.vector_store %arg5[%c0_14, %c0_15], %29 {strides = array<i32>} : memref<32x512xbf16, #tpu.memory_space<vmem>>, vector<32x512xbf16>,
    return
  }
  func.func @transform_0(%arg0: i32) -> (i32, i32) {
    %c0_i32 = arith.constant 0 : i32
    %c0_i32_0 = arith.constant 0 : i32
    %c0_i32_1 = arith.constant 0 : i32
    return %c0_i32, %c0_i32_0 : i32, i32
  }
  func.func @transform_1(%arg0: i32) -> (i32, i32) {
    %c0_i32 = arith.constant 0 : i32
    %c0_i32_0 = arith.constant 0 : i32
    %c0_i32_1 = arith.constant 0 : i32
    return %c0_i32, %c0_i32_0 : i32, i32
  }
  func.func @transform_2(%arg0: i32) -> (i32, i32) {
    %c0_i32 = arith.constant 0 : i32
    %c0_i32_0 = arith.constant 0 : i32
    %c0_i32_1 = arith.constant 0 : i32
    return %c0_i32, %c0_i32_0 : i32, i32
  }
  func.func @transform_3(%arg0: i32) -> (i32, i32) {
    %c0_i32 = arith.constant 0 : i32
    %c0_i32_0 = arith.constant 0 : i32
    %c0_i32_1 = arith.constant 0 : i32
    return %c0_i32, %c0_i32_0 : i32, i32
  }
  func.func @transform_4(%arg0: i32) -> (i32, i32) {
    %c0_i32 = arith.constant 0 : i32
    %c0_i32_0 = arith.constant 0 : i32
    %c0_i32_1 = arith.constant 0 : i32
    return %c0_i32, %c0_i32_0 : i32, i32
  }
}

module attributes {stable_mosaic.version = 11 : i64} {
  func.func @_tail_kernel(%arg0: i32, %arg1: memref<512x256xbf16, #tpu.memory_space<vmem>>, %arg2: memref<1x512xbf16, #tpu.memory_space<vmem>>, %arg3: memref<1x256xf32, #tpu.memory_space<vmem>>, %arg4: memref<1x1xf32, #tpu.memory_space<vmem>>) attributes {dimension_semantics = [#tpu.dimension_semantics<arbitrary>], iteration_bounds = array<i64: 1>, scalar_prefetch = 0 : i64, scratch_operands = 0 : i64, tpu.core_type = #tpu.core_type<tc>, window_params = [{pipeline_mode = #tpu.pipeline_mode<synchronous>, transform_indices = @transform_0, window_bounds = array<i64: 512, 256>}, {pipeline_mode = #tpu.pipeline_mode<synchronous>, transform_indices = @transform_1, window_bounds = array<i64: 1, 512>}, {pipeline_mode = #tpu.pipeline_mode<synchronous>, transform_indices = @transform_2, window_bounds = array<i64: 1, 256>}, {pipeline_mode = #tpu.pipeline_mode<synchronous>, transform_indices = @transform_3, window_bounds = array<i64: 1, 1>}]} {
    %c0 = arith.constant 0 : index
    %c0_0 = arith.constant 0 : index
    %0 = vector.load %arg2[%c0, %c0_0] : memref<1x512xbf16, #tpu.memory_space<vmem>>, vector<1x512xbf16>
    %c0_1 = arith.constant 0 : index
    %c0_2 = arith.constant 0 : index
    %1 = vector.load %arg1[%c0_1, %c0_2] : memref<512x256xbf16, #tpu.memory_space<vmem>>, vector<512x256xbf16>
    %cst = arith.constant dense<0.000000e+00> : vector<1x256xf32>
    %2 = tpu.matmul %0, %1, %cst {dimension_numbers = #tpu.dot_dimension_numbers<[1], [0], [0], [1], [0, 0, 1, 1], [], []>} : vector<1x512xbf16>, vector<512x256xbf16>, vector<1x256xf32> -> vector<1x256xf32>
    %c0_3 = arith.constant 0 : index
    %c0_4 = arith.constant 0 : index
    %3 = vector.load %arg3[%c0_3, %c0_4] : memref<1x256xf32, #tpu.memory_space<vmem>>, vector<1x256xf32>
    %4 = arith.mulf %2, %3 : vector<1x256xf32>
    %cst_5 = arith.constant dense<0.000000e+00> : vector<1xf32>
    %5 = vector.multi_reduction <add>, %4, %cst_5 [1] : vector<1x256xf32> to vector<1xf32>
    %6 = vector.shape_cast %5 : vector<1xf32> to vector<1x1xf32>
    %7 = arith.negf %6 : vector<1x1xf32>
    %8 = math.exp %7 : vector<1x1xf32>
    %cst_6 = arith.constant 1.000000e+00 : f32
    %9 = vector.broadcast %cst_6 : f32 to vector<1x1xf32>
    %10 = arith.addf %9, %8 : vector<1x1xf32>
    %11 = arith.divf %9, %10 : vector<1x1xf32>
    %c0_7 = arith.constant 0 : index
    %c0_8 = arith.constant 0 : index
    %12 = vector.load %arg4[%c0_7, %c0_8] : memref<1x1xf32, #tpu.memory_space<vmem>>, vector<1x1xf32>
    tpu.vector_store %arg4[%c0_7, %c0_8], %11 {strides = array<i32>} : memref<1x1xf32, #tpu.memory_space<vmem>>, vector<1x1xf32>,
    return
  }
  func.func @transform_0(%arg0: i32) -> (i32, i32) {
    %c0_i32 = arith.constant 0 : i32
    %c0_i32_0 = arith.constant 0 : i32
    %c0_i32_1 = arith.constant 0 : i32
    return %c0_i32, %c0_i32_0 : i32, i32
  }
  func.func @transform_1(%arg0: i32) -> (i32, i32) {
    %c0_i32 = arith.constant 0 : i32
    %c0_i32_0 = arith.constant 0 : i32
    %c0_i32_1 = arith.constant 0 : i32
    return %c0_i32, %c0_i32_0 : i32, i32
  }
  func.func @transform_2(%arg0: i32) -> (i32, i32) {
    %c0_i32 = arith.constant 0 : i32
    %c0_i32_0 = arith.constant 0 : i32
    %c0_i32_1 = arith.constant 0 : i32
    return %c0_i32, %c0_i32_0 : i32, i32
  }
  func.func @transform_3(%arg0: i32) -> (i32, i32) {
    %c0_i32 = arith.constant 0 : i32
    %c0_i32_0 = arith.constant 0 : i32
    %c0_i32_1 = arith.constant 0 : i32
    return %c0_i32, %c0_i32_0 : i32, i32
  }
}

</mosaic_0001>

<bundles_post_ra>
// kernel: discriminator_forward.5
= control target key start
LH: loop header
LB: loop body
LE: loop exit
PB: predicated region body
PF: predicated region fallthrough
CT: control target
= control target key end

     0   :  { %s4042_s9 = smov 0   ;;  %s4044_s10 = smov 0   ;;  %s4834_s0 = inlined_call_operand.vmem [shape: bf16[48,32768], index: 0, kind: input, shape index: {}]   ;;  %s4835_s1 = inlined_call_operand.vmem [shape: bf16[4,48], index: 1, kind: input, shape index: {}]   ;;  %s4836_s2 = inlined_call_operand.vmem [shape: bf16[4,32768], index: 2, kind: output, shape index: {}]  }
   0x1   :  { %s4046_s11 = smov 0  }
   0x2 LB: > { %s3704_s12 = sadd.s32 4294967295, %s4023_s11   ;;  %s4059_s13 = sadd.s32 1, %s4023_s11   ;;  %s4023_s11 = sphi %s4046_s11, %s4839_s11   ;;  %s4019_s10 = sphi %s4044_s10, %s4838_s10   ;;  %s4015_s9 = sphi %s4042_s9, %s4837_s9  }
   0x3   : > { %s16_s14 = ssub.s32 %s4023_s11, %s4059_s13  ;;  %s19_s15 = sadd.s32 1, %s4019_s10 }
   0x4   : > { %p17_p0 = scmp.eq.s32.totalorder %s16_s14, 0  ;;  %p26_p1 = scmp.ne.s32.totalorder %s4019_s10, %s4015_s9 }
   0x5   : > { %p27_p2 = scmp.eq.s32.totalorder %s4023_s11, 0  ;;  %p3707_p4 = scmp.ge.s32.totalorder %s4023_s11, 4 }
   0x6   : > { %s4068_s16 = scalar_select %p17_p0, %s4019_s10, %s19_s15  }
   0x7   : > { %p28_p3 = por %p27_p2, %p26_p1  ;;  %102 = sbr.rel (%p3707_p4) target bundleno = 113 (0x71), region = 20 }
   0xc   : > { %105 = sbr.rel (!%p28_p3) target bundleno = 113 (0x71), region = 24  ;;  %s107_s17 = sand.u32 (%p28_p3), 1, %s4019_s10  }
   0xd   : > { %s3971_s18 = sshll.u32 (%p28_p3), %s4023_s11, 8  ;;  %s3972_s19 = smul.u32 (%p28_p3), 1536, %s107_s17 }
   0xe   : > { %s4076_s22 = scalar_lea.vmem (%p28_p3), %s4834_s0, %s3971_s18 }
   0xf   : > { %v125_v0 = vld [vmem:[%s4076_s22] sm:$0xff] (%p28_p3)  ;;  %v127_v1 = vld [vmem:[%s4076_s22 + $0x8] sm:$0xff] (%p28_p3)  ;;  %v129_v2 = vld [vmem:[%s4076_s22 + $0x10] sm:$0xff] (%p28_p3)  ;;  %s4084_s23 = scalar_lea.vmem (%p28_p3), [#allocation2], %s3972_s19 }
  0x10   : > { %v131_v3 = vld [vmem:[%s4076_s22 + $0x18] sm:$0xff] (%p28_p3)  ;;  %v133_v4 = vld [vmem:[%s4076_s22 + $0x20] sm:$0xff] (%p28_p3)  ;;  %v135_v5 = vld [vmem:[%s4076_s22 + $0x28] sm:$0xff] (%p28_p3)  ;;  %126 = vst [vmem:[%s4084_s23] sm:$0xff] (%p28_p3), %v125_v0 }
  0x11   : > { %128 = vst [vmem:[%s4084_s23 + $0x8] sm:$0xff] %v127_v1  ;;  %130 = vst [vmem:[%s4084_s23 + $0x10] sm:$0xff] %v129_v2  ;;  %v137_v6 = vld [vmem:[%s4076_s22 + $0x30] sm:$0xff]  ;;  %v139_v7 = vld [vmem:[%s4076_s22 + $0x38] sm:$0xff] }
  0x12   : > { %132 = vst [vmem:[%s4084_s23 + $0x18] sm:$0xff] %v131_v3  ;;  %134 = vst [vmem:[%s4084_s23 + $0x20] sm:$0xff] %v133_v4  ;;  %v141_v8 = vld [vmem:[%s4076_s22 + $0x40] sm:$0xff]  ;;  %v143_v9 = vld [vmem:[%s4076_s22 + $0x48] sm:$0xff] }
  0x13   : > { %136 = vst [vmem:[%s4084_s23 + $0x28] sm:$0xff] %v135_v5  ;;  %138 = vst [vmem:[%s4084_s23 + $0x30] sm:$0xff] %v137_v6  ;;  %v145_v10 = vld [vmem:[%s4076_s22 + $0x50] sm:$0xff]  ;;  %v147_v11 = vld [vmem:[%s4076_s22 + $0x58] sm:$0xff] }
  0x14   : > { %140 = vst [vmem:[%s4084_s23 + $0x38] sm:$0xff] %v139_v7  ;;  %142 = vst [vmem:[%s4084_s23 + $0x40] sm:$0xff] %v141_v8  ;;  %v149_v12 = vld [vmem:[%s4076_s22 + $0x60] sm:$0xff]  ;;  %v151_v13 = vld [vmem:[%s4076_s22 + $0x68] sm:$0xff] }
  0x15   : > { %144 = vst [vmem:[%s4084_s23 + $0x48] sm:$0xff] %v143_v9  ;;  %146 = vst [vmem:[%s4084_s23 + $0x50] sm:$0xff] %v145_v10  ;;  %v153_v14 = vld [vmem:[%s4076_s22 + $0x70] sm:$0xff]  ;;  %v155_v15 = vld [vmem:[%s4076_s22 + $0x78] sm:$0xff] }
  0x16   : > { %148 = vst [vmem:[%s4084_s23 + $0x58] sm:$0xff] %v147_v11  ;;  %150 = vst [vmem:[%s4084_s23 + $0x60] sm:$0xff] %v149_v12  ;;  %v157_v16 = vld [vmem:[%s4076_s22 + $0x80] sm:$0xff]  ;;  %v159_v17 = vld [vmem:[%s4076_s22 + $0x88] sm:$0xff] }
  0x17   : > { %152 = vst [vmem:[%s4084_s23 + $0x68] sm:$0xff] %v151_v13  ;;  %154 = vst [vmem:[%s4084_s23 + $0x70] sm:$0xff] %v153_v14  ;;  %v161_v18 = vld [vmem:[%s4076_s22 + $0x90] sm:$0xff]  ;;  %v163_v19 = vld [vmem:[%s4076_s22 + $0x98] sm:$0xff] }
  0x18   : > { %156 = vst [vmem:[%s4084_s23 + $0x78] sm:$0xff] %v155_v15  ;;  %158 = vst [vmem:[%s4084_s23 + $0x80] sm:$0xff] %v157_v16  ;;  %v165_v20 = vld [vmem:[%s4076_s22 + $0xa0] sm:$0xff]  ;;  %v167_v21 = vld [vmem:[%s4076_s22 + $0xa8] sm:$0xff] }
  0x19   : > { %160 = vst [vmem:[%s4084_s23 + $0x88] sm:$0xff] %v159_v17  ;;  %162 = vst [vmem:[%s4084_s23 + $0x90] sm:$0xff] %v161_v18  ;;  %v169_v22 = vld [vmem:[%s4076_s22 + $0xb0] sm:$0xff]  ;;  %v171_v23 = vld [vmem:[%s4076_s22 + $0xb8] sm:$0xff] }
  0x1a   : > { %164 = vst [vmem:[%s4084_s23 + $0x98] sm:$0xff] %v163_v19  ;;  %166 = vst [vmem:[%s4084_s23 + $0xa0] sm:$0xff] %v165_v20  ;;  %v173_v24 = vld [vmem:[%s4076_s22 + $0xc0] sm:$0xff]  ;;  %v175_v25 = vld [vmem:[%s4076_s22 + $0xc8] sm:$0xff] }
  0x1b   : > { %168 = vst [vmem:[%s4084_s23 + $0xa8] sm:$0xff] %v167_v21  ;;  %170 = vst [vmem:[%s4084_s23 + $0xb0] sm:$0xff] %v169_v22  ;;  %v177_v26 = vld [vmem:[%s4076_s22 + $0xd0] sm:$0xff]  ;;  %v179_v27 = vld [vmem:[%s4076_s22 + $0xd8] sm:$0xff] }
  0x1c   : > { %172 = vst [vmem:[%s4084_s23 + $0xb8] sm:$0xff] %v171_v23  ;;  %174 = vst [vmem:[%s4084_s23 + $0xc0] sm:$0xff] %v173_v24  ;;  %v181_v28 = vld [vmem:[%s4076_s22 + $0xe0] sm:$0xff]  ;;  %v183_v29 = vld [vmem:[%s4076_s22 + $0xe8] sm:$0xff] }
  0x1d   : > { %176 = vst [vmem:[%s4084_s23 + $0xc8] sm:$0xff] %v175_v25  ;;  %178 = vst [vmem:[%s4084_s23 + $0xd0] sm:$0xff] %v177_v26  ;;  %v185_v30 = vld [vmem:[%s4076_s22 + $0xf0] sm:$0xff]  ;;  %v187_v31 = vld [vmem:[%s4076_s22 + $0xf8] sm:$0xff] }
  0x1e   : > { %180 = vst [vmem:[%s4084_s23 + $0xd8] sm:$0xff] %v179_v27  ;;  %182 = vst [vmem:[%s4084_s23 + $0xe0] sm:$0xff] %v181_v28  ;;  %v189_v32 = vld [vmem:[%s4076_s22 + $0x400] sm:$0xff]  ;;  %v191_v33 = vld [vmem:[%s4076_s22 + $0x408] sm:$0xff] }
  0x1f   : > { %184 = vst [vmem:[%s4084_s23 + $0xe8] sm:$0xff] %v183_v29  ;;  %186 = vst [vmem:[%s4084_s23 + $0xf0] sm:$0xff] %v185_v30  ;;  %v193_v34 = vld [vmem:[%s4076_s22 + $0x410] sm:$0xff]  ;;  %v195_v35 = vld [vmem:[%s4076_s22 + $0x418] sm:$0xff] }
  0x20   : > { %188 = vst [vmem:[%s4084_s23 + $0xf8] sm:$0xff] %v187_v31  ;;  %190 = vst [vmem:[%s4084_s23 + $0x100] sm:$0xff] %v189_v32  ;;  %v197_v36 = vld [vmem:[%s4076_s22 + $0x420] sm:$0xff]  ;;  %v199_v37 = vld [vmem:[%s4076_s22 + $0x428] sm:$0xff] }
  0x21   : > { %192 = vst [vmem:[%s4084_s23 + $0x108] sm:$0xff] %v191_v33  ;;  %194 = vst [vmem:[%s4084_s23 + $0x110] sm:$0xff] %v193_v34  ;;  %v201_v38 = vld [vmem:[%s4076_s22 + $0x430] sm:$0xff]  ;;  %v203_v39 = vld [vmem:[%s4076_s22 + $0x438] sm:$0xff] }
  0x22   : > { %196 = vst [vmem:[%s4084_s23 + $0x118] sm:$0xff] %v195_v35  ;;  %198 = vst [vmem:[%s4084_s23 + $0x120] sm:$0xff] %v197_v36  ;;  %v205_v40 = vld [vmem:[%s4076_s22 + $0x440] sm:$0xff]  ;;  %v207_v41 = vld [vmem:[%s4076_s22 + $0x448] sm:$0xff] }
  0x23   : > { %200 = vst [vmem:[%s4084_s23 + $0x128] sm:$0xff] %v199_v37  ;;  %202 = vst [vmem:[%s4084_s23 + $0x130] sm:$0xff] %v201_v38  ;;  %v209_v42 = vld [vmem:[%s4076_s22 + $0x450] sm:$0xff]  ;;  %v211_v43 = vld [vmem:[%s4076_s22 + $0x458] sm:$0xff] }
  0x24   : > { %204 = vst [vmem:[%s4084_s23 + $0x138] sm:$0xff] %v203_v39  ;;  %206 = vst [vmem:[%s4084_s23 + $0x140] sm:$0xff] %v205_v40  ;;  %v213_v44 = vld [vmem:[%s4076_s22 + $0x460] sm:$0xff]  ;;  %v215_v45 = vld [vmem:[%s4076_s22 + $0x468] sm:$0xff] }
  0x25   : > { %208 = vst [vmem:[%s4084_s23 + $0x148] sm:$0xff] %v207_v41  ;;  %210 = vst [vmem:[%s4084_s23 + $0x150] sm:$0xff] %v209_v42  ;;  %v217_v46 = vld [vmem:[%s4076_s22 + $0x470] sm:$0xff]  ;;  %v219_v47 = vld [vmem:[%s4076_s22 + $0x478] sm:$0xff] }
  0x26   : > { %212 = vst [vmem:[%s4084_s23 + $0x158] sm:$0xff] %v211_v43  ;;  %214 = vst [vmem:[%s4084_s23 + $0x160] sm:$0xff] %v213_v44  ;;  %v221_v48 = vld [vmem:[%s4076_s22 + $0x480] sm:$0xff]  ;;  %v223_v49 = vld [vmem:[%s4076_s22 + $0x488] sm:$0xff] }
  0x27   : > { %216 = vst [vmem:[%s4084_s23 + $0x168] sm:$0xff] %v215_v45  ;;  %218 = vst [vmem:[%s4084_s23 + $0x170] sm:$0xff] %v217_v46  ;;  %v225_v50 = vld [vmem:[%s4076_s22 + $0x490] sm:$0xff]  ;;  %v227_v51 = vld [vmem:[%s4076_s22 + $0x498] sm:$0xff] }
  0x28   : > { %220 = vst [vmem:[%s4084_s23 + $0x178] sm:$0xff] %v219_v47  ;;  %222 = vst [vmem:[%s4084_s23 + $0x180] sm:$0xff] %v221_v48  ;;  %v229_v52 = vld [vmem:[%s4076_s22 + $0x4a0] sm:$0xff]  ;;  %v231_v53 = vld [vmem:[%s4076_s22 + $0x4a8] sm:$0xff] }
  0x29   : > { %224 = vst [vmem:[%s4084_s23 + $0x188] sm:$0xff] %v223_v49  ;;  %226 = vst [vmem:[%s4084_s23 + $0x190] sm:$0xff] %v225_v50  ;;  %v233_v54 = vld [vmem:[%s4076_s22 + $0x4b0] sm:$0xff]  ;;  %v235_v55 = vld [vmem:[%s4076_s22 + $0x4b8] sm:$0xff] }
  0x2a   : > { %228 = vst [vmem:[%s4084_s23 + $0x198] sm:$0xff] %v227_v51  ;;  %230 = vst [vmem:[%s4084_s23 + $0x1a0] sm:$0xff] %v229_v52  ;;  %v237_v56 = vld [vmem:[%s4076_s22 + $0x4c0] sm:$0xff]  ;;  %v239_v57 = vld [vmem:[%s4076_s22 + $0x4c8] sm:$0xff] }
  0x2b   : > { %232 = vst [vmem:[%s4084_s23 + $0x1a8] sm:$0xff] %v231_v53  ;;  %234 = vst [vmem:[%s4084_s23 + $0x1b0] sm:$0xff] %v233_v54  ;;  %v241_v58 = vld [vmem:[%s4076_s22 + $0x4d0] sm:$0xff]  ;;  %v243_v59 = vld [vmem:[%s4076_s22 + $0x4d8] sm:$0xff] }
  0x2c   : > { %236 = vst [vmem:[%s4084_s23 + $0x1b8] sm:$0xff] %v235_v55  ;;  %238 = vst [vmem:[%s4084_s23 + $0x1c0] sm:$0xff] %v237_v56  ;;  %v245_v60 = vld [vmem:[%s4076_s22 + $0x4e0] sm:$0xff]  ;;  %v247_v61 = vld [vmem:[%s4076_s22 + $0x4e8] sm:$0xff] }
  0x2d   : > { %240 = vst [vmem:[%s4084_s23 + $0x1c8] sm:$0xff] %v239_v57  ;;  %242 = vst [vmem:[%s4084_s23 + $0x1d0] sm:$0xff] %v241_v58  ;;  %v249_v62 = vld [vmem:[%s4076_s22 + $0x4f0] sm:$0xff]  ;;  %v251_v63 = vld [vmem:[%s4076_s22 + $0x4f8] sm:$0xff] }
  0x2e   : > { %244 = vst [vmem:[%s4084_s23 + $0x1d8] sm:$0xff] %v243_v59  ;;  %246 = vst [vmem:[%s4084_s23 + $0x1e0] sm:$0xff] %v245_v60  ;;  %v253_v0 = vld [vmem:[%s4076_s22 + $0x800] sm:$0xff]  ;;  %v255_v1 = vld [vmem:[%s4076_s22 + $0x808] sm:$0xff] }
  0x2f   : > { %248 = vst [vmem:[%s4084_s23 + $0x1e8] sm:$0xff] %v247_v61  ;;  %250 = vst [vmem:[%s4084_s23 + $0x1f0] sm:$0xff] %v249_v62  ;;  %v257_v2 = vld [vmem:[%s4076_s22 + $0x810] sm:$0xff]  ;;  %v259_v3 = vld [vmem:[%s4076_s22 + $0x818] sm:$0xff] }
  0x30   : > { %252 = vst [vmem:[%s4084_s23 + $0x1f8] sm:$0xff] %v251_v63  ;;  %254 = vst [vmem:[%s4084_s23 + $0x200] sm:$0xff] %v253_v0  ;;  %v261_v4 = vld [vmem:[%s4076_s22 + $0x820] sm:$0xff]  ;;  %v263_v5 = vld [vmem:[%s4076_s22 + $0x828] sm:$0xff] }
  0x31   : > { %256 = vst [vmem:[%s4084_s23 + $0x208] sm:$0xff] %v255_v1  ;;  %258 = vst [vmem:[%s4084_s23 + $0x210] sm:$0xff] %v257_v2  ;;  %v265_v6 = vld [vmem:[%s4076_s22 + $0x830] sm:$0xff]  ;;  %v267_v7 = vld [vmem:[%s4076_s22 + $0x838] sm:$0xff] }
  0x32   : > { %260 = vst [vmem:[%s4084_s23 + $0x218] sm:$0xff] %v259_v3  ;;  %262 = vst [vmem:[%s4084_s23 + $0x220] sm:$0xff] %v261_v4  ;;  %v269_v8 = vld [vmem:[%s4076_s22 + $0x840] sm:$0xff]  ;;  %v271_v9 = vld [vmem:[%s4076_s22 + $0x848] sm:$0xff] }
  0x33   : > { %264 = vst [vmem:[%s4084_s23 + $0x228] sm:$0xff] %v263_v5  ;;  %266 = vst [vmem:[%s4084_s23 + $0x230] sm:$0xff] %v265_v6  ;;  %v273_v10 = vld [vmem:[%s4076_s22 + $0x850] sm:$0xff]  ;;  %v275_v11 = vld [vmem:[%s4076_s22 + $0x858] sm:$0xff] }
  0x34   : > { %268 = vst [vmem:[%s4084_s23 + $0x238] sm:$0xff] %v267_v7  ;;  %270 = vst [vmem:[%s4084_s23 + $0x240] sm:$0xff] %v269_v8  ;;  %v277_v12 = vld [vmem:[%s4076_s22 + $0x860] sm:$0xff]  ;;  %v279_v13 = vld [vmem:[%s4076_s22 + $0x868] sm:$0xff] }
  0x35   : > { %272 = vst [vmem:[%s4084_s23 + $0x248] sm:$0xff] %v271_v9  ;;  %274 = vst [vmem:[%s4084_s23 + $0x250] sm:$0xff] %v273_v10  ;;  %v281_v14 = vld [vmem:[%s4076_s22 + $0x870] sm:$0xff]  ;;  %v283_v15 = vld [vmem:[%s4076_s22 + $0x878] sm:$0xff] }
  0x36   : > { %276 = vst [vmem:[%s4084_s23 + $0x258] sm:$0xff] %v275_v11  ;;  %278 = vst [vmem:[%s4084_s23 + $0x260] sm:$0xff] %v277_v12  ;;  %v285_v16 = vld [vmem:[%s4076_s22 + $0x880] sm:$0xff]  ;;  %v287_v17 = vld [vmem:[%s4076_s22 + $0x888] sm:$0xff] }
  0x37   : > { %280 = vst [vmem:[%s4084_s23 + $0x268] sm:$0xff] %v279_v13  ;;  %282 = vst [vmem:[%s4084_s23 + $0x270] sm:$0xff] %v281_v14  ;;  %v289_v18 = vld [vmem:[%s4076_s22 + $0x890] sm:$0xff]  ;;  %v291_v19 = vld [vmem:[%s4076_s22 + $0x898] sm:$0xff] }
  0x38   : > { %284 = vst [vmem:[%s4084_s23 + $0x278] sm:$0xff] %v283_v15  ;;  %286 = vst [vmem:[%s4084_s23 + $0x280] sm:$0xff] %v285_v16  ;;  %v293_v20 = vld [vmem:[%s4076_s22 + $0x8a0] sm:$0xff]  ;;  %v295_v21 = vld [vmem:[%s4076_s22 + $0x8a8] sm:$0xff] }
  0x39   : > { %288 = vst [vmem:[%s4084_s23 + $0x288] sm:$0xff] %v287_v17  ;;  %290 = vst [vmem:[%s4084_s23 + $0x290] sm:$0xff] %v289_v18  ;;  %v297_v22 = vld [vmem:[%s4076_s22 + $0x8b0] sm:$0xff]  ;;  %v299_v23 = vld [vmem:[%s4076_s22 + $0x8b8] sm:$0xff] }
  0x3a   : > { %292 = vst [vmem:[%s4084_s23 + $0x298] sm:$0xff] %v291_v19  ;;  %294 = vst [vmem:[%s4084_s23 + $0x2a0] sm:$0xff] %v293_v20  ;;  %v301_v24 = vld [vmem:[%s4076_s22 + $0x8c0] sm:$0xff]  ;;  %v303_v25 = vld [vmem:[%s4076_s22 + $0x8c8] sm:$0xff] }
  0x3b   : > { %296 = vst [vmem:[%s4084_s23 + $0x2a8] sm:$0xff] %v295_v21  ;;  %298 = vst [vmem:[%s4084_s23 + $0x2b0] sm:$0xff] %v297_v22  ;;  %v305_v26 = vld [vmem:[%s4076_s22 + $0x8d0] sm:$0xff]  ;;  %v307_v27 = vld [vmem:[%s4076_s22 + $0x8d8] sm:$0xff] }
  0x3c   : > { %300 = vst [vmem:[%s4084_s23 + $0x2b8] sm:$0xff] %v299_v23  ;;  %302 = vst [vmem:[%s4084_s23 + $0x2c0] sm:$0xff] %v301_v24  ;;  %v309_v28 = vld [vmem:[%s4076_s22 + $0x8e0] sm:$0xff]  ;;  %v311_v29 = vld [vmem:[%s4076_s22 + $0x8e8] sm:$0xff] }
  0x3d   : > { %304 = vst [vmem:[%s4084_s23 + $0x2c8] sm:$0xff] %v303_v25  ;;  %306 = vst [vmem:[%s4084_s23 + $0x2d0] sm:$0xff] %v305_v26  ;;  %v313_v30 = vld [vmem:[%s4076_s22 + $0x8f0] sm:$0xff]  ;;  %v315_v31 = vld [vmem:[%s4076_s22 + $0x8f8] sm:$0xff] }
  0x3e   : > { %308 = vst [vmem:[%s4084_s23 + $0x2d8] sm:$0xff] %v307_v27  ;;  %310 = vst [vmem:[%s4084_s23 + $0x2e0] sm:$0xff] %v309_v28  ;;  %v317_v32 = vld [vmem:[%s4076_s22 + $0xc00] sm:$0xff]  ;;  %v319_v33 = vld [vmem:[%s4076_s22 + $0xc08] sm:$0xff] }
  0x3f   : > { %312 = vst [vmem:[%s4084_s23 + $0x2e8] sm:$0xff] %v311_v29  ;;  %314 = vst [vmem:[%s4084_s23 + $0x2f0] sm:$0xff] %v313_v30  ;;  %v321_v34 = vld [vmem:[%s4076_s22 + $0xc10] sm:$0xff]  ;;  %v323_v35 = vld [vmem:[%s4076_s22 + $0xc18] sm:$0xff] }
  0x40   : > { %316 = vst [vmem:[%s4084_s23 + $0x2f8] sm:$0xff] %v315_v31  ;;  %318 = vst [vmem:[%s4084_s23 + $0x300] sm:$0xff] %v317_v32  ;;  %v325_v36 = vld [vmem:[%s4076_s22 + $0xc20] sm:$0xff]  ;;  %v327_v37 = vld [vmem:[%s4076_s22 + $0xc28] sm:$0xff] }
  0x41   : > { %320 = vst [vmem:[%s4084_s23 + $0x308] sm:$0xff] %v319_v33  ;;  %322 = vst [vmem:[%s4084_s23 + $0x310] sm:$0xff] %v321_v34  ;;  %v329_v38 = vld [vmem:[%s4076_s22 + $0xc30] sm:$0xff]  ;;  %v331_v39 = vld [vmem:[%s4076_s22 + $0xc38] sm:$0xff] }
  0x42   : > { %324 = vst [vmem:[%s4084_s23 + $0x318] sm:$0xff] %v323_v35  ;;  %326 = vst [vmem:[%s4084_s23 + $0x320] sm:$0xff] %v325_v36  ;;  %v333_v40 = vld [vmem:[%s4076_s22 + $0xc40] sm:$0xff]  ;;  %v335_v41 = vld [vmem:[%s4076_s22 + $0xc48] sm:$0xff] }
  0x43   : > { %328 = vst [vmem:[%s4084_s23 + $0x328] sm:$0xff] %v327_v37  ;;  %330 = vst [vmem:[%s4084_s23 + $0x330] sm:$0xff] %v329_v38  ;;  %v337_v42 = vld [vmem:[%s4076_s22 + $0xc50] sm:$0xff]  ;;  %v339_v43 = vld [vmem:[%s4076_s22 + $0xc58] sm:$0xff] }
  0x44   : > { %332 = vst [vmem:[%s4084_s23 + $0x338] sm:$0xff] %v331_v39  ;;  %334 = vst [vmem:[%s4084_s23 + $0x340] sm:$0xff] %v333_v40  ;;  %v341_v44 = vld [vmem:[%s4076_s22 + $0xc60] sm:$0xff]  ;;  %v343_v45 = vld [vmem:[%s4076_s22 + $0xc68] sm:$0xff] }
  0x45   : > { %336 = vst [vmem:[%s4084_s23 + $0x348] sm:$0xff] %v335_v41  ;;  %338 = vst [vmem:[%s4084_s23 + $0x350] sm:$0xff] %v337_v42  ;;  %v345_v46 = vld [vmem:[%s4076_s22 + $0xc70] sm:$0xff]  ;;  %v347_v47 = vld [vmem:[%s4076_s22 + $0xc78] sm:$0xff] }
  0x46   : > { %340 = vst [vmem:[%s4084_s23 + $0x358] sm:$0xff] %v339_v43  ;;  %342 = vst [vmem:[%s4084_s23 + $0x360] sm:$0xff] %v341_v44  ;;  %v349_v48 = vld [vmem:[%s4076_s22 + $0xc80] sm:$0xff]  ;;  %v351_v49 = vld [vmem:[%s4076_s22 + $0xc88] sm:$0xff] }
  0x47   : > { %344 = vst [vmem:[%s4084_s23 + $0x368] sm:$0xff] %v343_v45  ;;  %346 = vst [vmem:[%s4084_s23 + $0x370] sm:$0xff] %v345_v46  ;;  %v353_v50 = vld [vmem:[%s4076_s22 + $0xc90] sm:$0xff]  ;;  %v355_v51 = vld [vmem:[%s4076_s22 + $0xc98] sm:$0xff] }
  0x48   : > { %348 = vst [vmem:[%s4084_s23 + $0x378] sm:$0xff] %v347_v47  ;;  %350 = vst [vmem:[%s4084_s23 + $0x380] sm:$0xff] %v349_v48  ;;  %v357_v52 = vld [vmem:[%s4076_s22 + $0xca0] sm:$0xff]  ;;  %v359_v53 = vld [vmem:[%s4076_s22 + $0xca8] sm:$0xff] }
  0x49   : > { %352 = vst [vmem:[%s4084_s23 + $0x388] sm:$0xff] %v351_v49  ;;  %354 = vst [vmem:[%s4084_s23 + $0x390] sm:$0xff] %v353_v50  ;;  %v361_v54 = vld [vmem:[%s4076_s22 + $0xcb0] sm:$0xff]  ;;  %v363_v55 = vld [vmem:[%s4076_s22 + $0xcb8] sm:$0xff] }
  0x4a   : > { %356 = vst [vmem:[%s4084_s23 + $0x398] sm:$0xff] %v355_v51  ;;  %358 = vst [vmem:[%s4084_s23 + $0x3a0] sm:$0xff] %v357_v52  ;;  %v365_v56 = vld [vmem:[%s4076_s22 + $0xcc0] sm:$0xff]  ;;  %v367_v57 = vld [vmem:[%s4076_s22 + $0xcc8] sm:$0xff] }
  0x4b   : > { %360 = vst [vmem:[%s4084_s23 + $0x3a8] sm:$0xff] %v359_v53  ;;  %362 = vst [vmem:[%s4084_s23 + $0x3b0] sm:$0xff] %v361_v54  ;;  %v369_v58 = vld [vmem:[%s4076_s22 + $0xcd0] sm:$0xff]  ;;  %v371_v59 = vld [vmem:[%s4076_s22 + $0xcd8] sm:$0xff] }
  0x4c   : > { %364 = vst [vmem:[%s4084_s23 + $0x3b8] sm:$0xff] %v363_v55  ;;  %366 = vst [vmem:[%s4084_s23 + $0x3c0] sm:$0xff] %v365_v56  ;;  %v373_v60 = vld [vmem:[%s4076_s22 + $0xce0] sm:$0xff]  ;;  %v375_v61 = vld [vmem:[%s4076_s22 + $0xce8] sm:$0xff] }
  0x4d   : > { %368 = vst [vmem:[%s4084_s23 + $0x3c8] sm:$0xff] %v367_v57  ;;  %370 = vst [vmem:[%s4084_s23 + $0x3d0] sm:$0xff] %v369_v58  ;;  %v377_v62 = vld [vmem:[%s4076_s22 + $0xcf0] sm:$0xff]  ;;  %v379_v63 = vld [vmem:[%s4076_s22 + $0xcf8] sm:$0xff] }
  0x4e   : > { %372 = vst [vmem:[%s4084_s23 + $0x3d8] sm:$0xff] %v371_v59  ;;  %374 = vst [vmem:[%s4084_s23 + $0x3e0] sm:$0xff] %v373_v60  ;;  %v381_v0 = vld [vmem:[%s4076_s22 + $0x1000] sm:$0xff]  ;;  %v383_v1 = vld [vmem:[%s4076_s22 + $0x1008] sm:$0xff] }
  0x4f   : > { %376 = vst [vmem:[%s4084_s23 + $0x3e8] sm:$0xff] %v375_v61  ;;  %378 = vst [vmem:[%s4084_s23 + $0x3f0] sm:$0xff] %v377_v62  ;;  %v385_v2 = vld [vmem:[%s4076_s22 + $0x1010] sm:$0xff]  ;;  %v387_v3 = vld [vmem:[%s4076_s22 + $0x1018] sm:$0xff] }
  0x50   : > { %380 = vst [vmem:[%s4084_s23 + $0x3f8] sm:$0xff] %v379_v63  ;;  %382 = vst [vmem:[%s4084_s23 + $0x400] sm:$0xff] %v381_v0  ;;  %v389_v4 = vld [vmem:[%s4076_s22 + $0x1020] sm:$0xff]  ;;  %v391_v5 = vld [vmem:[%s4076_s22 + $0x1028] sm:$0xff] }
  0x51   : > { %384 = vst [vmem:[%s4084_s23 + $0x408] sm:$0xff] %v383_v1  ;;  %386 = vst [vmem:[%s4084_s23 + $0x410] sm:$0xff] %v385_v2  ;;  %v393_v6 = vld [vmem:[%s4076_s22 + $0x1030] sm:$0xff]  ;;  %v395_v7 = vld [vmem:[%s4076_s22 + $0x1038] sm:$0xff] }
  0x52   : > { %388 = vst [vmem:[%s4084_s23 + $0x418] sm:$0xff] %v387_v3  ;;  %390 = vst [vmem:[%s4084_s23 + $0x420] sm:$0xff] %v389_v4  ;;  %v397_v8 = vld [vmem:[%s4076_s22 + $0x1040] sm:$0xff]  ;;  %v399_v9 = vld [vmem:[%s4076_s22 + $0x1048] sm:$0xff] }
  0x53   : > { %392 = vst [vmem:[%s4084_s23 + $0x428] sm:$0xff] %v391_v5  ;;  %394 = vst [vmem:[%s4084_s23 + $0x430] sm:$0xff] %v393_v6  ;;  %v401_v10 = vld [vmem:[%s4076_s22 + $0x1050] sm:$0xff]  ;;  %v403_v11 = vld [vmem:[%s4076_s22 + $0x1058] sm:$0xff] }
  0x54   : > { %396 = vst [vmem:[%s4084_s23 + $0x438] sm:$0xff] %v395_v7  ;;  %398 = vst [vmem:[%s4084_s23 + $0x440] sm:$0xff] %v397_v8  ;;  %v405_v12 = vld [vmem:[%s4076_s22 + $0x1060] sm:$0xff]  ;;  %v407_v13 = vld [vmem:[%s4076_s22 + $0x1068] sm:$0xff] }
  0x55   : > { %400 = vst [vmem:[%s4084_s23 + $0x448] sm:$0xff] %v399_v9  ;;  %402 = vst [vmem:[%s4084_s23 + $0x450] sm:$0xff] %v401_v10  ;;  %v409_v14 = vld [vmem:[%s4076_s22 + $0x1070] sm:$0xff]  ;;  %v411_v15 = vld [vmem:[%s4076_s22 + $0x1078] sm:$0xff] }
  0x56   : > { %404 = vst [vmem:[%s4084_s23 + $0x458] sm:$0xff] %v403_v11  ;;  %406 = vst [vmem:[%s4084_s23 + $0x460] sm:$0xff] %v405_v12  ;;  %v413_v16 = vld [vmem:[%s4076_s22 + $0x1080] sm:$0xff]  ;;  %v415_v17 = vld [vmem:[%s4076_s22 + $0x1088] sm:$0xff] }
  0x57   : > { %408 = vst [vmem:[%s4084_s23 + $0x468] sm:$0xff] %v407_v13  ;;  %410 = vst [vmem:[%s4084_s23 + $0x470] sm:$0xff] %v409_v14  ;;  %v417_v18 = vld [vmem:[%s4076_s22 + $0x1090] sm:$0xff]  ;;  %v419_v19 = vld [vmem:[%s4076_s22 + $0x1098] sm:$0xff] }
  0x58   : > { %412 = vst [vmem:[%s4084_s23 + $0x478] sm:$0xff] %v411_v15  ;;  %414 = vst [vmem:[%s4084_s23 + $0x480] sm:$0xff] %v413_v16  ;;  %v421_v20 = vld [vmem:[%s4076_s22 + $0x10a0] sm:$0xff]  ;;  %v423_v21 = vld [vmem:[%s4076_s22 + $0x10a8] sm:$0xff] }
  0x59   : > { %416 = vst [vmem:[%s4084_s23 + $0x488] sm:$0xff] %v415_v17  ;;  %418 = vst [vmem:[%s4084_s23 + $0x490] sm:$0xff] %v417_v18  ;;  %v425_v22 = vld [vmem:[%s4076_s22 + $0x10b0] sm:$0xff]  ;;  %v427_v23 = vld [vmem:[%s4076_s22 + $0x10b8] sm:$0xff] }
  0x5a   : > { %420 = vst [vmem:[%s4084_s23 + $0x498] sm:$0xff] %v419_v19  ;;  %422 = vst [vmem:[%s4084_s23 + $0x4a0] sm:$0xff] %v421_v20  ;;  %v429_v24 = vld [vmem:[%s4076_s22 + $0x10c0] sm:$0xff]  ;;  %v431_v25 = vld [vmem:[%s4076_s22 + $0x10c8] sm:$0xff] }
  0x5b   : > { %424 = vst [vmem:[%s4084_s23 + $0x4a8] sm:$0xff] %v423_v21  ;;  %426 = vst [vmem:[%s4084_s23 + $0x4b0] sm:$0xff] %v425_v22  ;;  %v433_v26 = vld [vmem:[%s4076_s22 + $0x10d0] sm:$0xff]  ;;  %v435_v27 = vld [vmem:[%s4076_s22 + $0x10d8] sm:$0xff] }
  0x5c   : > { %428 = vst [vmem:[%s4084_s23 + $0x4b8] sm:$0xff] %v427_v23  ;;  %430 = vst [vmem:[%s4084_s23 + $0x4c0] sm:$0xff] %v429_v24  ;;  %v437_v28 = vld [vmem:[%s4076_s22 + $0x10e0] sm:$0xff]  ;;  %v439_v29 = vld [vmem:[%s4076_s22 + $0x10e8] sm:$0xff] }
  0x5d   : > { %432 = vst [vmem:[%s4084_s23 + $0x4c8] sm:$0xff] %v431_v25  ;;  %434 = vst [vmem:[%s4084_s23 + $0x4d0] sm:$0xff] %v433_v26  ;;  %v441_v30 = vld [vmem:[%s4076_s22 + $0x10f0] sm:$0xff]  ;;  %v443_v31 = vld [vmem:[%s4076_s22 + $0x10f8] sm:$0xff] }
  0x5e   : > { %436 = vst [vmem:[%s4084_s23 + $0x4d8] sm:$0xff] %v435_v27  ;;  %438 = vst [vmem:[%s4084_s23 + $0x4e0] sm:$0xff] %v437_v28  ;;  %v445_v32 = vld [vmem:[%s4076_s22 + $0x1400] sm:$0xff]  ;;  %v447_v33 = vld [vmem:[%s4076_s22 + $0x1408] sm:$0xff] }
  0x5f   : > { %440 = vst [vmem:[%s4084_s23 + $0x4e8] sm:$0xff] %v439_v29  ;;  %442 = vst [vmem:[%s4084_s23 + $0x4f0] sm:$0xff] %v441_v30  ;;  %v449_v34 = vld [vmem:[%s4076_s22 + $0x1410] sm:$0xff]  ;;  %v451_v35 = vld [vmem:[%s4076_s22 + $0x1418] sm:$0xff] }
  0x60   : > { %444 = vst [vmem:[%s4084_s23 + $0x4f8] sm:$0xff] %v443_v31  ;;  %446 = vst [vmem:[%s4084_s23 + $0x500] sm:$0xff] %v445_v32  ;;  %v453_v36 = vld [vmem:[%s4076_s22 + $0x1420] sm:$0xff]  ;;  %v455_v37 = vld [vmem:[%s4076_s22 + $0x1428] sm:$0xff] }
  0x61   : > { %448 = vst [vmem:[%s4084_s23 + $0x508] sm:$0xff] %v447_v33  ;;  %450 = vst [vmem:[%s4084_s23 + $0x510] sm:$0xff] %v449_v34  ;;  %v457_v38 = vld [vmem:[%s4076_s22 + $0x1430] sm:$0xff]  ;;  %v459_v39 = vld [vmem:[%s4076_s22 + $0x1438] sm:$0xff] }
  0x62   : > { %452 = vst [vmem:[%s4084_s23 + $0x518] sm:$0xff] %v451_v35  ;;  %454 = vst [vmem:[%s4084_s23 + $0x520] sm:$0xff] %v453_v36  ;;  %v461_v40 = vld [vmem:[%s4076_s22 + $0x1440] sm:$0xff]  ;;  %v463_v41 = vld [vmem:[%s4076_s22 + $0x1448] sm:$0xff] }
  0x63   : > { %456 = vst [vmem:[%s4084_s23 + $0x528] sm:$0xff] %v455_v37  ;;  %458 = vst [vmem:[%s4084_s23 + $0x530] sm:$0xff] %v457_v38  ;;  %v465_v42 = vld [vmem:[%s4076_s22 + $0x1450] sm:$0xff]  ;;  %v467_v43 = vld [vmem:[%s4076_s22 + $0x1458] sm:$0xff] }
  0x64   : > { %460 = vst [vmem:[%s4084_s23 + $0x538] sm:$0xff] %v459_v39  ;;  %462 = vst [vmem:[%s4084_s23 + $0x540] sm:$0xff] %v461_v40  ;;  %v469_v44 = vld [vmem:[%s4076_s22 + $0x1460] sm:$0xff]  ;;  %v471_v45 = vld [vmem:[%s4076_s22 + $0x1468] sm:$0xff] }
  0x65   : > { %464 = vst [vmem:[%s4084_s23 + $0x548] sm:$0xff] %v463_v41  ;;  %466 = vst [vmem:[%s4084_s23 + $0x550] sm:$0xff] %v465_v42  ;;  %v473_v46 = vld [vmem:[%s4076_s22 + $0x1470] sm:$0xff]  ;;  %v475_v47 = vld [vmem:[%s4076_s22 + $0x1478] sm:$0xff] }
  0x66   : > { %468 = vst [vmem:[%s4084_s23 + $0x558] sm:$0xff] %v467_v43  ;;  %470 = vst [vmem:[%s4084_s23 + $0x560] sm:$0xff] %v469_v44  ;;  %v477_v48 = vld [vmem:[%s4076_s22 + $0x1480] sm:$0xff]  ;;  %v479_v49 = vld [vmem:[%s4076_s22 + $0x1488] sm:$0xff] }
  0x67   : > { %472 = vst [vmem:[%s4084_s23 + $0x568] sm:$0xff] %v471_v45  ;;  %474 = vst [vmem:[%s4084_s23 + $0x570] sm:$0xff] %v473_v46  ;;  %v481_v50 = vld [vmem:[%s4076_s22 + $0x1490] sm:$0xff]  ;;  %v483_v51 = vld [vmem:[%s4076_s22 + $0x1498] sm:$0xff] }
  0x68   : > { %476 = vst [vmem:[%s4084_s23 + $0x578] sm:$0xff] %v475_v47  ;;  %478 = vst [vmem:[%s4084_s23 + $0x580] sm:$0xff] %v477_v48  ;;  %v485_v52 = vld [vmem:[%s4076_s22 + $0x14a0] sm:$0xff]  ;;  %v487_v53 = vld [vmem:[%s4076_s22 + $0x14a8] sm:$0xff] }
  0x69   : > { %480 = vst [vmem:[%s4084_s23 + $0x588] sm:$0xff] %v479_v49  ;;  %482 = vst [vmem:[%s4084_s23 + $0x590] sm:$0xff] %v481_v50  ;;  %v489_v54 = vld [vmem:[%s4076_s22 + $0x14b0] sm:$0xff]  ;;  %v491_v55 = vld [vmem:[%s4076_s22 + $0x14b8] sm:$0xff] }
  0x6a   : > { %484 = vst [vmem:[%s4084_s23 + $0x598] sm:$0xff] %v483_v51  ;;  %486 = vst [vmem:[%s4084_s23 + $0x5a0] sm:$0xff] %v485_v52  ;;  %v493_v56 = vld [vmem:[%s4076_s22 + $0x14c0] sm:$0xff]  ;;  %v495_v57 = vld [vmem:[%s4076_s22 + $0x14c8] sm:$0xff] }
  0x6b   : > { %488 = vst [vmem:[%s4084_s23 + $0x5a8] sm:$0xff] %v487_v53  ;;  %490 = vst [vmem:[%s4084_s23 + $0x5b0] sm:$0xff] %v489_v54  ;;  %v497_v58 = vld [vmem:[%s4076_s22 + $0x14d0] sm:$0xff]  ;;  %v499_v59 = vld [vmem:[%s4076_s22 + $0x14d8] sm:$0xff] }
  0x6c   : > { %492 = vst [vmem:[%s4084_s23 + $0x5b8] sm:$0xff] %v491_v55  ;;  %494 = vst [vmem:[%s4084_s23 + $0x5c0] sm:$0xff] %v493_v56  ;;  %v501_v60 = vld [vmem:[%s4076_s22 + $0x14e0] sm:$0xff]  ;;  %v503_v61 = vld [vmem:[%s4076_s22 + $0x14e8] sm:$0xff] }
  0x6d   : > { %496 = vst [vmem:[%s4084_s23 + $0x5c8] sm:$0xff] %v495_v57  ;;  %498 = vst [vmem:[%s4084_s23 + $0x5d0] sm:$0xff] %v497_v58  ;;  %v505_v62 = vld [vmem:[%s4076_s22 + $0x14f0] sm:$0xff]  ;;  %v507_v63 = vld [vmem:[%s4076_s22 + $0x14f8] sm:$0xff] }
  0x6e   : > { %500 = vst [vmem:[%s4084_s23 + $0x5d8] sm:$0xff] %v499_v59  ;;  %502 = vst [vmem:[%s4084_s23 + $0x5e0] sm:$0xff] %v501_v60 }
  0x6f   : > { %504 = vst [vmem:[%s4084_s23 + $0x5e8] sm:$0xff] %v503_v61  ;;  %506 = vst [vmem:[%s4084_s23 + $0x5f0] sm:$0xff] %v505_v62 }
  0x70   : > { %508 = vst [vmem:[%s4084_s23 + $0x5f8] sm:$0xff] %v507_v63 }
  0x71 PF: > { %p3710_p5 = scmp.ge.s32.totalorder %s4023_s11, 1  ;;  %p513_p6 = scmp.lt.s32.totalorder %s4023_s11, 5 }
  0x73   : > { %p514_p7 = pnand %p3710_p5, %p513_p6 }
  0x74   : > { %s520_s24 = sand.u32 (!%p514_p7), 1, %s4015_s9   ;;  %s3711_s3 = sshll.u32 (!%p514_p7), %s3704_s12, 6 }
  0x75   : > { %517 = sbr.rel (%p514_p7) target bundleno = 523 (0x20b), region = 47  ;;  %p543_p8 = scmp.lt.s32.totalorder (!%p514_p7), %s3711_s3, 255 }
  0x76   : > { %s3973_s25 = smul.u32 (!%p514_p7), 1536, %s520_s24 }
  0x78   : > { %s4469_s26 = scalar_lea.vmem (!%p514_p7), [#allocation2], %s3973_s25 }
  0x7a   : > { %v4025_v0 = vmov 0   ;;  %v678_v1 = vld [vmem:[%s4469_s26 + $0x400] sm:$0xff]  ;;  %v679_v3 = vld [vmem:[%s4469_s26 + $0x408] sm:$0xff]  ;;  %v680_v23 = vld [vmem:[%s4469_s26 + $0x410] sm:$0xff]  ;;  %vm1702_vm0 = vcmask 392192   ;;  %s4841_s3 = smov (!%p543_p8, %s3711_s3), 255 }
  0x7b   : > { %1738 = vmatprep.mubr.bf16.mxu0 %v4025_v0  ;;  %1779 = vmatprep.mubr.bf16.mxu1 %v4025_v0  ;;  %v710_v2 = vld [vmem:[%s4469_s26 + $0x500] sm:$0xff]  ;;  %v711_v5 = vld [vmem:[%s4469_s26 + $0x508] sm:$0xff]  ;;  %v712_v24 = vld [vmem:[%s4469_s26 + $0x510] sm:$0xff]  ;;  %s3712_s4 = sshll.u32 %s4841_s3, 1 }
  0x7c   : > { %v3842_v4 = vcombine.high %v678_v1, %v710_v2  ;;  %v3841_v6 = vcombine.low %v678_v1, %v710_v2  ;;  %v614_v7 = vld [vmem:[%s4469_s26 + $0x200] sm:$0xff]  ;;  %v3844_v9 = vcombine.high %v679_v3, %v711_v5  ;;  %v3843_v10 = vcombine.low %v679_v3, %v711_v5  ;;  %v615_v12 = vld [vmem:[%s4469_s26 + $0x208] sm:$0xff]  ;;  %v681_v25 = vld [vmem:[%s4469_s26 + $0x418] sm:$0xff]  ;;  %s4776_s7 = scalar_lea.vmem %s4836_s2, %s3712_s4 }
  0x7d   : > { %v646_v8 = vld [vmem:[%s4469_s26 + $0x300] sm:$0xff]  ;;  %v647_v13 = vld [vmem:[%s4469_s26 + $0x308] sm:$0xff]  ;;  %v713_v26 = vld [vmem:[%s4469_s26 + $0x518] sm:$0xff]  ;;  %v3846_v29 = vcombine.high %v680_v23, %v712_v24  ;;  %v3845_v36 = vcombine.low %v680_v23, %v712_v24 }
  0x7e   : > { %v3778_v11 = vcombine.high %v614_v7, %v646_v8  ;;  %v550_v14 = vld [vmem:[%s4469_s26] sm:$0xff]  ;;  %1716 = vmatprep.subr.bf16.mxu0 %v3842_v4  ;;  %v3780_v15 = vcombine.high %v615_v12, %v647_v13  ;;  %v551_v17 = vld [vmem:[%s4469_s26 + $0x8] sm:$0xff]  ;;  %1757 = vmatprep.subr.bf16.mxu1 %v3844_v9  ;;  %v3777_v19 = vcombine.low %v614_v7, %v646_v8  ;;  %v616_v31 = vld [vmem:[%s4469_s26 + $0x210] sm:$0xff] }
  0x7f   : > { %v582_v16 = vld [vmem:[%s4469_s26 + $0x100] sm:$0xff]  ;;  %v583_v18 = vld [vmem:[%s4469_s26 + $0x108] sm:$0xff]  ;;  %1717 = vmatpush1.bf16.msra.mxu0 %v3841_v6  ;;  %1758 = vmatpush1.bf16.msra.mxu1 %v3843_v10  ;;  %v3779_v20 = vcombine.low %v615_v12, %v647_v13  ;;  %v3848_v30 = vcombine.high %v681_v25, %v713_v26  ;;  %v648_v32 = vld [vmem:[%s4469_s26 + $0x310] sm:$0xff]  ;;  %v3847_v37 = vcombine.low %v681_v25, %v713_v26 }
  0x80   : > { %1718 = vmatprep.subr.bf16.mxu0 %v3778_v11  ;;  %v3714_v21 = vcombine.high %v550_v14, %v582_v16  ;;  %1759 = vmatprep.subr.bf16.mxu1 %v3780_v15  ;;  %v3716_v22 = vcombine.high %v551_v17, %v583_v18  ;;  %v3713_v27 = vcombine.low %v550_v14, %v582_v16  ;;  %v617_v33 = vld [vmem:[%s4469_s26 + $0x218] sm:$0xff]  ;;  %v4494_v35 = vld [vmem:[%s4835_s1] sm:$0x3]  ;;  %v552_v40 = vld [vmem:[%s4469_s26 + $0x10] sm:$0xff] }
  0x81   : > { %v3715_v28 = vcombine.low %v551_v17, %v583_v18  ;;  %v649_v34 = vld [vmem:[%s4469_s26 + $0x318] sm:$0xff]  ;;  %v3782_v38 = vcombine.high %v616_v31, %v648_v32  ;;  %v584_v41 = vld [vmem:[%s4469_s26 + $0x110] sm:$0xff]  ;;  %v3781_v44 = vcombine.low %v616_v31, %v648_v32  ;;  %v682_v48 = vld [vmem:[%s4469_s26 + $0x420] sm:$0xff] }
  0x82   : > { %v3784_v39 = vcombine.high %v617_v33, %v649_v34  ;;  %v553_v42 = vld [vmem:[%s4469_s26 + $0x18] sm:$0xff]  ;;  %v3783_v45 = vcombine.low %v617_v33, %v649_v34  ;;  %v3718_v46 = vcombine.high %v552_v40, %v584_v41  ;;  %v714_v49 = vld [vmem:[%s4469_s26 + $0x520] sm:$0xff]  ;;  %v683_v50 = vld [vmem:[%s4469_s26 + $0x428] sm:$0xff]  ;;  %v3717_v52 = vcombine.low %v552_v40, %v584_v41 }
  0x83   : > { %1719 = vmatpush1.bf16.msra.mxu0 %v3777_v19  ;;  %1760 = vmatpush1.bf16.msra.mxu1 %v3779_v20  ;;  %v585_v43 = vld [vmem:[%s4469_s26 + $0x118] sm:$0xff]  ;;  %v715_v51 = vld [vmem:[%s4469_s26 + $0x528] sm:$0xff]  ;;  %v3850_v54 = vcombine.high %v682_v48, %v714_v49  ;;  %v618_v56 = vld [vmem:[%s4469_s26 + $0x220] sm:$0xff]  ;;  %v3849_v60 = vcombine.low %v682_v48, %v714_v49 }
  0x84   : > { %1720 = vmatprep.subr.bf16.mxu0 %v3714_v21  ;;  %1761 = vmatprep.subr.bf16.mxu1 %v3716_v22  ;;  %v3720_v47 = vcombine.high %v553_v42, %v585_v43  ;;  %v3719_v53 = vcombine.low %v553_v42, %v585_v43  ;;  %v3852_v55 = vcombine.high %v683_v50, %v715_v51  ;;  %v650_v57 = vld [vmem:[%s4469_s26 + $0x320] sm:$0xff]  ;;  %v619_v58 = vld [vmem:[%s4469_s26 + $0x228] sm:$0xff]  ;;  %v684_v9 = vld [vmem:[%s4469_s26 + $0x430] sm:$0xff] }
  0x85   : > { %v651_v59 = vld [vmem:[%s4469_s26 + $0x328] sm:$0xff]  ;;  %v3851_v61 = vcombine.low %v683_v50, %v715_v51  ;;  %v3786_v62 = vcombine.high %v618_v56, %v650_v57  ;;  %v554_v1 = vld [vmem:[%s4469_s26 + $0x20] sm:$0xff]  ;;  %v3785_v5 = vcombine.low %v618_v56, %v650_v57  ;;  %v716_v10 = vld [vmem:[%s4469_s26 + $0x530] sm:$0xff] }
  0x86   : > { %v3788_v63 = vcombine.high %v619_v58, %v651_v59  ;;  %v586_v2 = vld [vmem:[%s4469_s26 + $0x120] sm:$0xff]  ;;  %v555_v3 = vld [vmem:[%s4469_s26 + $0x28] sm:$0xff]  ;;  %v3787_v6 = vcombine.low %v619_v58, %v651_v59  ;;  %v685_v11 = vld [vmem:[%s4469_s26 + $0x438] sm:$0xff]  ;;  %v3854_v15 = vcombine.high %v684_v9, %v716_v10  ;;  %v3853_v21 = vcombine.low %v684_v9, %v716_v10 }
  0x87   : > { %1721 = vmatpush1.bf16.msra.mxu0 %v3713_v27  ;;  %1762 = vmatpush1.bf16.msra.mxu1 %v3715_v28  ;;  %v587_v4 = vld [vmem:[%s4469_s26 + $0x128] sm:$0xff]  ;;  %v3722_v7 = vcombine.high %v554_v1, %v586_v2  ;;  %v717_v12 = vld [vmem:[%s4469_s26 + $0x538] sm:$0xff]  ;;  %v3721_v13 = vcombine.low %v554_v1, %v586_v2  ;;  %v620_v17 = vld [vmem:[%s4469_s26 + $0x230] sm:$0xff] }
  0x88   : > { %1798 = vmatprep.subr.bf16.mxu0 %v3846_v29  ;;  %1839 = vmatprep.subr.bf16.mxu1 %v3848_v30  ;;  %v3724_v8 = vcombine.high %v555_v3, %v587_v4  ;;  %v3723_v14 = vcombine.low %v555_v3, %v587_v4  ;;  %v3856_v16 = vcombine.high %v685_v11, %v717_v12  ;;  %v652_v18 = vld [vmem:[%s4469_s26 + $0x330] sm:$0xff]  ;;  %v621_v19 = vld [vmem:[%s4469_s26 + $0x238] sm:$0xff]  ;;  %v686_v33 = vld [vmem:[%s4469_s26 + $0x440] sm:$0xff] }
  0x89   : > { %v653_v20 = vld [vmem:[%s4469_s26 + $0x338] sm:$0xff]  ;;  %v3855_v22 = vcombine.low %v685_v11, %v717_v12  ;;  %v3790_v23 = vcombine.high %v620_v17, %v652_v18  ;;  %v556_v25 = vld [vmem:[%s4469_s26 + $0x30] sm:$0xff]  ;;  %v3789_v29 = vcombine.low %v620_v17, %v652_v18  ;;  %v718_v34 = vld [vmem:[%s4469_s26 + $0x540] sm:$0xff] }
  0x8a   : > { %3905 = vmatmul.mubr.msk.bf16.vlgmr.msra.gmra.mxu0 %vm1702_vm0, %v4494_v35  ;;  %3906 = vmatmul.mubr.msk.bf16.vlgmr.msra.gmra.mxu1 %vm1702_vm0, %v4494_v35  ;;  %v3792_v24 = vcombine.high %v621_v19, %v653_v20  ;;  %v588_v26 = vld [vmem:[%s4469_s26 + $0x130] sm:$0xff]  ;;  %v557_v27 = vld [vmem:[%s4469_s26 + $0x38] sm:$0xff]  ;;  %v3791_v30 = vcombine.low %v621_v19, %v653_v20  ;;  %v3858_v40 = vcombine.high %v686_v33, %v718_v34  ;;  %v622_v42 = vld [vmem:[%s4469_s26 + $0x240] sm:$0xff] }
  0x8b   : > { %1799 = vmatpush1.bf16.msra.mxu0 %v3845_v36  ;;  %1840 = vmatpush1.bf16.msra.mxu1 %v3847_v37  ;;  %v589_v28 = vld [vmem:[%s4469_s26 + $0x138] sm:$0xff]  ;;  %v3726_v31 = vcombine.high %v556_v25, %v588_v26  ;;  %v687_v36 = vld [vmem:[%s4469_s26 + $0x448] sm:$0xff]  ;;  %v654_v43 = vld [vmem:[%s4469_s26 + $0x340] sm:$0xff] }
  0x8c   : > { %1800 = vmatprep.subr.bf16.mxu0 %v3782_v38  ;;  %1841 = vmatprep.subr.bf16.mxu1 %v3784_v39  ;;  %v3728_v32 = vcombine.high %v557_v27, %v589_v28  ;;  %v719_v37 = vld [vmem:[%s4469_s26 + $0x548] sm:$0xff]  ;;  %v3725_v38 = vcombine.low %v556_v25, %v588_v26  ;;  %v3727_v39 = vcombine.low %v557_v27, %v589_v28  ;;  %v558_v50 = vld [vmem:[%s4469_s26 + $0x40] sm:$0xff]  ;;  %v688_v58 = vld [vmem:[%s4469_s26 + $0x450] sm:$0xff] }
  0x8d   : > { %1820 = vmatprep.mubr.bf16.mxu0 %v4025_v0  ;;  %1861 = vmatprep.mubr.bf16.mxu1 %v4025_v0  ;;  %v3860_v41 = vcombine.high %v687_v36, %v719_v37  ;;  %v3794_v48 = vcombine.high %v622_v42, %v654_v43  ;;  %v590_v51 = vld [vmem:[%s4469_s26 + $0x140] sm:$0xff]  ;;  %v720_v59 = vld [vmem:[%s4469_s26 + $0x550] sm:$0xff] }
  0x8e   : > { %v3730_v56 = vcombine.high %v558_v50, %v590_v51  ;;  %v3862_v1 = vcombine.high %v688_v58, %v720_v59  ;;  %v624_v3 = vld [vmem:[%s4469_s26 + $0x250] sm:$0xff]  ;;  %v690_v19 = vld [vmem:[%s4469_s26 + $0x460] sm:$0xff] }
  0x8f   : > { %1801 = vmatpush1.bf16.msra.mxu0 %v3781_v44  ;;  %1842 = vmatpush1.bf16.msra.mxu1 %v3783_v45  ;;  %v623_v44 = vld [vmem:[%s4469_s26 + $0x248] sm:$0xff]  ;;  %v656_v4 = vld [vmem:[%s4469_s26 + $0x350] sm:$0xff]  ;;  %v722_v20 = vld [vmem:[%s4469_s26 + $0x560] sm:$0xff] }
  0x90   : > { %1802 = vmatprep.subr.bf16.mxu0 %v3718_v46  ;;  %1843 = vmatprep.subr.bf16.mxu1 %v3720_v47  ;;  %v655_v45 = vld [vmem:[%s4469_s26 + $0x348] sm:$0xff]  ;;  %v3857_v46 = vcombine.low %v686_v33, %v718_v34  ;;  %v3859_v47 = vcombine.low %v687_v36, %v719_v37  ;;  %v3798_v9 = vcombine.high %v624_v3, %v656_v4  ;;  %v560_v11 = vld [vmem:[%s4469_s26 + $0x50] sm:$0xff]  ;;  %v626_v27 = vld [vmem:[%s4469_s26 + $0x260] sm:$0xff] }
  0x91   : > { %v3796_v49 = vcombine.high %v623_v44, %v655_v45  ;;  %v592_v12 = vld [vmem:[%s4469_s26 + $0x150] sm:$0xff]  ;;  %v3866_v25 = vcombine.high %v690_v19, %v722_v20  ;;  %v658_v28 = vld [vmem:[%s4469_s26 + $0x360] sm:$0xff] }
  0x92   : > { %v3734_v17 = vcombine.high %v560_v11, %v592_v12  ;;  %v3802_v33 = vcombine.high %v626_v27, %v658_v28  ;;  %v562_v36 = vld [vmem:[%s4469_s26 + $0x60] sm:$0xff] }
  0x93   : > { %1803 = vmatpush1.bf16.msra.mxu0 %v3717_v52  ;;  %1844 = vmatpush1.bf16.msra.mxu1 %v3719_v53  ;;  %v559_v52 = vld [vmem:[%s4469_s26 + $0x48] sm:$0xff]  ;;  %v594_v37 = vld [vmem:[%s4469_s26 + $0x160] sm:$0xff] }
  0x94   : > { %1880 = vmatprep.subr.bf16.mxu0 %v3850_v54  ;;  %1921 = vmatprep.subr.bf16.mxu1 %v3852_v55  ;;  %v591_v53 = vld [vmem:[%s4469_s26 + $0x148] sm:$0xff]  ;;  %v3793_v54 = vcombine.low %v622_v42, %v654_v43  ;;  %v3795_v55 = vcombine.low %v623_v44, %v655_v45  ;;  %v3738_v42 = vcombine.high %v562_v36, %v594_v37  ;;  %v692_v44 = vld [vmem:[%s4469_s26 + $0x470] sm:$0xff] }
  0x95   : > { %v3732_v57 = vcombine.high %v559_v52, %v591_v53  ;;  %v724_v45 = vld [vmem:[%s4469_s26 + $0x570] sm:$0xff] }
  0x96   : > { %3907 = vmatmul.mubr.msk.bf16.vlgmr.msra.gmra.mxu0 %vm1702_vm0, %v4494_v35  ;;  %3908 = vmatmul.mubr.msk.bf16.vlgmr.msra.gmra.mxu1 %vm1702_vm0, %v4494_v35 }
  0x97   : > { %1881 = vmatpush1.bf16.msra.mxu0 %v3849_v60  ;;  %1922 = vmatpush1.bf16.msra.mxu1 %v3851_v61  ;;  %v689_v60 = vld [vmem:[%s4469_s26 + $0x458] sm:$0xff] }
  0x98   : > { %1882 = vmatprep.subr.bf16.mxu0 %v3786_v62  ;;  %1923 = vmatprep.subr.bf16.mxu1 %v3788_v63  ;;  %v721_v61 = vld [vmem:[%s4469_s26 + $0x558] sm:$0xff]  ;;  %v3729_v62 = vcombine.low %v558_v50, %v590_v51  ;;  %v3731_v63 = vcombine.low %v559_v52, %v591_v53  ;;  %v3870_v50 = vcombine.high %v692_v44, %v724_v45  ;;  %v628_v52 = vld [vmem:[%s4469_s26 + $0x270] sm:$0xff] }
  0x99   : > { %1902 = vmatprep.mubr.bf16.mxu0 %v4025_v0  ;;  %1943 = vmatprep.mubr.bf16.mxu1 %v4025_v0  ;;  %v3864_v2 = vcombine.high %v689_v60, %v721_v61  ;;  %v660_v53 = vld [vmem:[%s4469_s26 + $0x370] sm:$0xff] }
  0x9b   : > { %1883 = vmatpush1.bf16.msra.mxu0 %v3785_v5  ;;  %1924 = vmatpush1.bf16.msra.mxu1 %v3787_v6  ;;  %v625_v5 = vld [vmem:[%s4469_s26 + $0x258] sm:$0xff] }
  0x9c   : > { %1884 = vmatprep.subr.bf16.mxu0 %v3722_v7  ;;  %1925 = vmatprep.subr.bf16.mxu1 %v3724_v8  ;;  %v657_v6 = vld [vmem:[%s4469_s26 + $0x358] sm:$0xff]  ;;  %v3861_v7 = vcombine.low %v688_v58, %v720_v59  ;;  %v3863_v8 = vcombine.low %v689_v60, %v721_v61  ;;  %v3806_v58 = vcombine.high %v628_v52, %v660_v53  ;;  %v564_v60 = vld [vmem:[%s4469_s26 + $0x70] sm:$0xff] }
  0x9d   : > { %v3800_v10 = vcombine.high %v625_v5, %v657_v6  ;;  %v596_v61 = vld [vmem:[%s4469_s26 + $0x170] sm:$0xff] }
  0x9f   : > { %1885 = vmatpush1.bf16.msra.mxu0 %v3721_v13  ;;  %1926 = vmatpush1.bf16.msra.mxu1 %v3723_v14  ;;  %v561_v13 = vld [vmem:[%s4469_s26 + $0x58] sm:$0xff] }
  0xa0   : > { %1962 = vmatprep.subr.bf16.mxu0 %v3854_v15  ;;  %2003 = vmatprep.subr.bf16.mxu1 %v3856_v16  ;;  %v593_v14 = vld [vmem:[%s4469_s26 + $0x158] sm:$0xff]  ;;  %v3797_v15 = vcombine.low %v624_v3, %v656_v4  ;;  %v3799_v16 = vcombine.low %v625_v5, %v657_v6  ;;  %v3742_v3 = vcombine.high %v564_v60, %v596_v61  ;;  %v694_v5 = vld [vmem:[%s4469_s26 + $0x480] sm:$0xff] }
  0xa1   : > { %v3736_v18 = vcombine.high %v561_v13, %v593_v14  ;;  %v726_v6 = vld [vmem:[%s4469_s26 + $0x580] sm:$0xff] }
  0xa2   : > { %3909 = vmatmul.mubr.msk.bf16.vlgmr.msra.gmra.mxu0 %vm1702_vm0, %v4494_v35  ;;  %3910 = vmatmul.mubr.msk.bf16.vlgmr.msra.gmra.mxu1 %vm1702_vm0, %v4494_v35 }
  0xa3   : > { %1963 = vmatpush1.bf16.msra.mxu0 %v3853_v21  ;;  %2004 = vmatpush1.bf16.msra.mxu1 %v3855_v22  ;;  %v691_v21 = vld [vmem:[%s4469_s26 + $0x468] sm:$0xff] }
  0xa4   : > { %1964 = vmatprep.subr.bf16.mxu0 %v3790_v23  ;;  %2005 = vmatprep.subr.bf16.mxu1 %v3792_v24  ;;  %v723_v22 = vld [vmem:[%s4469_s26 + $0x568] sm:$0xff]  ;;  %v3733_v23 = vcombine.low %v560_v11, %v592_v12  ;;  %v3735_v24 = vcombine.low %v561_v13, %v593_v14  ;;  %v3874_v11 = vcombine.high %v694_v5, %v726_v6  ;;  %v630_v13 = vld [vmem:[%s4469_s26 + $0x280] sm:$0xff] }
  0xa5   : > { %1984 = vmatprep.mubr.bf16.mxu0 %v4025_v0  ;;  %2025 = vmatprep.mubr.bf16.mxu1 %v4025_v0  ;;  %v3868_v26 = vcombine.high %v691_v21, %v723_v22  ;;  %v662_v14 = vld [vmem:[%s4469_s26 + $0x380] sm:$0xff] }
  0xa7   : > { %1965 = vmatpush1.bf16.msra.mxu0 %v3789_v29  ;;  %2006 = vmatpush1.bf16.msra.mxu1 %v3791_v30  ;;  %v627_v29 = vld [vmem:[%s4469_s26 + $0x268] sm:$0xff] }
  0xa8   : > { %1966 = vmatprep.subr.bf16.mxu0 %v3726_v31  ;;  %2007 = vmatprep.subr.bf16.mxu1 %v3728_v32  ;;  %v659_v30 = vld [vmem:[%s4469_s26 + $0x368] sm:$0xff]  ;;  %v3865_v31 = vcombine.low %v690_v19, %v722_v20  ;;  %v3867_v32 = vcombine.low %v691_v21, %v723_v22  ;;  %v3810_v19 = vcombine.high %v630_v13, %v662_v14  ;;  %v566_v21 = vld [vmem:[%s4469_s26 + $0x80] sm:$0xff] }
  0xa9   : > { %v3804_v34 = vcombine.high %v627_v29, %v659_v30  ;;  %v598_v22 = vld [vmem:[%s4469_s26 + $0x180] sm:$0xff] }
  0xab   : > { %1967 = vmatpush1.bf16.msra.mxu0 %v3725_v38  ;;  %2008 = vmatpush1.bf16.msra.mxu1 %v3727_v39  ;;  %v563_v38 = vld [vmem:[%s4469_s26 + $0x68] sm:$0xff] }
  0xac   : > { %2044 = vmatprep.subr.bf16.mxu0 %v3858_v40  ;;  %2085 = vmatprep.subr.bf16.mxu1 %v3860_v41  ;;  %v595_v39 = vld [vmem:[%s4469_s26 + $0x168] sm:$0xff]  ;;  %v3801_v40 = vcombine.low %v626_v27, %v658_v28  ;;  %v3803_v41 = vcombine.low %v627_v29, %v659_v30  ;;  %v3746_v27 = vcombine.high %v566_v21, %v598_v22  ;;  %v696_v29 = vld [vmem:[%s4469_s26 + $0x490] sm:$0xff] }
  0xad   : > { %v3740_v43 = vcombine.high %v563_v38, %v595_v39  ;;  %v728_v30 = vld [vmem:[%s4469_s26 + $0x590] sm:$0xff] }
  0xae   : > { %3911 = vmatmul.mubr.msk.bf16.vlgmr.msra.gmra.mxu0 %vm1702_vm0, %v4494_v35  ;;  %3912 = vmatmul.mubr.msk.bf16.vlgmr.msra.gmra.mxu1 %vm1702_vm0, %v4494_v35 }
  0xaf   : > { %2045 = vmatpush1.bf16.msra.mxu0 %v3857_v46  ;;  %2086 = vmatpush1.bf16.msra.mxu1 %v3859_v47  ;;  %v693_v46 = vld [vmem:[%s4469_s26 + $0x478] sm:$0xff] }
  0xb0   : > { %2046 = vmatprep.subr.bf16.mxu0 %v3794_v48  ;;  %2087 = vmatprep.subr.bf16.mxu1 %v3796_v49  ;;  %v725_v47 = vld [vmem:[%s4469_s26 + $0x578] sm:$0xff]  ;;  %v3737_v48 = vcombine.low %v562_v36, %v594_v37  ;;  %v3739_v49 = vcombine.low %v563_v38, %v595_v39  ;;  %v3878_v36 = vcombine.high %v696_v29, %v728_v30  ;;  %v632_v38 = vld [vmem:[%s4469_s26 + $0x290] sm:$0xff] }
  0xb1   : > { %2066 = vmatprep.mubr.bf16.mxu0 %v4025_v0  ;;  %2107 = vmatprep.mubr.bf16.mxu1 %v4025_v0  ;;  %v3872_v51 = vcombine.high %v693_v46, %v725_v47  ;;  %v664_v39 = vld [vmem:[%s4469_s26 + $0x390] sm:$0xff] }
  0xb3   : > { %2047 = vmatpush1.bf16.msra.mxu0 %v3793_v54  ;;  %2088 = vmatpush1.bf16.msra.mxu1 %v3795_v55  ;;  %v629_v54 = vld [vmem:[%s4469_s26 + $0x278] sm:$0xff] }
  0xb4   : > { %2048 = vmatprep.subr.bf16.mxu0 %v3730_v56  ;;  %2089 = vmatprep.subr.bf16.mxu1 %v3732_v57  ;;  %v661_v55 = vld [vmem:[%s4469_s26 + $0x378] sm:$0xff]  ;;  %v3869_v56 = vcombine.low %v692_v44, %v724_v45  ;;  %v3871_v57 = vcombine.low %v693_v46, %v725_v47  ;;  %v3814_v44 = vcombine.high %v632_v38, %v664_v39  ;;  %v568_v46 = vld [vmem:[%s4469_s26 + $0x90] sm:$0xff] }
  0xb5   : > { %v3808_v59 = vcombine.high %v629_v54, %v661_v55  ;;  %v600_v47 = vld [vmem:[%s4469_s26 + $0x190] sm:$0xff] }
  0xb7   : > { %2049 = vmatpush1.bf16.msra.mxu0 %v3729_v62  ;;  %2090 = vmatpush1.bf16.msra.mxu1 %v3731_v63  ;;  %v565_v62 = vld [vmem:[%s4469_s26 + $0x78] sm:$0xff] }
  0xb8   : > { %2126 = vmatprep.subr.bf16.mxu0 %v3862_v1  ;;  %2167 = vmatprep.subr.bf16.mxu1 %v3864_v2  ;;  %v597_v63 = vld [vmem:[%s4469_s26 + $0x178] sm:$0xff]  ;;  %v3805_v1 = vcombine.low %v628_v52, %v660_v53  ;;  %v3807_v2 = vcombine.low %v629_v54, %v661_v55  ;;  %v3750_v52 = vcombine.high %v568_v46, %v600_v47  ;;  %v698_v54 = vld [vmem:[%s4469_s26 + $0x4a0] sm:$0xff] }
  0xb9   : > { %v3744_v4 = vcombine.high %v565_v62, %v597_v63  ;;  %v730_v55 = vld [vmem:[%s4469_s26 + $0x5a0] sm:$0xff] }
  0xba   : > { %3913 = vmatmul.mubr.msk.bf16.vlgmr.msra.gmra.mxu0 %vm1702_vm0, %v4494_v35  ;;  %3914 = vmatmul.mubr.msk.bf16.vlgmr.msra.gmra.mxu1 %vm1702_vm0, %v4494_v35 }
  0xbb   : > { %2127 = vmatpush1.bf16.msra.mxu0 %v3861_v7  ;;  %2168 = vmatpush1.bf16.msra.mxu1 %v3863_v8  ;;  %v695_v7 = vld [vmem:[%s4469_s26 + $0x488] sm:$0xff] }
  0xbc   : > { %2128 = vmatprep.subr.bf16.mxu0 %v3798_v9  ;;  %2169 = vmatprep.subr.bf16.mxu1 %v3800_v10  ;;  %v727_v8 = vld [vmem:[%s4469_s26 + $0x588] sm:$0xff]  ;;  %v3741_v9 = vcombine.low %v564_v60, %v596_v61  ;;  %v3743_v10 = vcombine.low %v565_v62, %v597_v63  ;;  %v3882_v60 = vcombine.high %v698_v54, %v730_v55  ;;  %v634_v62 = vld [vmem:[%s4469_s26 + $0x2a0] sm:$0xff] }
  0xbd   : > { %2148 = vmatprep.mubr.bf16.mxu0 %v4025_v0  ;;  %2189 = vmatprep.mubr.bf16.mxu1 %v4025_v0  ;;  %v3876_v12 = vcombine.high %v695_v7, %v727_v8  ;;  %v666_v63 = vld [vmem:[%s4469_s26 + $0x3a0] sm:$0xff] }
  0xbf   : > { %2129 = vmatpush1.bf16.msra.mxu0 %v3797_v15  ;;  %2170 = vmatpush1.bf16.msra.mxu1 %v3799_v16  ;;  %v631_v15 = vld [vmem:[%s4469_s26 + $0x288] sm:$0xff] }
  0xc0   : > { %2130 = vmatprep.subr.bf16.mxu0 %v3734_v17  ;;  %2171 = vmatprep.subr.bf16.mxu1 %v3736_v18  ;;  %v663_v16 = vld [vmem:[%s4469_s26 + $0x388] sm:$0xff]  ;;  %v3873_v17 = vcombine.low %v694_v5, %v726_v6  ;;  %v3875_v18 = vcombine.low %v695_v7, %v727_v8  ;;  %v3818_v5 = vcombine.high %v634_v62, %v666_v63  ;;  %v570_v7 = vld [vmem:[%s4469_s26 + $0xa0] sm:$0xff] }
  0xc1   : > { %v3812_v20 = vcombine.high %v631_v15, %v663_v16  ;;  %v602_v8 = vld [vmem:[%s4469_s26 + $0x1a0] sm:$0xff] }
  0xc3   : > { %2131 = vmatpush1.bf16.msra.mxu0 %v3733_v23  ;;  %2172 = vmatpush1.bf16.msra.mxu1 %v3735_v24  ;;  %v567_v23 = vld [vmem:[%s4469_s26 + $0x88] sm:$0xff] }
  0xc4   : > { %2208 = vmatprep.subr.bf16.mxu0 %v3866_v25  ;;  %2249 = vmatprep.subr.bf16.mxu1 %v3868_v26  ;;  %v599_v24 = vld [vmem:[%s4469_s26 + $0x188] sm:$0xff]  ;;  %v3809_v25 = vcombine.low %v630_v13, %v662_v14  ;;  %v3811_v26 = vcombine.low %v631_v15, %v663_v16  ;;  %v3754_v13 = vcombine.high %v570_v7, %v602_v8  ;;  %v700_v15 = vld [vmem:[%s4469_s26 + $0x4b0] sm:$0xff] }
  0xc5   : > { %v3748_v28 = vcombine.high %v567_v23, %v599_v24  ;;  %v732_v16 = vld [vmem:[%s4469_s26 + $0x5b0] sm:$0xff] }
  0xc6   : > { %3915 = vmatmul.mubr.msk.bf16.vlgmr.msra.gmra.mxu0 %vm1702_vm0, %v4494_v35  ;;  %3916 = vmatmul.mubr.msk.bf16.vlgmr.msra.gmra.mxu1 %vm1702_vm0, %v4494_v35 }
  0xc7   : > { %2209 = vmatpush1.bf16.msra.mxu0 %v3865_v31  ;;  %2250 = vmatpush1.bf16.msra.mxu1 %v3867_v32  ;;  %v697_v31 = vld [vmem:[%s4469_s26 + $0x498] sm:$0xff] }
  0xc8   : > { %2210 = vmatprep.subr.bf16.mxu0 %v3802_v33  ;;  %2251 = vmatprep.subr.bf16.mxu1 %v3804_v34  ;;  %v729_v32 = vld [vmem:[%s4469_s26 + $0x598] sm:$0xff]  ;;  %v3745_v33 = vcombine.low %v566_v21, %v598_v22  ;;  %v3747_v34 = vcombine.low %v567_v23, %v599_v24  ;;  %v3886_v21 = vcombine.high %v700_v15, %v732_v16  ;;  %v636_v23 = vld [vmem:[%s4469_s26 + $0x2b0] sm:$0xff] }
  0xc9   : > { %2230 = vmatprep.mubr.bf16.mxu0 %v4025_v0  ;;  %2271 = vmatprep.mubr.bf16.mxu1 %v4025_v0  ;;  %v3880_v37 = vcombine.high %v697_v31, %v729_v32  ;;  %v668_v24 = vld [vmem:[%s4469_s26 + $0x3b0] sm:$0xff] }
  0xcb   : > { %2211 = vmatpush1.bf16.msra.mxu0 %v3801_v40  ;;  %2252 = vmatpush1.bf16.msra.mxu1 %v3803_v41  ;;  %v633_v40 = vld [vmem:[%s4469_s26 + $0x298] sm:$0xff] }
  0xcc   : > { %2212 = vmatprep.subr.bf16.mxu0 %v3738_v42  ;;  %2253 = vmatprep.subr.bf16.mxu1 %v3740_v43  ;;  %v665_v41 = vld [vmem:[%s4469_s26 + $0x398] sm:$0xff]  ;;  %v3877_v42 = vcombine.low %v696_v29, %v728_v30  ;;  %v3879_v43 = vcombine.low %v697_v31, %v729_v32  ;;  %v3822_v29 = vcombine.high %v636_v23, %v668_v24  ;;  %v572_v31 = vld [vmem:[%s4469_s26 + $0xb0] sm:$0xff] }
  0xcd   : > { %v3816_v45 = vcombine.high %v633_v40, %v665_v41  ;;  %v604_v32 = vld [vmem:[%s4469_s26 + $0x1b0] sm:$0xff] }
  0xcf   : > { %2213 = vmatpush1.bf16.msra.mxu0 %v3737_v48  ;;  %2254 = vmatpush1.bf16.msra.mxu1 %v3739_v49  ;;  %v569_v48 = vld [vmem:[%s4469_s26 + $0x98] sm:$0xff] }
  0xd0   : > { %2290 = vmatprep.subr.bf16.mxu0 %v3870_v50  ;;  %2331 = vmatprep.subr.bf16.mxu1 %v3872_v51  ;;  %v601_v49 = vld [vmem:[%s4469_s26 + $0x198] sm:$0xff]  ;;  %v3813_v50 = vcombine.low %v632_v38, %v664_v39  ;;  %v3815_v51 = vcombine.low %v633_v40, %v665_v41  ;;  %v3758_v38 = vcombine.high %v572_v31, %v604_v32  ;;  %v702_v40 = vld [vmem:[%s4469_s26 + $0x4c0] sm:$0xff] }
  0xd1   : > { %v3752_v53 = vcombine.high %v569_v48, %v601_v49  ;;  %v734_v41 = vld [vmem:[%s4469_s26 + $0x5c0] sm:$0xff] }
  0xd2   : > { %3917 = vmatmul.mubr.msk.bf16.vlgmr.msra.gmra.mxu0 %vm1702_vm0, %v4494_v35  ;;  %3918 = vmatmul.mubr.msk.bf16.vlgmr.msra.gmra.mxu1 %vm1702_vm0, %v4494_v35 }
  0xd3   : > { %2291 = vmatpush1.bf16.msra.mxu0 %v3869_v56  ;;  %2332 = vmatpush1.bf16.msra.mxu1 %v3871_v57  ;;  %v699_v56 = vld [vmem:[%s4469_s26 + $0x4a8] sm:$0xff] }
  0xd4   : > { %2292 = vmatprep.subr.bf16.mxu0 %v3806_v58  ;;  %2333 = vmatprep.subr.bf16.mxu1 %v3808_v59  ;;  %v731_v57 = vld [vmem:[%s4469_s26 + $0x5a8] sm:$0xff]  ;;  %v3749_v58 = vcombine.low %v568_v46, %v600_v47  ;;  %v3751_v59 = vcombine.low %v569_v48, %v601_v49  ;;  %v3890_v46 = vcombine.high %v702_v40, %v734_v41  ;;  %v638_v48 = vld [vmem:[%s4469_s26 + $0x2c0] sm:$0xff] }
  0xd5   : > { %2312 = vmatprep.mubr.bf16.mxu0 %v4025_v0  ;;  %2353 = vmatprep.mubr.bf16.mxu1 %v4025_v0  ;;  %v3884_v61 = vcombine.high %v699_v56, %v731_v57  ;;  %v670_v49 = vld [vmem:[%s4469_s26 + $0x3c0] sm:$0xff] }
  0xd7   : > { %2293 = vmatpush1.bf16.msra.mxu0 %v3805_v1  ;;  %2334 = vmatpush1.bf16.msra.mxu1 %v3807_v2  ;;  %v635_v1 = vld [vmem:[%s4469_s26 + $0x2a8] sm:$0xff] }
  0xd8   : > { %2294 = vmatprep.subr.bf16.mxu0 %v3742_v3  ;;  %2335 = vmatprep.subr.bf16.mxu1 %v3744_v4  ;;  %v667_v2 = vld [vmem:[%s4469_s26 + $0x3a8] sm:$0xff]  ;;  %v3881_v3 = vcombine.low %v698_v54, %v730_v55  ;;  %v3883_v4 = vcombine.low %v699_v56, %v731_v57  ;;  %v3826_v54 = vcombine.high %v638_v48, %v670_v49  ;;  %v574_v56 = vld [vmem:[%s4469_s26 + $0xc0] sm:$0xff] }
  0xd9   : > { %v3820_v6 = vcombine.high %v635_v1, %v667_v2  ;;  %v606_v57 = vld [vmem:[%s4469_s26 + $0x1c0] sm:$0xff] }
  0xdb   : > { %2295 = vmatpush1.bf16.msra.mxu0 %v3741_v9  ;;  %2336 = vmatpush1.bf16.msra.mxu1 %v3743_v10  ;;  %v571_v9 = vld [vmem:[%s4469_s26 + $0xa8] sm:$0xff] }
  0xdc   : > { %2372 = vmatprep.subr.bf16.mxu0 %v3874_v11  ;;  %2413 = vmatprep.subr.bf16.mxu1 %v3876_v12  ;;  %v603_v10 = vld [vmem:[%s4469_s26 + $0x1a8] sm:$0xff]  ;;  %v3817_v11 = vcombine.low %v634_v62, %v666_v63  ;;  %v3819_v12 = vcombine.low %v635_v1, %v667_v2  ;;  %v3762_v62 = vcombine.high %v574_v56, %v606_v57  ;;  %v704_v1 = vld [vmem:[%s4469_s26 + $0x4d0] sm:$0xff] }
  0xdd   : > { %v3756_v14 = vcombine.high %v571_v9, %v603_v10  ;;  %v736_v2 = vld [vmem:[%s4469_s26 + $0x5d0] sm:$0xff] }
  0xde   : > { %3919 = vmatmul.mubr.msk.bf16.vlgmr.msra.gmra.mxu0 %vm1702_vm0, %v4494_v35  ;;  %3920 = vmatmul.mubr.msk.bf16.vlgmr.msra.gmra.mxu1 %vm1702_vm0, %v4494_v35 }
  0xdf   : > { %2373 = vmatpush1.bf16.msra.mxu0 %v3873_v17  ;;  %2414 = vmatpush1.bf16.msra.mxu1 %v3875_v18  ;;  %v701_v17 = vld [vmem:[%s4469_s26 + $0x4b8] sm:$0xff] }
  0xe0   : > { %2374 = vmatprep.subr.bf16.mxu0 %v3810_v19  ;;  %2415 = vmatprep.subr.bf16.mxu1 %v3812_v20  ;;  %v733_v18 = vld [vmem:[%s4469_s26 + $0x5b8] sm:$0xff]  ;;  %v3753_v19 = vcombine.low %v570_v7, %v602_v8  ;;  %v3755_v20 = vcombine.low %v571_v9, %v603_v10  ;;  %v3894_v7 = vcombine.high %v704_v1, %v736_v2  ;;  %v640_v9 = vld [vmem:[%s4469_s26 + $0x2d0] sm:$0xff] }
  0xe1   : > { %2394 = vmatprep.mubr.bf16.mxu0 %v4025_v0  ;;  %2435 = vmatprep.mubr.bf16.mxu1 %v4025_v0  ;;  %v3888_v22 = vcombine.high %v701_v17, %v733_v18  ;;  %v672_v10 = vld [vmem:[%s4469_s26 + $0x3d0] sm:$0xff] }
  0xe3   : > { %2375 = vmatpush1.bf16.msra.mxu0 %v3809_v25  ;;  %2416 = vmatpush1.bf16.msra.mxu1 %v3811_v26  ;;  %v637_v25 = vld [vmem:[%s4469_s26 + $0x2b8] sm:$0xff] }
  0xe4   : > { %2376 = vmatprep.subr.bf16.mxu0 %v3746_v27  ;;  %2417 = vmatprep.subr.bf16.mxu1 %v3748_v28  ;;  %v669_v26 = vld [vmem:[%s4469_s26 + $0x3b8] sm:$0xff]  ;;  %v3885_v27 = vcombine.low %v700_v15, %v732_v16  ;;  %v3887_v28 = vcombine.low %v701_v17, %v733_v18  ;;  %v3830_v15 = vcombine.high %v640_v9, %v672_v10  ;;  %v576_v17 = vld [vmem:[%s4469_s26 + $0xd0] sm:$0xff] }
  0xe5   : > { %v3824_v30 = vcombine.high %v637_v25, %v669_v26  ;;  %v608_v18 = vld [vmem:[%s4469_s26 + $0x1d0] sm:$0xff] }
  0xe7   : > { %2377 = vmatpush1.bf16.msra.mxu0 %v3745_v33  ;;  %2418 = vmatpush1.bf16.msra.mxu1 %v3747_v34  ;;  %v573_v33 = vld [vmem:[%s4469_s26 + $0xb8] sm:$0xff] }
  0xe8   : > { %2454 = vmatprep.subr.bf16.mxu0 %v3878_v36  ;;  %2495 = vmatprep.subr.bf16.mxu1 %v3880_v37  ;;  %v605_v34 = vld [vmem:[%s4469_s26 + $0x1b8] sm:$0xff]  ;;  %v3821_v36 = vcombine.low %v636_v23, %v668_v24  ;;  %v3823_v37 = vcombine.low %v637_v25, %v669_v26  ;;  %v3766_v23 = vcombine.high %v576_v17, %v608_v18  ;;  %v706_v25 = vld [vmem:[%s4469_s26 + $0x4e0] sm:$0xff] }
  0xe9   : > { %v3760_v39 = vcombine.high %v573_v33, %v605_v34  ;;  %v738_v26 = vld [vmem:[%s4469_s26 + $0x5e0] sm:$0xff] }
  0xea   : > { %3921 = vmatmul.mubr.msk.bf16.vlgmr.msra.gmra.mxu0 %vm1702_vm0, %v4494_v35  ;;  %3922 = vmatmul.mubr.msk.bf16.vlgmr.msra.gmra.mxu1 %vm1702_vm0, %v4494_v35 }
  0xeb   : > { %2455 = vmatpush1.bf16.msra.mxu0 %v3877_v42  ;;  %2496 = vmatpush1.bf16.msra.mxu1 %v3879_v43  ;;  %v703_v42 = vld [vmem:[%s4469_s26 + $0x4c8] sm:$0xff] }
  0xec   : > { %2456 = vmatprep.subr.bf16.mxu0 %v3814_v44  ;;  %2497 = vmatprep.subr.bf16.mxu1 %v3816_v45  ;;  %v735_v43 = vld [vmem:[%s4469_s26 + $0x5c8] sm:$0xff]  ;;  %v3757_v44 = vcombine.low %v572_v31, %v604_v32  ;;  %v3759_v45 = vcombine.low %v573_v33, %v605_v34  ;;  %v642_v32 = vld [vmem:[%s4469_s26 + $0x2e0] sm:$0xff] }
  0xed   : > { %2476 = vmatprep.mubr.bf16.mxu0 %v4025_v0  ;;  %2517 = vmatprep.mubr.bf16.mxu1 %v4025_v0  ;;  %v3892_v47 = vcombine.high %v703_v42, %v735_v43  ;;  %v674_v33 = vld [vmem:[%s4469_s26 + $0x3e0] sm:$0xff]  ;;  %v643_v34 = vld [vmem:[%s4469_s26 + $0x2e8] sm:$0xff] }
  0xef   : > { %2457 = vmatpush1.bf16.msra.mxu0 %v3813_v50  ;;  %2498 = vmatpush1.bf16.msra.mxu1 %v3815_v51  ;;  %v639_v50 = vld [vmem:[%s4469_s26 + $0x2c8] sm:$0xff] }
  0xf0   : > { %2458 = vmatprep.subr.bf16.mxu0 %v3750_v52  ;;  %2499 = vmatprep.subr.bf16.mxu1 %v3752_v53  ;;  %v671_v51 = vld [vmem:[%s4469_s26 + $0x3c8] sm:$0xff]  ;;  %v3889_v52 = vcombine.low %v702_v40, %v734_v41  ;;  %v3891_v53 = vcombine.low %v703_v42, %v735_v43  ;;  %v578_v41 = vld [vmem:[%s4469_s26 + $0xe0] sm:$0xff] }
  0xf1   : > { %v3828_v55 = vcombine.high %v639_v50, %v671_v51  ;;  %v610_v42 = vld [vmem:[%s4469_s26 + $0x1e0] sm:$0xff] }
  0xf2   : > { %v4735_v43 = vld [vmem:[%s4835_s1] sm:$0x3] }
  0xf3   : > { %2459 = vmatpush1.bf16.msra.mxu0 %v3749_v58  ;;  %2500 = vmatpush1.bf16.msra.mxu1 %v3751_v59  ;;  %v575_v58 = vld [vmem:[%s4469_s26 + $0xc8] sm:$0xff] }
  0xf4   : > { %2536 = vmatprep.subr.bf16.mxu0 %v3882_v60  ;;  %2577 = vmatprep.subr.bf16.mxu1 %v3884_v61  ;;  %v607_v59 = vld [vmem:[%s4469_s26 + $0x1c8] sm:$0xff]  ;;  %v3825_v60 = vcombine.low %v638_v48, %v670_v49  ;;  %v3827_v61 = vcombine.low %v639_v50, %v671_v51  ;;  %v3770_v48 = vcombine.high %v578_v41, %v610_v42  ;;  %v708_v50 = vld [vmem:[%s4469_s26 + $0x4f0] sm:$0xff] }
  0xf5   : > { %v3764_v63 = vcombine.high %v575_v58, %v607_v59  ;;  %v740_v51 = vld [vmem:[%s4469_s26 + $0x5f0] sm:$0xff] }
  0xf6   : > { %3923 = vmatmul.mubr.msk.bf16.vlgmr.msra.gmra.mxu0 %vm1702_vm0, %v4494_v35  ;;  %3924 = vmatmul.mubr.msk.bf16.vlgmr.msra.gmra.mxu1 %vm1702_vm0, %v4494_v35 }
  0xf7   : > { %2537 = vmatpush1.bf16.msra.mxu0 %v3881_v3  ;;  %2578 = vmatpush1.bf16.msra.mxu1 %v3883_v4  ;;  %v705_v3 = vld [vmem:[%s4469_s26 + $0x4d8] sm:$0xff] }
  0xf8   : > { %2538 = vmatprep.subr.bf16.mxu0 %v3818_v5  ;;  %2579 = vmatprep.subr.bf16.mxu1 %v3820_v6  ;;  %v737_v4 = vld [vmem:[%s4469_s26 + $0x5d8] sm:$0xff]  ;;  %v3761_v5 = vcombine.low %v574_v56, %v606_v57  ;;  %v3763_v6 = vcombine.low %v575_v58, %v607_v59  ;;  %v3902_v56 = vcombine.high %v708_v50, %v740_v51  ;;  %v644_v58 = vld [vmem:[%s4469_s26 + $0x2f0] sm:$0xff] }
  0xf9   : > { %2558 = vmatprep.mubr.bf16.mxu0 %v4025_v0  ;;  %2599 = vmatprep.mubr.bf16.mxu1 %v4025_v0  ;;  %v3896_v8 = vcombine.high %v705_v3, %v737_v4  ;;  %v676_v59 = vld [vmem:[%s4469_s26 + $0x3f0] sm:$0xff] }
  0xfb   : > { %2539 = vmatpush1.bf16.msra.mxu0 %v3817_v11  ;;  %2580 = vmatpush1.bf16.msra.mxu1 %v3819_v12  ;;  %v641_v11 = vld [vmem:[%s4469_s26 + $0x2d8] sm:$0xff] }
  0xfc   : > { %2540 = vmatprep.subr.bf16.mxu0 %v3754_v13  ;;  %2581 = vmatprep.subr.bf16.mxu1 %v3756_v14  ;;  %v673_v12 = vld [vmem:[%s4469_s26 + $0x3d8] sm:$0xff]  ;;  %v3893_v13 = vcombine.low %v704_v1, %v736_v2  ;;  %v3895_v14 = vcombine.low %v705_v3, %v737_v4  ;;  %v3838_v1 = vcombine.high %v644_v58, %v676_v59  ;;  %v580_v3 = vld [vmem:[%s4469_s26 + $0xf0] sm:$0xff] }
  0xfd   : > { %v3832_v16 = vcombine.high %v641_v11, %v673_v12  ;;  %v612_v4 = vld [vmem:[%s4469_s26 + $0x1f0] sm:$0xff] }
  0xff   : > { %2541 = vmatpush1.bf16.msra.mxu0 %v3753_v19  ;;  %2582 = vmatpush1.bf16.msra.mxu1 %v3755_v20  ;;  %v577_v19 = vld [vmem:[%s4469_s26 + $0xd8] sm:$0xff] }
 0x100   : > { %2618 = vmatprep.subr.bf16.mxu0 %v3886_v21  ;;  %2659 = vmatprep.subr.bf16.mxu1 %v3888_v22  ;;  %v609_v20 = vld [vmem:[%s4469_s26 + $0x1d8] sm:$0xff]  ;;  %v3829_v21 = vcombine.low %v640_v9, %v672_v10  ;;  %v3831_v22 = vcombine.low %v641_v11, %v673_v12  ;;  %v3774_v9 = vcombine.high %v580_v3, %v612_v4 }
 0x101   : > { %v3768_v24 = vcombine.high %v577_v19, %v609_v20  ;;  %v3773_v11 = vcombine.low %v580_v3, %v612_v4 }
 0x102   : > { %3925 = vmatmul.mubr.msk.bf16.vlgmr.msra.gmra.mxu0 %vm1702_vm0, %v4494_v35  ;;  %3926 = vmatmul.mubr.msk.bf16.vlgmr.msra.gmra.mxu1 %vm1702_vm0, %v4494_v35 }
 0x103   : > { %2619 = vmatpush1.bf16.msra.mxu0 %v3885_v27  ;;  %2660 = vmatpush1.bf16.msra.mxu1 %v3887_v28  ;;  %v707_v27 = vld [vmem:[%s4469_s26 + $0x4e8] sm:$0xff]  ;;  %v3765_v28 = vcombine.low %v576_v17, %v608_v18 }
 0x104   : > { %2620 = vmatprep.subr.bf16.mxu0 %v3822_v29  ;;  %2661 = vmatprep.subr.bf16.mxu1 %v3824_v30  ;;  %v3767_v29 = vcombine.low %v577_v19, %v609_v20  ;;  %v3898_v30 = vcombine.high %v706_v25, %v738_v26 }
 0x105   : > { %2640 = vmatprep.mubr.bf16.mxu0 %v4025_v0  ;;  %2681 = vmatprep.mubr.bf16.mxu1 %v4025_v0 }
 0x107   : > { %2621 = vmatpush1.bf16.msra.mxu0 %v3821_v36  ;;  %2662 = vmatpush1.bf16.msra.mxu1 %v3823_v37  ;;  %v675_v36 = vld [vmem:[%s4469_s26 + $0x3e8] sm:$0xff]  ;;  %v3897_v37 = vcombine.low %v706_v25, %v738_v26 }
 0x108   : > { %2622 = vmatprep.subr.bf16.mxu0 %v3758_v38  ;;  %2663 = vmatprep.subr.bf16.mxu1 %v3760_v39  ;;  %v3834_v39 = vcombine.high %v642_v32, %v674_v33  ;;  %v3836_v40 = vcombine.high %v643_v34, %v675_v36 }
 0x10b   : > { %2623 = vmatpush1.bf16.msra.mxu0 %v3757_v44  ;;  %2664 = vmatpush1.bf16.msra.mxu1 %v3759_v45  ;;  %v579_v44 = vld [vmem:[%s4469_s26 + $0xe8] sm:$0xff] }
 0x10c   : > { %2700 = vmatprep.subr.bf16.mxu0 %v3890_v46  ;;  %2741 = vmatprep.subr.bf16.mxu1 %v3892_v47  ;;  %v611_v45 = vld [vmem:[%s4469_s26 + $0x1e8] sm:$0xff]  ;;  %v3833_v46 = vcombine.low %v642_v32, %v674_v33  ;;  %v3835_v47 = vcombine.low %v643_v34, %v675_v36 }
 0x10d   : > { %v3772_v49 = vcombine.high %v579_v44, %v611_v45 }
 0x10e   : > { %3927 = vmatmul.mubr.msk.bf16.vlgmr.msra.gmra.mxu0 %vm1702_vm0, %v4494_v35  ;;  %3928 = vmatmul.mubr.msk.bf16.vlgmr.msra.gmra.mxu1 %vm1702_vm0, %v4494_v35 }
 0x10f   : > { %2701 = vmatpush1.bf16.msra.mxu0 %v3889_v52  ;;  %2742 = vmatpush1.bf16.msra.mxu1 %v3891_v53  ;;  %v709_v52 = vld [vmem:[%s4469_s26 + $0x4f8] sm:$0xff] }
 0x110   : > { %2702 = vmatprep.subr.bf16.mxu0 %v3826_v54  ;;  %2743 = vmatprep.subr.bf16.mxu1 %v3828_v55  ;;  %v741_v53 = vld [vmem:[%s4469_s26 + $0x5f8] sm:$0xff]  ;;  %v3769_v54 = vcombine.low %v578_v41, %v610_v42  ;;  %v3771_v55 = vcombine.low %v579_v44, %v611_v45 }
 0x111   : > { %2722 = vmatprep.mubr.bf16.mxu0 %v4025_v0  ;;  %2763 = vmatprep.mubr.bf16.mxu1 %v4025_v0  ;;  %v3904_v57 = vcombine.high %v709_v52, %v741_v53 }
 0x113   : > { %2703 = vmatpush1.bf16.msra.mxu0 %v3825_v60  ;;  %2744 = vmatpush1.bf16.msra.mxu1 %v3827_v61  ;;  %v645_v60 = vld [vmem:[%s4469_s26 + $0x2f8] sm:$0xff] }
 0x114   : > { %2704 = vmatprep.subr.bf16.mxu0 %v3762_v62  ;;  %2745 = vmatprep.subr.bf16.mxu1 %v3764_v63  ;;  %v677_v61 = vld [vmem:[%s4469_s26 + $0x3f8] sm:$0xff]  ;;  %v3901_v62 = vcombine.low %v708_v50, %v740_v51  ;;  %v3903_v63 = vcombine.low %v709_v52, %v741_v53 }
 0x115   : > { %v3840_v2 = vcombine.high %v645_v60, %v677_v61 }
 0x117   : > { %2705 = vmatpush1.bf16.msra.mxu0 %v3761_v5  ;;  %2746 = vmatpush1.bf16.msra.mxu1 %v3763_v6  ;;  %v581_v5 = vld [vmem:[%s4469_s26 + $0xf8] sm:$0xff] }
 0x118   : > { %2782 = vmatprep.subr.bf16.mxu0 %v3894_v7  ;;  %2823 = vmatprep.subr.bf16.mxu1 %v3896_v8  ;;  %v613_v6 = vld [vmem:[%s4469_s26 + $0x1f8] sm:$0xff]  ;;  %v3837_v7 = vcombine.low %v644_v58, %v676_v59  ;;  %v3839_v8 = vcombine.low %v645_v60, %v677_v61 }
 0x119   : > { %v3776_v10 = vcombine.high %v581_v5, %v613_v6  ;;  %v3775_v12 = vcombine.low %v581_v5, %v613_v6 }
 0x11a   : > { %3929 = vmatmul.mubr.msk.bf16.vlgmr.msra.gmra.mxu0 %vm1702_vm0, %v4494_v35  ;;  %3930 = vmatmul.mubr.msk.bf16.vlgmr.msra.gmra.mxu1 %vm1702_vm0, %v4494_v35  ;;  %v739_v35 = vld [vmem:[%s4469_s26 + $0x5e8] sm:$0xff] }
 0x11b   : > { %2783 = vmatpush1.bf16.msra.mxu0 %v3893_v13  ;;  %2824 = vmatpush1.bf16.msra.mxu1 %v3895_v14  ;;  %v3900_v31 = vcombine.high %v707_v27, %v739_v35  ;;  %v3899_v38 = vcombine.low %v707_v27, %v739_v35  ;;  %v4026_v13 = vmov 1983009808  }
 0x11c   : > { %2784 = vmatprep.subr.bf16.mxu0 %v3830_v15  ;;  %2825 = vmatprep.subr.bf16.mxu1 %v3832_v16  ;;  %v3341_v14 = vunpack.c.l.s4 %v4026_v13  ;;  %v3343_v15 = vlaneseq }
 0x11d   : > { %2804 = vmatprep.mubr.bf16.mxu0 %v4025_v0  ;;  %2845 = vmatprep.mubr.bf16.mxu1 %v4025_v0 }
 0x11e   : > { %v3342_v16 = vunpack.c.0.s8 %v3341_v14  ;;  %v3344_v17 = vshrl.u32 %v3343_v15, 7 }
 0x11f   : > { %2785 = vmatpush1.bf16.msra.mxu0 %v3829_v21  ;;  %2826 = vmatpush1.bf16.msra.mxu1 %v3831_v22 }
 0x120   : > { %2786 = vmatprep.subr.bf16.mxu0 %v3766_v23  ;;  %2827 = vmatprep.subr.bf16.mxu1 %v3768_v24  ;;  %v4769_v24 = vsub.s32 %v3342_v16, %v3344_v17 }
 0x123   : > { %2787 = vmatpush1.bf16.msra.mxu0 %v3765_v28  ;;  %2828 = vmatpush1.bf16.msra.mxu1 %v3767_v29 }
 0x124   : > { %2864 = vmatprep.subr.bf16.mxu0 %v3898_v30  ;;  %2905 = vmatprep.subr.bf16.mxu1 %v3900_v31 }
 0x126   : > { %3931 = vmatmul.mubr.msk.bf16.vlgmr.msra.gmra.mxu0 %vm1702_vm0, %v4735_v43  ;;  %3932 = vmatmul.mubr.msk.bf16.vlgmr.msra.gmra.mxu1 %vm1702_vm0, %v4735_v43 }
 0x127   : > { %2865 = vmatpush1.bf16.msra.mxu0 %v3897_v37  ;;  %2906 = vmatpush1.bf16.msra.mxu1 %v3899_v38 }
 0x128   : > { %2866 = vmatprep.subr.bf16.mxu0 %v3834_v39  ;;  %2907 = vmatprep.subr.bf16.mxu1 %v3836_v40 }
 0x129   : > { %2886 = vmatprep.mubr.bf16.mxu0 %v4025_v0  ;;  %2927 = vmatprep.mubr.bf16.mxu1 %v4025_v0 }
 0x12b   : > { %2867 = vmatpush1.bf16.msra.mxu0 %v3833_v46  ;;  %2908 = vmatpush1.bf16.msra.mxu1 %v3835_v47 }
 0x12c   : > { %2868 = vmatprep.subr.bf16.mxu0 %v3770_v48  ;;  %2909 = vmatprep.subr.bf16.mxu1 %v3772_v49 }
 0x12f   : > { %2869 = vmatpush1.bf16.msra.mxu0 %v3769_v54  ;;  %2910 = vmatpush1.bf16.msra.mxu1 %v3771_v55 }
 0x130   : > { %2946 = vmatprep.subr.bf16.mxu0 %v3902_v56  ;;  %2987 = vmatprep.subr.bf16.mxu1 %v3904_v57 }
 0x132   : > { %3933 = vmatmul.mubr.msk.bf16.vlgmr.msra.gmra.mxu0 %vm1702_vm0, %v4735_v43  ;;  %3934 = vmatmul.mubr.msk.bf16.vlgmr.msra.gmra.mxu1 %vm1702_vm0, %v4735_v43 }
 0x133   : > { %2947 = vmatpush1.bf16.msra.mxu0 %v3901_v62  ;;  %2988 = vmatpush1.bf16.msra.mxu1 %v3903_v63 }
 0x134   : > { %2948 = vmatprep.subr.bf16.mxu0 %v3838_v1  ;;  %2989 = vmatprep.subr.bf16.mxu1 %v3840_v2 }
 0x135   : > { %2968 = vmatprep.mubr.bf16.mxu0 %v4025_v0  ;;  %3009 = vmatprep.mubr.bf16.mxu1 %v4025_v0 }
 0x137   : > { %2949 = vmatpush1.bf16.msra.mxu0 %v3837_v7  ;;  %2990 = vmatpush1.bf16.msra.mxu1 %v3839_v8 }
 0x138   : > { %2950 = vmatprep.subr.bf16.mxu0 %v3774_v9  ;;  %2991 = vmatprep.subr.bf16.mxu1 %v3776_v10 }
 0x13b   : > { %2951 = vmatpush1.bf16.msra.mxu0 %v3773_v11  ;;  %2992 = vmatpush1.bf16.msra.mxu1 %v3775_v12 }
 0x13e   : > { %3935 = vmatmul.mubr.msk.bf16.vlgmr.msra.gmra.mxu0 %vm1702_vm0, %v4735_v43  ;;  %3936 = vmatmul.mubr.msk.bf16.vlgmr.msra.gmra.mxu1 %vm1702_vm0, %v4735_v43 }
 0x14a   : > { %v1740_v0 = vpop.f32.mrf.mxu0  ;;  %v1781_v19 = vpop.f32.mrf.mxu1 }
 0x14b   : > { %v3082_v18 = vmul.f32 0.2, %v1740_v0  ;;  %vm3018_vm1 = vcmp.ge.f32.partialorder %v1740_v0, 0.0  ;;  %v3084_v20 = vmul.f32 0.2, %v1781_v19  ;;  %vm3020_vm2 = vcmp.ge.f32.partialorder %v1781_v19, 0.0 }
 0x14c   : > { %v1742_v21 = vpop.f32.mrf.mxu0  ;;  %v1783_v23 = vpop.f32.mrf.mxu1 }
 0x14d   : > { %vm3019_vm3 = vcmp.ge.f32.partialorder %v1742_v21, 0.0  ;;  %v3083_v22 = vmul.f32 0.2, %v1742_v21  ;;  %vm3021_vm4 = vcmp.ge.f32.partialorder %v1783_v23, 0.0  ;;  %v3085_v25 = vmul.f32 0.2, %v1783_v23 }
 0x14e   : > { %v1744_v26 = vpop.f32.mrf.mxu0  ;;  %v3146_v27 = vsel %vm3018_vm1, %v1740_v0, %v3082_v18  ;;  %v1785_v28 = vpop.f32.mrf.mxu1  ;;  %v3148_v29 = vsel %vm3020_vm2, %v1781_v19, %v3084_v20 }
 0x14f   : > { %v3147_v35 = vsel %vm3019_vm3, %v1742_v21, %v3083_v22  ;;  %v3149_v31 = vsel %vm3021_vm4, %v1783_v23, %v3085_v25 }
 0x150   : > { %v3937_v30 = vpack.c.bf16 %v3147_v35, %v3146_v27  ;;  %v1745_v32 = vpop.f32.mrf.mxu0  ;;  %v3938_v33 = vpack.c.bf16 %v3149_v31, %v3148_v29  ;;  %v1786_v34 = vpop.f32.mrf.mxu1 }
 0x152   : > { %v3346_v36 = vrot.slane %v3937_v30, %v4769_v24  ;;  %v3353_v37 = vrot.slane %v3938_v33, %v4769_v24 }
 0x154   : > { %v3354_v38 = vcombine.low %v3346_v36, %v3353_v37 }
 0x156   : > { %v1822_v39 = vpop.f32.mrf.mxu0  ;;  %3626 = vst [vmem:[%s4776_s7] sm:$0xff] %v3354_v38  ;;  %v1863_v41 = vpop.f32.mrf.mxu1 }
 0x157   : > { %v3086_v40 = vmul.f32 0.2, %v1822_v39  ;;  %vm3022_vm5 = vcmp.ge.f32.partialorder %v1822_v39, 0.0  ;;  %v3088_v42 = vmul.f32 0.2, %v1863_v41  ;;  %vm3024_vm6 = vcmp.ge.f32.partialorder %v1863_v41, 0.0 }
 0x158   : > { %v1824_v43 = vpop.f32.mrf.mxu0  ;;  %v1865_v45 = vpop.f32.mrf.mxu1 }
 0x159   : > { %vm3023_vm7 = vcmp.ge.f32.partialorder %v1824_v43, 0.0  ;;  %v3087_v44 = vmul.f32 0.2, %v1824_v43  ;;  %vm3025_vm8 = vcmp.ge.f32.partialorder %v1865_v45, 0.0  ;;  %v3089_v46 = vmul.f32 0.2, %v1865_v45 }
 0x15a   : > { %v1826_v47 = vpop.f32.mrf.mxu0  ;;  %v3150_v48 = vsel %vm3022_vm5, %v1822_v39, %v3086_v40  ;;  %v1867_v50 = vpop.f32.mrf.mxu1  ;;  %v3152_v51 = vsel %vm3024_vm6, %v1863_v41, %v3088_v42 }
 0x15b   : > { %v3151_v49 = vsel %vm3023_vm7, %v1824_v43, %v3087_v44  ;;  %v3153_v53 = vsel %vm3025_vm8, %v1865_v45, %v3089_v46 }
 0x15c   : > { %v3939_v52 = vpack.c.bf16 %v3151_v49, %v3150_v48  ;;  %v1827_v54 = vpop.f32.mrf.mxu0  ;;  %v3940_v55 = vpack.c.bf16 %v3153_v53, %v3152_v51  ;;  %v1868_v56 = vpop.f32.mrf.mxu1 }
 0x15e   : > { %v3363_v57 = vrot.slane %v3939_v52, %v4769_v24  ;;  %v3370_v58 = vrot.slane %v3940_v55, %v4769_v24 }
 0x160   : > { %v3371_v59 = vcombine.low %v3363_v57, %v3370_v58 }
 0x162   : > { %v1904_v60 = vpop.f32.mrf.mxu0  ;;  %3627 = vst [vmem:[%s4776_s7 + $0x8] sm:$0xff] %v3371_v59  ;;  %v1945_v62 = vpop.f32.mrf.mxu1 }
 0x163   : > { %v3090_v61 = vmul.f32 0.2, %v1904_v60  ;;  %vm3026_vm9 = vcmp.ge.f32.partialorder %v1904_v60, 0.0  ;;  %v3092_v63 = vmul.f32 0.2, %v1945_v62  ;;  %vm3028_vm10 = vcmp.ge.f32.partialorder %v1945_v62, 0.0 }
 0x164   : > { %v1906_v1 = vpop.f32.mrf.mxu0  ;;  %v1947_v3 = vpop.f32.mrf.mxu1 }
 0x165   : > { %vm3027_vm11 = vcmp.ge.f32.partialorder %v1906_v1, 0.0  ;;  %v3091_v2 = vmul.f32 0.2, %v1906_v1  ;;  %vm3029_vm12 = vcmp.ge.f32.partialorder %v1947_v3, 0.0  ;;  %v3093_v4 = vmul.f32 0.2, %v1947_v3 }
 0x166   : > { %v1908_v5 = vpop.f32.mrf.mxu0  ;;  %v3154_v6 = vsel %vm3026_vm9, %v1904_v60, %v3090_v61  ;;  %v1949_v8 = vpop.f32.mrf.mxu1  ;;  %v3156_v9 = vsel %vm3028_vm10, %v1945_v62, %v3092_v63 }
 0x167   : > { %v3155_v7 = vsel %vm3027_vm11, %v1906_v1, %v3091_v2  ;;  %v3157_v11 = vsel %vm3029_vm12, %v1947_v3, %v3093_v4 }
 0x168   : > { %v3941_v10 = vpack.c.bf16 %v3155_v7, %v3154_v6  ;;  %v1909_v12 = vpop.f32.mrf.mxu0  ;;  %v3942_v13 = vpack.c.bf16 %v3157_v11, %v3156_v9  ;;  %v1950_v14 = vpop.f32.mrf.mxu1 }
 0x16a   : > { %v3380_v15 = vrot.slane %v3941_v10, %v4769_v24  ;;  %v3387_v0 = vrot.slane %v3942_v13, %v4769_v24 }
 0x16c   : > { %v3388_v16 = vcombine.low %v3380_v15, %v3387_v0 }
 0x16e   : > { %v1986_v17 = vpop.f32.mrf.mxu0  ;;  %3628 = vst [vmem:[%s4776_s7 + $0x10] sm:$0xff] %v3388_v16  ;;  %v2027_v19 = vpop.f32.mrf.mxu1 }
 0x16f   : > { %v3094_v18 = vmul.f32 0.2, %v1986_v17  ;;  %vm3030_vm13 = vcmp.ge.f32.partialorder %v1986_v17, 0.0  ;;  %v3096_v20 = vmul.f32 0.2, %v2027_v19  ;;  %vm3032_vm14 = vcmp.ge.f32.partialorder %v2027_v19, 0.0 }
 0x170   : > { %v1988_v21 = vpop.f32.mrf.mxu0  ;;  %v2029_v23 = vpop.f32.mrf.mxu1 }
 0x171   : > { %vm3031_vm15 = vcmp.ge.f32.partialorder %v1988_v21, 0.0  ;;  %v3095_v22 = vmul.f32 0.2, %v1988_v21  ;;  %vm3033_vm0 = vcmp.ge.f32.partialorder %v2029_v23, 0.0  ;;  %v3097_v25 = vmul.f32 0.2, %v2029_v23 }
 0x172   : > { %v1990_v26 = vpop.f32.mrf.mxu0  ;;  %v3158_v27 = vsel %vm3030_vm13, %v1986_v17, %v3094_v18  ;;  %v2031_v28 = vpop.f32.mrf.mxu1  ;;  %v3160_v29 = vsel %vm3032_vm14, %v2027_v19, %v3096_v20 }
 0x173   : > { %v3159_v35 = vsel %vm3031_vm15, %v1988_v21, %v3095_v22  ;;  %v3161_v31 = vsel %vm3033_vm0, %v2029_v23, %v3097_v25 }
 0x174   : > { %v3943_v30 = vpack.c.bf16 %v3159_v35, %v3158_v27  ;;  %v1991_v32 = vpop.f32.mrf.mxu0  ;;  %v3944_v33 = vpack.c.bf16 %v3161_v31, %v3160_v29  ;;  %v2032_v34 = vpop.f32.mrf.mxu1 }
 0x176   : > { %v3397_v36 = vrot.slane %v3943_v30, %v4769_v24  ;;  %v3404_v37 = vrot.slane %v3944_v33, %v4769_v24 }
 0x178   : > { %v3405_v38 = vcombine.low %v3397_v36, %v3404_v37 }
 0x17a   : > { %v2068_v39 = vpop.f32.mrf.mxu0  ;;  %3629 = vst [vmem:[%s4776_s7 + $0x18] sm:$0xff] %v3405_v38  ;;  %v2109_v41 = vpop.f32.mrf.mxu1 }
 0x17b   : > { %v3098_v40 = vmul.f32 0.2, %v2068_v39  ;;  %vm3034_vm1 = vcmp.ge.f32.partialorder %v2068_v39, 0.0  ;;  %v3100_v42 = vmul.f32 0.2, %v2109_v41  ;;  %vm3036_vm2 = vcmp.ge.f32.partialorder %v2109_v41, 0.0 }
 0x17c   : > { %v2070_v43 = vpop.f32.mrf.mxu0  ;;  %v2111_v45 = vpop.f32.mrf.mxu1 }
 0x17d   : > { %vm3035_vm3 = vcmp.ge.f32.partialorder %v2070_v43, 0.0  ;;  %v3099_v44 = vmul.f32 0.2, %v2070_v43  ;;  %vm3037_vm4 = vcmp.ge.f32.partialorder %v2111_v45, 0.0  ;;  %v3101_v46 = vmul.f32 0.2, %v2111_v45 }
 0x17e   : > { %v2072_v47 = vpop.f32.mrf.mxu0  ;;  %v3162_v48 = vsel %vm3034_vm1, %v2068_v39, %v3098_v40  ;;  %v2113_v50 = vpop.f32.mrf.mxu1  ;;  %v3164_v51 = vsel %vm3036_vm2, %v2109_v41, %v3100_v42 }
 0x17f   : > { %v3163_v49 = vsel %vm3035_vm3, %v2070_v43, %v3099_v44  ;;  %v3165_v53 = vsel %vm3037_vm4, %v2111_v45, %v3101_v46 }
 0x180   : > { %v3945_v52 = vpack.c.bf16 %v3163_v49, %v3162_v48  ;;  %v2073_v54 = vpop.f32.mrf.mxu0  ;;  %v3946_v55 = vpack.c.bf16 %v3165_v53, %v3164_v51  ;;  %v2114_v56 = vpop.f32.mrf.mxu1 }
 0x182   : > { %v3414_v57 = vrot.slane %v3945_v52, %v4769_v24  ;;  %v3421_v58 = vrot.slane %v3946_v55, %v4769_v24 }
 0x184   : > { %v3422_v59 = vcombine.low %v3414_v57, %v3421_v58 }
 0x186   : > { %v2150_v60 = vpop.f32.mrf.mxu0  ;;  %3630 = vst [vmem:[%s4776_s7 + $0x20] sm:$0xff] %v3422_v59  ;;  %v2191_v62 = vpop.f32.mrf.mxu1 }
 0x187   : > { %v3102_v61 = vmul.f32 0.2, %v2150_v60  ;;  %vm3038_vm5 = vcmp.ge.f32.partialorder %v2150_v60, 0.0  ;;  %v3104_v63 = vmul.f32 0.2, %v2191_v62  ;;  %vm3040_vm6 = vcmp.ge.f32.partialorder %v2191_v62, 0.0 }
 0x188   : > { %v2152_v1 = vpop.f32.mrf.mxu0  ;;  %v2193_v3 = vpop.f32.mrf.mxu1 }
 0x189   : > { %vm3039_vm7 = vcmp.ge.f32.partialorder %v2152_v1, 0.0  ;;  %v3103_v2 = vmul.f32 0.2, %v2152_v1  ;;  %vm3041_vm8 = vcmp.ge.f32.partialorder %v2193_v3, 0.0  ;;  %v3105_v4 = vmul.f32 0.2, %v2193_v3 }
 0x18a   : > { %v2154_v5 = vpop.f32.mrf.mxu0  ;;  %v3166_v6 = vsel %vm3038_vm5, %v2150_v60, %v3102_v61  ;;  %v2195_v8 = vpop.f32.mrf.mxu1  ;;  %v3168_v9 = vsel %vm3040_vm6, %v2191_v62, %v3104_v63 }
 0x18b   : > { %v3167_v7 = vsel %vm3039_vm7, %v2152_v1, %v3103_v2  ;;  %v3169_v11 = vsel %vm3041_vm8, %v2193_v3, %v3105_v4 }
 0x18c   : > { %v3947_v10 = vpack.c.bf16 %v3167_v7, %v3166_v6  ;;  %v2155_v12 = vpop.f32.mrf.mxu0  ;;  %v3948_v13 = vpack.c.bf16 %v3169_v11, %v3168_v9  ;;  %v2196_v14 = vpop.f32.mrf.mxu1 }
 0x18e   : > { %v3431_v15 = vrot.slane %v3947_v10, %v4769_v24  ;;  %v3438_v0 = vrot.slane %v3948_v13, %v4769_v24 }
 0x190   : > { %v3439_v16 = vcombine.low %v3431_v15, %v3438_v0 }
 0x192   : > { %v2232_v17 = vpop.f32.mrf.mxu0  ;;  %3631 = vst [vmem:[%s4776_s7 + $0x28] sm:$0xff] %v3439_v16  ;;  %v2273_v19 = vpop.f32.mrf.mxu1 }
 0x193   : > { %v3106_v18 = vmul.f32 0.2, %v2232_v17  ;;  %vm3042_vm9 = vcmp.ge.f32.partialorder %v2232_v17, 0.0  ;;  %v3108_v20 = vmul.f32 0.2, %v2273_v19  ;;  %vm3044_vm10 = vcmp.ge.f32.partialorder %v2273_v19, 0.0 }
 0x194   : > { %v2234_v21 = vpop.f32.mrf.mxu0  ;;  %v2275_v23 = vpop.f32.mrf.mxu1 }
 0x195   : > { %vm3043_vm11 = vcmp.ge.f32.partialorder %v2234_v21, 0.0  ;;  %v3107_v22 = vmul.f32 0.2, %v2234_v21  ;;  %vm3045_vm12 = vcmp.ge.f32.partialorder %v2275_v23, 0.0  ;;  %v3109_v25 = vmul.f32 0.2, %v2275_v23 }
 0x196   : > { %v2236_v26 = vpop.f32.mrf.mxu0  ;;  %v3170_v27 = vsel %vm3042_vm9, %v2232_v17, %v3106_v18  ;;  %v2277_v28 = vpop.f32.mrf.mxu1  ;;  %v3172_v29 = vsel %vm3044_vm10, %v2273_v19, %v3108_v20 }
 0x197   : > { %v3171_v35 = vsel %vm3043_vm11, %v2234_v21, %v3107_v22  ;;  %v3173_v31 = vsel %vm3045_vm12, %v2275_v23, %v3109_v25 }
 0x198   : > { %v3949_v30 = vpack.c.bf16 %v3171_v35, %v3170_v27  ;;  %v2237_v32 = vpop.f32.mrf.mxu0  ;;  %v3950_v33 = vpack.c.bf16 %v3173_v31, %v3172_v29  ;;  %v2278_v34 = vpop.f32.mrf.mxu1 }
 0x19a   : > { %v3448_v36 = vrot.slane %v3949_v30, %v4769_v24  ;;  %v3455_v37 = vrot.slane %v3950_v33, %v4769_v24 }
 0x19c   : > { %v3456_v38 = vcombine.low %v3448_v36, %v3455_v37 }
 0x19e   : > { %v2314_v39 = vpop.f32.mrf.mxu0  ;;  %3632 = vst [vmem:[%s4776_s7 + $0x30] sm:$0xff] %v3456_v38  ;;  %v2355_v41 = vpop.f32.mrf.mxu1 }
 0x19f   : > { %v3110_v40 = vmul.f32 0.2, %v2314_v39  ;;  %vm3046_vm13 = vcmp.ge.f32.partialorder %v2314_v39, 0.0  ;;  %v3112_v42 = vmul.f32 0.2, %v2355_v41  ;;  %vm3048_vm14 = vcmp.ge.f32.partialorder %v2355_v41, 0.0 }
 0x1a0   : > { %v2316_v43 = vpop.f32.mrf.mxu0  ;;  %v2357_v45 = vpop.f32.mrf.mxu1 }
 0x1a1   : > { %vm3047_vm15 = vcmp.ge.f32.partialorder %v2316_v43, 0.0  ;;  %v3111_v44 = vmul.f32 0.2, %v2316_v43  ;;  %vm3049_vm0 = vcmp.ge.f32.partialorder %v2357_v45, 0.0  ;;  %v3113_v46 = vmul.f32 0.2, %v2357_v45 }
 0x1a2   : > { %v2318_v47 = vpop.f32.mrf.mxu0  ;;  %v3174_v48 = vsel %vm3046_vm13, %v2314_v39, %v3110_v40  ;;  %v2359_v50 = vpop.f32.mrf.mxu1  ;;  %v3176_v51 = vsel %vm3048_vm14, %v2355_v41, %v3112_v42 }
 0x1a3   : > { %v3175_v49 = vsel %vm3047_vm15, %v2316_v43, %v3111_v44  ;;  %v3177_v53 = vsel %vm3049_vm0, %v2357_v45, %v3113_v46 }
 0x1a4   : > { %v3951_v52 = vpack.c.bf16 %v3175_v49, %v3174_v48  ;;  %v2319_v54 = vpop.f32.mrf.mxu0  ;;  %v3952_v55 = vpack.c.bf16 %v3177_v53, %v3176_v51  ;;  %v2360_v56 = vpop.f32.mrf.mxu1 }
 0x1a6   : > { %v3465_v57 = vrot.slane %v3951_v52, %v4769_v24  ;;  %v3472_v58 = vrot.slane %v3952_v55, %v4769_v24 }
 0x1a8   : > { %v3473_v59 = vcombine.low %v3465_v57, %v3472_v58 }
 0x1aa   : > { %v2396_v60 = vpop.f32.mrf.mxu0  ;;  %3633 = vst [vmem:[%s4776_s7 + $0x38] sm:$0xff] %v3473_v59  ;;  %v2437_v62 = vpop.f32.mrf.mxu1 }
 0x1ab   : > { %v3114_v61 = vmul.f32 0.2, %v2396_v60  ;;  %vm3050_vm1 = vcmp.ge.f32.partialorder %v2396_v60, 0.0  ;;  %v3116_v63 = vmul.f32 0.2, %v2437_v62  ;;  %vm3052_vm2 = vcmp.ge.f32.partialorder %v2437_v62, 0.0 }
 0x1ac   : > { %v2398_v1 = vpop.f32.mrf.mxu0  ;;  %v2439_v3 = vpop.f32.mrf.mxu1 }
 0x1ad   : > { %vm3051_vm3 = vcmp.ge.f32.partialorder %v2398_v1, 0.0  ;;  %v3115_v2 = vmul.f32 0.2, %v2398_v1  ;;  %vm3053_vm4 = vcmp.ge.f32.partialorder %v2439_v3, 0.0  ;;  %v3117_v4 = vmul.f32 0.2, %v2439_v3 }
 0x1ae   : > { %v2400_v5 = vpop.f32.mrf.mxu0  ;;  %v3178_v6 = vsel %vm3050_vm1, %v2396_v60, %v3114_v61  ;;  %v2441_v8 = vpop.f32.mrf.mxu1  ;;  %v3180_v9 = vsel %vm3052_vm2, %v2437_v62, %v3116_v63 }
 0x1af   : > { %v3179_v7 = vsel %vm3051_vm3, %v2398_v1, %v3115_v2  ;;  %v3181_v11 = vsel %vm3053_vm4, %v2439_v3, %v3117_v4 }
 0x1b0   : > { %v3953_v10 = vpack.c.bf16 %v3179_v7, %v3178_v6  ;;  %v2401_v12 = vpop.f32.mrf.mxu0  ;;  %v3954_v13 = vpack.c.bf16 %v3181_v11, %v3180_v9  ;;  %v2442_v14 = vpop.f32.mrf.mxu1 }
 0x1b2   : > { %v3482_v15 = vrot.slane %v3953_v10, %v4769_v24  ;;  %v3489_v0 = vrot.slane %v3954_v13, %v4769_v24 }
 0x1b4   : > { %v3490_v16 = vcombine.low %v3482_v15, %v3489_v0 }
 0x1b6   : > { %v2478_v17 = vpop.f32.mrf.mxu0  ;;  %3634 = vst [vmem:[%s4776_s7 + $0x40] sm:$0xff] %v3490_v16  ;;  %v2519_v19 = vpop.f32.mrf.mxu1 }
 0x1b7   : > { %v3118_v18 = vmul.f32 0.2, %v2478_v17  ;;  %vm3054_vm5 = vcmp.ge.f32.partialorder %v2478_v17, 0.0  ;;  %v3120_v20 = vmul.f32 0.2, %v2519_v19  ;;  %vm3056_vm6 = vcmp.ge.f32.partialorder %v2519_v19, 0.0 }
 0x1b8   : > { %v2480_v21 = vpop.f32.mrf.mxu0  ;;  %v2521_v23 = vpop.f32.mrf.mxu1 }
 0x1b9   : > { %vm3055_vm7 = vcmp.ge.f32.partialorder %v2480_v21, 0.0  ;;  %v3119_v22 = vmul.f32 0.2, %v2480_v21  ;;  %vm3057_vm8 = vcmp.ge.f32.partialorder %v2521_v23, 0.0  ;;  %v3121_v25 = vmul.f32 0.2, %v2521_v23 }
 0x1ba   : > { %v2482_v26 = vpop.f32.mrf.mxu0  ;;  %v3182_v27 = vsel %vm3054_vm5, %v2478_v17, %v3118_v18  ;;  %v2523_v28 = vpop.f32.mrf.mxu1  ;;  %v3184_v29 = vsel %vm3056_vm6, %v2519_v19, %v3120_v20 }
 0x1bb   : > { %v3183_v35 = vsel %vm3055_vm7, %v2480_v21, %v3119_v22  ;;  %v3185_v31 = vsel %vm3057_vm8, %v2521_v23, %v3121_v25 }
 0x1bc   : > { %v3955_v30 = vpack.c.bf16 %v3183_v35, %v3182_v27  ;;  %v2483_v32 = vpop.f32.mrf.mxu0  ;;  %v3956_v33 = vpack.c.bf16 %v3185_v31, %v3184_v29  ;;  %v2524_v34 = vpop.f32.mrf.mxu1 }
 0x1be   : > { %v3499_v36 = vrot.slane %v3955_v30, %v4769_v24  ;;  %v3506_v37 = vrot.slane %v3956_v33, %v4769_v24 }
 0x1c0   : > { %v3507_v38 = vcombine.low %v3499_v36, %v3506_v37 }
 0x1c2   : > { %v2560_v39 = vpop.f32.mrf.mxu0  ;;  %3635 = vst [vmem:[%s4776_s7 + $0x48] sm:$0xff] %v3507_v38  ;;  %v2601_v41 = vpop.f32.mrf.mxu1 }
 0x1c3   : > { %v3122_v40 = vmul.f32 0.2, %v2560_v39  ;;  %vm3058_vm9 = vcmp.ge.f32.partialorder %v2560_v39, 0.0  ;;  %v3124_v42 = vmul.f32 0.2, %v2601_v41  ;;  %vm3060_vm10 = vcmp.ge.f32.partialorder %v2601_v41, 0.0 }
 0x1c4   : > { %v2562_v43 = vpop.f32.mrf.mxu0  ;;  %v2603_v45 = vpop.f32.mrf.mxu1 }
 0x1c5   : > { %vm3059_vm11 = vcmp.ge.f32.partialorder %v2562_v43, 0.0  ;;  %v3123_v44 = vmul.f32 0.2, %v2562_v43  ;;  %vm3061_vm12 = vcmp.ge.f32.partialorder %v2603_v45, 0.0  ;;  %v3125_v46 = vmul.f32 0.2, %v2603_v45 }
 0x1c6   : > { %v2564_v47 = vpop.f32.mrf.mxu0  ;;  %v3186_v48 = vsel %vm3058_vm9, %v2560_v39, %v3122_v40  ;;  %v2605_v50 = vpop.f32.mrf.mxu1  ;;  %v3188_v51 = vsel %vm3060_vm10, %v2601_v41, %v3124_v42 }
 0x1c7   : > { %v3187_v49 = vsel %vm3059_vm11, %v2562_v43, %v3123_v44  ;;  %v3189_v53 = vsel %vm3061_vm12, %v2603_v45, %v3125_v46 }
 0x1c8   : > { %v3957_v52 = vpack.c.bf16 %v3187_v49, %v3186_v48  ;;  %v2565_v54 = vpop.f32.mrf.mxu0  ;;  %v3958_v55 = vpack.c.bf16 %v3189_v53, %v3188_v51  ;;  %v2606_v56 = vpop.f32.mrf.mxu1 }
 0x1ca   : > { %v3516_v57 = vrot.slane %v3957_v52, %v4769_v24  ;;  %v3523_v58 = vrot.slane %v3958_v55, %v4769_v24 }
 0x1cc   : > { %v3524_v59 = vcombine.low %v3516_v57, %v3523_v58 }
 0x1ce   : > { %v2642_v60 = vpop.f32.mrf.mxu0  ;;  %3636 = vst [vmem:[%s4776_s7 + $0x50] sm:$0xff] %v3524_v59  ;;  %v2683_v62 = vpop.f32.mrf.mxu1 }
 0x1cf   : > { %v3126_v61 = vmul.f32 0.2, %v2642_v60  ;;  %vm3062_vm13 = vcmp.ge.f32.partialorder %v2642_v60, 0.0  ;;  %v3128_v63 = vmul.f32 0.2, %v2683_v62  ;;  %vm3064_vm14 = vcmp.ge.f32.partialorder %v2683_v62, 0.0 }
 0x1d0   : > { %v2644_v1 = vpop.f32.mrf.mxu0  ;;  %v2685_v3 = vpop.f32.mrf.mxu1 }
 0x1d1   : > { %vm3063_vm15 = vcmp.ge.f32.partialorder %v2644_v1, 0.0  ;;  %v3127_v2 = vmul.f32 0.2, %v2644_v1  ;;  %vm3065_vm0 = vcmp.ge.f32.partialorder %v2685_v3, 0.0  ;;  %v3129_v4 = vmul.f32 0.2, %v2685_v3 }
 0x1d2   : > { %v2646_v5 = vpop.f32.mrf.mxu0  ;;  %v3190_v6 = vsel %vm3062_vm13, %v2642_v60, %v3126_v61  ;;  %v2687_v8 = vpop.f32.mrf.mxu1  ;;  %v3192_v9 = vsel %vm3064_vm14, %v2683_v62, %v3128_v63 }
 0x1d3   : > { %v3191_v7 = vsel %vm3063_vm15, %v2644_v1, %v3127_v2  ;;  %v3193_v11 = vsel %vm3065_vm0, %v2685_v3, %v3129_v4 }
 0x1d4   : > { %v3959_v10 = vpack.c.bf16 %v3191_v7, %v3190_v6  ;;  %v2647_v12 = vpop.f32.mrf.mxu0  ;;  %v3960_v13 = vpack.c.bf16 %v3193_v11, %v3192_v9  ;;  %v2688_v14 = vpop.f32.mrf.mxu1 }
 0x1d6   : > { %v3533_v15 = vrot.slane %v3959_v10, %v4769_v24  ;;  %v3540_v0 = vrot.slane %v3960_v13, %v4769_v24 }
 0x1d8   : > { %v3541_v16 = vcombine.low %v3533_v15, %v3540_v0 }
 0x1da   : > { %v2724_v17 = vpop.f32.mrf.mxu0  ;;  %3637 = vst [vmem:[%s4776_s7 + $0x58] sm:$0xff] %v3541_v16  ;;  %v2765_v19 = vpop.f32.mrf.mxu1 }
 0x1db   : > { %v3130_v18 = vmul.f32 0.2, %v2724_v17  ;;  %vm3066_vm1 = vcmp.ge.f32.partialorder %v2724_v17, 0.0  ;;  %v3132_v20 = vmul.f32 0.2, %v2765_v19  ;;  %vm3068_vm2 = vcmp.ge.f32.partialorder %v2765_v19, 0.0 }
 0x1dc   : > { %v2726_v21 = vpop.f32.mrf.mxu0  ;;  %v2767_v23 = vpop.f32.mrf.mxu1 }
 0x1dd   : > { %vm3067_vm3 = vcmp.ge.f32.partialorder %v2726_v21, 0.0  ;;  %v3131_v22 = vmul.f32 0.2, %v2726_v21  ;;  %vm3069_vm4 = vcmp.ge.f32.partialorder %v2767_v23, 0.0  ;;  %v3133_v25 = vmul.f32 0.2, %v2767_v23 }
 0x1de   : > { %v2728_v26 = vpop.f32.mrf.mxu0  ;;  %v3194_v27 = vsel %vm3066_vm1, %v2724_v17, %v3130_v18  ;;  %v2769_v28 = vpop.f32.mrf.mxu1  ;;  %v3196_v29 = vsel %vm3068_vm2, %v2765_v19, %v3132_v20 }
 0x1df   : > { %v3195_v35 = vsel %vm3067_vm3, %v2726_v21, %v3131_v22  ;;  %v3197_v31 = vsel %vm3069_vm4, %v2767_v23, %v3133_v25 }
 0x1e0   : > { %v3961_v30 = vpack.c.bf16 %v3195_v35, %v3194_v27  ;;  %v2729_v32 = vpop.f32.mrf.mxu0  ;;  %v3962_v33 = vpack.c.bf16 %v3197_v31, %v3196_v29  ;;  %v2770_v34 = vpop.f32.mrf.mxu1 }
 0x1e2   : > { %v3550_v36 = vrot.slane %v3961_v30, %v4769_v24  ;;  %v3557_v37 = vrot.slane %v3962_v33, %v4769_v24 }
 0x1e4   : > { %v3558_v38 = vcombine.low %v3550_v36, %v3557_v37 }
 0x1e6   : > { %v2806_v39 = vpop.f32.mrf.mxu0  ;;  %3638 = vst [vmem:[%s4776_s7 + $0x60] sm:$0xff] %v3558_v38  ;;  %v2847_v41 = vpop.f32.mrf.mxu1 }
 0x1e7   : > { %v3134_v40 = vmul.f32 0.2, %v2806_v39  ;;  %vm3070_vm5 = vcmp.ge.f32.partialorder %v2806_v39, 0.0  ;;  %v3136_v42 = vmul.f32 0.2, %v2847_v41  ;;  %vm3072_vm6 = vcmp.ge.f32.partialorder %v2847_v41, 0.0 }
 0x1e8   : > { %v2808_v43 = vpop.f32.mrf.mxu0  ;;  %v2849_v45 = vpop.f32.mrf.mxu1 }
 0x1e9   : > { %vm3071_vm7 = vcmp.ge.f32.partialorder %v2808_v43, 0.0  ;;  %v3135_v44 = vmul.f32 0.2, %v2808_v43  ;;  %vm3073_vm8 = vcmp.ge.f32.partialorder %v2849_v45, 0.0  ;;  %v3137_v46 = vmul.f32 0.2, %v2849_v45 }
 0x1ea   : > { %v2810_v47 = vpop.f32.mrf.mxu0  ;;  %v3198_v48 = vsel %vm3070_vm5, %v2806_v39, %v3134_v40  ;;  %v2851_v50 = vpop.f32.mrf.mxu1  ;;  %v3200_v51 = vsel %vm3072_vm6, %v2847_v41, %v3136_v42 }
 0x1eb   : > { %v3199_v49 = vsel %vm3071_vm7, %v2808_v43, %v3135_v44  ;;  %v3201_v53 = vsel %vm3073_vm8, %v2849_v45, %v3137_v46 }
 0x1ec   : > { %v3963_v52 = vpack.c.bf16 %v3199_v49, %v3198_v48  ;;  %v2811_v54 = vpop.f32.mrf.mxu0  ;;  %v3964_v55 = vpack.c.bf16 %v3201_v53, %v3200_v51  ;;  %v2852_v56 = vpop.f32.mrf.mxu1 }
 0x1ee   : > { %v3567_v57 = vrot.slane %v3963_v52, %v4769_v24  ;;  %v3574_v58 = vrot.slane %v3964_v55, %v4769_v24 }
 0x1f0   : > { %v3575_v59 = vcombine.low %v3567_v57, %v3574_v58 }
 0x1f2   : > { %v2888_v60 = vpop.f32.mrf.mxu0  ;;  %3639 = vst [vmem:[%s4776_s7 + $0x68] sm:$0xff] %v3575_v59  ;;  %v2929_v62 = vpop.f32.mrf.mxu1 }
 0x1f3   : > { %v3138_v61 = vmul.f32 0.2, %v2888_v60  ;;  %vm3074_vm9 = vcmp.ge.f32.partialorder %v2888_v60, 0.0  ;;  %v3140_v63 = vmul.f32 0.2, %v2929_v62  ;;  %vm3076_vm10 = vcmp.ge.f32.partialorder %v2929_v62, 0.0 }
 0x1f4   : > { %v2890_v1 = vpop.f32.mrf.mxu0  ;;  %v2931_v3 = vpop.f32.mrf.mxu1 }
 0x1f5   : > { %vm3075_vm11 = vcmp.ge.f32.partialorder %v2890_v1, 0.0  ;;  %v3139_v2 = vmul.f32 0.2, %v2890_v1  ;;  %vm3077_vm12 = vcmp.ge.f32.partialorder %v2931_v3, 0.0  ;;  %v3141_v4 = vmul.f32 0.2, %v2931_v3 }
 0x1f6   : > { %v2892_v5 = vpop.f32.mrf.mxu0  ;;  %v3202_v6 = vsel %vm3074_vm9, %v2888_v60, %v3138_v61  ;;  %v2933_v8 = vpop.f32.mrf.mxu1  ;;  %v3204_v9 = vsel %vm3076_vm10, %v2929_v62, %v3140_v63 }
 0x1f7   : > { %v3203_v7 = vsel %vm3075_vm11, %v2890_v1, %v3139_v2  ;;  %v3205_v11 = vsel %vm3077_vm12, %v2931_v3, %v3141_v4 }
 0x1f8   : > { %v3965_v10 = vpack.c.bf16 %v3203_v7, %v3202_v6  ;;  %v2893_v12 = vpop.f32.mrf.mxu0  ;;  %v3966_v13 = vpack.c.bf16 %v3205_v11, %v3204_v9  ;;  %v2934_v14 = vpop.f32.mrf.mxu1 }
 0x1fa   : > { %v3584_v15 = vrot.slane %v3965_v10, %v4769_v24  ;;  %v3591_v0 = vrot.slane %v3966_v13, %v4769_v24 }
 0x1fc   : > { %v3592_v16 = vcombine.low %v3584_v15, %v3591_v0 }
 0x1fe   : > { %v2970_v17 = vpop.f32.mrf.mxu0  ;;  %3640 = vst [vmem:[%s4776_s7 + $0x70] sm:$0xff] %v3592_v16  ;;  %v3011_v19 = vpop.f32.mrf.mxu1 }
 0x1ff   : > { %v3142_v18 = vmul.f32 0.2, %v2970_v17  ;;  %vm3078_vm13 = vcmp.ge.f32.partialorder %v2970_v17, 0.0  ;;  %v3144_v20 = vmul.f32 0.2, %v3011_v19  ;;  %vm3080_vm14 = vcmp.ge.f32.partialorder %v3011_v19, 0.0 }
 0x200   : > { %v2972_v21 = vpop.f32.mrf.mxu0  ;;  %v3013_v23 = vpop.f32.mrf.mxu1 }
 0x201   : > { %vm3079_vm15 = vcmp.ge.f32.partialorder %v2972_v21, 0.0  ;;  %v3143_v22 = vmul.f32 0.2, %v2972_v21  ;;  %vm3081_vm0 = vcmp.ge.f32.partialorder %v3013_v23, 0.0  ;;  %v3145_v25 = vmul.f32 0.2, %v3013_v23 }
 0x202   : > { %v2974_v26 = vpop.f32.mrf.mxu0  ;;  %v3206_v27 = vsel %vm3078_vm13, %v2970_v17, %v3142_v18  ;;  %v3015_v28 = vpop.f32.mrf.mxu1  ;;  %v3208_v29 = vsel %vm3080_vm14, %v3011_v19, %v3144_v20 }
 0x203   : > { %v3207_v35 = vsel %vm3079_vm15, %v2972_v21, %v3143_v22  ;;  %v3209_v31 = vsel %vm3081_vm0, %v3013_v23, %v3145_v25 }
 0x204   : > { %v3967_v30 = vpack.c.bf16 %v3207_v35, %v3206_v27  ;;  %v2975_v32 = vpop.f32.mrf.mxu0  ;;  %v3968_v33 = vpack.c.bf16 %v3209_v31, %v3208_v29  ;;  %v3016_v34 = vpop.f32.mrf.mxu1 }
 0x206   : > { %v3601_v36 = vrot.slane %v3967_v30, %v4769_v24  ;;  %v3608_v37 = vrot.slane %v3968_v33, %v4769_v24 }
 0x208   : > { %v3609_v38 = vcombine.low %v3601_v36, %v3608_v37 }
 0x20a   : > { %3641 = vst [vmem:[%s4776_s7 + $0x78] sm:$0xff] %v3609_v38 }
 0x20b PF: > { %p9_p9 = scmp.ge.s32.totalorder %s4059_s13, 6   ;;  %s4837_s9 = smov %s4019_s10 }
 0x20c   : > { %s4838_s10 = smov %s4068_s16  ;;  %s4839_s11 = smov %s4059_s13 }
 0x20d   :  { %11 = sbr.rel (!%p9_p9) target bundleno = 2 (0x2), region = 86 }

// kernel: discriminator_forward.6
= control target key start
LH: loop header
LB: loop body
LE: loop exit
PB: predicated region body
PF: predicated region fallthrough
CT: control target
= control target key end

     0   :  { %v4116_v3 = vmov 0   ;;  %vm1555_vm0 = vcmask 523264   ;;  %s6855_s0 = inlined_call_operand.vmem [shape: bf16[64,8192], index: 0, kind: input, shape index: {}]   ;;  %s6856_s1 = inlined_call_operand.vmem [shape: bf16[8,64], index: 1, kind: input, shape index: {}]   ;;  %s6857_s2 = inlined_call_operand.vmem [shape: f32[8,1], index: 2, kind: input, shape index: {}]   ;;  %s6858_s3 = inlined_call_operand.vmem [shape: f32[8,1], index: 3, kind: input, shape index: {}]   ;;  %s6859_s4 = inlined_call_operand.vmem [shape: bf16[8,8192], index: 4, kind: output, shape index: {}]  }
   0x1   :  { %v211_v0 = vld [vmem:[%s6855_s0 + $0x600] sm:$0xff]  ;;  %v212_v2 = vld [vmem:[%s6855_s0 + $0x608] sm:$0xff]  ;;  %1591 = vmatprep.mubr.bf16.mxu0 %v4116_v3  ;;  %1632 = vmatprep.mubr.bf16.mxu1 %v4116_v3  ;;  %v213_v31 = vld [vmem:[%s6855_s0 + $0x610] sm:$0xff] }
   0x2   :  { %v243_v1 = vld [vmem:[%s6855_s0 + $0x700] sm:$0xff]  ;;  %v244_v5 = vld [vmem:[%s6855_s0 + $0x708] sm:$0xff]  ;;  %4111 = vset.pattern.permute.xlu1 %v4116_v3  ;;  %4112 = vset.pattern.permute.xlu0 %v4116_v3  ;;  %v245_v32 = vld [vmem:[%s6855_s0 + $0x710] sm:$0xff] }
   0x3   :  { %v3951_v4 = vcombine.high %v211_v0, %v243_v1  ;;  %v3950_v6 = vcombine.low %v211_v0, %v243_v1  ;;  %v147_v7 = vld [vmem:[%s6855_s0 + $0x400] sm:$0xff]  ;;  %v3953_v9 = vcombine.high %v212_v2, %v244_v5  ;;  %v3952_v10 = vcombine.low %v212_v2, %v244_v5  ;;  %v148_v12 = vld [vmem:[%s6855_s0 + $0x408] sm:$0xff]  ;;  %v214_v33 = vld [vmem:[%s6855_s0 + $0x618] sm:$0xff] }
   0x4   :  { %v179_v8 = vld [vmem:[%s6855_s0 + $0x500] sm:$0xff]  ;;  %v180_v13 = vld [vmem:[%s6855_s0 + $0x508] sm:$0xff]  ;;  %v246_v34 = vld [vmem:[%s6855_s0 + $0x718] sm:$0xff]  ;;  %v3955_v37 = vcombine.high %v213_v31, %v245_v32  ;;  %v3954_v44 = vcombine.low %v213_v31, %v245_v32 }
   0x5   :  { %v3887_v11 = vcombine.high %v147_v7, %v179_v8  ;;  %v83_v14 = vld [vmem:[%s6855_s0 + $0x200] sm:$0xff]  ;;  %1567 = vmatprep.subr.bf16.mxu0 %v3951_v4  ;;  %v3889_v15 = vcombine.high %v148_v12, %v180_v13  ;;  %v84_v17 = vld [vmem:[%s6855_s0 + $0x208] sm:$0xff]  ;;  %1608 = vmatprep.subr.bf16.mxu1 %v3953_v9  ;;  %v3886_v19 = vcombine.low %v147_v7, %v179_v8  ;;  %v149_v39 = vld [vmem:[%s6855_s0 + $0x410] sm:$0xff] }
   0x6   :  { %v115_v16 = vld [vmem:[%s6855_s0 + $0x300] sm:$0xff]  ;;  %v116_v18 = vld [vmem:[%s6855_s0 + $0x308] sm:$0xff]  ;;  %1568 = vmatpush1.bf16.msra.mxu0 %v3950_v6  ;;  %1609 = vmatpush1.bf16.msra.mxu1 %v3952_v10  ;;  %v3888_v20 = vcombine.low %v148_v12, %v180_v13  ;;  %v3957_v38 = vcombine.high %v214_v33, %v246_v34  ;;  %v181_v40 = vld [vmem:[%s6855_s0 + $0x510] sm:$0xff]  ;;  %v3956_v45 = vcombine.low %v214_v33, %v246_v34 }
   0x7   :  { %1569 = vmatprep.subr.bf16.mxu0 %v3887_v11  ;;  %v3823_v21 = vcombine.high %v83_v14, %v115_v16  ;;  %1610 = vmatprep.subr.bf16.mxu1 %v3889_v15  ;;  %v3825_v22 = vcombine.high %v84_v17, %v116_v18  ;;  %v19_v23 = vld [vmem:[%s6855_s0] sm:$0xff]  ;;  %v20_v25 = vld [vmem:[%s6855_s0 + $0x8] sm:$0xff]  ;;  %v3822_v27 = vcombine.low %v83_v14, %v115_v16  ;;  %v150_v41 = vld [vmem:[%s6855_s0 + $0x418] sm:$0xff] }
   0x8   :  { %v51_v24 = vld [vmem:[%s6855_s0 + $0x100] sm:$0xff]  ;;  %v52_v26 = vld [vmem:[%s6855_s0 + $0x108] sm:$0xff]  ;;  %v3824_v28 = vcombine.low %v84_v17, %v116_v18  ;;  %v182_v42 = vld [vmem:[%s6855_s0 + $0x518] sm:$0xff]  ;;  %v3891_v46 = vcombine.high %v149_v39, %v181_v40  ;;  %v3890_v52 = vcombine.low %v149_v39, %v181_v40 }
   0x9   :  { %v3759_v29 = vcombine.high %v19_v23, %v51_v24  ;;  %v3761_v30 = vcombine.high %v20_v25, %v52_v26  ;;  %v3758_v35 = vcombine.low %v19_v23, %v51_v24  ;;  %v3760_v36 = vcombine.low %v20_v25, %v52_v26  ;;  %v4221_v43 = vld [vmem:[%s6856_s1] sm:$0xf]  ;;  %v85_v48 = vld [vmem:[%s6855_s0 + $0x210] sm:$0xff]  ;;  %v86_v50 = vld [vmem:[%s6855_s0 + $0x218] sm:$0xff] }
   0xa   :  { %1570 = vmatpush1.bf16.msra.mxu0 %v3886_v19  ;;  %1611 = vmatpush1.bf16.msra.mxu1 %v3888_v20  ;;  %v3893_v47 = vcombine.high %v150_v41, %v182_v42  ;;  %v117_v49 = vld [vmem:[%s6855_s0 + $0x310] sm:$0xff]  ;;  %v118_v51 = vld [vmem:[%s6855_s0 + $0x318] sm:$0xff]  ;;  %v3892_v53 = vcombine.low %v150_v41, %v182_v42  ;;  %v215_v0 = vld [vmem:[%s6855_s0 + $0x620] sm:$0xff] }
   0xb   :  { %1571 = vmatprep.subr.bf16.mxu0 %v3823_v21  ;;  %1612 = vmatprep.subr.bf16.mxu1 %v3825_v22  ;;  %v3827_v54 = vcombine.high %v85_v48, %v117_v49  ;;  %v3829_v55 = vcombine.high %v86_v50, %v118_v51  ;;  %v21_v56 = vld [vmem:[%s6855_s0 + $0x10] sm:$0xff]  ;;  %v22_v58 = vld [vmem:[%s6855_s0 + $0x18] sm:$0xff]  ;;  %v3826_v60 = vcombine.low %v85_v48, %v117_v49  ;;  %v247_v1 = vld [vmem:[%s6855_s0 + $0x720] sm:$0xff] }
   0xc   :  { %v53_v57 = vld [vmem:[%s6855_s0 + $0x110] sm:$0xff]  ;;  %v54_v59 = vld [vmem:[%s6855_s0 + $0x118] sm:$0xff]  ;;  %v3828_v61 = vcombine.low %v86_v50, %v118_v51  ;;  %v216_v2 = vld [vmem:[%s6855_s0 + $0x628] sm:$0xff]  ;;  %v3959_v7 = vcombine.high %v215_v0, %v247_v1  ;;  %v3958_v13 = vcombine.low %v215_v0, %v247_v1 }
   0xd   :  { %v3763_v62 = vcombine.high %v21_v56, %v53_v57  ;;  %v3765_v63 = vcombine.high %v22_v58, %v54_v59  ;;  %v248_v4 = vld [vmem:[%s6855_s0 + $0x728] sm:$0xff]  ;;  %v3762_v5 = vcombine.low %v21_v56, %v53_v57  ;;  %v3764_v6 = vcombine.low %v22_v58, %v54_v59  ;;  %v151_v9 = vld [vmem:[%s6855_s0 + $0x420] sm:$0xff]  ;;  %v217_v33 = vld [vmem:[%s6855_s0 + $0x630] sm:$0xff] }
   0xe   :  { %1572 = vmatpush1.bf16.msra.mxu0 %v3822_v27  ;;  %1613 = vmatpush1.bf16.msra.mxu1 %v3824_v28  ;;  %v3961_v8 = vcombine.high %v216_v2, %v248_v4  ;;  %v183_v10 = vld [vmem:[%s6855_s0 + $0x520] sm:$0xff]  ;;  %v152_v11 = vld [vmem:[%s6855_s0 + $0x428] sm:$0xff]  ;;  %v3960_v14 = vcombine.low %v216_v2, %v248_v4  ;;  %v249_v34 = vld [vmem:[%s6855_s0 + $0x730] sm:$0xff] }
   0xf   :  { %1573 = vmatprep.subr.bf16.mxu0 %v3759_v29  ;;  %1614 = vmatprep.subr.bf16.mxu1 %v3761_v30  ;;  %v184_v12 = vld [vmem:[%s6855_s0 + $0x528] sm:$0xff]  ;;  %v3895_v15 = vcombine.high %v151_v9, %v183_v10  ;;  %v87_v17 = vld [vmem:[%s6855_s0 + $0x220] sm:$0xff]  ;;  %v3894_v21 = vcombine.low %v151_v9, %v183_v10  ;;  %v3963_v39 = vcombine.high %v217_v33, %v249_v34  ;;  %v153_v41 = vld [vmem:[%s6855_s0 + $0x430] sm:$0xff] }
  0x10   :  { %v3897_v16 = vcombine.high %v152_v11, %v184_v12  ;;  %v119_v18 = vld [vmem:[%s6855_s0 + $0x320] sm:$0xff]  ;;  %v88_v19 = vld [vmem:[%s6855_s0 + $0x228] sm:$0xff]  ;;  %v3896_v22 = vcombine.low %v152_v11, %v184_v12  ;;  %v185_v42 = vld [vmem:[%s6855_s0 + $0x530] sm:$0xff] }
  0x11   :  { %v120_v20 = vld [vmem:[%s6855_s0 + $0x328] sm:$0xff]  ;;  %v3831_v23 = vcombine.high %v87_v17, %v119_v18  ;;  %v23_v25 = vld [vmem:[%s6855_s0 + $0x20] sm:$0xff]  ;;  %v3830_v29 = vcombine.low %v87_v17, %v119_v18  ;;  %v3899_v48 = vcombine.high %v153_v41, %v185_v42  ;;  %v89_v50 = vld [vmem:[%s6855_s0 + $0x230] sm:$0xff] }
  0x12   :  { %1574 = vmatpush1.bf16.msra.mxu0 %v3758_v35  ;;  %1615 = vmatpush1.bf16.msra.mxu1 %v3760_v36  ;;  %v3833_v24 = vcombine.high %v88_v19, %v120_v20  ;;  %v55_v26 = vld [vmem:[%s6855_s0 + $0x120] sm:$0xff]  ;;  %v24_v27 = vld [vmem:[%s6855_s0 + $0x28] sm:$0xff]  ;;  %v3832_v30 = vcombine.low %v88_v19, %v120_v20  ;;  %v218_v35 = vld [vmem:[%s6855_s0 + $0x638] sm:$0xff] }
  0x13   :  { %1649 = vmatprep.subr.bf16.mxu0 %v3955_v37  ;;  %1690 = vmatprep.subr.bf16.mxu1 %v3957_v38  ;;  %v56_v28 = vld [vmem:[%s6855_s0 + $0x128] sm:$0xff]  ;;  %v3767_v31 = vcombine.high %v23_v25, %v55_v26  ;;  %v250_v36 = vld [vmem:[%s6855_s0 + $0x738] sm:$0xff]  ;;  %v3766_v37 = vcombine.low %v23_v25, %v55_v26  ;;  %v121_v51 = vld [vmem:[%s6855_s0 + $0x330] sm:$0xff] }
  0x14   :  { %v3769_v32 = vcombine.high %v24_v27, %v56_v28  ;;  %v3768_v38 = vcombine.low %v24_v27, %v56_v28  ;;  %v3965_v40 = vcombine.high %v218_v35, %v250_v36  ;;  %v3835_v56 = vcombine.high %v89_v50, %v121_v51  ;;  %v25_v58 = vld [vmem:[%s6855_s0 + $0x30] sm:$0xff]  ;;  %v219_v2 = vld [vmem:[%s6855_s0 + $0x640] sm:$0xff] }
  0x15   :  { %4014 = vmatmul.mubr.msk.bf16.vlgmr.msra.gmra.mxu0 %vm1555_vm0, %v4221_v43  ;;  %4015 = vmatmul.mubr.msk.bf16.vlgmr.msra.gmra.mxu1 %vm1555_vm0, %v4221_v43  ;;  %v57_v59 = vld [vmem:[%s6855_s0 + $0x130] sm:$0xff]  ;;  %v251_v4 = vld [vmem:[%s6855_s0 + $0x740] sm:$0xff] }
  0x16   :  { %1650 = vmatpush1.bf16.msra.mxu0 %v3954_v44  ;;  %1691 = vmatpush1.bf16.msra.mxu1 %v3956_v45  ;;  %v154_v44 = vld [vmem:[%s6855_s0 + $0x438] sm:$0xff]  ;;  %v3771_v0 = vcombine.high %v25_v58, %v57_v59  ;;  %v3967_v9 = vcombine.high %v219_v2, %v251_v4  ;;  %v155_v11 = vld [vmem:[%s6855_s0 + $0x440] sm:$0xff] }
  0x17   :  { %1651 = vmatprep.subr.bf16.mxu0 %v3891_v46  ;;  %1692 = vmatprep.subr.bf16.mxu1 %v3893_v47  ;;  %v186_v45 = vld [vmem:[%s6855_s0 + $0x538] sm:$0xff]  ;;  %v3962_v46 = vcombine.low %v217_v33, %v249_v34  ;;  %v3964_v47 = vcombine.low %v218_v35, %v250_v36  ;;  %v187_v12 = vld [vmem:[%s6855_s0 + $0x540] sm:$0xff]  ;;  %v221_v35 = vld [vmem:[%s6855_s0 + $0x650] sm:$0xff] }
  0x18   :  { %1673 = vmatprep.mubr.bf16.mxu0 %v4116_v3  ;;  %1714 = vmatprep.mubr.bf16.mxu1 %v4116_v3  ;;  %v3901_v49 = vcombine.high %v154_v44, %v186_v45  ;;  %v3903_v17 = vcombine.high %v155_v11, %v187_v12  ;;  %v91_v19 = vld [vmem:[%s6855_s0 + $0x240] sm:$0xff]  ;;  %v253_v36 = vld [vmem:[%s6855_s0 + $0x750] sm:$0xff] }
  0x19   :  { %v123_v20 = vld [vmem:[%s6855_s0 + $0x340] sm:$0xff] }
  0x1a   :  { %1652 = vmatpush1.bf16.msra.mxu0 %v3890_v52  ;;  %1693 = vmatpush1.bf16.msra.mxu1 %v3892_v53  ;;  %v90_v52 = vld [vmem:[%s6855_s0 + $0x238] sm:$0xff]  ;;  %v3839_v25 = vcombine.high %v91_v19, %v123_v20  ;;  %v27_v27 = vld [vmem:[%s6855_s0 + $0x40] sm:$0xff] }
  0x1b   :  { %1653 = vmatprep.subr.bf16.mxu0 %v3827_v54  ;;  %1694 = vmatprep.subr.bf16.mxu1 %v3829_v55  ;;  %v122_v53 = vld [vmem:[%s6855_s0 + $0x338] sm:$0xff]  ;;  %v3898_v54 = vcombine.low %v153_v41, %v185_v42  ;;  %v3900_v55 = vcombine.low %v154_v44, %v186_v45  ;;  %v59_v28 = vld [vmem:[%s6855_s0 + $0x140] sm:$0xff]  ;;  %v3971_v41 = vcombine.high %v221_v35, %v253_v36  ;;  %v157_v44 = vld [vmem:[%s6855_s0 + $0x450] sm:$0xff] }
  0x1c   :  { %v3837_v57 = vcombine.high %v90_v52, %v122_v53  ;;  %v3775_v33 = vcombine.high %v27_v27, %v59_v28  ;;  %v189_v45 = vld [vmem:[%s6855_s0 + $0x550] sm:$0xff] }
  0x1e   :  { %1654 = vmatpush1.bf16.msra.mxu0 %v3826_v60  ;;  %1695 = vmatpush1.bf16.msra.mxu1 %v3828_v61  ;;  %v26_v60 = vld [vmem:[%s6855_s0 + $0x38] sm:$0xff] }
  0x1f   :  { %1655 = vmatprep.subr.bf16.mxu0 %v3763_v62  ;;  %1696 = vmatprep.subr.bf16.mxu1 %v3765_v63  ;;  %v58_v61 = vld [vmem:[%s6855_s0 + $0x138] sm:$0xff]  ;;  %v3834_v62 = vcombine.low %v89_v50, %v121_v51  ;;  %v3836_v63 = vcombine.low %v90_v52, %v122_v53  ;;  %v3907_v50 = vcombine.high %v157_v44, %v189_v45  ;;  %v93_v52 = vld [vmem:[%s6855_s0 + $0x250] sm:$0xff] }
  0x20   :  { %v3773_v1 = vcombine.high %v26_v60, %v58_v61  ;;  %v125_v53 = vld [vmem:[%s6855_s0 + $0x350] sm:$0xff] }
  0x22   :  { %1656 = vmatpush1.bf16.msra.mxu0 %v3762_v5  ;;  %1697 = vmatpush1.bf16.msra.mxu1 %v3764_v6  ;;  %v220_v5 = vld [vmem:[%s6855_s0 + $0x648] sm:$0xff] }
  0x23   :  { %1731 = vmatprep.subr.bf16.mxu0 %v3959_v7  ;;  %1772 = vmatprep.subr.bf16.mxu1 %v3961_v8  ;;  %v252_v6 = vld [vmem:[%s6855_s0 + $0x748] sm:$0xff]  ;;  %v3770_v7 = vcombine.low %v25_v58, %v57_v59  ;;  %v3772_v8 = vcombine.low %v26_v60, %v58_v61  ;;  %v3843_v58 = vcombine.high %v93_v52, %v125_v53  ;;  %v29_v60 = vld [vmem:[%s6855_s0 + $0x50] sm:$0xff] }
  0x24   :  { %v3969_v10 = vcombine.high %v220_v5, %v252_v6  ;;  %v61_v61 = vld [vmem:[%s6855_s0 + $0x150] sm:$0xff] }
  0x25   :  { %4016 = vmatmul.mubr.msk.bf16.vlgmr.msra.gmra.mxu0 %vm1555_vm0, %v4221_v43  ;;  %4017 = vmatmul.mubr.msk.bf16.vlgmr.msra.gmra.mxu1 %vm1555_vm0, %v4221_v43 }
  0x26   :  { %1732 = vmatpush1.bf16.msra.mxu0 %v3958_v13  ;;  %1773 = vmatpush1.bf16.msra.mxu1 %v3960_v14  ;;  %v156_v13 = vld [vmem:[%s6855_s0 + $0x448] sm:$0xff] }
  0x27   :  { %1733 = vmatprep.subr.bf16.mxu0 %v3895_v15  ;;  %1774 = vmatprep.subr.bf16.mxu1 %v3897_v16  ;;  %v188_v14 = vld [vmem:[%s6855_s0 + $0x548] sm:$0xff]  ;;  %v3966_v15 = vcombine.low %v219_v2, %v251_v4  ;;  %v3968_v16 = vcombine.low %v220_v5, %v252_v6  ;;  %v3779_v2 = vcombine.high %v29_v60, %v61_v61  ;;  %v223_v5 = vld [vmem:[%s6855_s0 + $0x660] sm:$0xff] }
  0x28   :  { %1755 = vmatprep.mubr.bf16.mxu0 %v4116_v3  ;;  %1796 = vmatprep.mubr.bf16.mxu1 %v4116_v3  ;;  %v3905_v18 = vcombine.high %v156_v13, %v188_v14  ;;  %v255_v6 = vld [vmem:[%s6855_s0 + $0x760] sm:$0xff] }
  0x2a   :  { %1734 = vmatpush1.bf16.msra.mxu0 %v3894_v21  ;;  %1775 = vmatpush1.bf16.msra.mxu1 %v3896_v22  ;;  %v92_v21 = vld [vmem:[%s6855_s0 + $0x248] sm:$0xff] }
  0x2b   :  { %1735 = vmatprep.subr.bf16.mxu0 %v3831_v23  ;;  %1776 = vmatprep.subr.bf16.mxu1 %v3833_v24  ;;  %v124_v22 = vld [vmem:[%s6855_s0 + $0x348] sm:$0xff]  ;;  %v3902_v23 = vcombine.low %v155_v11, %v187_v12  ;;  %v3904_v24 = vcombine.low %v156_v13, %v188_v14  ;;  %v3975_v11 = vcombine.high %v223_v5, %v255_v6  ;;  %v159_v13 = vld [vmem:[%s6855_s0 + $0x460] sm:$0xff] }
  0x2c   :  { %v3841_v26 = vcombine.high %v92_v21, %v124_v22  ;;  %v191_v14 = vld [vmem:[%s6855_s0 + $0x560] sm:$0xff] }
  0x2e   :  { %1736 = vmatpush1.bf16.msra.mxu0 %v3830_v29  ;;  %1777 = vmatpush1.bf16.msra.mxu1 %v3832_v30  ;;  %v28_v29 = vld [vmem:[%s6855_s0 + $0x48] sm:$0xff] }
  0x2f   :  { %1737 = vmatprep.subr.bf16.mxu0 %v3767_v31  ;;  %1778 = vmatprep.subr.bf16.mxu1 %v3769_v32  ;;  %v60_v30 = vld [vmem:[%s6855_s0 + $0x148] sm:$0xff]  ;;  %v3838_v31 = vcombine.low %v91_v19, %v123_v20  ;;  %v3840_v32 = vcombine.low %v92_v21, %v124_v22  ;;  %v3911_v19 = vcombine.high %v159_v13, %v191_v14  ;;  %v95_v21 = vld [vmem:[%s6855_s0 + $0x260] sm:$0xff] }
  0x30   :  { %v3777_v34 = vcombine.high %v28_v29, %v60_v30  ;;  %v127_v22 = vld [vmem:[%s6855_s0 + $0x360] sm:$0xff] }
  0x32   :  { %1738 = vmatpush1.bf16.msra.mxu0 %v3766_v37  ;;  %1779 = vmatpush1.bf16.msra.mxu1 %v3768_v38  ;;  %v222_v37 = vld [vmem:[%s6855_s0 + $0x658] sm:$0xff] }
  0x33   :  { %1813 = vmatprep.subr.bf16.mxu0 %v3963_v39  ;;  %1854 = vmatprep.subr.bf16.mxu1 %v3965_v40  ;;  %v254_v38 = vld [vmem:[%s6855_s0 + $0x758] sm:$0xff]  ;;  %v3774_v39 = vcombine.low %v27_v27, %v59_v28  ;;  %v3776_v40 = vcombine.low %v28_v29, %v60_v30  ;;  %v3847_v27 = vcombine.high %v95_v21, %v127_v22  ;;  %v31_v29 = vld [vmem:[%s6855_s0 + $0x60] sm:$0xff] }
  0x34   :  { %v3973_v42 = vcombine.high %v222_v37, %v254_v38  ;;  %v63_v30 = vld [vmem:[%s6855_s0 + $0x160] sm:$0xff] }
  0x35   :  { %4018 = vmatmul.mubr.msk.bf16.vlgmr.msra.gmra.mxu0 %vm1555_vm0, %v4221_v43  ;;  %4019 = vmatmul.mubr.msk.bf16.vlgmr.msra.gmra.mxu1 %vm1555_vm0, %v4221_v43 }
  0x36   :  { %1814 = vmatpush1.bf16.msra.mxu0 %v3962_v46  ;;  %1855 = vmatpush1.bf16.msra.mxu1 %v3964_v47  ;;  %v158_v46 = vld [vmem:[%s6855_s0 + $0x458] sm:$0xff] }
  0x37   :  { %1815 = vmatprep.subr.bf16.mxu0 %v3899_v48  ;;  %1856 = vmatprep.subr.bf16.mxu1 %v3901_v49  ;;  %v190_v47 = vld [vmem:[%s6855_s0 + $0x558] sm:$0xff]  ;;  %v3970_v48 = vcombine.low %v221_v35, %v253_v36  ;;  %v3972_v49 = vcombine.low %v222_v37, %v254_v38  ;;  %v3783_v35 = vcombine.high %v31_v29, %v63_v30  ;;  %v225_v37 = vld [vmem:[%s6855_s0 + $0x670] sm:$0xff] }
  0x38   :  { %1837 = vmatprep.mubr.bf16.mxu0 %v4116_v3  ;;  %1878 = vmatprep.mubr.bf16.mxu1 %v4116_v3  ;;  %v3909_v51 = vcombine.high %v158_v46, %v190_v47  ;;  %v257_v38 = vld [vmem:[%s6855_s0 + $0x770] sm:$0xff] }
  0x3a   :  { %1816 = vmatpush1.bf16.msra.mxu0 %v3898_v54  ;;  %1857 = vmatpush1.bf16.msra.mxu1 %v3900_v55  ;;  %v94_v54 = vld [vmem:[%s6855_s0 + $0x258] sm:$0xff] }
  0x3b   :  { %1817 = vmatprep.subr.bf16.mxu0 %v3835_v56  ;;  %1858 = vmatprep.subr.bf16.mxu1 %v3837_v57  ;;  %v126_v55 = vld [vmem:[%s6855_s0 + $0x358] sm:$0xff]  ;;  %v3906_v56 = vcombine.low %v157_v44, %v189_v45  ;;  %v3908_v57 = vcombine.low %v158_v46, %v190_v47  ;;  %v3979_v44 = vcombine.high %v225_v37, %v257_v38  ;;  %v161_v46 = vld [vmem:[%s6855_s0 + $0x470] sm:$0xff] }
  0x3c   :  { %v3845_v59 = vcombine.high %v94_v54, %v126_v55  ;;  %v193_v47 = vld [vmem:[%s6855_s0 + $0x570] sm:$0xff] }
  0x3e   :  { %1818 = vmatpush1.bf16.msra.mxu0 %v3834_v62  ;;  %1859 = vmatpush1.bf16.msra.mxu1 %v3836_v63  ;;  %v30_v62 = vld [vmem:[%s6855_s0 + $0x58] sm:$0xff] }
  0x3f   :  { %1819 = vmatprep.subr.bf16.mxu0 %v3771_v0  ;;  %1860 = vmatprep.subr.bf16.mxu1 %v3773_v1  ;;  %v62_v63 = vld [vmem:[%s6855_s0 + $0x158] sm:$0xff]  ;;  %v3842_v0 = vcombine.low %v93_v52, %v125_v53  ;;  %v3844_v1 = vcombine.low %v94_v54, %v126_v55  ;;  %v3915_v52 = vcombine.high %v161_v46, %v193_v47  ;;  %v97_v54 = vld [vmem:[%s6855_s0 + $0x270] sm:$0xff] }
  0x40   :  { %v3781_v4 = vcombine.high %v30_v62, %v62_v63  ;;  %v129_v55 = vld [vmem:[%s6855_s0 + $0x370] sm:$0xff] }
  0x42   :  { %1820 = vmatpush1.bf16.msra.mxu0 %v3770_v7  ;;  %1861 = vmatpush1.bf16.msra.mxu1 %v3772_v8  ;;  %v224_v7 = vld [vmem:[%s6855_s0 + $0x668] sm:$0xff] }
  0x43   :  { %1895 = vmatprep.subr.bf16.mxu0 %v3967_v9  ;;  %1936 = vmatprep.subr.bf16.mxu1 %v3969_v10  ;;  %v256_v8 = vld [vmem:[%s6855_s0 + $0x768] sm:$0xff]  ;;  %v3778_v9 = vcombine.low %v29_v60, %v61_v61  ;;  %v3780_v10 = vcombine.low %v30_v62, %v62_v63  ;;  %v3851_v60 = vcombine.high %v97_v54, %v129_v55  ;;  %v33_v62 = vld [vmem:[%s6855_s0 + $0x70] sm:$0xff] }
  0x44   :  { %v3977_v12 = vcombine.high %v224_v7, %v256_v8  ;;  %v65_v63 = vld [vmem:[%s6855_s0 + $0x170] sm:$0xff] }
  0x45   :  { %4020 = vmatmul.mubr.msk.bf16.vlgmr.msra.gmra.mxu0 %vm1555_vm0, %v4221_v43  ;;  %4021 = vmatmul.mubr.msk.bf16.vlgmr.msra.gmra.mxu1 %vm1555_vm0, %v4221_v43 }
  0x46   :  { %1896 = vmatpush1.bf16.msra.mxu0 %v3966_v15  ;;  %1937 = vmatpush1.bf16.msra.mxu1 %v3968_v16  ;;  %v160_v15 = vld [vmem:[%s6855_s0 + $0x468] sm:$0xff] }
  0x47   :  { %1897 = vmatprep.subr.bf16.mxu0 %v3903_v17  ;;  %1938 = vmatprep.subr.bf16.mxu1 %v3905_v18  ;;  %v192_v16 = vld [vmem:[%s6855_s0 + $0x568] sm:$0xff]  ;;  %v3974_v17 = vcombine.low %v223_v5, %v255_v6  ;;  %v3976_v18 = vcombine.low %v224_v7, %v256_v8  ;;  %v3787_v5 = vcombine.high %v33_v62, %v65_v63  ;;  %v227_v7 = vld [vmem:[%s6855_s0 + $0x680] sm:$0xff] }
  0x48   :  { %1919 = vmatprep.mubr.bf16.mxu0 %v4116_v3  ;;  %1960 = vmatprep.mubr.bf16.mxu1 %v4116_v3  ;;  %v3913_v20 = vcombine.high %v160_v15, %v192_v16  ;;  %v259_v8 = vld [vmem:[%s6855_s0 + $0x780] sm:$0xff] }
  0x4a   :  { %1898 = vmatpush1.bf16.msra.mxu0 %v3902_v23  ;;  %1939 = vmatpush1.bf16.msra.mxu1 %v3904_v24  ;;  %v96_v23 = vld [vmem:[%s6855_s0 + $0x268] sm:$0xff] }
  0x4b   :  { %1899 = vmatprep.subr.bf16.mxu0 %v3839_v25  ;;  %1940 = vmatprep.subr.bf16.mxu1 %v3841_v26  ;;  %v128_v24 = vld [vmem:[%s6855_s0 + $0x368] sm:$0xff]  ;;  %v3910_v25 = vcombine.low %v159_v13, %v191_v14  ;;  %v3912_v26 = vcombine.low %v160_v15, %v192_v16  ;;  %v3983_v13 = vcombine.high %v227_v7, %v259_v8  ;;  %v163_v15 = vld [vmem:[%s6855_s0 + $0x480] sm:$0xff] }
  0x4c   :  { %v3849_v28 = vcombine.high %v96_v23, %v128_v24  ;;  %v195_v16 = vld [vmem:[%s6855_s0 + $0x580] sm:$0xff] }
  0x4e   :  { %1900 = vmatpush1.bf16.msra.mxu0 %v3838_v31  ;;  %1941 = vmatpush1.bf16.msra.mxu1 %v3840_v32  ;;  %v32_v31 = vld [vmem:[%s6855_s0 + $0x68] sm:$0xff] }
  0x4f   :  { %1901 = vmatprep.subr.bf16.mxu0 %v3775_v33  ;;  %1942 = vmatprep.subr.bf16.mxu1 %v3777_v34  ;;  %v64_v32 = vld [vmem:[%s6855_s0 + $0x168] sm:$0xff]  ;;  %v3846_v33 = vcombine.low %v95_v21, %v127_v22  ;;  %v3848_v34 = vcombine.low %v96_v23, %v128_v24  ;;  %v3919_v21 = vcombine.high %v163_v15, %v195_v16  ;;  %v99_v23 = vld [vmem:[%s6855_s0 + $0x280] sm:$0xff] }
  0x50   :  { %v3785_v36 = vcombine.high %v32_v31, %v64_v32  ;;  %v131_v24 = vld [vmem:[%s6855_s0 + $0x380] sm:$0xff] }
  0x52   :  { %1902 = vmatpush1.bf16.msra.mxu0 %v3774_v39  ;;  %1943 = vmatpush1.bf16.msra.mxu1 %v3776_v40  ;;  %v226_v39 = vld [vmem:[%s6855_s0 + $0x678] sm:$0xff] }
  0x53   :  { %1977 = vmatprep.subr.bf16.mxu0 %v3971_v41  ;;  %2018 = vmatprep.subr.bf16.mxu1 %v3973_v42  ;;  %v258_v40 = vld [vmem:[%s6855_s0 + $0x778] sm:$0xff]  ;;  %v3782_v41 = vcombine.low %v31_v29, %v63_v30  ;;  %v3784_v42 = vcombine.low %v32_v31, %v64_v32  ;;  %v3855_v29 = vcombine.high %v99_v23, %v131_v24  ;;  %v35_v31 = vld [vmem:[%s6855_s0 + $0x80] sm:$0xff] }
  0x54   :  { %v3981_v45 = vcombine.high %v226_v39, %v258_v40  ;;  %v67_v32 = vld [vmem:[%s6855_s0 + $0x180] sm:$0xff] }
  0x55   :  { %4022 = vmatmul.mubr.msk.bf16.vlgmr.msra.gmra.mxu0 %vm1555_vm0, %v4221_v43  ;;  %4023 = vmatmul.mubr.msk.bf16.vlgmr.msra.gmra.mxu1 %vm1555_vm0, %v4221_v43 }
  0x56   :  { %1978 = vmatpush1.bf16.msra.mxu0 %v3970_v48  ;;  %2019 = vmatpush1.bf16.msra.mxu1 %v3972_v49  ;;  %v162_v48 = vld [vmem:[%s6855_s0 + $0x478] sm:$0xff] }
  0x57   :  { %1979 = vmatprep.subr.bf16.mxu0 %v3907_v50  ;;  %2020 = vmatprep.subr.bf16.mxu1 %v3909_v51  ;;  %v194_v49 = vld [vmem:[%s6855_s0 + $0x578] sm:$0xff]  ;;  %v3978_v50 = vcombine.low %v225_v37, %v257_v38  ;;  %v3980_v51 = vcombine.low %v226_v39, %v258_v40  ;;  %v3791_v37 = vcombine.high %v35_v31, %v67_v32  ;;  %v229_v39 = vld [vmem:[%s6855_s0 + $0x690] sm:$0xff] }
  0x58   :  { %2001 = vmatprep.mubr.bf16.mxu0 %v4116_v3  ;;  %2042 = vmatprep.mubr.bf16.mxu1 %v4116_v3  ;;  %v3917_v53 = vcombine.high %v162_v48, %v194_v49  ;;  %v261_v40 = vld [vmem:[%s6855_s0 + $0x790] sm:$0xff] }
  0x5a   :  { %1980 = vmatpush1.bf16.msra.mxu0 %v3906_v56  ;;  %2021 = vmatpush1.bf16.msra.mxu1 %v3908_v57  ;;  %v98_v56 = vld [vmem:[%s6855_s0 + $0x278] sm:$0xff] }
  0x5b   :  { %1981 = vmatprep.subr.bf16.mxu0 %v3843_v58  ;;  %2022 = vmatprep.subr.bf16.mxu1 %v3845_v59  ;;  %v130_v57 = vld [vmem:[%s6855_s0 + $0x378] sm:$0xff]  ;;  %v3914_v58 = vcombine.low %v161_v46, %v193_v47  ;;  %v3916_v59 = vcombine.low %v162_v48, %v194_v49  ;;  %v3987_v46 = vcombine.high %v229_v39, %v261_v40  ;;  %v165_v48 = vld [vmem:[%s6855_s0 + $0x490] sm:$0xff] }
  0x5c   :  { %v3853_v61 = vcombine.high %v98_v56, %v130_v57  ;;  %v197_v49 = vld [vmem:[%s6855_s0 + $0x590] sm:$0xff] }
  0x5e   :  { %1982 = vmatpush1.bf16.msra.mxu0 %v3842_v0  ;;  %2023 = vmatpush1.bf16.msra.mxu1 %v3844_v1  ;;  %v34_v0 = vld [vmem:[%s6855_s0 + $0x78] sm:$0xff] }
  0x5f   :  { %1983 = vmatprep.subr.bf16.mxu0 %v3779_v2  ;;  %2024 = vmatprep.subr.bf16.mxu1 %v3781_v4  ;;  %v66_v1 = vld [vmem:[%s6855_s0 + $0x178] sm:$0xff]  ;;  %v3850_v2 = vcombine.low %v97_v54, %v129_v55  ;;  %v3852_v4 = vcombine.low %v98_v56, %v130_v57  ;;  %v3923_v54 = vcombine.high %v165_v48, %v197_v49  ;;  %v101_v56 = vld [vmem:[%s6855_s0 + $0x290] sm:$0xff] }
  0x60   :  { %v3789_v6 = vcombine.high %v34_v0, %v66_v1  ;;  %v133_v57 = vld [vmem:[%s6855_s0 + $0x390] sm:$0xff] }
  0x62   :  { %1984 = vmatpush1.bf16.msra.mxu0 %v3778_v9  ;;  %2025 = vmatpush1.bf16.msra.mxu1 %v3780_v10  ;;  %v228_v9 = vld [vmem:[%s6855_s0 + $0x688] sm:$0xff] }
  0x63   :  { %2059 = vmatprep.subr.bf16.mxu0 %v3975_v11  ;;  %2100 = vmatprep.subr.bf16.mxu1 %v3977_v12  ;;  %v260_v10 = vld [vmem:[%s6855_s0 + $0x788] sm:$0xff]  ;;  %v3786_v11 = vcombine.low %v33_v62, %v65_v63  ;;  %v3788_v12 = vcombine.low %v34_v0, %v66_v1  ;;  %v3859_v62 = vcombine.high %v101_v56, %v133_v57  ;;  %v37_v0 = vld [vmem:[%s6855_s0 + $0x90] sm:$0xff] }
  0x64   :  { %v3985_v14 = vcombine.high %v228_v9, %v260_v10  ;;  %v69_v1 = vld [vmem:[%s6855_s0 + $0x190] sm:$0xff] }
  0x65   :  { %4024 = vmatmul.mubr.msk.bf16.vlgmr.msra.gmra.mxu0 %vm1555_vm0, %v4221_v43  ;;  %4025 = vmatmul.mubr.msk.bf16.vlgmr.msra.gmra.mxu1 %vm1555_vm0, %v4221_v43 }
  0x66   :  { %2060 = vmatpush1.bf16.msra.mxu0 %v3974_v17  ;;  %2101 = vmatpush1.bf16.msra.mxu1 %v3976_v18  ;;  %v164_v17 = vld [vmem:[%s6855_s0 + $0x488] sm:$0xff] }
  0x67   :  { %2061 = vmatprep.subr.bf16.mxu0 %v3911_v19  ;;  %2102 = vmatprep.subr.bf16.mxu1 %v3913_v20  ;;  %v196_v18 = vld [vmem:[%s6855_s0 + $0x588] sm:$0xff]  ;;  %v3982_v19 = vcombine.low %v227_v7, %v259_v8  ;;  %v3984_v20 = vcombine.low %v228_v9, %v260_v10  ;;  %v3795_v7 = vcombine.high %v37_v0, %v69_v1  ;;  %v231_v9 = vld [vmem:[%s6855_s0 + $0x6a0] sm:$0xff] }
  0x68   :  { %2083 = vmatprep.mubr.bf16.mxu0 %v4116_v3  ;;  %2124 = vmatprep.mubr.bf16.mxu1 %v4116_v3  ;;  %v3921_v22 = vcombine.high %v164_v17, %v196_v18  ;;  %v263_v10 = vld [vmem:[%s6855_s0 + $0x7a0] sm:$0xff] }
  0x6a   :  { %2062 = vmatpush1.bf16.msra.mxu0 %v3910_v25  ;;  %2103 = vmatpush1.bf16.msra.mxu1 %v3912_v26  ;;  %v100_v25 = vld [vmem:[%s6855_s0 + $0x288] sm:$0xff] }
  0x6b   :  { %2063 = vmatprep.subr.bf16.mxu0 %v3847_v27  ;;  %2104 = vmatprep.subr.bf16.mxu1 %v3849_v28  ;;  %v132_v26 = vld [vmem:[%s6855_s0 + $0x388] sm:$0xff]  ;;  %v3918_v27 = vcombine.low %v163_v15, %v195_v16  ;;  %v3920_v28 = vcombine.low %v164_v17, %v196_v18  ;;  %v3991_v15 = vcombine.high %v231_v9, %v263_v10  ;;  %v167_v17 = vld [vmem:[%s6855_s0 + $0x4a0] sm:$0xff] }
  0x6c   :  { %v3857_v30 = vcombine.high %v100_v25, %v132_v26  ;;  %v199_v18 = vld [vmem:[%s6855_s0 + $0x5a0] sm:$0xff] }
  0x6e   :  { %2064 = vmatpush1.bf16.msra.mxu0 %v3846_v33  ;;  %2105 = vmatpush1.bf16.msra.mxu1 %v3848_v34  ;;  %v36_v33 = vld [vmem:[%s6855_s0 + $0x88] sm:$0xff] }
  0x6f   :  { %2065 = vmatprep.subr.bf16.mxu0 %v3783_v35  ;;  %2106 = vmatprep.subr.bf16.mxu1 %v3785_v36  ;;  %v68_v34 = vld [vmem:[%s6855_s0 + $0x188] sm:$0xff]  ;;  %v3854_v35 = vcombine.low %v99_v23, %v131_v24  ;;  %v3856_v36 = vcombine.low %v100_v25, %v132_v26  ;;  %v3927_v23 = vcombine.high %v167_v17, %v199_v18  ;;  %v103_v25 = vld [vmem:[%s6855_s0 + $0x2a0] sm:$0xff] }
  0x70   :  { %v3793_v38 = vcombine.high %v36_v33, %v68_v34  ;;  %v135_v26 = vld [vmem:[%s6855_s0 + $0x3a0] sm:$0xff] }
  0x72   :  { %2066 = vmatpush1.bf16.msra.mxu0 %v3782_v41  ;;  %2107 = vmatpush1.bf16.msra.mxu1 %v3784_v42  ;;  %v230_v41 = vld [vmem:[%s6855_s0 + $0x698] sm:$0xff] }
  0x73   :  { %2141 = vmatprep.subr.bf16.mxu0 %v3979_v44  ;;  %2182 = vmatprep.subr.bf16.mxu1 %v3981_v45  ;;  %v262_v42 = vld [vmem:[%s6855_s0 + $0x798] sm:$0xff]  ;;  %v3790_v44 = vcombine.low %v35_v31, %v67_v32  ;;  %v3792_v45 = vcombine.low %v36_v33, %v68_v34  ;;  %v3863_v31 = vcombine.high %v103_v25, %v135_v26  ;;  %v39_v33 = vld [vmem:[%s6855_s0 + $0xa0] sm:$0xff] }
  0x74   :  { %v3989_v47 = vcombine.high %v230_v41, %v262_v42  ;;  %v71_v34 = vld [vmem:[%s6855_s0 + $0x1a0] sm:$0xff] }
  0x75   :  { %4026 = vmatmul.mubr.msk.bf16.vlgmr.msra.gmra.mxu0 %vm1555_vm0, %v4221_v43  ;;  %4027 = vmatmul.mubr.msk.bf16.vlgmr.msra.gmra.mxu1 %vm1555_vm0, %v4221_v43 }
  0x76   :  { %2142 = vmatpush1.bf16.msra.mxu0 %v3978_v50  ;;  %2183 = vmatpush1.bf16.msra.mxu1 %v3980_v51  ;;  %v166_v50 = vld [vmem:[%s6855_s0 + $0x498] sm:$0xff] }
  0x77   :  { %2143 = vmatprep.subr.bf16.mxu0 %v3915_v52  ;;  %2184 = vmatprep.subr.bf16.mxu1 %v3917_v53  ;;  %v198_v51 = vld [vmem:[%s6855_s0 + $0x598] sm:$0xff]  ;;  %v3986_v52 = vcombine.low %v229_v39, %v261_v40  ;;  %v3988_v53 = vcombine.low %v230_v41, %v262_v42  ;;  %v233_v40 = vld [vmem:[%s6855_s0 + $0x6b0] sm:$0xff] }
  0x78   :  { %2165 = vmatprep.mubr.bf16.mxu0 %v4116_v3  ;;  %2206 = vmatprep.mubr.bf16.mxu1 %v4116_v3  ;;  %v3925_v55 = vcombine.high %v166_v50, %v198_v51  ;;  %v265_v41 = vld [vmem:[%s6855_s0 + $0x7b0] sm:$0xff]  ;;  %v234_v42 = vld [vmem:[%s6855_s0 + $0x6b8] sm:$0xff] }
  0x7a   :  { %2144 = vmatpush1.bf16.msra.mxu0 %v3914_v58  ;;  %2185 = vmatpush1.bf16.msra.mxu1 %v3916_v59  ;;  %v102_v58 = vld [vmem:[%s6855_s0 + $0x298] sm:$0xff] }
  0x7b   :  { %2145 = vmatprep.subr.bf16.mxu0 %v3851_v60  ;;  %2186 = vmatprep.subr.bf16.mxu1 %v3853_v61  ;;  %v134_v59 = vld [vmem:[%s6855_s0 + $0x398] sm:$0xff]  ;;  %v3922_v60 = vcombine.low %v165_v48, %v197_v49  ;;  %v3924_v61 = vcombine.low %v166_v50, %v198_v51  ;;  %v169_v49 = vld [vmem:[%s6855_s0 + $0x4b0] sm:$0xff] }
  0x7c   :  { %v3861_v63 = vcombine.high %v102_v58, %v134_v59  ;;  %v201_v50 = vld [vmem:[%s6855_s0 + $0x5b0] sm:$0xff]  ;;  %v170_v51 = vld [vmem:[%s6855_s0 + $0x4b8] sm:$0xff] }
  0x7e   :  { %2146 = vmatpush1.bf16.msra.mxu0 %v3850_v2  ;;  %2187 = vmatpush1.bf16.msra.mxu1 %v3852_v4  ;;  %v38_v2 = vld [vmem:[%s6855_s0 + $0x98] sm:$0xff] }
  0x7f   :  { %2147 = vmatprep.subr.bf16.mxu0 %v3787_v5  ;;  %2188 = vmatprep.subr.bf16.mxu1 %v3789_v6  ;;  %v70_v4 = vld [vmem:[%s6855_s0 + $0x198] sm:$0xff]  ;;  %v3858_v5 = vcombine.low %v101_v56, %v133_v57  ;;  %v3860_v6 = vcombine.low %v102_v58, %v134_v59  ;;  %v105_v57 = vld [vmem:[%s6855_s0 + $0x2b0] sm:$0xff]  ;;  %v4772_v59 = vld [vmem:[%s6856_s1] sm:$0xf] }
  0x80   :  { %v3797_v8 = vcombine.high %v38_v2, %v70_v4  ;;  %v137_v58 = vld [vmem:[%s6855_s0 + $0x3b0] sm:$0xff] }
  0x82   :  { %2148 = vmatpush1.bf16.msra.mxu0 %v3786_v11  ;;  %2189 = vmatpush1.bf16.msra.mxu1 %v3788_v12  ;;  %v232_v11 = vld [vmem:[%s6855_s0 + $0x6a8] sm:$0xff] }
  0x83   :  { %2223 = vmatprep.subr.bf16.mxu0 %v3983_v13  ;;  %2264 = vmatprep.subr.bf16.mxu1 %v3985_v14  ;;  %v264_v12 = vld [vmem:[%s6855_s0 + $0x7a8] sm:$0xff]  ;;  %v3794_v13 = vcombine.low %v37_v0, %v69_v1  ;;  %v3796_v14 = vcombine.low %v38_v2, %v70_v4  ;;  %v3867_v0 = vcombine.high %v105_v57, %v137_v58  ;;  %v41_v2 = vld [vmem:[%s6855_s0 + $0xb0] sm:$0xff] }
  0x84   :  { %v3993_v16 = vcombine.high %v232_v11, %v264_v12  ;;  %v73_v4 = vld [vmem:[%s6855_s0 + $0x1b0] sm:$0xff] }
  0x85   :  { %4028 = vmatmul.mubr.msk.bf16.vlgmr.msra.gmra.mxu0 %vm1555_vm0, %v4221_v43  ;;  %4029 = vmatmul.mubr.msk.bf16.vlgmr.msra.gmra.mxu1 %vm1555_vm0, %v4221_v43 }
  0x86   :  { %2224 = vmatpush1.bf16.msra.mxu0 %v3982_v19  ;;  %2265 = vmatpush1.bf16.msra.mxu1 %v3984_v20  ;;  %v168_v19 = vld [vmem:[%s6855_s0 + $0x4a8] sm:$0xff] }
  0x87   :  { %2225 = vmatprep.subr.bf16.mxu0 %v3919_v21  ;;  %2266 = vmatprep.subr.bf16.mxu1 %v3921_v22  ;;  %v200_v20 = vld [vmem:[%s6855_s0 + $0x5a8] sm:$0xff]  ;;  %v3990_v21 = vcombine.low %v231_v9, %v263_v10  ;;  %v3992_v22 = vcombine.low %v232_v11, %v264_v12  ;;  %v3803_v9 = vcombine.high %v41_v2, %v73_v4  ;;  %v235_v11 = vld [vmem:[%s6855_s0 + $0x6c0] sm:$0xff] }
  0x88   :  { %2247 = vmatprep.mubr.bf16.mxu0 %v4116_v3  ;;  %2288 = vmatprep.mubr.bf16.mxu1 %v4116_v3  ;;  %v3929_v24 = vcombine.high %v168_v19, %v200_v20  ;;  %v267_v12 = vld [vmem:[%s6855_s0 + $0x7c0] sm:$0xff] }
  0x8a   :  { %2226 = vmatpush1.bf16.msra.mxu0 %v3918_v27  ;;  %2267 = vmatpush1.bf16.msra.mxu1 %v3920_v28  ;;  %v104_v27 = vld [vmem:[%s6855_s0 + $0x2a8] sm:$0xff] }
  0x8b   :  { %2227 = vmatprep.subr.bf16.mxu0 %v3855_v29  ;;  %2268 = vmatprep.subr.bf16.mxu1 %v3857_v30  ;;  %v136_v28 = vld [vmem:[%s6855_s0 + $0x3a8] sm:$0xff]  ;;  %v3926_v29 = vcombine.low %v167_v17, %v199_v18  ;;  %v3928_v30 = vcombine.low %v168_v19, %v200_v20  ;;  %v3999_v17 = vcombine.high %v235_v11, %v267_v12  ;;  %v171_v19 = vld [vmem:[%s6855_s0 + $0x4c0] sm:$0xff] }
  0x8c   :  { %v3865_v32 = vcombine.high %v104_v27, %v136_v28  ;;  %v203_v20 = vld [vmem:[%s6855_s0 + $0x5c0] sm:$0xff] }
  0x8e   :  { %2228 = vmatpush1.bf16.msra.mxu0 %v3854_v35  ;;  %2269 = vmatpush1.bf16.msra.mxu1 %v3856_v36  ;;  %v72_v35 = vld [vmem:[%s6855_s0 + $0x1a8] sm:$0xff]  ;;  %v3862_v36 = vcombine.low %v103_v25, %v135_v26  ;;  %v3935_v25 = vcombine.high %v171_v19, %v203_v20 }
  0x8f   :  { %2229 = vmatprep.subr.bf16.mxu0 %v3791_v37  ;;  %2270 = vmatprep.subr.bf16.mxu1 %v3793_v38  ;;  %v3864_v37 = vcombine.low %v104_v27, %v136_v28  ;;  %v3799_v38 = vcombine.high %v39_v33, %v71_v34  ;;  %v107_v27 = vld [vmem:[%s6855_s0 + $0x2c0] sm:$0xff] }
  0x90   :  { %v139_v28 = vld [vmem:[%s6855_s0 + $0x3c0] sm:$0xff] }
  0x92   :  { %2230 = vmatpush1.bf16.msra.mxu0 %v3790_v44  ;;  %2271 = vmatpush1.bf16.msra.mxu1 %v3792_v45  ;;  %v266_v44 = vld [vmem:[%s6855_s0 + $0x7b8] sm:$0xff]  ;;  %v3798_v45 = vcombine.low %v39_v33, %v71_v34  ;;  %v3871_v33 = vcombine.high %v107_v27, %v139_v28 }
  0x93   :  { %2305 = vmatprep.subr.bf16.mxu0 %v3987_v46  ;;  %2346 = vmatprep.subr.bf16.mxu1 %v3989_v47  ;;  %v3995_v47 = vcombine.high %v233_v40, %v265_v41  ;;  %v3997_v48 = vcombine.high %v234_v42, %v266_v44 }
  0x95   :  { %4030 = vmatmul.mubr.msk.bf16.vlgmr.msra.gmra.mxu0 %vm1555_vm0, %v4221_v43  ;;  %4031 = vmatmul.mubr.msk.bf16.vlgmr.msra.gmra.mxu1 %vm1555_vm0, %v4221_v43 }
  0x96   :  { %2306 = vmatpush1.bf16.msra.mxu0 %v3986_v52  ;;  %2347 = vmatpush1.bf16.msra.mxu1 %v3988_v53  ;;  %v202_v52 = vld [vmem:[%s6855_s0 + $0x5b8] sm:$0xff]  ;;  %v3994_v53 = vcombine.low %v233_v40, %v265_v41 }
  0x97   :  { %2307 = vmatprep.subr.bf16.mxu0 %v3923_v54  ;;  %2348 = vmatprep.subr.bf16.mxu1 %v3925_v55  ;;  %v3996_v54 = vcombine.low %v234_v42, %v266_v44  ;;  %v3931_v55 = vcombine.high %v169_v49, %v201_v50  ;;  %v3933_v56 = vcombine.high %v170_v51, %v202_v52  ;;  %v237_v42 = vld [vmem:[%s6855_s0 + $0x6d0] sm:$0xff] }
  0x98   :  { %2329 = vmatprep.mubr.bf16.mxu0 %v4116_v3  ;;  %2370 = vmatprep.mubr.bf16.mxu1 %v4116_v3  ;;  %v269_v44 = vld [vmem:[%s6855_s0 + $0x7d0] sm:$0xff] }
  0x9a   :  { %2308 = vmatpush1.bf16.msra.mxu0 %v3922_v60  ;;  %2349 = vmatpush1.bf16.msra.mxu1 %v3924_v61  ;;  %v106_v60 = vld [vmem:[%s6855_s0 + $0x2b8] sm:$0xff] }
  0x9b   :  { %2309 = vmatprep.subr.bf16.mxu0 %v3859_v62  ;;  %2350 = vmatprep.subr.bf16.mxu1 %v3861_v63  ;;  %v138_v61 = vld [vmem:[%s6855_s0 + $0x3b8] sm:$0xff]  ;;  %v3930_v62 = vcombine.low %v169_v49, %v201_v50  ;;  %v3932_v63 = vcombine.low %v170_v51, %v202_v52  ;;  %v4003_v49 = vcombine.high %v237_v42, %v269_v44  ;;  %v173_v51 = vld [vmem:[%s6855_s0 + $0x4d0] sm:$0xff] }
  0x9c   :  { %v3869_v1 = vcombine.high %v106_v60, %v138_v61  ;;  %v205_v52 = vld [vmem:[%s6855_s0 + $0x5d0] sm:$0xff] }
  0x9e   :  { %2310 = vmatpush1.bf16.msra.mxu0 %v3858_v5  ;;  %2351 = vmatpush1.bf16.msra.mxu1 %v3860_v6  ;;  %v42_v5 = vld [vmem:[%s6855_s0 + $0xb8] sm:$0xff] }
  0x9f   :  { %2311 = vmatprep.subr.bf16.mxu0 %v3795_v7  ;;  %2352 = vmatprep.subr.bf16.mxu1 %v3797_v8  ;;  %v74_v6 = vld [vmem:[%s6855_s0 + $0x1b8] sm:$0xff]  ;;  %v3866_v7 = vcombine.low %v105_v57, %v137_v58  ;;  %v3868_v8 = vcombine.low %v106_v60, %v138_v61  ;;  %v3939_v57 = vcombine.high %v173_v51, %v205_v52  ;;  %v109_v60 = vld [vmem:[%s6855_s0 + $0x2d0] sm:$0xff] }
  0xa0   :  { %v3805_v10 = vcombine.high %v42_v5, %v74_v6  ;;  %v141_v61 = vld [vmem:[%s6855_s0 + $0x3d0] sm:$0xff] }
  0xa2   :  { %2312 = vmatpush1.bf16.msra.mxu0 %v3794_v13  ;;  %2353 = vmatpush1.bf16.msra.mxu1 %v3796_v14  ;;  %v236_v13 = vld [vmem:[%s6855_s0 + $0x6c8] sm:$0xff] }
  0xa3   :  { %2387 = vmatprep.subr.bf16.mxu0 %v3991_v15  ;;  %2428 = vmatprep.subr.bf16.mxu1 %v3993_v16  ;;  %v268_v14 = vld [vmem:[%s6855_s0 + $0x7c8] sm:$0xff]  ;;  %v3802_v15 = vcombine.low %v41_v2, %v73_v4  ;;  %v3804_v16 = vcombine.low %v42_v5, %v74_v6  ;;  %v3938_v2 = vcombine.low %v173_v51, %v205_v52 }
  0xa4   :  { %v4001_v18 = vcombine.high %v236_v13, %v268_v14  ;;  %v3875_v6 = vcombine.high %v109_v60, %v141_v61  ;;  %v48_v52 = vld [vmem:[%s6855_s0 + $0xe8] sm:$0xff] }
  0xa5   :  { %4032 = vmatmul.mubr.msk.bf16.vlgmr.msra.gmra.mxu0 %vm1555_vm0, %v4221_v43  ;;  %4033 = vmatmul.mubr.msk.bf16.vlgmr.msra.gmra.mxu1 %vm1555_vm0, %v4221_v43  ;;  %v40_v43 = vld [vmem:[%s6855_s0 + $0xa8] sm:$0xff] }
  0xa6   :  { %2388 = vmatpush1.bf16.msra.mxu0 %v3990_v21  ;;  %2429 = vmatpush1.bf16.msra.mxu1 %v3992_v22  ;;  %v3801_v39 = vcombine.high %v40_v43, %v72_v35  ;;  %v3800_v46 = vcombine.low %v40_v43, %v72_v35  ;;  %v172_v21 = vld [vmem:[%s6855_s0 + $0x4c8] sm:$0xff]  ;;  %v43_v43 = vld [vmem:[%s6855_s0 + $0xc0] sm:$0xff] }
  0xa7   :  { %2389 = vmatprep.subr.bf16.mxu0 %v3927_v23  ;;  %2430 = vmatprep.subr.bf16.mxu1 %v3929_v24  ;;  %v204_v22 = vld [vmem:[%s6855_s0 + $0x5c8] sm:$0xff]  ;;  %v3998_v23 = vcombine.low %v235_v11, %v267_v12  ;;  %v4000_v24 = vcombine.low %v236_v13, %v268_v14  ;;  %v75_v35 = vld [vmem:[%s6855_s0 + $0x1c0] sm:$0xff]  ;;  %v46_v12 = vld [vmem:[%s6855_s0 + $0xd8] sm:$0xff] }
  0xa8   :  { %2411 = vmatprep.mubr.bf16.mxu0 %v4116_v3  ;;  %2452 = vmatprep.mubr.bf16.mxu1 %v4116_v3  ;;  %v3937_v26 = vcombine.high %v172_v21, %v204_v22  ;;  %v3807_v40 = vcombine.high %v43_v43, %v75_v35  ;;  %v78_v13 = vld [vmem:[%s6855_s0 + $0x1d8] sm:$0xff] }
  0xaa   :  { %2390 = vmatpush1.bf16.msra.mxu0 %v3926_v29  ;;  %2431 = vmatpush1.bf16.msra.mxu1 %v3928_v30  ;;  %v108_v29 = vld [vmem:[%s6855_s0 + $0x2c8] sm:$0xff] }
  0xab   :  { %2391 = vmatprep.subr.bf16.mxu0 %v3863_v31  ;;  %2432 = vmatprep.subr.bf16.mxu1 %v3865_v32  ;;  %v140_v30 = vld [vmem:[%s6855_s0 + $0x3c8] sm:$0xff]  ;;  %v3934_v31 = vcombine.low %v171_v19, %v203_v20  ;;  %v3936_v32 = vcombine.low %v172_v21, %v204_v22  ;;  %v3813_v20 = vcombine.high %v46_v12, %v78_v13  ;;  %v239_v21 = vld [vmem:[%s6855_s0 + $0x6e0] sm:$0xff] }
  0xac   :  { %v3873_v34 = vcombine.high %v108_v29, %v140_v30  ;;  %v271_v22 = vld [vmem:[%s6855_s0 + $0x7e0] sm:$0xff] }
  0xae   :  { %2392 = vmatpush1.bf16.msra.mxu0 %v3862_v36  ;;  %2433 = vmatpush1.bf16.msra.mxu1 %v3864_v37  ;;  %v44_v36 = vld [vmem:[%s6855_s0 + $0xc8] sm:$0xff] }
  0xaf   :  { %2393 = vmatprep.subr.bf16.mxu0 %v3799_v38  ;;  %2434 = vmatprep.subr.bf16.mxu1 %v3801_v39  ;;  %v76_v37 = vld [vmem:[%s6855_s0 + $0x1c8] sm:$0xff]  ;;  %v3870_v38 = vcombine.low %v107_v27, %v139_v28  ;;  %v3872_v39 = vcombine.low %v108_v29, %v140_v30  ;;  %v4007_v27 = vcombine.high %v239_v21, %v271_v22  ;;  %v175_v29 = vld [vmem:[%s6855_s0 + $0x4e0] sm:$0xff] }
  0xb0   :  { %v3809_v41 = vcombine.high %v44_v36, %v76_v37  ;;  %v207_v30 = vld [vmem:[%s6855_s0 + $0x5e0] sm:$0xff] }
  0xb2   :  { %2394 = vmatpush1.bf16.msra.mxu0 %v3798_v45  ;;  %2435 = vmatpush1.bf16.msra.mxu1 %v3800_v46  ;;  %v238_v45 = vld [vmem:[%s6855_s0 + $0x6d8] sm:$0xff] }
  0xb3   :  { %2469 = vmatprep.subr.bf16.mxu0 %v3995_v47  ;;  %2510 = vmatprep.subr.bf16.mxu1 %v3997_v48  ;;  %v270_v46 = vld [vmem:[%s6855_s0 + $0x7d8] sm:$0xff]  ;;  %v3806_v47 = vcombine.low %v43_v43, %v75_v35  ;;  %v3808_v48 = vcombine.low %v44_v36, %v76_v37  ;;  %v3943_v43 = vcombine.high %v175_v29, %v207_v30  ;;  %v111_v36 = vld [vmem:[%s6855_s0 + $0x2e0] sm:$0xff] }
  0xb4   :  { %v4005_v50 = vcombine.high %v238_v45, %v270_v46  ;;  %v143_v37 = vld [vmem:[%s6855_s0 + $0x3e0] sm:$0xff] }
  0xb5   :  { %4034 = vmatmul.mubr.msk.bf16.vlgmr.msra.gmra.mxu0 %vm1555_vm0, %v4772_v59  ;;  %4035 = vmatmul.mubr.msk.bf16.vlgmr.msra.gmra.mxu1 %vm1555_vm0, %v4772_v59 }
  0xb6   :  { %2470 = vmatpush1.bf16.msra.mxu0 %v3994_v53  ;;  %2511 = vmatpush1.bf16.msra.mxu1 %v3996_v54  ;;  %v174_v53 = vld [vmem:[%s6855_s0 + $0x4d8] sm:$0xff] }
  0xb7   :  { %2471 = vmatprep.subr.bf16.mxu0 %v3931_v55  ;;  %2512 = vmatprep.subr.bf16.mxu1 %v3933_v56  ;;  %v206_v54 = vld [vmem:[%s6855_s0 + $0x5d8] sm:$0xff]  ;;  %v4002_v55 = vcombine.low %v237_v42, %v269_v44  ;;  %v4004_v56 = vcombine.low %v238_v45, %v270_v46  ;;  %v3942_v42 = vcombine.low %v175_v29, %v207_v30 }
  0xb8   :  { %2493 = vmatprep.mubr.bf16.mxu0 %v4116_v3  ;;  %2534 = vmatprep.mubr.bf16.mxu1 %v4116_v3  ;;  %v3941_v58 = vcombine.high %v174_v53, %v206_v54  ;;  %v3940_v5 = vcombine.low %v174_v53, %v206_v54  ;;  %v3879_v46 = vcombine.high %v111_v36, %v143_v37  ;;  %v80_v53 = vld [vmem:[%s6855_s0 + $0x1e8] sm:$0xff] }
  0xba   :  { %2472 = vmatpush1.bf16.msra.mxu0 %v3930_v62  ;;  %2513 = vmatpush1.bf16.msra.mxu1 %v3932_v63  ;;  %v110_v63 = vld [vmem:[%s6855_s0 + $0x2d8] sm:$0xff] }
  0xbb   :  { %2473 = vmatprep.subr.bf16.mxu0 %v3867_v0  ;;  %2514 = vmatprep.subr.bf16.mxu1 %v3869_v1  ;;  %v142_v0 = vld [vmem:[%s6855_s0 + $0x3d8] sm:$0xff] }
  0xbe   :  { %2474 = vmatpush1.bf16.msra.mxu0 %v3866_v7  ;;  %2515 = vmatpush1.bf16.msra.mxu1 %v3868_v8  ;;  %v3877_v8 = vcombine.high %v110_v63, %v142_v0 }
  0xbf   :  { %2475 = vmatprep.subr.bf16.mxu0 %v3803_v9  ;;  %2516 = vmatprep.subr.bf16.mxu1 %v3805_v10  ;;  %v45_v9 = vld [vmem:[%s6855_s0 + $0xd0] sm:$0xff] }
  0xc0   :  { %v77_v10 = vld [vmem:[%s6855_s0 + $0x1d0] sm:$0xff] }
  0xc2   :  { %2476 = vmatpush1.bf16.msra.mxu0 %v3802_v15  ;;  %2517 = vmatpush1.bf16.msra.mxu1 %v3804_v16  ;;  %v3874_v15 = vcombine.low %v109_v60, %v141_v61  ;;  %v3817_v61 = vcombine.high %v48_v52, %v80_v53 }
  0xc3   :  { %2551 = vmatprep.subr.bf16.mxu0 %v3999_v17  ;;  %2592 = vmatprep.subr.bf16.mxu1 %v4001_v18  ;;  %v3876_v17 = vcombine.low %v110_v63, %v142_v0  ;;  %v3811_v18 = vcombine.high %v45_v9, %v77_v10  ;;  %v241_v63 = vld [vmem:[%s6855_s0 + $0x6f0] sm:$0xff] }
  0xc4   :  { %v273_v0 = vld [vmem:[%s6855_s0 + $0x7f0] sm:$0xff] }
  0xc5   :  { %4036 = vmatmul.mubr.msk.bf16.vlgmr.msra.gmra.mxu0 %vm1555_vm0, %v4772_v59  ;;  %4037 = vmatmul.mubr.msk.bf16.vlgmr.msra.gmra.mxu1 %vm1555_vm0, %v4772_v59 }
  0xc6   :  { %2552 = vmatpush1.bf16.msra.mxu0 %v3998_v23  ;;  %2593 = vmatpush1.bf16.msra.mxu1 %v4000_v24  ;;  %v240_v23 = vld [vmem:[%s6855_s0 + $0x6e8] sm:$0xff] }
  0xc7   :  { %2553 = vmatprep.subr.bf16.mxu0 %v3935_v25  ;;  %2594 = vmatprep.subr.bf16.mxu1 %v3937_v26  ;;  %v272_v24 = vld [vmem:[%s6855_s0 + $0x7e8] sm:$0xff]  ;;  %v3810_v25 = vcombine.low %v45_v9, %v77_v10  ;;  %v3812_v26 = vcombine.low %v46_v12, %v78_v13  ;;  %v4011_v9 = vcombine.high %v241_v63, %v273_v0  ;;  %v209_v12 = vld [vmem:[%s6855_s0 + $0x5f0] sm:$0xff]  ;;  %v178_v13 = vld [vmem:[%s6855_s0 + $0x4f8] sm:$0xff] }
  0xc8   :  { %2575 = vmatprep.mubr.bf16.mxu0 %v4116_v3  ;;  %2616 = vmatprep.mubr.bf16.mxu1 %v4116_v3  ;;  %v4009_v28 = vcombine.high %v240_v23, %v272_v24 }
  0xca   :  { %2554 = vmatpush1.bf16.msra.mxu0 %v3934_v31  ;;  %2595 = vmatpush1.bf16.msra.mxu1 %v3936_v32  ;;  %v176_v31 = vld [vmem:[%s6855_s0 + $0x4e8] sm:$0xff] }
  0xcb   :  { %2555 = vmatprep.subr.bf16.mxu0 %v3871_v33  ;;  %2596 = vmatprep.subr.bf16.mxu1 %v3873_v34  ;;  %v208_v32 = vld [vmem:[%s6855_s0 + $0x5e8] sm:$0xff]  ;;  %v4006_v33 = vcombine.low %v239_v21, %v271_v22  ;;  %v4008_v34 = vcombine.low %v240_v23, %v272_v24  ;;  %v114_v22 = vld [vmem:[%s6855_s0 + $0x2f8] sm:$0xff] }
  0xcc   :  { %v3945_v35 = vcombine.high %v176_v31, %v208_v32  ;;  %v3944_v45 = vcombine.low %v176_v31, %v208_v32  ;;  %v146_v23 = vld [vmem:[%s6855_s0 + $0x3f8] sm:$0xff]  ;;  %v49_v32 = vld [vmem:[%s6855_s0 + $0xf0] sm:$0xff] }
  0xcd   :  { %v3885_v31 = vcombine.high %v114_v22, %v146_v23 }
  0xce   :  { %2556 = vmatpush1.bf16.msra.mxu0 %v3870_v38  ;;  %2597 = vmatpush1.bf16.msra.mxu1 %v3872_v39  ;;  %v112_v39 = vld [vmem:[%s6855_s0 + $0x2e8] sm:$0xff] }
  0xcf   :  { %2557 = vmatprep.subr.bf16.mxu0 %v3807_v40  ;;  %2598 = vmatprep.subr.bf16.mxu1 %v3809_v41  ;;  %v144_v40 = vld [vmem:[%s6855_s0 + $0x3e8] sm:$0xff] }
  0xd2   :  { %2558 = vmatpush1.bf16.msra.mxu0 %v3806_v47  ;;  %2599 = vmatpush1.bf16.msra.mxu1 %v3808_v48  ;;  %v3881_v48 = vcombine.high %v112_v39, %v144_v40 }
  0xd3   :  { %2633 = vmatprep.subr.bf16.mxu0 %v4003_v49  ;;  %2674 = vmatprep.subr.bf16.mxu1 %v4005_v50  ;;  %v47_v49 = vld [vmem:[%s6855_s0 + $0xe0] sm:$0xff] }
  0xd4   :  { %v79_v50 = vld [vmem:[%s6855_s0 + $0x1e0] sm:$0xff] }
  0xd5   :  { %v4882_v62 = vpop.f32.mrf.mxu0  ;;  %4038 = vmatmul.mubr.msk.bf16.vlgmr.msra.gmra.mxu0 %vm1555_vm0, %v4772_v59  ;;  %v4892_v1 = vpop.f32.mrf.mxu1  ;;  %4039 = vmatmul.mubr.msk.bf16.vlgmr.msra.gmra.mxu1 %vm1555_vm0, %v4772_v59 }
  0xd6   :  { %2634 = vmatpush1.bf16.msra.mxu0 %v4002_v55  ;;  %2675 = vmatpush1.bf16.msra.mxu1 %v4004_v56  ;;  %v3878_v55 = vcombine.low %v111_v36, %v143_v37 }
  0xd7   :  { %v4896_v4 = vpop.f32.mrf.mxu0  ;;  %2635 = vmatprep.subr.bf16.mxu0 %v3939_v57  ;;  %v4898_v7 = vpop.f32.mrf.mxu1  ;;  %2676 = vmatprep.subr.bf16.mxu1 %v3941_v58  ;;  %v3880_v57 = vcombine.low %v112_v39, %v144_v40  ;;  %v3815_v58 = vcombine.high %v47_v49, %v79_v50  ;;  %v3884_v40 = vcombine.low %v114_v22, %v146_v23 }
  0xd8   :  { %2657 = vmatprep.mubr.bf16.mxu0 %v4116_v3  ;;  %2698 = vmatprep.mubr.bf16.mxu1 %v4116_v3  ;;  %v2871_v29 = vadd.f32 %v4896_v4, %v4882_v62 }
  0xd9   :  { %v1597_v11 = vpop.f32.mrf.mxu0  ;;  %v1638_v14 = vpop.f32.mrf.mxu1 }
  0xda   :  { %2636 = vmatpush1.bf16.msra.mxu0 %v3938_v2  ;;  %2677 = vmatpush1.bf16.msra.mxu1 %v3940_v5  ;;  %v242_v2 = vld [vmem:[%s6855_s0 + $0x6f8] sm:$0xff]  ;;  %v177_v11 = vld [vmem:[%s6855_s0 + $0x4f0] sm:$0xff] }
  0xdb   :  { %v1598_v16 = vpop.f32.mrf.mxu0  ;;  %2637 = vmatprep.subr.bf16.mxu0 %v3875_v6  ;;  %v1639_v19 = vpop.f32.mrf.mxu1  ;;  %2678 = vmatprep.subr.bf16.mxu1 %v3877_v8  ;;  %v274_v5 = vld [vmem:[%s6855_s0 + $0x7f8] sm:$0xff]  ;;  %v3814_v6 = vcombine.low %v47_v49, %v79_v50  ;;  %v3816_v8 = vcombine.low %v48_v52, %v80_v53 }
  0xdc   :  { %v4013_v10 = vcombine.high %v242_v2, %v274_v5  ;;  %v210_v14 = vld [vmem:[%s6855_s0 + $0x5f8] sm:$0xff]  ;;  %v4012_v16 = vcombine.low %v242_v2, %v274_v5  ;;  %v113_v19 = vld [vmem:[%s6855_s0 + $0x2f0] sm:$0xff] }
  0xde   :  { %2638 = vmatpush1.bf16.msra.mxu0 %v3874_v15  ;;  %2679 = vmatpush1.bf16.msra.mxu1 %v3876_v17  ;;  %v4010_v15 = vcombine.low %v241_v63, %v273_v0  ;;  %v3947_v17 = vcombine.high %v177_v11, %v209_v12 }
  0xdf   :  { %2639 = vmatprep.subr.bf16.mxu0 %v3811_v18  ;;  %2680 = vmatprep.subr.bf16.mxu1 %v3813_v20  ;;  %v3949_v18 = vcombine.high %v178_v13, %v210_v14  ;;  %v145_v20 = vld [vmem:[%s6855_s0 + $0x3f0] sm:$0xff] }
  0xe0   :  { %v3882_v37 = vcombine.low %v113_v19, %v145_v20 }
  0xe2   :  { %2640 = vmatpush1.bf16.msra.mxu0 %v3810_v25  ;;  %2681 = vmatpush1.bf16.msra.mxu1 %v3812_v26  ;;  %v3946_v25 = vcombine.low %v177_v11, %v209_v12 }
  0xe3   :  { %2715 = vmatprep.subr.bf16.mxu0 %v4007_v27  ;;  %2756 = vmatprep.subr.bf16.mxu1 %v4009_v28  ;;  %v3948_v27 = vcombine.low %v178_v13, %v210_v14  ;;  %v3883_v28 = vcombine.high %v113_v19, %v145_v20 }
  0xe5   :  { %v4944_v38 = vpop.f32.mrf.mxu0  ;;  %4040 = vmatmul.mubr.msk.bf16.vlgmr.msra.gmra.mxu0 %vm1555_vm0, %v4772_v59  ;;  %v4954_v41 = vpop.f32.mrf.mxu1  ;;  %4041 = vmatmul.mubr.msk.bf16.vlgmr.msra.gmra.mxu1 %vm1555_vm0, %v4772_v59 }
  0xe6   :  { %2716 = vmatpush1.bf16.msra.mxu0 %v4006_v33  ;;  %2757 = vmatpush1.bf16.msra.mxu1 %v4008_v34  ;;  %v81_v33 = vld [vmem:[%s6855_s0 + $0x1f0] sm:$0xff] }
  0xe7   :  { %v4958_v44 = vpop.f32.mrf.mxu0  ;;  %2717 = vmatprep.subr.bf16.mxu0 %v3943_v43  ;;  %v4960_v47 = vpop.f32.mrf.mxu1  ;;  %2758 = vmatprep.subr.bf16.mxu1 %v3945_v35  ;;  %v50_v43 = vld [vmem:[%s6855_s0 + $0xf8] sm:$0xff]  ;;  %v3818_v49 = vcombine.low %v49_v32, %v81_v33 }
  0xe8   :  { %2739 = vmatprep.mubr.bf16.mxu0 %v4116_v3  ;;  %2780 = vmatprep.mubr.bf16.mxu1 %v4116_v3  ;;  %v82_v35 = vld [vmem:[%s6855_s0 + $0x1f8] sm:$0xff] }
  0xe9   :  { %v1679_v51 = vpop.f32.mrf.mxu0  ;;  %v1720_v54 = vpop.f32.mrf.mxu1  ;;  %v3820_v50 = vcombine.low %v50_v43, %v82_v35 }
  0xea   :  { %2718 = vmatpush1.bf16.msra.mxu0 %v3942_v42  ;;  %2759 = vmatpush1.bf16.msra.mxu1 %v3944_v45  ;;  %v3819_v42 = vcombine.high %v49_v32, %v81_v33  ;;  %v2872_v45 = vadd.f32 %v2871_v29, %v4892_v1 }
  0xeb   :  { %v1680_v56 = vpop.f32.mrf.mxu0  ;;  %2719 = vmatprep.subr.bf16.mxu0 %v3879_v46  ;;  %v1721_v60 = vpop.f32.mrf.mxu1  ;;  %2760 = vmatprep.subr.bf16.mxu1 %v3881_v48  ;;  %v3821_v48 = vcombine.high %v50_v43, %v82_v35 }
  0xee   :  { %2720 = vmatpush1.bf16.msra.mxu0 %v3878_v55  ;;  %2761 = vmatpush1.bf16.msra.mxu1 %v3880_v57 }
  0xef   :  { %2721 = vmatprep.subr.bf16.mxu0 %v3815_v58  ;;  %2762 = vmatprep.subr.bf16.mxu1 %v3817_v61 }
  0xf2   :  { %2722 = vmatpush1.bf16.msra.mxu0 %v3814_v6  ;;  %2763 = vmatpush1.bf16.msra.mxu1 %v3816_v8 }
  0xf3   :  { %2797 = vmatprep.subr.bf16.mxu0 %v4011_v9  ;;  %2838 = vmatprep.subr.bf16.mxu1 %v4013_v10 }
  0xf5   :  { %v5006_v21 = vpop.f32.mrf.mxu0  ;;  %4042 = vmatmul.mubr.msk.bf16.vlgmr.msra.gmra.mxu0 %vm1555_vm0, %v4772_v59  ;;  %v5016_v24 = vpop.f32.mrf.mxu1  ;;  %4043 = vmatmul.mubr.msk.bf16.vlgmr.msra.gmra.mxu1 %vm1555_vm0, %v4772_v59 }
  0xf6   :  { %2798 = vmatpush1.bf16.msra.mxu0 %v4010_v15  ;;  %2839 = vmatpush1.bf16.msra.mxu1 %v4012_v16 }
  0xf7   :  { %v5020_v26 = vpop.f32.mrf.mxu0  ;;  %2799 = vmatprep.subr.bf16.mxu0 %v3947_v17  ;;  %v5024_v30 = vpop.f32.mrf.mxu1  ;;  %2840 = vmatprep.subr.bf16.mxu1 %v3949_v18 }
  0xf8   :  { %2821 = vmatprep.mubr.bf16.mxu0 %v4116_v3  ;;  %2862 = vmatprep.mubr.bf16.mxu1 %v4116_v3  ;;  %v2873_v3 = vadd.f32 %v2872_v45, %v4898_v7 }
  0xf9   :  { %v1761_v34 = vpop.f32.mrf.mxu0  ;;  %v1802_v36 = vpop.f32.mrf.mxu1 }
  0xfa   :  { %2800 = vmatpush1.bf16.msra.mxu0 %v3946_v25  ;;  %2841 = vmatpush1.bf16.msra.mxu1 %v3948_v27  ;;  %v2874_v51 = vadd.f32 %v2873_v3, %v4944_v38 }
  0xfb   :  { %v1762_v39 = vpop.f32.mrf.mxu0  ;;  %2801 = vmatprep.subr.bf16.mxu0 %v3883_v28  ;;  %v1803_v46 = vpop.f32.mrf.mxu1  ;;  %2842 = vmatprep.subr.bf16.mxu1 %v3885_v31 }
  0xfc   :  { %v2875_v53 = vadd.f32 %v2874_v51, %v4958_v44 }
  0xfe   :  { %2802 = vmatpush1.bf16.msra.mxu0 %v3882_v37  ;;  %2843 = vmatpush1.bf16.msra.mxu1 %v3884_v40  ;;  %v2876_v58 = vadd.f32 %v2875_v53, %v4954_v41 }
  0xff   :  { %2803 = vmatprep.subr.bf16.mxu0 %v3819_v42  ;;  %2844 = vmatprep.subr.bf16.mxu1 %v3821_v48 }
 0x100   :  { %v2877_v0 = vadd.f32 %v2876_v58, %v4960_v47 }
 0x102   :  { %2804 = vmatpush1.bf16.msra.mxu0 %v3818_v49  ;;  %2845 = vmatpush1.bf16.msra.mxu1 %v3820_v50  ;;  %v2878_v2 = vadd.f32 %v2877_v0, %v5006_v21 }
 0x104   :  { %v2879_v5 = vadd.f32 %v2878_v2, %v5020_v26 }
 0x105   :  { %v5043_v52 = vpop.f32.mrf.mxu0  ;;  %4044 = vmatmul.mubr.msk.bf16.vlgmr.msra.gmra.mxu0 %vm1555_vm0, %v4772_v59  ;;  %v5048_v54 = vpop.f32.mrf.mxu1  ;;  %4045 = vmatmul.mubr.msk.bf16.vlgmr.msra.gmra.mxu1 %vm1555_vm0, %v4772_v59 }
 0x106   :  { %v2880_v9 = vadd.f32 %v2879_v5, %v5016_v24 }
 0x107   :  { %v5052_v55 = vpop.f32.mrf.mxu0  ;;  %v5054_v56 = vpop.f32.mrf.mxu1 }
 0x108   :  { %v2881_v14 = vadd.f32 %v2880_v9, %v5024_v30 }
 0x109   :  { %v1843_v57 = vpop.f32.mrf.mxu0  ;;  %v1884_v60 = vpop.f32.mrf.mxu1 }
 0x10a   :  { %v2882_v16 = vadd.f32 %v2881_v14, %v5043_v52 }
 0x10b   :  { %v1844_v61 = vpop.f32.mrf.mxu0  ;;  %v1885_v63 = vpop.f32.mrf.mxu1 }
 0x10c   :  { %v2883_v17 = vadd.f32 %v2882_v16, %v5052_v55 }
 0x10e   :  { %v2884_v19 = vadd.f32 %v2883_v17, %v5048_v54 }
 0x110   :  { %v2885_v27 = vadd.f32 %v2884_v19, %v5054_v56 }
 0x115   :  { %v5060_v6 = vpop.f32.mrf.mxu0  ;;  %v5062_v8 = vpop.f32.mrf.mxu1 }
 0x116   :  { %v2886_v31 = vadd.f32 %v2885_v27, %v5060_v6 }
 0x117   :  { %v5064_v59 = vpop.f32.mrf.mxu0  ;;  %v5067_v10 = vpop.f32.mrf.mxu1 }
 0x118   :  { %v2887_v33 = vadd.f32 %v2886_v31, %v5064_v59 }
 0x119   :  { %v1925_v11 = vpop.f32.mrf.mxu0  ;;  %v1966_v12 = vpop.f32.mrf.mxu1 }
 0x11a   :  { %v2888_v34 = vadd.f32 %v2887_v33, %v5062_v8 }
 0x11b   :  { %v1926_v13 = vpop.f32.mrf.mxu0  ;;  %v1967_v15 = vpop.f32.mrf.mxu1 }
 0x11c   :  { %v2889_v37 = vadd.f32 %v2888_v34, %v5067_v10 }
 0x125   :  { %v5072_v18 = vpop.f32.mrf.mxu0  ;;  %v5075_v20 = vpop.f32.mrf.mxu1 }
 0x126   :  { %v2890_v42 = vadd.f32 %v2889_v37, %v5072_v18 }
 0x127   :  { %v5077_v22 = vpop.f32.mrf.mxu0  ;;  %v5079_v23 = vpop.f32.mrf.mxu1 }
 0x128   :  { %v2891_v49 = vadd.f32 %v2890_v42, %v5077_v22 }
 0x129   :  { %v2007_v25 = vpop.f32.mrf.mxu0  ;;  %v2048_v28 = vpop.f32.mrf.mxu1 }
 0x12a   :  { %v2892_v50 = vadd.f32 %v2891_v49, %v5075_v20 }
 0x12b   :  { %v2008_v29 = vpop.f32.mrf.mxu0  ;;  %v2049_v32 = vpop.f32.mrf.mxu1 }
 0x12c   :  { %v2893_v51 = vadd.f32 %v2892_v50, %v5079_v23 }
 0x135   :  { %v5085_v43 = vpop.f32.mrf.mxu0  ;;  %v5087_v35 = vpop.f32.mrf.mxu1 }
 0x136   :  { %v2894_v58 = vadd.f32 %v2893_v51, %v5085_v43 }
 0x137   :  { %v5089_v36 = vpop.f32.mrf.mxu0  ;;  %v5092_v39 = vpop.f32.mrf.mxu1 }
 0x138   :  { %v2895_v2 = vadd.f32 %v2894_v58, %v5089_v36 }
 0x139   :  { %v2089_v40 = vpop.f32.mrf.mxu0  ;;  %v2130_v45 = vpop.f32.mrf.mxu1 }
 0x13a   :  { %v2896_v9 = vadd.f32 %v2895_v2, %v5087_v35 }
 0x13b   :  { %v2090_v46 = vpop.f32.mrf.mxu0  ;;  %v2131_v48 = vpop.f32.mrf.mxu1 }
 0x13c   :  { %v2897_v11 = vadd.f32 %v2896_v9, %v5092_v39 }
 0x145   :  { %v5097_v3 = vpop.f32.mrf.mxu0  ;;  %v5100_v53 = vpop.f32.mrf.mxu1 }
 0x146   :  { %v2898_v13 = vadd.f32 %v2897_v11, %v5097_v3 }
 0x147   :  { %v5102_v57 = vpop.f32.mrf.mxu0  ;;  %v5105_v60 = vpop.f32.mrf.mxu1 }
 0x148   :  { %v2899_v19 = vadd.f32 %v2898_v13, %v5102_v57 }
 0x149   :  { %v2171_v61 = vpop.f32.mrf.mxu0  ;;  %v2212_v63 = vpop.f32.mrf.mxu1 }
 0x14a   :  { %v2900_v29 = vadd.f32 %v2899_v19, %v5100_v53 }
 0x14b   :  { %v2172_v0 = vpop.f32.mrf.mxu0  ;;  %v2213_v5 = vpop.f32.mrf.mxu1 }
 0x14c   :  { %v2901_v31 = vadd.f32 %v2900_v29, %v5105_v60 }
 0x155   :  { %v5110_v12 = vpop.f32.mrf.mxu0  ;;  %v5113_v14 = vpop.f32.mrf.mxu1 }
 0x156   :  { %v2902_v32 = vadd.f32 %v2901_v31, %v5110_v12 }
 0x157   :  { %v5115_v15 = vpop.f32.mrf.mxu0  ;;  %v5117_v16 = vpop.f32.mrf.mxu1 }
 0x158   :  { %v2903_v40 = vadd.f32 %v2902_v32, %v5115_v15 }
 0x159   :  { %v2253_v17 = vpop.f32.mrf.mxu0  ;;  %v2294_v25 = vpop.f32.mrf.mxu1 }
 0x15a   :  { %v2904_v49 = vadd.f32 %v2903_v40, %v5113_v14 }
 0x15b   :  { %v2254_v27 = vpop.f32.mrf.mxu0  ;;  %v2295_v28 = vpop.f32.mrf.mxu1 }
 0x15c   :  { %v2905_v51 = vadd.f32 %v2904_v49, %v5117_v16 }
 0x165   :  { %v5123_v33 = vpop.f32.mrf.mxu0  ;;  %v5125_v34 = vpop.f32.mrf.mxu1 }
 0x166   :  { %v2906_v58 = vadd.f32 %v2905_v51, %v5123_v33 }
 0x167   :  { %v5127_v37 = vpop.f32.mrf.mxu0  ;;  %v5130_v42 = vpop.f32.mrf.mxu1 }
 0x168   :  { %v2907_v63 = vadd.f32 %v2906_v58, %v5127_v37 }
 0x169   :  { %v2335_v45 = vpop.f32.mrf.mxu0  ;;  %v2376_v46 = vpop.f32.mrf.mxu1 }
 0x16a   :  { %v2908_v11 = vadd.f32 %v2907_v63, %v5125_v34 }
 0x16b   :  { %v2336_v48 = vpop.f32.mrf.mxu0  ;;  %v2377_v50 = vpop.f32.mrf.mxu1 }
 0x16c   :  { %v2909_v25 = vadd.f32 %v2908_v11, %v5130_v42 }
 0x175   :  { %v5135_v61 = vpop.f32.mrf.mxu0  ;;  %v5138_v0 = vpop.f32.mrf.mxu1 }
 0x176   :  { %v2910_v27 = vadd.f32 %v2909_v25, %v5135_v61 }
 0x177   :  { %v5140_v2 = vpop.f32.mrf.mxu0  ;;  %v5142_v5 = vpop.f32.mrf.mxu1 }
 0x178   :  { %v2911_v28 = vadd.f32 %v2910_v27, %v5140_v2 }
 0x179   :  { %v2417_v9 = vpop.f32.mrf.mxu0  ;;  %v2458_v13 = vpop.f32.mrf.mxu1 }
 0x17a   :  { %v2912_v40 = vadd.f32 %v2911_v28, %v5138_v0 }
 0x17b   :  { %v2418_v17 = vpop.f32.mrf.mxu0  ;;  %v2459_v19 = vpop.f32.mrf.mxu1 }
 0x17c   :  { %v2913_v50 = vadd.f32 %v2912_v40, %v5142_v5 }
 0x185   :  { %v5148_v29 = vpop.f32.mrf.mxu0  ;;  %v5150_v31 = vpop.f32.mrf.mxu1 }
 0x186   :  { %6918 = vst [vmem:[#allocation2_spill] sm:$0xff] %v5150_v31  ;;  %v2914_v58 = vadd.f32 %v2913_v50, %v5148_v29 }
 0x187   :  { %v5152_v32 = vpop.f32.mrf.mxu0  ;;  %v5155_v45 = vpop.f32.mrf.mxu1 }
 0x188   :  { %6919 = vst [vmem:[#allocation3_spill] sm:$0xff] %v5155_v45  ;;  %v2915_v63 = vadd.f32 %v2914_v58, %v5152_v32 }
 0x189   :  { %v2499_v46 = vpop.f32.mrf.mxu0  ;;  %v2540_v48 = vpop.f32.mrf.mxu1 }
 0x18a   :  { %v2916_v11 = vadd.f32 %v2915_v63, %v5150_v31 }
 0x18b   :  { %v2500_v49 = vpop.f32.mrf.mxu0  ;;  %v2541_v51 = vpop.f32.mrf.mxu1 }
 0x18c   :  { %v2917_v27 = vadd.f32 %v2916_v11, %v5155_v45 }
 0x195   :  { %v5160_v9 = vpop.f32.mrf.mxu0  ;;  %v5163_v13 = vpop.f32.mrf.mxu1 }
 0x196   :  { %6920 = vst [vmem:[#allocation4_spill] sm:$0xff] %v5160_v9  ;;  %6921 = vst [vmem:[#allocation5_spill] sm:$0xff] %v5163_v13  ;;  %v2918_v46 = vadd.f32 %v2917_v27, %v5160_v9 }
 0x197   :  { %v5165_v17 = vpop.f32.mrf.mxu0  ;;  %v5167_v19 = vpop.f32.mrf.mxu1 }
 0x198   :  { %6922 = vst [vmem:[#allocation6_spill] sm:$0xff] %v5165_v17  ;;  %v2919_v49 = vadd.f32 %v2918_v46, %v5165_v17 }
 0x199   :  { %v2581_v25 = vpop.f32.mrf.mxu0  ;;  %v2622_v28 = vpop.f32.mrf.mxu1 }
 0x19a   :  { %v2920_v50 = vadd.f32 %v2919_v49, %v5163_v13 }
 0x19b   :  { %v2582_v40 = vpop.f32.mrf.mxu0  ;;  %v2623_v48 = vpop.f32.mrf.mxu1 }
 0x19c   :  { %v2921_v31 = vadd.f32 %v2920_v50, %v5167_v19 }
 0x1a5   :  { %v5173_v51 = vpop.f32.mrf.mxu0  ;;  %v5175_v58 = vpop.f32.mrf.mxu1 }
 0x1a6   :  { %6923 = vst [vmem:[#allocation7_spill] sm:$0xff] %v5173_v51  ;;  %6924 = vst [vmem:[#allocation8_spill] sm:$0xff] %v5175_v58  ;;  %v2922_v28 = vadd.f32 %v2921_v31, %v5173_v51 }
 0x1a7   :  { %v5177_v63 = vpop.f32.mrf.mxu0  ;;  %v5180_v25 = vpop.f32.mrf.mxu1 }
 0x1a8   :  { %6925 = vst [vmem:[#allocation9_spill] sm:$0xff] %v5177_v63  ;;  %6926 = vst [vmem:[#allocation10_spill] sm:$0xff] %v5180_v25  ;;  %v2923_v46 = vadd.f32 %v2922_v28, %v5177_v63 }
 0x1a9   :  { %v2663_v11 = vpop.f32.mrf.mxu0  ;;  %v2704_v40 = vpop.f32.mrf.mxu1 }
 0x1aa   :  { %v2924_v49 = vadd.f32 %v2923_v46, %v5175_v58 }
 0x1ab   :  { %v2664_v27 = vpop.f32.mrf.mxu0  ;;  %v2705_v48 = vpop.f32.mrf.mxu1 }
 0x1ac   :  { %v2925_v17 = vadd.f32 %v2924_v49, %v5180_v25 }
 0x1b5   :  { %v5185_v13 = vpop.f32.mrf.mxu0  ;;  %v5188_v9 = vpop.f32.mrf.mxu1 }
 0x1b6   :  { %6927 = vst [vmem:[#allocation11_spill] sm:$0xff] %v5188_v9  ;;  %v2926_v50 = vadd.f32 %v2925_v17, %v5185_v13 }
 0x1b7   :  { %v5190_v45 = vpop.f32.mrf.mxu0  ;;  %v5193_v11 = vpop.f32.mrf.mxu1 }
 0x1b8   :  { %6928 = vst [vmem:[#allocation12_spill] sm:$0xff] %v5193_v11  ;;  %v2927_v48 = vadd.f32 %v2926_v50, %v5190_v45 }
 0x1b9   :  { %v2745_v31 = vpop.f32.mrf.mxu0  ;;  %v2786_v40 = vpop.f32.mrf.mxu1 }
 0x1ba   :  { %v2928_v46 = vadd.f32 %v2927_v48, %v5188_v9 }
 0x1bb   :  { %v2746_v27 = vpop.f32.mrf.mxu0  ;;  %v2787_v28 = vpop.f32.mrf.mxu1 }
 0x1bc   :  { %v2929_v58 = vadd.f32 %v2928_v46, %v5193_v11 }
 0x1c5   :  { %v5198_v63 = vpop.f32.mrf.mxu0  ;;  %v5201_v25 = vpop.f32.mrf.mxu1 }
 0x1c6   :  { %v2930_v49 = vadd.f32 %v2929_v58, %v5198_v63 }
 0x1c7   :  { %v5203_v51 = vpop.f32.mrf.mxu0  ;;  %v5206_v31 = vpop.f32.mrf.mxu1 }
 0x1c8   :  { %v2931_v17 = vadd.f32 %v2930_v49, %v5203_v51 }
 0x1c9   :  { %v2827_v40 = vpop.f32.mrf.mxu0  ;;  %v2868_v27 = vpop.f32.mrf.mxu1 }
 0x1ca   :  { %v2932_v50 = vadd.f32 %v2931_v17, %v5201_v25 }
 0x1cb   :  { %v2828_v28 = vpop.f32.mrf.mxu0  ;;  %v2869_v48 = vpop.f32.mrf.mxu1 }
 0x1cc   :  { %v2933_v46 = vadd.f32 %v2932_v50, %v5206_v31 }
 0x1ce   :  { %2934 = vadd.xlane.f32.xlu0 %v2933_v46 }
 0x257   :  { %v2935_v11 = vpop.xlane.xlu0 %2934 }
 0x258   :  { %v5210_v9 = vmul.f32 0.00012207031, %v2935_v11 }
 0x25a   :  { %v5214_v58 = vsub.f32 %v4882_v62, %v5210_v9  ;;  %v5218_v49 = vsub.f32 %v4896_v4, %v5210_v9  ;;  %v5222_v40 = vsub.f32 %v4892_v1, %v5210_v9  ;;  %v5230_v11 = vsub.f32 %v4898_v7, %v5210_v9 }
 0x25b   :  { %v5234_v62 = vsub.f32 %v4944_v38, %v5210_v9  ;;  %v5240_v1 = vsub.f32 %v4958_v44, %v5210_v9  ;;  %v5246_v7 = vsub.f32 %v4954_v41, %v5210_v9 }
 0x25c   :  { %6929 = vst [vmem:[#allocation13_spill] sm:$0xff] %v5222_v40  ;;  %v3001_v17 = vmul.f32 %v5214_v58, %v5214_v58  ;;  %v3002_v27 = vmul.f32 %v5218_v49, %v5218_v49  ;;  %v3003_v4 = vmul.f32 %v5222_v40, %v5222_v40  ;;  %v3004_v28 = vmul.f32 %v5230_v11, %v5230_v11 }
 0x25d   :  { %v3005_v38 = vmul.f32 %v5234_v62, %v5234_v62  ;;  %v5252_v40 = vsub.f32 %v4960_v47, %v5210_v9  ;;  %v3006_v44 = vmul.f32 %v5240_v1, %v5240_v1  ;;  %v3007_v41 = vmul.f32 %v5246_v7, %v5246_v7 }
 0x25e   :  { %v3065_v50 = vadd.f32 %v3002_v27, %v3001_v17  ;;  %v5258_v27 = vsub.f32 %v5006_v21, %v5210_v9 }
 0x25f   :  { %v3008_v47 = vmul.f32 %v5252_v40, %v5252_v40 }
 0x260   :  { %v3066_v48 = vadd.f32 %v3065_v50, %v3003_v4  ;;  %v5264_v50 = vsub.f32 %v5020_v26, %v5210_v9  ;;  %v3009_v21 = vmul.f32 %v5258_v27, %v5258_v27 }
 0x262   :  { %v3067_v46 = vadd.f32 %v3066_v48, %v3004_v28  ;;  %v5270_v48 = vsub.f32 %v5016_v24, %v5210_v9  ;;  %v3010_v26 = vmul.f32 %v5264_v50, %v5264_v50 }
 0x264   :  { %v3068_v17 = vadd.f32 %v3067_v46, %v3005_v38  ;;  %v5276_v46 = vsub.f32 %v5024_v30, %v5210_v9  ;;  %v3011_v24 = vmul.f32 %v5270_v48, %v5270_v48 }
 0x266   :  { %v3069_v4 = vadd.f32 %v3068_v17, %v3006_v44  ;;  %v5282_v17 = vsub.f32 %v5043_v52, %v5210_v9  ;;  %v3012_v30 = vmul.f32 %v5276_v46, %v5276_v46 }
 0x268   :  { %v3070_v28 = vadd.f32 %v3069_v4, %v3007_v41  ;;  %v5288_v4 = vsub.f32 %v5052_v55, %v5210_v9  ;;  %v3013_v52 = vmul.f32 %v5282_v17, %v5282_v17 }
 0x26a   :  { %v3071_v38 = vadd.f32 %v3070_v28, %v3008_v47  ;;  %v5294_v28 = vsub.f32 %v5048_v54, %v5210_v9  ;;  %v3014_v55 = vmul.f32 %v5288_v4, %v5288_v4 }
 0x26c   :  { %v3072_v44 = vadd.f32 %v3071_v38, %v3009_v21  ;;  %v5300_v38 = vsub.f32 %v5054_v56, %v5210_v9  ;;  %v3015_v54 = vmul.f32 %v5294_v28, %v5294_v28 }
 0x26e   :  { %v3073_v41 = vadd.f32 %v3072_v44, %v3010_v26  ;;  %v5306_v44 = vsub.f32 %v5060_v6, %v5210_v9  ;;  %v3016_v56 = vmul.f32 %v5300_v38, %v5300_v38 }
 0x270   :  { %v3074_v47 = vadd.f32 %v3073_v41, %v3011_v24  ;;  %v5312_v41 = vsub.f32 %v5064_v59, %v5210_v9  ;;  %v3017_v6 = vmul.f32 %v5306_v44, %v5306_v44 }
 0x272   :  { %v3075_v21 = vadd.f32 %v3074_v47, %v3012_v30  ;;  %v5318_v47 = vsub.f32 %v5062_v8, %v5210_v9  ;;  %v3018_v59 = vmul.f32 %v5312_v41, %v5312_v41 }
 0x274   :  { %v3076_v26 = vadd.f32 %v3075_v21, %v3013_v52  ;;  %v5324_v21 = vsub.f32 %v5067_v10, %v5210_v9  ;;  %v3019_v8 = vmul.f32 %v5318_v47, %v5318_v47 }
 0x276   :  { %v3077_v24 = vadd.f32 %v3076_v26, %v3014_v55  ;;  %v5330_v26 = vsub.f32 %v5072_v18, %v5210_v9  ;;  %v3020_v10 = vmul.f32 %v5324_v21, %v5324_v21 }
 0x278   :  { %v3078_v30 = vadd.f32 %v3077_v24, %v3015_v54  ;;  %v5336_v24 = vsub.f32 %v5077_v22, %v5210_v9  ;;  %v3021_v18 = vmul.f32 %v5330_v26, %v5330_v26 }
 0x27a   :  { %v3079_v52 = vadd.f32 %v3078_v30, %v3016_v56  ;;  %v5342_v30 = vsub.f32 %v5075_v20, %v5210_v9  ;;  %v3022_v22 = vmul.f32 %v5336_v24, %v5336_v24 }
 0x27c   :  { %v3080_v55 = vadd.f32 %v3079_v52, %v3017_v6  ;;  %v5348_v52 = vsub.f32 %v5079_v23, %v5210_v9  ;;  %v3023_v20 = vmul.f32 %v5342_v30, %v5342_v30 }
 0x27e   :  { %v3081_v54 = vadd.f32 %v3080_v55, %v3018_v59  ;;  %v5354_v55 = vsub.f32 %v5085_v43, %v5210_v9  ;;  %v3024_v23 = vmul.f32 %v5348_v52, %v5348_v52 }
 0x280   :  { %v3082_v56 = vadd.f32 %v3081_v54, %v3019_v8  ;;  %v5360_v54 = vsub.f32 %v5089_v36, %v5210_v9  ;;  %v3025_v43 = vmul.f32 %v5354_v55, %v5354_v55 }
 0x282   :  { %v3083_v6 = vadd.f32 %v3082_v56, %v3020_v10  ;;  %v5366_v56 = vsub.f32 %v5087_v35, %v5210_v9  ;;  %v3026_v36 = vmul.f32 %v5360_v54, %v5360_v54 }
 0x284   :  { %v3084_v59 = vadd.f32 %v3083_v6, %v3021_v18  ;;  %v5372_v6 = vsub.f32 %v5092_v39, %v5210_v9  ;;  %v3027_v35 = vmul.f32 %v5366_v56, %v5366_v56 }
 0x286   :  { %v3085_v8 = vadd.f32 %v3084_v59, %v3022_v22  ;;  %v5378_v59 = vsub.f32 %v5097_v3, %v5210_v9  ;;  %v3028_v39 = vmul.f32 %v5372_v6, %v5372_v6 }
 0x288   :  { %v3086_v10 = vadd.f32 %v3085_v8, %v3023_v20  ;;  %v5384_v8 = vsub.f32 %v5102_v57, %v5210_v9  ;;  %v3029_v3 = vmul.f32 %v5378_v59, %v5378_v59 }
 0x28a   :  { %v3087_v18 = vadd.f32 %v3086_v10, %v3024_v23  ;;  %v5390_v10 = vsub.f32 %v5100_v53, %v5210_v9  ;;  %v3030_v57 = vmul.f32 %v5384_v8, %v5384_v8 }
 0x28c   :  { %v3088_v22 = vadd.f32 %v3087_v18, %v3025_v43  ;;  %v5396_v18 = vsub.f32 %v5105_v60, %v5210_v9  ;;  %v3031_v53 = vmul.f32 %v5390_v10, %v5390_v10 }
 0x28e   :  { %v3089_v20 = vadd.f32 %v3088_v22, %v3026_v36  ;;  %v5402_v22 = vsub.f32 %v5110_v12, %v5210_v9  ;;  %v3032_v60 = vmul.f32 %v5396_v18, %v5396_v18 }
 0x290   :  { %v3090_v23 = vadd.f32 %v3089_v20, %v3027_v35  ;;  %v5408_v20 = vsub.f32 %v5115_v15, %v5210_v9  ;;  %v3033_v12 = vmul.f32 %v5402_v22, %v5402_v22 }
 0x292   :  { %v3091_v43 = vadd.f32 %v3090_v23, %v3028_v39  ;;  %v5414_v23 = vsub.f32 %v5113_v14, %v5210_v9  ;;  %v3034_v15 = vmul.f32 %v5408_v20, %v5408_v20 }
 0x294   :  { %v3092_v36 = vadd.f32 %v3091_v43, %v3029_v3  ;;  %v5420_v43 = vsub.f32 %v5117_v16, %v5210_v9  ;;  %v3035_v14 = vmul.f32 %v5414_v23, %v5414_v23 }
 0x296   :  { %v3093_v35 = vadd.f32 %v3092_v36, %v3030_v57  ;;  %v5426_v36 = vsub.f32 %v5123_v33, %v5210_v9  ;;  %v3036_v16 = vmul.f32 %v5420_v43, %v5420_v43 }
 0x298   :  { %v3094_v39 = vadd.f32 %v3093_v35, %v3031_v53  ;;  %v5432_v35 = vsub.f32 %v5127_v37, %v5210_v9  ;;  %v3037_v33 = vmul.f32 %v5426_v36, %v5426_v36 }
 0x29a   :  { %v3095_v3 = vadd.f32 %v3094_v39, %v3032_v60  ;;  %v5438_v39 = vsub.f32 %v5125_v34, %v5210_v9  ;;  %v3038_v37 = vmul.f32 %v5432_v35, %v5432_v35 }
 0x29c   :  { %v3096_v57 = vadd.f32 %v3095_v3, %v3033_v12  ;;  %v5444_v3 = vsub.f32 %v5130_v42, %v5210_v9  ;;  %v3039_v34 = vmul.f32 %v5438_v39, %v5438_v39 }
 0x29e   :  { %v3097_v53 = vadd.f32 %v3096_v57, %v3034_v15  ;;  %v5450_v57 = vsub.f32 %v5135_v61, %v5210_v9  ;;  %v3040_v42 = vmul.f32 %v5444_v3, %v5444_v3 }
 0x2a0   :  { %v3098_v60 = vadd.f32 %v3097_v53, %v3035_v14  ;;  %v5456_v53 = vsub.f32 %v5140_v2, %v5210_v9  ;;  %v3041_v61 = vmul.f32 %v5450_v57, %v5450_v57 }
 0x2a2   :  { %v3099_v12 = vadd.f32 %v3098_v60, %v3036_v16  ;;  %6930 = vst [vmem:[#allocation14_spill] sm:$0xff] %v5456_v53  ;;  %v5462_v60 = vsub.f32 %v5138_v0, %v5210_v9  ;;  %v3042_v2 = vmul.f32 %v5456_v53, %v5456_v53 }
 0x2a4   :  { %v3100_v15 = vadd.f32 %v3099_v12, %v3037_v33  ;;  %6931 = vst [vmem:[#allocation15_spill] sm:$0xff] %v5462_v60  ;;  %v5468_v12 = vsub.f32 %v5142_v5, %v5210_v9  ;;  %v3043_v0 = vmul.f32 %v5462_v60, %v5462_v60 }
 0x2a6   :  { %v3101_v14 = vadd.f32 %v3100_v15, %v3038_v37  ;;  %6932 = vst [vmem:[#allocation16_spill] sm:$0xff] %v5468_v12  ;;  %v5474_v15 = vsub.f32 %v5148_v29, %v5210_v9  ;;  %v3044_v5 = vmul.f32 %v5468_v12, %v5468_v12 }
 0x2a8   :  { %v3102_v16 = vadd.f32 %v3101_v14, %v3039_v34  ;;  %6933 = vst [vmem:[#allocation17_spill] sm:$0xff] %v5474_v15  ;;  %v5480_v14 = vsub.f32 %v5152_v32, %v5210_v9  ;;  %v3045_v29 = vmul.f32 %v5474_v15, %v5474_v15 }
 0x2aa   :  { %v3103_v33 = vadd.f32 %v3102_v16, %v3040_v42  ;;  %6934 = vst [vmem:[#allocation18_spill] sm:$0xff] %v5480_v14  ;;  %v6935_v16 = vld [vmem:[#allocation2_spill] sm:$0xff]  ;;  %v3046_v32 = vmul.f32 %v5480_v14, %v5480_v14 }
 0x2ab   :  { %v5486_v53 = vsub.f32 %v6935_v16, %v5210_v9  ;;  %v6940_v16 = vld [vmem:[#allocation6_spill] sm:$0xff] }
 0x2ac   :  { %v3104_v37 = vadd.f32 %v3103_v33, %v3041_v61  ;;  %v6936_v33 = vld [vmem:[#allocation3_spill] sm:$0xff]  ;;  %v5504_v15 = vsub.f32 %v6940_v16, %v5210_v9 }
 0x2ad   :  { %v5492_v60 = vsub.f32 %v6936_v33, %v5210_v9  ;;  %v6942_v33 = vld [vmem:[#allocation5_spill] sm:$0xff]  ;;  %v6944_v16 = vld [vmem:[#allocation7_spill] sm:$0xff] }
 0x2ae   :  { %v3105_v34 = vadd.f32 %v3104_v37, %v3042_v2  ;;  %v6938_v37 = vld [vmem:[#allocation4_spill] sm:$0xff]  ;;  %v5510_v14 = vsub.f32 %v6942_v33, %v5210_v9  ;;  %v6945_v33 = vld [vmem:[#allocation9_spill] sm:$0xff] }
 0x2af   :  { %6937 = vst [vmem:[#allocation2_spill] sm:$0xff] %v5492_v60  ;;  %v5498_v12 = vsub.f32 %v6938_v37, %v5210_v9  ;;  %6941 = vst [vmem:[#allocation4_spill] sm:$0xff] %v5504_v15  ;;  %v5516_v37 = vsub.f32 %v5167_v19, %v5210_v9 }
 0x2b0   :  { %v3106_v42 = vadd.f32 %v3105_v34, %v3043_v0  ;;  %v3047_v0 = vmul.f32 %v5486_v53, %v5486_v53  ;;  %6943 = vst [vmem:[#allocation6_spill] sm:$0xff] %v5510_v14 }
 0x2b1   :  { %6939 = vst [vmem:[#allocation3_spill] sm:$0xff] %v5498_v12  ;;  %v3052_v19 = vmul.f32 %v5516_v37, %v5516_v37 }
 0x2b2   :  { %v3107_v61 = vadd.f32 %v3106_v42, %v3044_v5  ;;  %v3048_v5 = vmul.f32 %v5492_v60, %v5492_v60  ;;  %v5522_v60 = vsub.f32 %v6944_v16, %v5210_v9  ;;  %v6949_v16 = vld [vmem:[#allocation10_spill] sm:$0xff] }
 0x2b4   :  { %v3108_v2 = vadd.f32 %v3107_v61, %v3045_v29  ;;  %v3049_v29 = vmul.f32 %v5498_v12, %v5498_v12  ;;  %v5528_v12 = vsub.f32 %v6945_v33, %v5210_v9  ;;  %v5546_v33 = vsub.f32 %v5185_v13, %v5210_v9 }
 0x2b6   :  { %v3109_v34 = vadd.f32 %v3108_v2, %v3046_v32  ;;  %v3050_v32 = vmul.f32 %v5504_v15, %v5504_v15  ;;  %6946 = vst [vmem:[#allocation5_spill] sm:$0xff] %v5528_v12  ;;  %v3057_v13 = vmul.f32 %v5546_v33, %v5546_v33 }
 0x2b8   :  { %v3110_v42 = vadd.f32 %v3109_v34, %v3047_v0  ;;  %v3051_v0 = vmul.f32 %v5510_v14, %v5510_v14  ;;  %v5540_v14 = vsub.f32 %v6949_v16, %v5210_v9  ;;  %v6950_v16 = vld [vmem:[#allocation11_spill] sm:$0xff] }
 0x2ba   :  { %v3111_v61 = vadd.f32 %v3110_v42, %v3048_v5  ;;  %v6947_v42 = vld [vmem:[#allocation8_spill] sm:$0xff] }
 0x2bb   :  { %v5534_v15 = vsub.f32 %v6947_v42, %v5210_v9  ;;  %v5552_v42 = vsub.f32 %v5190_v45, %v5210_v9 }
 0x2bc   :  { %v3112_v2 = vadd.f32 %v3111_v61, %v3049_v29  ;;  %v3053_v29 = vmul.f32 %v5522_v60, %v5522_v60 }
 0x2bd   :  { %6948 = vst [vmem:[#allocation7_spill] sm:$0xff] %v5534_v15  ;;  %v3058_v45 = vmul.f32 %v5552_v42, %v5552_v42 }
 0x2be   :  { %v3113_v34 = vadd.f32 %v3112_v2, %v3050_v32  ;;  %v3054_v32 = vmul.f32 %v5528_v12, %v5528_v12  ;;  %v5558_v12 = vsub.f32 %v6950_v16, %v5210_v9  ;;  %v5576_v16 = vsub.f32 %v5203_v51, %v5210_v9 }
 0x2c0   :  { %v3114_v5 = vadd.f32 %v3113_v34, %v3051_v0  ;;  %v3055_v0 = vmul.f32 %v5534_v15, %v5534_v15  ;;  %v3062_v51 = vmul.f32 %v5576_v16, %v5576_v16 }
 0x2c2   :  { %v3115_v61 = vadd.f32 %v3114_v5, %v3052_v19  ;;  %v3056_v19 = vmul.f32 %v5540_v14, %v5540_v14 }
 0x2c4   :  { %v3116_v2 = vadd.f32 %v3115_v61, %v3053_v29  ;;  %v6951_v61 = vld [vmem:[#allocation12_spill] sm:$0xff] }
 0x2c5   :  { %v5564_v15 = vsub.f32 %v6951_v61, %v5210_v9  ;;  %v5582_v61 = vsub.f32 %v5201_v25, %v5210_v9 }
 0x2c6   :  { %v3117_v34 = vadd.f32 %v3116_v2, %v3054_v32  ;;  %v5570_v2 = vsub.f32 %v5198_v63, %v5210_v9 }
 0x2c7   :  { %6952 = vst [vmem:[#allocation9_spill] sm:$0xff] %v5564_v15 }
 0x2c8   :  { %v3118_v5 = vadd.f32 %v3117_v34, %v3055_v0  ;;  %6953 = vst [vmem:[#allocation8_spill] sm:$0xff] %v5570_v2  ;;  %v3059_v0 = vmul.f32 %v5558_v12, %v5558_v12  ;;  %v3061_v63 = vmul.f32 %v5570_v2, %v5570_v2 }
 0x2ca   :  { %v3119_v29 = vadd.f32 %v3118_v5, %v3056_v19  ;;  %v3060_v19 = vmul.f32 %v5564_v15, %v5564_v15 }
 0x2cc   :  { %v3120_v32 = vadd.f32 %v3119_v29, %v3057_v13  ;;  %v5588_v29 = vsub.f32 %v5206_v31, %v5210_v9  ;;  %v3131_v9 = vld [vmem:[%s6857_s2] sm:$0xff] }
 0x2ce   :  { %v3121_v34 = vadd.f32 %v3120_v32, %v3058_v45  ;;  %v3063_v32 = vmul.f32 %v5582_v61, %v5582_v61  ;;  %v3064_v25 = vmul.f32 %v5588_v29, %v5588_v29 }
 0x2d0   :  { %v3122_v5 = vadd.f32 %v3121_v34, %v3059_v0 }
 0x2d2   :  { %v3123_v13 = vadd.f32 %v3122_v5, %v3060_v19 }
 0x2d4   :  { %v3124_v45 = vadd.f32 %v3123_v13, %v3061_v63  ;;  %v3204_v13 = vld [vmem:[%s6858_s3] sm:$0xff] }
 0x2d6   :  { %v3125_v0 = vadd.f32 %v3124_v45, %v3062_v51  ;;  %v6954_v45 = vld [vmem:[#allocation13_spill] sm:$0xff] }
 0x2d8   :  { %v3126_v34 = vadd.f32 %v3125_v0, %v3063_v32 }
 0x2da   :  { %v3127_v15 = vadd.f32 %v3126_v34, %v3064_v25 }
 0x2dc   :  { %3128 = vadd.xlane.f32.xlu0 %v3127_v15 }
 0x365   :  { %v3129_v2 = vpop.xlane.xlu0 %3128 }
 0x366   :  { %v3130_v19 = vmul.f32 0.00012207031, %v3129_v2 }
 0x368   :  { %v3132_v5 = vadd.f32 1e-05, %v3130_v19  ;;  %v6955_v19 = vld [vmem:[#allocation14_spill] sm:$0xff] }
 0x36a   :  { %4113 = vrsqrt.f32 %v3132_v5  ;;  %v6956_v5 = vld [vmem:[#allocation15_spill] sm:$0xff] }
 0x377   :  { %v4114_v31 = vpop.eup %4113 }
 0x378   :  { %v3134_v63 = vmul.f32 %v4114_v31, %v3131_v9  ;;  %v6957_v9 = vld [vmem:[#allocation16_spill] sm:$0xff]  ;;  %v6959_v31 = vld [vmem:[#allocation17_spill] sm:$0xff] }
 0x37a   :  { %3137 = vperm.xlu1 %4111, %v3134_v63   ;;  %v6961_v63 = vld [vmem:[#allocation18_spill] sm:$0xff] }
 0x37e   :  { %3207 = vperm.xlu1 %4111, %v3204_v13  }
 0x3f5   :  { %v5602_v51 = vpop.permute.xlu1 %3137 }
 0x3f6   :  { %v5606_v15 = vmul.f32 %v5602_v51, %v5214_v58  ;;  %v5610_v2 = vmul.f32 %v5602_v51, %v5218_v49  ;;  %v5614_v32 = vmul.f32 %v5602_v51, %v6954_v45  ;;  %v5618_v0 = vmul.f32 %v5602_v51, %v5230_v11  ;;  %v6962_v45 = vld [vmem:[#allocation2_spill] sm:$0xff] }
 0x3f7   :  { %v5622_v25 = vmul.f32 %v5602_v51, %v5234_v62  ;;  %v5626_v58 = vmul.f32 %v5602_v51, %v5240_v1  ;;  %v5630_v49 = vmul.f32 %v5602_v51, %v5246_v7  ;;  %v5634_v34 = vmul.f32 %v5602_v51, %v5252_v40 }
 0x3f8   :  { %v5638_v11 = vmul.f32 %v5602_v51, %v5258_v27  ;;  %v5642_v62 = vmul.f32 %v5602_v51, %v5264_v50  ;;  %v5646_v1 = vmul.f32 %v5602_v51, %v5270_v48  ;;  %v5650_v7 = vmul.f32 %v5602_v51, %v5276_v46 }
 0x3f9   :  { %v5654_v40 = vmul.f32 %v5602_v51, %v5282_v17  ;;  %v5658_v27 = vmul.f32 %v5602_v51, %v5288_v4  ;;  %v5662_v50 = vmul.f32 %v5602_v51, %v5294_v28  ;;  %v5666_v48 = vmul.f32 %v5602_v51, %v5300_v38 }
 0x3fa   :  { %v5670_v46 = vmul.f32 %v5602_v51, %v5306_v44  ;;  %v5674_v17 = vmul.f32 %v5602_v51, %v5312_v41  ;;  %v5678_v4 = vmul.f32 %v5602_v51, %v5318_v47  ;;  %v5682_v28 = vmul.f32 %v5602_v51, %v5324_v21 }
 0x3fb   :  { %v5686_v38 = vmul.f32 %v5602_v51, %v5330_v26  ;;  %v5690_v44 = vmul.f32 %v5602_v51, %v5336_v24  ;;  %v5694_v41 = vmul.f32 %v5602_v51, %v5342_v30  ;;  %v5698_v47 = vmul.f32 %v5602_v51, %v5348_v52 }
 0x3fc   :  { %v5702_v21 = vmul.f32 %v5602_v51, %v5354_v55  ;;  %v5706_v26 = vmul.f32 %v5602_v51, %v5360_v54  ;;  %v5710_v24 = vmul.f32 %v5602_v51, %v5366_v56  ;;  %v5714_v30 = vmul.f32 %v5602_v51, %v5372_v6 }
 0x3fd   :  { %v5718_v52 = vmul.f32 %v5602_v51, %v5378_v59  ;;  %v5722_v55 = vmul.f32 %v5602_v51, %v5384_v8  ;;  %v5726_v54 = vmul.f32 %v5602_v51, %v5390_v10  ;;  %v5730_v56 = vmul.f32 %v5602_v51, %v5396_v18 }
 0x3fe   :  { %v5734_v6 = vmul.f32 %v5602_v51, %v5402_v22  ;;  %v5738_v59 = vmul.f32 %v5602_v51, %v5408_v20  ;;  %v5742_v8 = vmul.f32 %v5602_v51, %v5414_v23  ;;  %v5746_v10 = vmul.f32 %v5602_v51, %v5420_v43 }
 0x3ff   :  { %v5750_v18 = vmul.f32 %v5602_v51, %v5426_v36  ;;  %v5754_v22 = vmul.f32 %v5602_v51, %v5432_v35  ;;  %v5758_v20 = vmul.f32 %v5602_v51, %v5438_v39  ;;  %v5762_v23 = vmul.f32 %v5602_v51, %v5444_v3 }
 0x400   :  { %v5766_v43 = vmul.f32 %v5602_v51, %v5450_v57  ;;  %v5770_v36 = vmul.f32 %v5602_v51, %v6955_v19  ;;  %v5774_v35 = vmul.f32 %v5602_v51, %v6956_v5  ;;  %v5778_v39 = vmul.f32 %v5602_v51, %v6957_v9  ;;  %v6964_v5 = vld [vmem:[#allocation3_spill] sm:$0xff] }
 0x401   :  { %v5782_v3 = vmul.f32 %v5602_v51, %v6959_v31  ;;  %v5786_v57 = vmul.f32 %v5602_v51, %v6961_v63  ;;  %v5790_v13 = vmul.f32 %v5602_v51, %v5486_v53  ;;  %v5794_v19 = vmul.f32 %v5602_v51, %v6962_v45 }
 0x402   :  { %6958 = vst [vmem:[#allocation10_spill] sm:$0xff] %v5778_v39  ;;  %v5798_v9 = vmul.f32 %v5602_v51, %v6964_v5  ;;  %v6966_v39 = vld [vmem:[#allocation4_spill] sm:$0xff]  ;;  %v5810_v53 = vmul.f32 %v5602_v51, %v5516_v37  ;;  %v5814_v45 = vmul.f32 %v5602_v51, %v5522_v60  ;;  %v5832_v37 = vmul.f32 %v5602_v51, %v5546_v33 }
 0x403   :  { %6960 = vst [vmem:[#allocation11_spill] sm:$0xff] %v5782_v3  ;;  %6963 = vst [vmem:[#allocation12_spill] sm:$0xff] %v5794_v19  ;;  %v5802_v31 = vmul.f32 %v5602_v51, %v6966_v39  ;;  %v6968_v3 = vld [vmem:[#allocation6_spill] sm:$0xff]  ;;  %v6969_v19 = vld [vmem:[#allocation5_spill] sm:$0xff]  ;;  %v5836_v60 = vmul.f32 %v5602_v51, %v5552_v42  ;;  %v5852_v33 = vmul.f32 %v5602_v51, %v5576_v16 }
 0x404   :  { %6965 = vst [vmem:[#allocation13_spill] sm:$0xff] %v5798_v9  ;;  %v5806_v63 = vmul.f32 %v5602_v51, %v6968_v3  ;;  %v5818_v5 = vmul.f32 %v5602_v51, %v6969_v19  ;;  %v6971_v9 = vld [vmem:[#allocation7_spill] sm:$0xff]  ;;  %v5828_v3 = vmul.f32 %v5602_v51, %v5540_v14  ;;  %v5840_v19 = vmul.f32 %v5602_v51, %v5558_v12 }
 0x405   :  { %6967 = vst [vmem:[#allocation14_spill] sm:$0xff] %v5802_v31  ;;  %v5822_v39 = vmul.f32 %v5602_v51, %v6971_v9  ;;  %v5824_v31 = vpop.permute.xlu1 %3207  ;;  %v6973_v9 = vld [vmem:[#allocation9_spill] sm:$0xff]  ;;  %v5856_v42 = vmul.f32 %v5602_v51, %v5582_v61  ;;  %v5860_v12 = vmul.f32 %v5602_v51, %v5588_v29 }
 0x406   :  { %6970 = vst [vmem:[#allocation15_spill] sm:$0xff] %v5818_v5  ;;  %v6974_v5 = vld [vmem:[#allocation8_spill] sm:$0xff]  ;;  %v5872_v16 = vadd.f32 %v5824_v31, %v5614_v32  ;;  %v5876_v61 = vadd.f32 %v5824_v31, %v5618_v0  ;;  %v5880_v29 = vadd.f32 %v5824_v31, %v5622_v25  ;;  %v5896_v32 = vadd.f32 %v5824_v31, %v5638_v11 }
 0x407   :  { %6972 = vst [vmem:[#allocation16_spill] sm:$0xff] %v5822_v39  ;;  %v5844_v39 = vmul.f32 %v5602_v51, %v6973_v9  ;;  %v5848_v14 = vmul.f32 %v5602_v51, %v6974_v5  ;;  %v5864_v9 = vadd.f32 %v5824_v31, %v5606_v15  ;;  %v5868_v5 = vadd.f32 %v5824_v31, %v5610_v2 }
 0x408   :  { %v5884_v51 = vadd.f32 %v5824_v31, %v5626_v58  ;;  %v5888_v15 = vadd.f32 %v5824_v31, %v5630_v49  ;;  %v5892_v2 = vadd.f32 %v5824_v31, %v5634_v34  ;;  %v5900_v0 = vadd.f32 %v5824_v31, %v5642_v62 }
 0x409   :  { %v5904_v25 = vadd.f32 %v5824_v31, %v5646_v1  ;;  %v5908_v58 = vadd.f32 %v5824_v31, %v5650_v7  ;;  %v5912_v49 = vadd.f32 %v5824_v31, %v5654_v40  ;;  %v5916_v34 = vadd.f32 %v5824_v31, %v5658_v27 }
 0x40a   :  { %v5920_v11 = vadd.f32 %v5824_v31, %v5662_v50  ;;  %v5924_v62 = vadd.f32 %v5824_v31, %v5666_v48  ;;  %v5928_v1 = vadd.f32 %v5824_v31, %v5670_v46  ;;  %v5932_v7 = vadd.f32 %v5824_v31, %v5674_v17 }
 0x40b   :  { %v5936_v40 = vadd.f32 %v5824_v31, %v5678_v4  ;;  %v5940_v27 = vadd.f32 %v5824_v31, %v5682_v28  ;;  %v5944_v50 = vadd.f32 %v5824_v31, %v5686_v38  ;;  %v5948_v48 = vadd.f32 %v5824_v31, %v5690_v44 }
 0x40c   :  { %v5952_v46 = vadd.f32 %v5824_v31, %v5694_v41  ;;  %v5956_v17 = vadd.f32 %v5824_v31, %v5698_v47  ;;  %v5960_v4 = vadd.f32 %v5824_v31, %v5702_v21  ;;  %v5964_v28 = vadd.f32 %v5824_v31, %v5706_v26 }
 0x40d   :  { %v5968_v38 = vadd.f32 %v5824_v31, %v5710_v24  ;;  %v5972_v44 = vadd.f32 %v5824_v31, %v5714_v30  ;;  %v5976_v41 = vadd.f32 %v5824_v31, %v5718_v52  ;;  %v5980_v47 = vadd.f32 %v5824_v31, %v5722_v55 }
 0x40e   :  { %v5984_v21 = vadd.f32 %v5824_v31, %v5726_v54  ;;  %v5988_v26 = vadd.f32 %v5824_v31, %v5730_v56  ;;  %v5992_v24 = vadd.f32 %v5824_v31, %v5734_v6  ;;  %v5996_v30 = vadd.f32 %v5824_v31, %v5738_v59 }
 0x40f   :  { %v6000_v52 = vadd.f32 %v5824_v31, %v5742_v8  ;;  %v6004_v55 = vadd.f32 %v5824_v31, %v5746_v10  ;;  %v6008_v54 = vadd.f32 %v5824_v31, %v5750_v18  ;;  %v6012_v56 = vadd.f32 %v5824_v31, %v5754_v22  ;;  %v6978_v22 = vld [vmem:[#allocation10_spill] sm:$0xff] }
 0x410   :  { %v6016_v6 = vadd.f32 %v5824_v31, %v5758_v20  ;;  %v6020_v59 = vadd.f32 %v5824_v31, %v5762_v23  ;;  %v6024_v8 = vadd.f32 %v5824_v31, %v5766_v43  ;;  %v6028_v10 = vadd.f32 %v5824_v31, %v5770_v36 }
 0x411   :  { %v6032_v18 = vadd.f32 %v5824_v31, %v5774_v35  ;;  %v6036_v20 = vadd.f32 %v5824_v31, %v6978_v22  ;;  %v6044_v43 = vadd.f32 %v5824_v31, %v5786_v57  ;;  %v6048_v36 = vadd.f32 %v5824_v31, %v5790_v13 }
 0x412   :  { %6975 = vst [vmem:[#allocation17_spill] sm:$0xff] %v6016_v6  ;;  %6976 = vst [vmem:[#allocation18_spill] sm:$0xff] %v6028_v10  ;;  %v6980_v6 = vld [vmem:[#allocation11_spill] sm:$0xff]  ;;  %v6981_v10 = vld [vmem:[#allocation12_spill] sm:$0xff]  ;;  %v6064_v57 = vadd.f32 %v5824_v31, %v5806_v63  ;;  %v6068_v13 = vadd.f32 %v5824_v31, %v5810_v53  ;;  %v6084_v63 = vadd.f32 %v5824_v31, %v5828_v3  ;;  %vm3274_vm1 = vcmp.ge.f32.partialorder %v5864_v9, 0.0 }
 0x413   :  { %6977 = vst [vmem:[#allocation2_spill] sm:$0xff] %v6032_v18  ;;  %6979 = vst [vmem:[#allocation3_spill] sm:$0xff] %v6036_v20  ;;  %v6040_v23 = vadd.f32 %v5824_v31, %v6980_v6  ;;  %v6052_v35 = vadd.f32 %v5824_v31, %v6981_v10  ;;  %v6983_v18 = vld [vmem:[#allocation13_spill] sm:$0xff]  ;;  %v6985_v20 = vld [vmem:[#allocation14_spill] sm:$0xff]  ;;  %v6072_v10 = vadd.f32 %v5824_v31, %v5814_v45  ;;  %vm3275_vm2 = vcmp.ge.f32.partialorder %v5868_v5, 0.0 }
 0x414   :  { %v6056_v22 = vadd.f32 %v5824_v31, %v6983_v18  ;;  %v6060_v6 = vadd.f32 %v5824_v31, %v6985_v20  ;;  %6987 = vst [vmem:[#allocation7_spill] sm:$0xff] %v6064_v57  ;;  %6988 = vst [vmem:[#allocation9_spill] sm:$0xff] %v6068_v13  ;;  %v6088_v53 = vadd.f32 %v5824_v31, %v5832_v37  ;;  %vm3276_vm3 = vcmp.ge.f32.partialorder %v5872_v16, 0.0 }
 0x415   :  { %6982 = vst [vmem:[#allocation4_spill] sm:$0xff] %v6052_v35  ;;  %6989 = vst [vmem:[#allocation8_spill] sm:$0xff] %v6072_v10  ;;  %v6990_v35 = vld [vmem:[#allocation15_spill] sm:$0xff]  ;;  %v6092_v45 = vadd.f32 %v5824_v31, %v5836_v60  ;;  %v6104_v3 = vadd.f32 %v5824_v31, %v5848_v14  ;;  %v6108_v37 = vadd.f32 %v5824_v31, %v5852_v33  ;;  %vm3277_vm4 = vcmp.ge.f32.partialorder %v5876_v61, 0.0 }
 0x416   :  { %6984 = vst [vmem:[#allocation6_spill] sm:$0xff] %v6056_v22  ;;  %6986 = vst [vmem:[#allocation5_spill] sm:$0xff] %v6060_v6  ;;  %v6076_v18 = vadd.f32 %v5824_v31, %v6990_v35  ;;  %v6992_v22 = vld [vmem:[#allocation16_spill] sm:$0xff]  ;;  %v6096_v35 = vadd.f32 %v5824_v31, %v5840_v19  ;;  %vm3278_vm5 = vcmp.ge.f32.partialorder %v5880_v29, 0.0  ;;  %vm3279_vm6 = vcmp.ge.f32.partialorder %v5884_v51, 0.0 }
 0x417   :  { %v6080_v20 = vadd.f32 %v5824_v31, %v6992_v22  ;;  %6994 = vst [vmem:[#allocation12_spill] sm:$0xff] %v6084_v63  ;;  %6995 = vst [vmem:[#allocation13_spill] sm:$0xff] %v6088_v53  ;;  %v6100_v22 = vadd.f32 %v5824_v31, %v5844_v39  ;;  %vm3280_vm7 = vcmp.ge.f32.partialorder %v5888_v15, 0.0  ;;  %vm3281_vm8 = vcmp.ge.f32.partialorder %v5892_v2, 0.0 }
 0x418   :  { %6991 = vst [vmem:[#allocation10_spill] sm:$0xff] %v6076_v18  ;;  %6996 = vst [vmem:[#allocation14_spill] sm:$0xff] %v6092_v45  ;;  %vm3282_vm9 = vcmp.ge.f32.partialorder %v5896_v32, 0.0  ;;  %v6121_v39 = vadd.f32 %v5824_v31, %v5856_v42  ;;  %vm3283_vm10 = vcmp.ge.f32.partialorder %v5900_v0, 0.0  ;;  %v3338_v60 = vmul.f32 0.2, %v5864_v9 }
 0x419   :  { %6993 = vst [vmem:[#allocation11_spill] sm:$0xff] %v6080_v20  ;;  %6997 = vst [vmem:[#allocation15_spill] sm:$0xff] %v6096_v35  ;;  %v3339_v19 = vmul.f32 0.2, %v5868_v5  ;;  %v3340_v14 = vmul.f32 0.2, %v5872_v16  ;;  %v6129_v33 = vadd.f32 %v5824_v31, %v5860_v12 }
 0x41a   :  { %6998 = vst [vmem:[#allocation16_spill] sm:$0xff] %v6100_v22  ;;  %6999 = vst [vmem:[#allocation19_spill] sm:$0xff] %v6104_v3  ;;  %vm3284_vm11 = vcmp.ge.f32.partialorder %v5904_v25, 0.0  ;;  %v3342_v3 = vmul.f32 0.2, %v5880_v29  ;;  %vm3285_vm12 = vcmp.ge.f32.partialorder %v5908_v58, 0.0  ;;  %v6142_v31 = vsel %vm3274_vm1, %v5864_v9, %v3338_v60 }
 0x41b   :  { %7000 = vst [vmem:[#allocation20_spill] sm:$0xff] %v6108_v37  ;;  %7001 = vst [vmem:[#allocation21_spill] sm:$0xff] %v6121_v39  ;;  %v3341_v37 = vmul.f32 0.2, %v5876_v61  ;;  %v3343_v42 = vmul.f32 0.2, %v5884_v51  ;;  %v6153_v53 = vsel %vm3275_vm2, %v5868_v5, %v3339_v19 }
 0x41c   :  { %7002 = vst [vmem:[#allocation22_spill] sm:$0xff] %v6129_v33  ;;  %v3344_v39 = vmul.f32 0.2, %v5888_v15  ;;  %v3345_v22 = vmul.f32 0.2, %v5892_v2  ;;  %7003 = vst [vmem:[#allocation23_spill] sm:$0xff] %v6142_v31  ;;  %v6168_v31 = vsel %vm3276_vm3, %v5872_v16, %v3340_v14 }
 0x41d   :  { %v3346_v35 = vmul.f32 0.2, %v5896_v32  ;;  %vm3286_vm13 = vcmp.ge.f32.partialorder %v5912_v49, 0.0  ;;  %v3347_v12 = vmul.f32 0.2, %v5900_v0  ;;  %7004 = vst [vmem:[#allocation24_spill] sm:$0xff] %v6153_v53  ;;  %v6183_v20 = vsel %vm3277_vm4, %v5876_v61, %v3341_v37 }
 0x41e   :  { %v3348_v33 = vmul.f32 0.2, %v5904_v25  ;;  %v6148_v45 = vmul.f32 0.2, %v5908_v58  ;;  %vm3287_vm14 = vcmp.ge.f32.partialorder %v5916_v34, 0.0  ;;  %7005 = vst [vmem:[#allocation25_spill] sm:$0xff] %v6168_v31 }
 0x41f   :  { %v6157_v63 = vmul.f32 0.2, %v5912_v49  ;;  %v6160_v9 = vmul.f32 0.2, %v5916_v34  ;;  %v6163_v60 = vmul.f32 0.2, %v5920_v11 }
 0x420   :  { %vm3288_vm15 = vcmp.ge.f32.partialorder %v5920_v11, 0.0  ;;  %v6172_v5 = vmul.f32 0.2, %v5924_v62  ;;  %v6175_v19 = vmul.f32 0.2, %v5928_v1  ;;  %7007 = vst [vmem:[#allocation27_spill] sm:$0xff] %v6183_v20 }
 0x421   :  { %v6178_v53 = vmul.f32 0.2, %v5932_v7  ;;  %vm3289_vm0 = vcmp.ge.f32.partialorder %v5924_v62, 0.0  ;;  %v6187_v16 = vmul.f32 0.2, %v5936_v40  ;;  %vm3290_vm1 = vcmp.ge.f32.partialorder %v5928_v1, 0.0 }
 0x422   :  { %v6190_v14 = vmul.f32 0.2, %v5940_v27  ;;  %v6193_v31 = vmul.f32 0.2, %v5944_v50  ;;  %v6202_v61 = vmul.f32 0.2, %v5948_v48 }
 0x423   :  { %7006 = vst [vmem:[#allocation26_spill] sm:$0xff] %v6178_v53  ;;  %v6198_v53 = vsel %vm3278_vm5, %v5880_v29, %v3342_v3  ;;  %v6205_v37 = vmul.f32 0.2, %v5952_v46  ;;  %v6208_v20 = vmul.f32 0.2, %v5956_v17  ;;  %vm3291_vm2 = vcmp.ge.f32.partialorder %v5932_v7, 0.0 }
 0x424   :  { %7008 = vst [vmem:[#allocation28_spill] sm:$0xff] %v6193_v31  ;;  %7009 = vst [vmem:[#allocation29_spill] sm:$0xff] %v6198_v53  ;;  %v6213_v31 = vsel %vm3279_vm6, %v5884_v51, %v3343_v42  ;;  %v6217_v29 = vmul.f32 0.2, %v5960_v4  ;;  %v6220_v3 = vmul.f32 0.2, %v5964_v28 }
 0x425   :  { %7010 = vst [vmem:[#allocation30_spill] sm:$0xff] %v6208_v20  ;;  %7011 = vst [vmem:[#allocation31_spill] sm:$0xff] %v6213_v31  ;;  %v6223_v53 = vmul.f32 0.2, %v5968_v38  ;;  %v6228_v20 = vsel %vm3280_vm7, %v5888_v15, %v3344_v39  ;;  %vm3292_vm3 = vcmp.ge.f32.partialorder %v5936_v40, 0.0  ;;  %vm3293_vm4 = vcmp.ge.f32.partialorder %v5940_v27, 0.0 }
 0x426   :  { %7013 = vst [vmem:[#allocation33_spill] sm:$0xff] %v6228_v20  ;;  %v6232_v51 = vmul.f32 0.2, %v5972_v44  ;;  %v6235_v42 = vmul.f32 0.2, %v5976_v41  ;;  %vm3296_vm7 = vcmp.ge.f32.partialorder %v5952_v46, 0.0 }
 0x427   :  { %7012 = vst [vmem:[#allocation32_spill] sm:$0xff] %v6223_v53  ;;  %v6238_v31 = vmul.f32 0.2, %v5980_v47  ;;  %v6243_v53 = vsel %vm3281_vm8, %v5892_v2, %v3345_v22  ;;  %v6249_v15 = vmul.f32 0.2, %v5984_v21  ;;  %v6260_v2 = vsel %vm3282_vm9, %v5896_v32, %v3346_v35 }
 0x428   :  { %7014 = vst [vmem:[#allocation34_spill] sm:$0xff] %v6243_v53  ;;  %v6252_v39 = vmul.f32 0.2, %v5988_v26  ;;  %v6255_v20 = vmul.f32 0.2, %v5992_v24  ;;  %7016 = vst [vmem:[#allocation36_spill] sm:$0xff] %v6260_v2  ;;  %v6278_v32 = vsel %vm3283_vm10, %v5900_v0, %v3347_v12  ;;  %v6296_v0 = vsel %vm3284_vm11, %v5904_v25, %v3348_v33 }
 0x429   :  { %v6267_v22 = vmul.f32 0.2, %v5996_v30  ;;  %v6270_v53 = vmul.f32 0.2, %v6000_v52  ;;  %7019 = vst [vmem:[#allocation39_spill] sm:$0xff] %v6278_v32  ;;  %vm3300_vm9 = vcmp.ge.f32.partialorder %v5968_v38, 0.0  ;;  %v6315_v25 = vsel %vm3285_vm12, %v5908_v58, %v6148_v45 }
 0x42a   :  { %7015 = vst [vmem:[#allocation35_spill] sm:$0xff] %v6255_v20  ;;  %v6273_v20 = vmul.f32 0.2, %v6004_v55  ;;  %v6285_v35 = vmul.f32 0.2, %v6008_v54  ;;  %7023 = vst [vmem:[#allocation41_spill] sm:$0xff] %v6296_v0  ;;  %v6334_v58 = vsel %vm3286_vm13, %v5912_v49, %v6157_v63  ;;  %v6353_v49 = vsel %vm3287_vm14, %v5916_v34, %v6160_v9 }
 0x42b   :  { %7017 = vst [vmem:[#allocation37_spill] sm:$0xff] %v6270_v53  ;;  %v6288_v2 = vmul.f32 0.2, %v6012_v56  ;;  %vm3304_vm10 = vcmp.ge.f32.partialorder %v5984_v21, 0.0  ;;  %v6303_v12 = vmul.f32 0.2, %v6020_v59  ;;  %v6372_v34 = vsel %vm3288_vm15, %v5920_v11, %v6163_v60 }
 0x42c   :  { %7018 = vst [vmem:[#allocation38_spill] sm:$0xff] %v6273_v20  ;;  %v7021_v20 = vld [vmem:[#allocation17_spill] sm:$0xff]  ;;  %v6306_v32 = vmul.f32 0.2, %v6024_v8  ;;  %7028 = vst [vmem:[#allocation44_spill] sm:$0xff] %v6315_v25  ;;  %vm3308_vm11 = vcmp.ge.f32.partialorder %v6000_v52, 0.0  ;;  %v6391_v11 = vsel %vm3289_vm0, %v5924_v62, %v6172_v5  ;;  %v6404_v62 = vsel %vm3290_vm1, %v5928_v1, %v6175_v19 }
 0x42d   :  { %7020 = vst [vmem:[#allocation40_spill] sm:$0xff] %v6288_v2  ;;  %v6291_v53 = vmul.f32 0.2, %v7021_v20  ;;  %7024 = vst [vmem:[#allocation42_spill] sm:$0xff] %v6303_v12  ;;  %v7029_v33 = vld [vmem:[#allocation2_spill] sm:$0xff]  ;;  %vm3312_vm12 = vcmp.ge.f32.partialorder %v7021_v20, 0.0 }
 0x42e   :  { %7025 = vst [vmem:[#allocation43_spill] sm:$0xff] %v6306_v32  ;;  %v6322_v0 = vmul.f32 0.2, %v7029_v33  ;;  %v7030_v32 = vld [vmem:[#allocation3_spill] sm:$0xff]  ;;  %7033 = vst [vmem:[#allocation45_spill] sm:$0xff] %v6334_v58  ;;  %vm3316_vm13 = vcmp.ge.f32.partialorder %v7029_v33, 0.0 }
 0x42f   :  { %7022 = vst [vmem:[#allocation17_spill] sm:$0xff] %v6291_v53  ;;  %v7026_v53 = vld [vmem:[#allocation18_spill] sm:$0xff]  ;;  %v6325_v12 = vmul.f32 0.2, %v7030_v32  ;;  %v6341_v45 = vmul.f32 0.2, %v6044_v43 }
 0x430   :  { %v6309_v2 = vmul.f32 0.2, %v7026_v53  ;;  %v6344_v25 = vmul.f32 0.2, %v6048_v36  ;;  %7037 = vst [vmem:[#allocation47_spill] sm:$0xff] %v6353_v49  ;;  %v7038_v63 = vld [vmem:[#allocation6_spill] sm:$0xff] }
 0x431   :  { %7031 = vst [vmem:[#allocation2_spill] sm:$0xff] %v6325_v12  ;;  %v6360_v58 = vmul.f32 0.2, %v7038_v63  ;;  %7041 = vst [vmem:[#allocation49_spill] sm:$0xff] %v6372_v34  ;;  %vm3320_vm14 = vcmp.ge.f32.partialorder %v6048_v36, 0.0  ;;  %vm3324_vm15 = vcmp.ge.f32.partialorder %v6064_v57, 0.0 }
 0x432   :  { %7027 = vst [vmem:[#allocation18_spill] sm:$0xff] %v6309_v2  ;;  %v6328_v2 = vmul.f32 0.2, %v6040_v23  ;;  %7034 = vst [vmem:[#allocation46_spill] sm:$0xff] %v6344_v25  ;;  %v6363_v25 = vmul.f32 0.2, %v6060_v6 }
 0x433   :  { %v6379_v9 = vmul.f32 0.2, %v6068_v13  ;;  %v6382_v49 = vmul.f32 0.2, %v6072_v10  ;;  %7045 = vst [vmem:[#allocation53_spill] sm:$0xff] %v6391_v11  ;;  %v7046_v60 = vld [vmem:[#allocation11_spill] sm:$0xff] }
 0x434   :  { %7032 = vst [vmem:[#allocation3_spill] sm:$0xff] %v6328_v2  ;;  %v7035_v2 = vld [vmem:[#allocation4_spill] sm:$0xff]  ;;  %7039 = vst [vmem:[#allocation6_spill] sm:$0xff] %v6363_v25  ;;  %v3392_v34 = vmul.f32 0.2, %v7046_v60  ;;  %v7048_v6 = vld [vmem:[#allocation13_spill] sm:$0xff] }
 0x435   :  { %v6347_v12 = vmul.f32 0.2, %v7035_v2  ;;  %7042 = vst [vmem:[#allocation50_spill] sm:$0xff] %v6379_v9  ;;  %7043 = vst [vmem:[#allocation51_spill] sm:$0xff] %v6382_v49  ;;  %v7047_v49 = vld [vmem:[#allocation12_spill] sm:$0xff]  ;;  %vm3328_vm0 = vcmp.ge.f32.partialorder %v7046_v60, 0.0 }
 0x436   :  { %v3393_v9 = vmul.f32 0.2, %v7047_v49  ;;  %7049 = vst [vmem:[#allocation54_spill] sm:$0xff] %v6404_v62  ;;  %v7050_v5 = vld [vmem:[#allocation14_spill] sm:$0xff]  ;;  %v7052_v13 = vld [vmem:[#allocation16_spill] sm:$0xff]  ;;  %v7055_v19 = vld [vmem:[#allocation19_spill] sm:$0xff] }
 0x437   :  { %7036 = vst [vmem:[#allocation4_spill] sm:$0xff] %v6347_v12  ;;  %v6366_v12 = vmul.f32 0.2, %v6064_v57  ;;  %v3395_v11 = vmul.f32 0.2, %v7050_v5  ;;  %v7053_v25 = vld [vmem:[#allocation26_spill] sm:$0xff] }
 0x438   :  { %v3397_v57 = vmul.f32 0.2, %v7052_v13  ;;  %v6417_v1 = vsel %vm3291_vm2, %v5932_v7, %v7053_v25  ;;  %vm3334_vm5 = vcmp.ge.f32.partialorder %v7055_v19, 0.0  ;;  %v7056_v62 = vld [vmem:[#allocation20_spill] sm:$0xff]  ;;  %v3398_v5 = vmul.f32 0.2, %v7055_v19 }
 0x439   :  { %7040 = vst [vmem:[#allocation48_spill] sm:$0xff] %v6366_v12  ;;  %v6385_v12 = vmul.f32 0.2, %v6076_v18  ;;  %v7051_v18 = vld [vmem:[#allocation15_spill] sm:$0xff]  ;;  %v7057_v49 = vld [vmem:[#allocation21_spill] sm:$0xff]  ;;  %v6430_v7 = vsel %vm3292_vm3, %v5936_v40, %v6187_v16  ;;  %v7058_v25 = vld [vmem:[#allocation22_spill] sm:$0xff]  ;;  %v6439_v19 = vsel %vm3293_vm4, %v5940_v27, %v6190_v14  ;;  %v6457_v16 = vsel %vm3296_vm7, %v5952_v46, %v6205_v37 }
 0x43a   :  { %v3396_v10 = vmul.f32 0.2, %v7051_v18  ;;  %7054 = vst [vmem:[#allocation15_spill] sm:$0xff] %v6417_v1  ;;  %vm3332_vm1 = vcmp.ge.f32.partialorder %v7051_v18, 0.0  ;;  %v3400_v60 = vmul.f32 0.2, %v7057_v49 }
 0x43b   :  { %7044 = vst [vmem:[#allocation52_spill] sm:$0xff] %v6385_v12  ;;  %v3394_v12 = vmul.f32 0.2, %v7048_v6  ;;  %v3399_v6 = vmul.f32 0.2, %v7056_v62  ;;  %vm3336_vm2 = vcmp.ge.f32.partialorder %v7057_v49, 0.0 }
 0x43c   :  { %vm3337_vm6 = vcmp.ge.f32.partialorder %v7058_v25, 0.0  ;;  %v3401_v1 = vmul.f32 0.2, %v7058_v25  ;;  %v7059_v62 = vld [vmem:[#allocation28_spill] sm:$0xff]  ;;  %vm7060_vm8 = vcmp.ge.f32.partialorder %v5944_v50, 0.0  ;;  %vm7061_vm3 = vcmp.ge.f32.partialorder %v5948_v48, 0.0 }
 0x43d   :  { %v6445_v13 = vsel %vm7060_vm8, %v5944_v50, %v7059_v62  ;;  %v6451_v40 = vsel %vm7061_vm3, %v5948_v48, %v6202_v61  ;;  %v7062_v27 = vld [vmem:[#allocation30_spill] sm:$0xff]  ;;  %vm7063_vm4 = vcmp.ge.f32.partialorder %v5956_v17, 0.0  ;;  %vm7064_vm8 = vcmp.ge.f32.partialorder %v5960_v4, 0.0  ;;  %v7066_v46 = vld [vmem:[#allocation32_spill] sm:$0xff] }
 0x43e   :  { %v6463_v14 = vsel %vm7063_vm4, %v5956_v17, %v7062_v27  ;;  %v6469_v50 = vsel %vm7064_vm8, %v5960_v4, %v6217_v29  ;;  %vm7065_vm3 = vcmp.ge.f32.partialorder %v5964_v28, 0.0  ;;  %v6481_v61 = vsel %vm3300_vm9, %v5968_v38, %v7066_v46  ;;  %v7100_v46 = vld [vmem:[#allocation7_spill] sm:$0xff] }
 0x43f   :  { %v6475_v48 = vsel %vm7065_vm3, %v5964_v28, %v6220_v3  ;;  %vm7067_vm7 = vcmp.ge.f32.partialorder %v5972_v44, 0.0  ;;  %vm7068_vm4 = vcmp.ge.f32.partialorder %v5976_v41, 0.0  ;;  %vm7069_vm8 = vcmp.ge.f32.partialorder %v5980_v47, 0.0 }
 0x440   :  { %v6487_v17 = vsel %vm7067_vm7, %v5972_v44, %v6232_v51  ;;  %v6493_v4 = vsel %vm7068_vm4, %v5976_v41, %v6235_v42  ;;  %v6499_v28 = vsel %vm7069_vm8, %v5980_v47, %v6238_v31  ;;  %v6505_v38 = vsel %vm3304_vm10, %v5984_v21, %v6249_v15  ;;  %v7071_v41 = vld [vmem:[#allocation35_spill] sm:$0xff]  ;;  %v7074_v21 = vld [vmem:[#allocation37_spill] sm:$0xff] }
 0x441   :  { %vm7070_vm9 = vcmp.ge.f32.partialorder %v5988_v26, 0.0  ;;  %vm7072_vm3 = vcmp.ge.f32.partialorder %v5992_v24, 0.0  ;;  %vm7073_vm7 = vcmp.ge.f32.partialorder %v5996_v30, 0.0  ;;  %v6529_v31 = vsel %vm3308_vm11, %v6000_v52, %v7074_v21  ;;  %v7080_v52 = vld [vmem:[#allocation17_spill] sm:$0xff] }
 0x442   :  { %v6511_v44 = vsel %vm7070_vm9, %v5988_v26, %v6252_v39  ;;  %v6517_v37 = vsel %vm7072_vm3, %v5992_v24, %v7071_v41  ;;  %v6523_v47 = vsel %vm7073_vm7, %v5996_v30, %v6267_v22  ;;  %v7075_v26 = vld [vmem:[#allocation38_spill] sm:$0xff]  ;;  %vm7076_vm10 = vcmp.ge.f32.partialorder %v6004_v55, 0.0  ;;  %v7078_v30 = vld [vmem:[#allocation40_spill] sm:$0xff]  ;;  %v7102_v21 = vld [vmem:[#allocation9_spill] sm:$0xff] }
 0x443   :  { %v6535_v29 = vsel %vm7076_vm10, %v6004_v55, %v7075_v26  ;;  %vm7077_vm4 = vcmp.ge.f32.partialorder %v6008_v54, 0.0  ;;  %vm7079_vm8 = vcmp.ge.f32.partialorder %v6012_v56, 0.0  ;;  %v6553_v51 = vsel %vm3312_vm12, %v7021_v20, %v7080_v52  ;;  %v7081_v55 = vld [vmem:[#allocation42_spill] sm:$0xff]  ;;  %v7107_v52 = vld [vmem:[#allocation52_spill] sm:$0xff] }
 0x444   :  { %v6541_v24 = vsel %vm7077_vm4, %v6008_v54, %v6285_v35  ;;  %v6547_v3 = vsel %vm7079_vm8, %v6012_v56, %v7078_v30  ;;  %vm7082_vm11 = vcmp.ge.f32.partialorder %v6020_v59, 0.0  ;;  %v7083_v54 = vld [vmem:[#allocation43_spill] sm:$0xff]  ;;  %vm7084_vm9 = vcmp.ge.f32.partialorder %v6024_v8, 0.0  ;;  %v7085_v56 = vld [vmem:[#allocation18_spill] sm:$0xff] }
 0x445   :  { %v6559_v42 = vsel %vm7082_vm11, %v6020_v59, %v7081_v55  ;;  %v6565_v15 = vsel %vm7084_vm9, %v6024_v8, %v7083_v54  ;;  %vm7086_vm3 = vcmp.ge.f32.partialorder %v7026_v53, 0.0  ;;  %v6577_v20 = vsel %vm3316_vm13, %v7029_v33, %v6322_v0  ;;  %v7087_v59 = vld [vmem:[#allocation2_spill] sm:$0xff]  ;;  %v7089_v8 = vld [vmem:[#allocation3_spill] sm:$0xff] }
 0x446   :  { %v6571_v39 = vsel %vm7086_vm3, %v7026_v53, %v7085_v56  ;;  %vm7088_vm12 = vcmp.ge.f32.partialorder %v7030_v32, 0.0  ;;  %vm7090_vm7 = vcmp.ge.f32.partialorder %v6040_v23, 0.0  ;;  %vm7091_vm10 = vcmp.ge.f32.partialorder %v6044_v43, 0.0  ;;  %v7092_v0 = vld [vmem:[#allocation46_spill] sm:$0xff]  ;;  %v7110_v56 = vld [vmem:[#allocation11_spill] sm:$0xff] }
 0x447   :  { %v6583_v22 = vsel %vm7088_vm12, %v7030_v32, %v7087_v59  ;;  %v6589_v35 = vsel %vm7090_vm7, %v6040_v23, %v7089_v8  ;;  %v6595_v53 = vsel %vm7091_vm10, %v6044_v43, %v6341_v45  ;;  %v6601_v33 = vsel %vm3320_vm14, %v6048_v36, %v7092_v0  ;;  %v7093_v32 = vld [vmem:[#allocation4_spill] sm:$0xff]  ;;  %v7096_v43 = vld [vmem:[#allocation6_spill] sm:$0xff]  ;;  %v7097_v45 = vld [vmem:[#allocation5_spill] sm:$0xff] }
 0x448   :  { %vm7094_vm13 = vcmp.ge.f32.partialorder %v7035_v2, 0.0  ;;  %vm7095_vm4 = vcmp.ge.f32.partialorder %v7038_v63, 0.0  ;;  %vm7098_vm8 = vcmp.ge.f32.partialorder %v7097_v45, 0.0  ;;  %v7099_v36 = vld [vmem:[#allocation48_spill] sm:$0xff]  ;;  %vm7103_vm14 = vcmp.ge.f32.partialorder %v7102_v21, 0.0  ;;  %v7108_v55 = vld [vmem:[#allocation10_spill] sm:$0xff] }
 0x449   :  { %v6607_v62 = vsel %vm7094_vm13, %v7035_v2, %v7093_v32  ;;  %v6613_v23 = vsel %vm7095_vm4, %v7038_v63, %v6360_v58  ;;  %v6619_v27 = vsel %vm7098_vm8, %v7097_v45, %v7096_v43  ;;  %v6625_v41 = vsel %vm3324_vm15, %v7100_v46, %v7099_v36  ;;  %v7101_v2 = vld [vmem:[#allocation50_spill] sm:$0xff]  ;;  %v7104_v58 = vld [vmem:[#allocation51_spill] sm:$0xff]  ;;  %v7105_v63 = vld [vmem:[#allocation8_spill] sm:$0xff] }
 0x44a   :  { %v6631_v26 = vsel %vm7103_vm14, %v7102_v21, %v7101_v2  ;;  %vm7106_vm11 = vcmp.ge.f32.partialorder %v7105_v63, 0.0  ;;  %vm7109_vm9 = vcmp.ge.f32.partialorder %v7108_v55, 0.0  ;;  %v6648_v59 = vsel %vm3328_vm0, %v7110_v56, %v3392_v34  ;;  %v7111_v8 = vld [vmem:[#allocation12_spill] sm:$0xff]  ;;  %v7113_v32 = vld [vmem:[#allocation13_spill] sm:$0xff]  ;;  %v7115_v45 = vld [vmem:[#allocation14_spill] sm:$0xff] }
 0x44b   :  { %v6637_v30 = vsel %vm7106_vm11, %v7105_v63, %v7104_v58  ;;  %v6643_v54 = vsel %vm7109_vm9, %v7108_v55, %v7107_v52  ;;  %vm7112_vm15 = vcmp.ge.f32.partialorder %v7111_v8, 0.0  ;;  %vm7114_vm3 = vcmp.ge.f32.partialorder %v7113_v32, 0.0  ;;  %v7117_v46 = vld [vmem:[#allocation16_spill] sm:$0xff]  ;;  %v7120_v2 = vld [vmem:[#allocation19_spill] sm:$0xff]  ;;  %v7131_v56 = vld [vmem:[#allocation29_spill] sm:$0xff] }
 0x44c   :  { %v6653_v0 = vsel %vm7112_vm15, %v7111_v8, %v3393_v9  ;;  %v6658_v43 = vsel %vm7114_vm3, %v7113_v32, %v3394_v12  ;;  %vm7116_vm12 = vcmp.ge.f32.partialorder %v7115_v45, 0.0  ;;  %v6668_v34 = vsel %vm3332_vm1, %v7051_v18, %v3396_v10  ;;  %v7122_v21 = vld [vmem:[#allocation20_spill] sm:$0xff]  ;;  %v7127_v18 = vld [vmem:[#allocation23_spill] sm:$0xff]  ;;  %v7133_v32 = vld [vmem:[#allocation33_spill] sm:$0xff] }
 0x44d   :  { %v6663_v36 = vsel %vm7116_vm12, %v7115_v45, %v3395_v11  ;;  %vm7118_vm0 = vcmp.ge.f32.partialorder %v7117_v46, 0.0  ;;  %v6678_v12 = vsel %vm3334_vm5, %v7120_v2, %v3398_v5  ;;  %vm7123_vm7 = vcmp.ge.f32.partialorder %v7122_v21, 0.0  ;;  %v7128_v58 = vld [vmem:[#allocation24_spill] sm:$0xff]  ;;  %v7129_v5 = vld [vmem:[#allocation25_spill] sm:$0xff]  ;;  %v7130_v52 = vld [vmem:[#allocation27_spill] sm:$0xff] }
 0x44e   :  { %v6673_v9 = vsel %vm7118_vm0, %v7117_v46, %v3397_v57  ;;  %7121 = vst [vmem:[#allocation21_spill] sm:$0xff] %v6678_v12  ;;  %v6683_v11 = vsel %vm7123_vm7, %v7122_v21, %v3399_v6  ;;  %v6688_v10 = vsel %vm3336_vm2, %v7057_v49, %v3400_v60  ;;  %v6693_v57 = vsel %vm3337_vm6, %v7058_v25, %v3401_v1  ;;  %v7132_v8 = vld [vmem:[#allocation31_spill] sm:$0xff]  ;;  %v7134_v45 = vld [vmem:[#allocation34_spill] sm:$0xff]  ;;  %v7135_v2 = vld [vmem:[#allocation36_spill] sm:$0xff] }
 0x44f   :  { %7119 = vst [vmem:[#allocation26_spill] sm:$0xff] %v6673_v9  ;;  %7124 = vst [vmem:[#allocation22_spill] sm:$0xff] %v6683_v11  ;;  %v4078_v63 = vpack.c.bf16 %v7128_v58, %v7127_v18  ;;  %v4079_v55 = vpack.c.bf16 %v7130_v52, %v7129_v5  ;;  %v4080_v6 = vpack.c.bf16 %v7132_v8, %v7131_v56  ;;  %v7136_v49 = vld [vmem:[#allocation39_spill] sm:$0xff]  ;;  %v7137_v21 = vld [vmem:[#allocation41_spill] sm:$0xff] }
 0x450   :  { %7125 = vst [vmem:[#allocation28_spill] sm:$0xff] %v6688_v10  ;;  %7126 = vst [vmem:[#allocation30_spill] sm:$0xff] %v6693_v57  ;;  %v4081_v46 = vpack.c.bf16 %v7134_v45, %v7133_v32  ;;  %v4082_v60 = vpack.c.bf16 %v7136_v49, %v7135_v2  ;;  %v7138_v10 = vld [vmem:[#allocation44_spill] sm:$0xff]  ;;  %v7139_v1 = vld [vmem:[#allocation45_spill] sm:$0xff]  ;;  %v4087_v56 = vpack.c.bf16 %v6439_v19, %v6430_v7 }
 0x451   :  { %v4083_v11 = vpack.c.bf16 %v7138_v10, %v7137_v21  ;;  %v7140_v25 = vld [vmem:[#allocation47_spill] sm:$0xff]  ;;  %v7141_v12 = vld [vmem:[#allocation49_spill] sm:$0xff]  ;;  %v7143_v9 = vld [vmem:[#allocation54_spill] sm:$0xff]  ;;  %3722 = vst [vmem:[%s6859_s4] sm:$0xff] %v4078_v63  ;;  %v4088_v10 = vpack.c.bf16 %v6451_v40, %v6445_v13  ;;  %v4091_v19 = vpack.c.bf16 %v6487_v17, %v6481_v61  ;;  %v4092_v13 = vpack.c.bf16 %v6499_v28, %v6493_v4 }
 0x452   :  { %v4084_v57 = vpack.c.bf16 %v7140_v25, %v7139_v1  ;;  %v7142_v18 = vld [vmem:[#allocation53_spill] sm:$0xff]  ;;  %v7144_v5 = vld [vmem:[#allocation15_spill] sm:$0xff]  ;;  %3723 = vst [vmem:[%s6859_s4 + $0x8] sm:$0xff] %v4079_v55  ;;  %3724 = vst [vmem:[%s6859_s4 + $0x10] sm:$0xff] %v4080_v6  ;;  %v4093_v7 = vpack.c.bf16 %v6511_v44, %v6505_v38  ;;  %v4094_v40 = vpack.c.bf16 %v6523_v47, %v6517_v37 }
 0x453   :  { %v4085_v58 = vpack.c.bf16 %v7142_v18, %v7141_v12  ;;  %v4086_v52 = vpack.c.bf16 %v7144_v5, %v7143_v9  ;;  %v4089_v12 = vpack.c.bf16 %v6463_v14, %v6457_v16  ;;  %v4090_v9 = vpack.c.bf16 %v6475_v48, %v6469_v50  ;;  %3725 = vst [vmem:[%s6859_s4 + $0x18] sm:$0xff] %v4081_v46 }
 0x454   :  { %3726 = vst [vmem:[%s6859_s4 + $0x20] sm:$0xff] %v4082_v60  ;;  %3727 = vst [vmem:[%s6859_s4 + $0x28] sm:$0xff] %v4083_v11  ;;  %v4095_v16 = vpack.c.bf16 %v6535_v29, %v6529_v31  ;;  %v4096_v14 = vpack.c.bf16 %v6547_v3, %v6541_v24  ;;  %v4097_v50 = vpack.c.bf16 %v6559_v42, %v6553_v51 }
 0x455   :  { %3728 = vst [vmem:[%s6859_s4 + $0x30] sm:$0xff] %v4084_v57  ;;  %3729 = vst [vmem:[%s6859_s4 + $0x38] sm:$0xff] %v4085_v58  ;;  %v4098_v48 = vpack.c.bf16 %v6571_v39, %v6565_v15  ;;  %v4099_v61 = vpack.c.bf16 %v6583_v22, %v6577_v20  ;;  %v4100_v17 = vpack.c.bf16 %v6595_v53, %v6589_v35  ;;  %v7146_v24 = vld [vmem:[#allocation21_spill] sm:$0xff] }
 0x456   :  { %3730 = vst [vmem:[%s6859_s4 + $0x40] sm:$0xff] %v4086_v52  ;;  %3731 = vst [vmem:[%s6859_s4 + $0x48] sm:$0xff] %v4087_v56  ;;  %v4101_v4 = vpack.c.bf16 %v6607_v62, %v6601_v33  ;;  %v4102_v28 = vpack.c.bf16 %v6619_v27, %v6613_v23  ;;  %v4103_v38 = vpack.c.bf16 %v6631_v26, %v6625_v41  ;;  %v7145_v31 = vld [vmem:[#allocation26_spill] sm:$0xff] }
 0x457   :  { %3732 = vst [vmem:[%s6859_s4 + $0x50] sm:$0xff] %v4088_v10  ;;  %3733 = vst [vmem:[%s6859_s4 + $0x58] sm:$0xff] %v4089_v12  ;;  %v4104_v44 = vpack.c.bf16 %v6643_v54, %v6637_v30  ;;  %v4105_v37 = vpack.c.bf16 %v6653_v0, %v6648_v59  ;;  %v4106_v47 = vpack.c.bf16 %v6663_v36, %v6658_v43  ;;  %v7147_v3 = vld [vmem:[#allocation22_spill] sm:$0xff]  ;;  %v7148_v42 = vld [vmem:[#allocation28_spill] sm:$0xff] }
 0x458   :  { %3734 = vst [vmem:[%s6859_s4 + $0x60] sm:$0xff] %v4090_v9  ;;  %3735 = vst [vmem:[%s6859_s4 + $0x68] sm:$0xff] %v4091_v19  ;;  %v4107_v29 = vpack.c.bf16 %v7145_v31, %v6668_v34  ;;  %v4108_v51 = vpack.c.bf16 %v7147_v3, %v7146_v24  ;;  %v7149_v15 = vld [vmem:[#allocation30_spill] sm:$0xff] }
 0x459   :  { %3736 = vst [vmem:[%s6859_s4 + $0x70] sm:$0xff] %v4092_v13  ;;  %3737 = vst [vmem:[%s6859_s4 + $0x78] sm:$0xff] %v4093_v7  ;;  %v4109_v39 = vpack.c.bf16 %v7149_v15, %v7148_v42 }
 0x45a   :  { %3738 = vst [vmem:[%s6859_s4 + $0x80] sm:$0xff] %v4094_v40  ;;  %3739 = vst [vmem:[%s6859_s4 + $0x88] sm:$0xff] %v4095_v16 }
 0x45b   :  { %3740 = vst [vmem:[%s6859_s4 + $0x90] sm:$0xff] %v4096_v14  ;;  %3741 = vst [vmem:[%s6859_s4 + $0x98] sm:$0xff] %v4097_v50 }
 0x45c   :  { %3742 = vst [vmem:[%s6859_s4 + $0xa0] sm:$0xff] %v4098_v48  ;;  %3743 = vst [vmem:[%s6859_s4 + $0xa8] sm:$0xff] %v4099_v61 }
 0x45d   :  { %3744 = vst [vmem:[%s6859_s4 + $0xb0] sm:$0xff] %v4100_v17  ;;  %3745 = vst [vmem:[%s6859_s4 + $0xb8] sm:$0xff] %v4101_v4 }
 0x45e   :  { %3746 = vst [vmem:[%s6859_s4 + $0xc0] sm:$0xff] %v4102_v28  ;;  %3747 = vst [vmem:[%s6859_s4 + $0xc8] sm:$0xff] %v4103_v38 }
 0x45f   :  { %3748 = vst [vmem:[%s6859_s4 + $0xd0] sm:$0xff] %v4104_v44  ;;  %3749 = vst [vmem:[%s6859_s4 + $0xd8] sm:$0xff] %v4105_v37 }
 0x460   :  { %3750 = vst [vmem:[%s6859_s4 + $0xe0] sm:$0xff] %v4106_v47  ;;  %3751 = vst [vmem:[%s6859_s4 + $0xe8] sm:$0xff] %v4107_v29 }
 0x461   :  { %3752 = vst [vmem:[%s6859_s4 + $0xf0] sm:$0xff] %v4108_v51  ;;  %3753 = vst [vmem:[%s6859_s4 + $0xf8] sm:$0xff] %v4109_v39 }

// kernel: discriminator_forward.7
= control target key start
LH: loop header
LB: loop body
LE: loop exit
PB: predicated region body
PF: predicated region fallthrough
CT: control target
= control target key end

     0   :  { %v1749_v3 = vmov 0   ;;  %s2619_s0 = inlined_call_operand.vmem [shape: bf16[128,2048], index: 0, kind: input, shape index: {}]   ;;  %s2620_s1 = inlined_call_operand.vmem [shape: bf16[16,128], index: 1, kind: input, shape index: {}]   ;;  %s2621_s3 = inlined_call_operand.vmem [shape: f32[16,1], index: 3, kind: input, shape index: {}]   ;;  %s2622_s2 = inlined_call_operand.vmem [shape: f32[16,1], index: 2, kind: input, shape index: {}]   ;;  %s2623_s4 = inlined_call_operand.vmem [shape: bf16[16,2048], index: 4, kind: output, shape index: {}]  }
   0x1   :  { %v132_v0 = vld [vmem:[%s2619_s0 + $0x380] sm:$0xff]  ;;  %v133_v2 = vld [vmem:[%s2619_s0 + $0x388] sm:$0xff]  ;;  %826 = vmatprep.mubr.bf16.mxu0 %v1749_v3  ;;  %869 = vmatprep.mubr.bf16.mxu1 %v1749_v3  ;;  %v134_v63 = vld [vmem:[%s2619_s0 + $0x390] sm:$0xff] }
   0x2   :  { %v140_v1 = vld [vmem:[%s2619_s0 + $0x3c0] sm:$0xff]  ;;  %v141_v5 = vld [vmem:[%s2619_s0 + $0x3c8] sm:$0xff]  ;;  %1743 = vset.pattern.permute.xlu1 %v1749_v3  ;;  %1742 = vset.pattern.permute.xlu0 %v1749_v3 }
   0x3   :  { %v1694_v4 = vcombine.high %v132_v0, %v140_v1  ;;  %v1693_v6 = vcombine.low %v132_v0, %v140_v1  ;;  %v116_v7 = vld [vmem:[%s2619_s0 + $0x300] sm:$0xff]  ;;  %v1696_v9 = vcombine.high %v133_v2, %v141_v5  ;;  %v1695_v10 = vcombine.low %v133_v2, %v141_v5  ;;  %v117_v12 = vld [vmem:[%s2619_s0 + $0x308] sm:$0xff]  ;;  %v142_v0 = vld [vmem:[%s2619_s0 + $0x3d0] sm:$0xff] }
   0x4   :  { %v124_v8 = vld [vmem:[%s2619_s0 + $0x340] sm:$0xff]  ;;  %v125_v13 = vld [vmem:[%s2619_s0 + $0x348] sm:$0xff]  ;;  %v135_v1 = vld [vmem:[%s2619_s0 + $0x398] sm:$0xff] }
   0x5   :  { %v1678_v11 = vcombine.high %v116_v7, %v124_v8  ;;  %v100_v14 = vld [vmem:[%s2619_s0 + $0x280] sm:$0xff]  ;;  %794 = vmatprep.subr.bf16.mxu0 %v1694_v4  ;;  %v1680_v15 = vcombine.high %v117_v12, %v125_v13  ;;  %v101_v17 = vld [vmem:[%s2619_s0 + $0x288] sm:$0xff]  ;;  %837 = vmatprep.subr.bf16.mxu1 %v1696_v9  ;;  %v1677_v19 = vcombine.low %v116_v7, %v124_v8  ;;  %v143_v2 = vld [vmem:[%s2619_s0 + $0x3d8] sm:$0xff] }
   0x6   :  { %v108_v16 = vld [vmem:[%s2619_s0 + $0x2c0] sm:$0xff]  ;;  %v109_v18 = vld [vmem:[%s2619_s0 + $0x2c8] sm:$0xff]  ;;  %795 = vmatpush1.bf16.msra.mxu0 %v1693_v6  ;;  %838 = vmatpush1.bf16.msra.mxu1 %v1695_v10  ;;  %v1679_v20 = vcombine.low %v117_v12, %v125_v13  ;;  %v1698_v6 = vcombine.high %v134_v63, %v142_v0  ;;  %v1700_v7 = vcombine.high %v135_v1, %v143_v2  ;;  %v118_v8 = vld [vmem:[%s2619_s0 + $0x310] sm:$0xff] }
   0x7   :  { %796 = vmatprep.subr.bf16.mxu0 %v1678_v11  ;;  %v1662_v21 = vcombine.high %v100_v14, %v108_v16  ;;  %839 = vmatprep.subr.bf16.mxu1 %v1680_v15  ;;  %v1664_v22 = vcombine.high %v101_v17, %v109_v18  ;;  %v84_v23 = vld [vmem:[%s2619_s0 + $0x200] sm:$0xff]  ;;  %v85_v25 = vld [vmem:[%s2619_s0 + $0x208] sm:$0xff]  ;;  %v1661_v27 = vcombine.low %v100_v14, %v108_v16  ;;  %v126_v9 = vld [vmem:[%s2619_s0 + $0x350] sm:$0xff] }
   0x8   :  { %v92_v24 = vld [vmem:[%s2619_s0 + $0x240] sm:$0xff]  ;;  %v93_v26 = vld [vmem:[%s2619_s0 + $0x248] sm:$0xff]  ;;  %v1663_v28 = vcombine.low %v101_v17, %v109_v18  ;;  %v119_v11 = vld [vmem:[%s2619_s0 + $0x318] sm:$0xff]  ;;  %v1697_v13 = vcombine.low %v134_v63, %v142_v0  ;;  %v1699_v14 = vcombine.low %v135_v1, %v143_v2  ;;  %v1682_v15 = vcombine.high %v118_v8, %v126_v9 }
   0x9   :  { %v1646_v29 = vcombine.high %v84_v23, %v92_v24  ;;  %v1648_v30 = vcombine.high %v85_v25, %v93_v26  ;;  %v68_v31 = vld [vmem:[%s2619_s0 + $0x180] sm:$0xff]  ;;  %v69_v33 = vld [vmem:[%s2619_s0 + $0x188] sm:$0xff]  ;;  %v1645_v35 = vcombine.low %v84_v23, %v92_v24  ;;  %v1647_v36 = vcombine.low %v85_v25, %v93_v26  ;;  %v127_v12 = vld [vmem:[%s2619_s0 + $0x358] sm:$0xff] }
   0xa   :  { %797 = vmatpush1.bf16.msra.mxu0 %v1677_v19  ;;  %840 = vmatpush1.bf16.msra.mxu1 %v1679_v20  ;;  %v76_v32 = vld [vmem:[%s2619_s0 + $0x1c0] sm:$0xff]  ;;  %v77_v34 = vld [vmem:[%s2619_s0 + $0x1c8] sm:$0xff]  ;;  %v1684_v16 = vcombine.high %v119_v11, %v127_v12  ;;  %v102_v17 = vld [vmem:[%s2619_s0 + $0x290] sm:$0xff] }
   0xb   :  { %798 = vmatprep.subr.bf16.mxu0 %v1662_v21  ;;  %841 = vmatprep.subr.bf16.mxu1 %v1664_v22  ;;  %v1630_v37 = vcombine.high %v68_v31, %v76_v32  ;;  %v1632_v38 = vcombine.high %v69_v33, %v77_v34  ;;  %v52_v39 = vld [vmem:[%s2619_s0 + $0x100] sm:$0xff]  ;;  %v53_v41 = vld [vmem:[%s2619_s0 + $0x108] sm:$0xff]  ;;  %v1629_v43 = vcombine.low %v68_v31, %v76_v32  ;;  %v110_v18 = vld [vmem:[%s2619_s0 + $0x2d0] sm:$0xff] }
   0xc   :  { %v60_v40 = vld [vmem:[%s2619_s0 + $0x140] sm:$0xff]  ;;  %v61_v42 = vld [vmem:[%s2619_s0 + $0x148] sm:$0xff]  ;;  %v1631_v44 = vcombine.low %v69_v33, %v77_v34  ;;  %v103_v19 = vld [vmem:[%s2619_s0 + $0x298] sm:$0xff]  ;;  %v1681_v21 = vcombine.low %v118_v8, %v126_v9  ;;  %v1683_v22 = vcombine.low %v119_v11, %v127_v12  ;;  %v1666_v23 = vcombine.high %v102_v17, %v110_v18 }
   0xd   :  { %v1614_v45 = vcombine.high %v52_v39, %v60_v40  ;;  %v1616_v46 = vcombine.high %v53_v41, %v61_v42  ;;  %v36_v47 = vld [vmem:[%s2619_s0 + $0x80] sm:$0xff]  ;;  %v37_v49 = vld [vmem:[%s2619_s0 + $0x88] sm:$0xff]  ;;  %v1613_v51 = vcombine.low %v52_v39, %v60_v40  ;;  %v1615_v52 = vcombine.low %v53_v41, %v61_v42  ;;  %v111_v20 = vld [vmem:[%s2619_s0 + $0x2d8] sm:$0xff] }
   0xe   :  { %799 = vmatpush1.bf16.msra.mxu0 %v1661_v27  ;;  %842 = vmatpush1.bf16.msra.mxu1 %v1663_v28  ;;  %v44_v48 = vld [vmem:[%s2619_s0 + $0xc0] sm:$0xff]  ;;  %v45_v50 = vld [vmem:[%s2619_s0 + $0xc8] sm:$0xff]  ;;  %v1668_v24 = vcombine.high %v103_v19, %v111_v20  ;;  %v86_v25 = vld [vmem:[%s2619_s0 + $0x210] sm:$0xff] }
   0xf   :  { %800 = vmatprep.subr.bf16.mxu0 %v1646_v29  ;;  %843 = vmatprep.subr.bf16.mxu1 %v1648_v30  ;;  %v1598_v53 = vcombine.high %v36_v47, %v44_v48  ;;  %v1600_v54 = vcombine.high %v37_v49, %v45_v50  ;;  %v20_v55 = vld [vmem:[%s2619_s0] sm:$0xff]  ;;  %v21_v57 = vld [vmem:[%s2619_s0 + $0x8] sm:$0xff]  ;;  %v1597_v59 = vcombine.low %v36_v47, %v44_v48  ;;  %v94_v26 = vld [vmem:[%s2619_s0 + $0x250] sm:$0xff] }
  0x10   :  { %v28_v56 = vld [vmem:[%s2619_s0 + $0x40] sm:$0xff]  ;;  %v29_v58 = vld [vmem:[%s2619_s0 + $0x48] sm:$0xff]  ;;  %v1599_v60 = vcombine.low %v37_v49, %v45_v50  ;;  %v87_v27 = vld [vmem:[%s2619_s0 + $0x218] sm:$0xff]  ;;  %v1665_v29 = vcombine.low %v102_v17, %v110_v18  ;;  %v1667_v30 = vcombine.low %v103_v19, %v111_v20  ;;  %v1650_v31 = vcombine.high %v86_v25, %v94_v26 }
  0x11   :  { %v1582_v61 = vcombine.high %v20_v55, %v28_v56  ;;  %v1584_v62 = vcombine.high %v21_v57, %v29_v58  ;;  %v1581_v4 = vcombine.low %v20_v55, %v28_v56  ;;  %v1583_v5 = vcombine.low %v21_v57, %v29_v58  ;;  %v1896_v10 = vld [vmem:[%s2620_s1] sm:$0xff]   ;;  %v95_v28 = vld [vmem:[%s2619_s0 + $0x258] sm:$0xff]  ;;  %v70_v33 = vld [vmem:[%s2619_s0 + $0x190] sm:$0xff] }
  0x12   :  { %801 = vmatpush1.bf16.msra.mxu0 %v1645_v35  ;;  %844 = vmatpush1.bf16.msra.mxu1 %v1647_v36  ;;  %v1652_v32 = vcombine.high %v87_v27, %v95_v28  ;;  %v78_v34 = vld [vmem:[%s2619_s0 + $0x1d0] sm:$0xff]  ;;  %v71_v35 = vld [vmem:[%s2619_s0 + $0x198] sm:$0xff]  ;;  %v136_v1 = vld [vmem:[%s2619_s0 + $0x3a0] sm:$0xff] }
  0x13   :  { %802 = vmatprep.subr.bf16.mxu0 %v1630_v37  ;;  %845 = vmatprep.subr.bf16.mxu1 %v1632_v38  ;;  %v79_v36 = vld [vmem:[%s2619_s0 + $0x1d8] sm:$0xff]  ;;  %v1649_v37 = vcombine.low %v86_v25, %v94_v26  ;;  %v1651_v38 = vcombine.low %v87_v27, %v95_v28  ;;  %v1634_v39 = vcombine.high %v70_v33, %v78_v34  ;;  %v54_v41 = vld [vmem:[%s2619_s0 + $0x110] sm:$0xff]  ;;  %v144_v2 = vld [vmem:[%s2619_s0 + $0x3e0] sm:$0xff] }
  0x14   :  { %v1636_v40 = vcombine.high %v71_v35, %v79_v36  ;;  %v62_v42 = vld [vmem:[%s2619_s0 + $0x150] sm:$0xff]  ;;  %v1702_v8 = vcombine.high %v136_v1, %v144_v2  ;;  %v120_v11 = vld [vmem:[%s2619_s0 + $0x320] sm:$0xff] }
  0x15   :  { %v1618_v47 = vcombine.high %v54_v41, %v62_v42  ;;  %v38_v49 = vld [vmem:[%s2619_s0 + $0x90] sm:$0xff]  ;;  %v128_v12 = vld [vmem:[%s2619_s0 + $0x360] sm:$0xff] }
  0x16   :  { %803 = vmatpush1.bf16.msra.mxu0 %v1629_v43  ;;  %846 = vmatpush1.bf16.msra.mxu1 %v1631_v44  ;;  %v55_v43 = vld [vmem:[%s2619_s0 + $0x118] sm:$0xff]  ;;  %v46_v50 = vld [vmem:[%s2619_s0 + $0xd0] sm:$0xff]  ;;  %v1686_v17 = vcombine.high %v120_v11, %v128_v12  ;;  %v104_v19 = vld [vmem:[%s2619_s0 + $0x2a0] sm:$0xff] }
  0x17   :  { %804 = vmatprep.subr.bf16.mxu0 %v1614_v45  ;;  %847 = vmatprep.subr.bf16.mxu1 %v1616_v46  ;;  %v63_v44 = vld [vmem:[%s2619_s0 + $0x158] sm:$0xff]  ;;  %v1633_v45 = vcombine.low %v70_v33, %v78_v34  ;;  %v1635_v46 = vcombine.low %v71_v35, %v79_v36  ;;  %v1602_v55 = vcombine.high %v38_v49, %v46_v50  ;;  %v22_v57 = vld [vmem:[%s2619_s0 + $0x10] sm:$0xff]  ;;  %v112_v20 = vld [vmem:[%s2619_s0 + $0x2e0] sm:$0xff] }
  0x18   :  { %v1620_v48 = vcombine.high %v55_v43, %v63_v44  ;;  %v30_v58 = vld [vmem:[%s2619_s0 + $0x50] sm:$0xff]  ;;  %v1670_v25 = vcombine.high %v104_v19, %v112_v20  ;;  %v88_v27 = vld [vmem:[%s2619_s0 + $0x220] sm:$0xff] }
  0x19   :  { %v1586_v63 = vcombine.high %v22_v57, %v30_v58  ;;  %v96_v28 = vld [vmem:[%s2619_s0 + $0x260] sm:$0xff] }
  0x1a   :  { %805 = vmatpush1.bf16.msra.mxu0 %v1613_v51  ;;  %848 = vmatpush1.bf16.msra.mxu1 %v1615_v52  ;;  %v39_v51 = vld [vmem:[%s2619_s0 + $0x98] sm:$0xff]  ;;  %v1654_v33 = vcombine.high %v88_v27, %v96_v28  ;;  %v72_v35 = vld [vmem:[%s2619_s0 + $0x1a0] sm:$0xff] }
  0x1b   :  { %806 = vmatprep.subr.bf16.mxu0 %v1598_v53  ;;  %849 = vmatprep.subr.bf16.mxu1 %v1600_v54  ;;  %v47_v52 = vld [vmem:[%s2619_s0 + $0xd8] sm:$0xff]  ;;  %v1617_v53 = vcombine.low %v54_v41, %v62_v42  ;;  %v1619_v54 = vcombine.low %v55_v43, %v63_v44  ;;  %v80_v36 = vld [vmem:[%s2619_s0 + $0x1e0] sm:$0xff] }
  0x1c   :  { %v1604_v56 = vcombine.high %v39_v51, %v47_v52  ;;  %v1638_v41 = vcombine.high %v72_v35, %v80_v36  ;;  %v56_v43 = vld [vmem:[%s2619_s0 + $0x120] sm:$0xff] }
  0x1d   :  { %v64_v44 = vld [vmem:[%s2619_s0 + $0x160] sm:$0xff] }
  0x1e   :  { %807 = vmatpush1.bf16.msra.mxu0 %v1597_v59  ;;  %850 = vmatpush1.bf16.msra.mxu1 %v1599_v60  ;;  %v23_v59 = vld [vmem:[%s2619_s0 + $0x18] sm:$0xff] }
  0x1f   :  { %808 = vmatprep.subr.bf16.mxu0 %v1582_v61  ;;  %851 = vmatprep.subr.bf16.mxu1 %v1584_v62  ;;  %v31_v60 = vld [vmem:[%s2619_s0 + $0x58] sm:$0xff]  ;;  %v1601_v61 = vcombine.low %v38_v49, %v46_v50  ;;  %v1603_v62 = vcombine.low %v39_v51, %v47_v52  ;;  %v1622_v49 = vcombine.high %v56_v43, %v64_v44  ;;  %v40_v51 = vld [vmem:[%s2619_s0 + $0xa0] sm:$0xff] }
  0x20   :  { %v1588_v0 = vcombine.high %v23_v59, %v31_v60  ;;  %v48_v52 = vld [vmem:[%s2619_s0 + $0xe0] sm:$0xff] }
  0x22   :  { %809 = vmatpush1.bf16.msra.mxu0 %v1581_v4  ;;  %852 = vmatpush1.bf16.msra.mxu1 %v1583_v5  ;;  %v137_v4 = vld [vmem:[%s2619_s0 + $0x3a8] sm:$0xff] }
  0x23   :  { %880 = vmatprep.subr.bf16.mxu0 %v1698_v6  ;;  %923 = vmatprep.subr.bf16.mxu1 %v1700_v7  ;;  %v145_v5 = vld [vmem:[%s2619_s0 + $0x3e8] sm:$0xff]  ;;  %v1585_v6 = vcombine.low %v22_v57, %v30_v58  ;;  %v1587_v7 = vcombine.low %v23_v59, %v31_v60  ;;  %v1606_v57 = vcombine.high %v40_v51, %v48_v52  ;;  %v24_v59 = vld [vmem:[%s2619_s0 + $0x20] sm:$0xff] }
  0x24   :  { %v1704_v9 = vcombine.high %v137_v4, %v145_v5  ;;  %v32_v60 = vld [vmem:[%s2619_s0 + $0x60] sm:$0xff] }
  0x25   :  { %827 = vmatmul.mubr.bf16.vlgmr.msra.gmra.mxu0 %v1896_v10  ;;  %870 = vmatmul.mubr.bf16.vlgmr.msra.gmra.mxu1 %v1896_v10 }
  0x26   :  { %881 = vmatpush1.bf16.msra.mxu0 %v1697_v13  ;;  %924 = vmatpush1.bf16.msra.mxu1 %v1699_v14  ;;  %v121_v13 = vld [vmem:[%s2619_s0 + $0x328] sm:$0xff] }
  0x27   :  { %882 = vmatprep.subr.bf16.mxu0 %v1682_v15  ;;  %925 = vmatprep.subr.bf16.mxu1 %v1684_v16  ;;  %v129_v14 = vld [vmem:[%s2619_s0 + $0x368] sm:$0xff]  ;;  %v1701_v15 = vcombine.low %v136_v1, %v144_v2  ;;  %v1703_v16 = vcombine.low %v137_v4, %v145_v5  ;;  %v1590_v1 = vcombine.high %v24_v59, %v32_v60  ;;  %v138_v4 = vld [vmem:[%s2619_s0 + $0x3b0] sm:$0xff] }
  0x28   :  { %912 = vmatprep.mubr.bf16.mxu0 %v1749_v3  ;;  %955 = vmatprep.mubr.bf16.mxu1 %v1749_v3  ;;  %v1688_v18 = vcombine.high %v121_v13, %v129_v14  ;;  %v146_v5 = vld [vmem:[%s2619_s0 + $0x3f0] sm:$0xff] }
  0x2a   :  { %883 = vmatpush1.bf16.msra.mxu0 %v1681_v21  ;;  %926 = vmatpush1.bf16.msra.mxu1 %v1683_v22  ;;  %v105_v21 = vld [vmem:[%s2619_s0 + $0x2a8] sm:$0xff] }
  0x2b   :  { %884 = vmatprep.subr.bf16.mxu0 %v1666_v23  ;;  %927 = vmatprep.subr.bf16.mxu1 %v1668_v24  ;;  %v113_v22 = vld [vmem:[%s2619_s0 + $0x2e8] sm:$0xff]  ;;  %v1685_v23 = vcombine.low %v120_v11, %v128_v12  ;;  %v1687_v24 = vcombine.low %v121_v13, %v129_v14  ;;  %v1706_v11 = vcombine.high %v138_v4, %v146_v5  ;;  %v122_v13 = vld [vmem:[%s2619_s0 + $0x330] sm:$0xff] }
  0x2c   :  { %v1672_v26 = vcombine.high %v105_v21, %v113_v22  ;;  %v130_v14 = vld [vmem:[%s2619_s0 + $0x370] sm:$0xff] }
  0x2e   :  { %885 = vmatpush1.bf16.msra.mxu0 %v1665_v29  ;;  %928 = vmatpush1.bf16.msra.mxu1 %v1667_v30  ;;  %v89_v29 = vld [vmem:[%s2619_s0 + $0x228] sm:$0xff] }
  0x2f   :  { %886 = vmatprep.subr.bf16.mxu0 %v1650_v31  ;;  %929 = vmatprep.subr.bf16.mxu1 %v1652_v32  ;;  %v97_v30 = vld [vmem:[%s2619_s0 + $0x268] sm:$0xff]  ;;  %v1669_v31 = vcombine.low %v104_v19, %v112_v20  ;;  %v1671_v32 = vcombine.low %v105_v21, %v113_v22  ;;  %v1690_v19 = vcombine.high %v122_v13, %v130_v14  ;;  %v106_v21 = vld [vmem:[%s2619_s0 + $0x2b0] sm:$0xff] }
  0x30   :  { %v1656_v34 = vcombine.high %v89_v29, %v97_v30  ;;  %v114_v22 = vld [vmem:[%s2619_s0 + $0x2f0] sm:$0xff] }
  0x32   :  { %887 = vmatpush1.bf16.msra.mxu0 %v1649_v37  ;;  %930 = vmatpush1.bf16.msra.mxu1 %v1651_v38  ;;  %v73_v37 = vld [vmem:[%s2619_s0 + $0x1a8] sm:$0xff] }
  0x33   :  { %888 = vmatprep.subr.bf16.mxu0 %v1634_v39  ;;  %931 = vmatprep.subr.bf16.mxu1 %v1636_v40  ;;  %v81_v38 = vld [vmem:[%s2619_s0 + $0x1e8] sm:$0xff]  ;;  %v1653_v39 = vcombine.low %v88_v27, %v96_v28  ;;  %v1655_v40 = vcombine.low %v89_v29, %v97_v30  ;;  %v1674_v27 = vcombine.high %v106_v21, %v114_v22  ;;  %v90_v29 = vld [vmem:[%s2619_s0 + $0x230] sm:$0xff] }
  0x34   :  { %v1640_v42 = vcombine.high %v73_v37, %v81_v38  ;;  %v98_v30 = vld [vmem:[%s2619_s0 + $0x270] sm:$0xff] }
  0x36   :  { %889 = vmatpush1.bf16.msra.mxu0 %v1633_v45  ;;  %932 = vmatpush1.bf16.msra.mxu1 %v1635_v46  ;;  %v57_v45 = vld [vmem:[%s2619_s0 + $0x128] sm:$0xff] }
  0x37   :  { %890 = vmatprep.subr.bf16.mxu0 %v1618_v47  ;;  %933 = vmatprep.subr.bf16.mxu1 %v1620_v48  ;;  %v65_v46 = vld [vmem:[%s2619_s0 + $0x168] sm:$0xff]  ;;  %v1637_v47 = vcombine.low %v72_v35, %v80_v36  ;;  %v1639_v48 = vcombine.low %v73_v37, %v81_v38  ;;  %v1658_v35 = vcombine.high %v90_v29, %v98_v30  ;;  %v74_v37 = vld [vmem:[%s2619_s0 + $0x1b0] sm:$0xff] }
  0x38   :  { %v1624_v50 = vcombine.high %v57_v45, %v65_v46  ;;  %v82_v38 = vld [vmem:[%s2619_s0 + $0x1f0] sm:$0xff] }
  0x3a   :  { %891 = vmatpush1.bf16.msra.mxu0 %v1617_v53  ;;  %934 = vmatpush1.bf16.msra.mxu1 %v1619_v54  ;;  %v41_v53 = vld [vmem:[%s2619_s0 + $0xa8] sm:$0xff] }
  0x3b   :  { %892 = vmatprep.subr.bf16.mxu0 %v1602_v55  ;;  %935 = vmatprep.subr.bf16.mxu1 %v1604_v56  ;;  %v49_v54 = vld [vmem:[%s2619_s0 + $0xe8] sm:$0xff]  ;;  %v1621_v55 = vcombine.low %v56_v43, %v64_v44  ;;  %v1623_v56 = vcombine.low %v57_v45, %v65_v46  ;;  %v58_v44 = vld [vmem:[%s2619_s0 + $0x130] sm:$0xff]  ;;  %v59_v46 = vld [vmem:[%s2619_s0 + $0x138] sm:$0xff] }
  0x3c   :  { %v1608_v58 = vcombine.high %v41_v53, %v49_v54  ;;  %v66_v45 = vld [vmem:[%s2619_s0 + $0x170] sm:$0xff] }
  0x3e   :  { %893 = vmatpush1.bf16.msra.mxu0 %v1601_v61  ;;  %936 = vmatpush1.bf16.msra.mxu1 %v1603_v62  ;;  %v25_v61 = vld [vmem:[%s2619_s0 + $0x28] sm:$0xff] }
  0x3f   :  { %894 = vmatprep.subr.bf16.mxu0 %v1586_v63  ;;  %937 = vmatprep.subr.bf16.mxu1 %v1588_v0  ;;  %v33_v62 = vld [vmem:[%s2619_s0 + $0x68] sm:$0xff]  ;;  %v1605_v63 = vcombine.low %v40_v51, %v48_v52  ;;  %v1607_v0 = vcombine.low %v41_v53, %v49_v54  ;;  %v42_v52 = vld [vmem:[%s2619_s0 + $0xb0] sm:$0xff]  ;;  %v43_v54 = vld [vmem:[%s2619_s0 + $0xb8] sm:$0xff] }
  0x40   :  { %v1592_v2 = vcombine.high %v25_v61, %v33_v62  ;;  %v50_v53 = vld [vmem:[%s2619_s0 + $0xf0] sm:$0xff] }
  0x42   :  { %895 = vmatpush1.bf16.msra.mxu0 %v1585_v6  ;;  %938 = vmatpush1.bf16.msra.mxu1 %v1587_v7  ;;  %v139_v6 = vld [vmem:[%s2619_s0 + $0x3b8] sm:$0xff] }
  0x43   :  { %966 = vmatprep.subr.bf16.mxu0 %v1702_v8  ;;  %1009 = vmatprep.subr.bf16.mxu1 %v1704_v9  ;;  %v147_v7 = vld [vmem:[%s2619_s0 + $0x3f8] sm:$0xff]  ;;  %v1589_v8 = vcombine.low %v24_v59, %v32_v60  ;;  %v1591_v9 = vcombine.low %v25_v61, %v33_v62  ;;  %v26_v60 = vld [vmem:[%s2619_s0 + $0x30] sm:$0xff] }
  0x44   :  { %v1708_v12 = vcombine.high %v139_v6, %v147_v7  ;;  %v34_v61 = vld [vmem:[%s2619_s0 + $0x70] sm:$0xff]  ;;  %v27_v62 = vld [vmem:[%s2619_s0 + $0x38] sm:$0xff] }
  0x45   :  { %913 = vmatmul.mubr.bf16.vlgmr.msra.gmra.mxu0 %v1896_v10  ;;  %956 = vmatmul.mubr.bf16.vlgmr.msra.gmra.mxu1 %v1896_v10 }
  0x46   :  { %967 = vmatpush1.bf16.msra.mxu0 %v1701_v15  ;;  %1010 = vmatpush1.bf16.msra.mxu1 %v1703_v16  ;;  %v123_v15 = vld [vmem:[%s2619_s0 + $0x338] sm:$0xff] }
  0x47   :  { %968 = vmatprep.subr.bf16.mxu0 %v1686_v17  ;;  %1011 = vmatprep.subr.bf16.mxu1 %v1688_v18  ;;  %v131_v16 = vld [vmem:[%s2619_s0 + $0x378] sm:$0xff]  ;;  %v1705_v17 = vcombine.low %v138_v4, %v146_v5  ;;  %v1707_v18 = vcombine.low %v139_v6, %v147_v7  ;;  %v1593_v5 = vcombine.low %v26_v60, %v34_v61 }
  0x48   :  { %998 = vmatprep.mubr.bf16.mxu0 %v1749_v3  ;;  %1041 = vmatprep.mubr.bf16.mxu1 %v1749_v3  ;;  %v1692_v20 = vcombine.high %v123_v15, %v131_v16 }
  0x4a   :  { %969 = vmatpush1.bf16.msra.mxu0 %v1685_v23  ;;  %1012 = vmatpush1.bf16.msra.mxu1 %v1687_v24  ;;  %v107_v23 = vld [vmem:[%s2619_s0 + $0x2b8] sm:$0xff] }
  0x4b   :  { %970 = vmatprep.subr.bf16.mxu0 %v1670_v25  ;;  %1013 = vmatprep.subr.bf16.mxu1 %v1672_v26  ;;  %v115_v24 = vld [vmem:[%s2619_s0 + $0x2f8] sm:$0xff]  ;;  %v1689_v25 = vcombine.low %v122_v13, %v130_v14  ;;  %v1691_v26 = vcombine.low %v123_v15, %v131_v16 }
  0x4c   :  { %v1676_v28 = vcombine.high %v107_v23, %v115_v24 }
  0x4e   :  { %971 = vmatpush1.bf16.msra.mxu0 %v1669_v31  ;;  %1014 = vmatpush1.bf16.msra.mxu1 %v1671_v32  ;;  %v91_v31 = vld [vmem:[%s2619_s0 + $0x238] sm:$0xff] }
  0x4f   :  { %972 = vmatprep.subr.bf16.mxu0 %v1654_v33  ;;  %1015 = vmatprep.subr.bf16.mxu1 %v1656_v34  ;;  %v99_v32 = vld [vmem:[%s2619_s0 + $0x278] sm:$0xff]  ;;  %v1673_v33 = vcombine.low %v106_v21, %v114_v22  ;;  %v1675_v34 = vcombine.low %v107_v23, %v115_v24 }
  0x50   :  { %v1660_v36 = vcombine.high %v91_v31, %v99_v32 }
  0x52   :  { %973 = vmatpush1.bf16.msra.mxu0 %v1653_v39  ;;  %1016 = vmatpush1.bf16.msra.mxu1 %v1655_v40  ;;  %v83_v39 = vld [vmem:[%s2619_s0 + $0x1f8] sm:$0xff]  ;;  %v1657_v40 = vcombine.low %v90_v29, %v98_v30 }
  0x53   :  { %974 = vmatprep.subr.bf16.mxu0 %v1638_v41  ;;  %1017 = vmatprep.subr.bf16.mxu1 %v1640_v42  ;;  %v1659_v41 = vcombine.low %v91_v31, %v99_v32  ;;  %v1642_v42 = vcombine.high %v74_v37, %v82_v38 }
  0x56   :  { %975 = vmatpush1.bf16.msra.mxu0 %v1637_v47  ;;  %1018 = vmatpush1.bf16.msra.mxu1 %v1639_v48  ;;  %v67_v47 = vld [vmem:[%s2619_s0 + $0x178] sm:$0xff]  ;;  %v1641_v48 = vcombine.low %v74_v37, %v82_v38 }
  0x57   :  { %976 = vmatprep.subr.bf16.mxu0 %v1622_v49  ;;  %1019 = vmatprep.subr.bf16.mxu1 %v1624_v50  ;;  %v1626_v50 = vcombine.high %v58_v44, %v66_v45  ;;  %v1628_v51 = vcombine.high %v59_v46, %v67_v47 }
  0x5a   :  { %977 = vmatpush1.bf16.msra.mxu0 %v1621_v55  ;;  %1020 = vmatpush1.bf16.msra.mxu1 %v1623_v56  ;;  %v51_v55 = vld [vmem:[%s2619_s0 + $0xf8] sm:$0xff]  ;;  %v1625_v56 = vcombine.low %v58_v44, %v66_v45 }
  0x5b   :  { %978 = vmatprep.subr.bf16.mxu0 %v1606_v57  ;;  %1021 = vmatprep.subr.bf16.mxu1 %v1608_v58  ;;  %v1627_v57 = vcombine.low %v59_v46, %v67_v47  ;;  %v1610_v58 = vcombine.high %v42_v52, %v50_v53  ;;  %v1612_v59 = vcombine.high %v43_v54, %v51_v55 }
  0x5e   :  { %979 = vmatpush1.bf16.msra.mxu0 %v1605_v63  ;;  %1022 = vmatpush1.bf16.msra.mxu1 %v1607_v0  ;;  %v35_v63 = vld [vmem:[%s2619_s0 + $0x78] sm:$0xff]  ;;  %v1609_v0 = vcombine.low %v42_v52, %v50_v53 }
  0x5f   :  { %980 = vmatprep.subr.bf16.mxu0 %v1590_v1  ;;  %1023 = vmatprep.subr.bf16.mxu1 %v1592_v2  ;;  %v1611_v1 = vcombine.low %v43_v54, %v51_v55  ;;  %v1594_v2 = vcombine.high %v26_v60, %v34_v61  ;;  %v1596_v4 = vcombine.high %v27_v62, %v35_v63 }
  0x60   :  { %v1595_v6 = vcombine.low %v27_v62, %v35_v63 }
  0x62   :  { %981 = vmatpush1.bf16.msra.mxu0 %v1589_v8  ;;  %1024 = vmatpush1.bf16.msra.mxu1 %v1591_v9 }
  0x63   :  { %1052 = vmatprep.subr.bf16.mxu0 %v1706_v11  ;;  %1095 = vmatprep.subr.bf16.mxu1 %v1708_v12 }
  0x65   :  { %999 = vmatmul.mubr.bf16.vlgmr.msra.gmra.mxu0 %v1896_v10  ;;  %1042 = vmatmul.mubr.bf16.vlgmr.msra.gmra.mxu1 %v1896_v10 }
  0x66   :  { %1053 = vmatpush1.bf16.msra.mxu0 %v1705_v17  ;;  %1096 = vmatpush1.bf16.msra.mxu1 %v1707_v18 }
  0x67   :  { %1054 = vmatprep.subr.bf16.mxu0 %v1690_v19  ;;  %1097 = vmatprep.subr.bf16.mxu1 %v1692_v20 }
  0x68   :  { %1084 = vmatprep.mubr.bf16.mxu0 %v1749_v3  ;;  %1127 = vmatprep.mubr.bf16.mxu1 %v1749_v3  ;;  %v75_v3 = vld [vmem:[%s2619_s0 + $0x1b8] sm:$0xff] }
  0x69   :  { %v1644_v43 = vcombine.high %v75_v3, %v83_v39  ;;  %v1643_v49 = vcombine.low %v75_v3, %v83_v39 }
  0x6a   :  { %1055 = vmatpush1.bf16.msra.mxu0 %v1689_v25  ;;  %1098 = vmatpush1.bf16.msra.mxu1 %v1691_v26 }
  0x6b   :  { %1056 = vmatprep.subr.bf16.mxu0 %v1674_v27  ;;  %1099 = vmatprep.subr.bf16.mxu1 %v1676_v28 }
  0x6e   :  { %1057 = vmatpush1.bf16.msra.mxu0 %v1673_v33  ;;  %1100 = vmatpush1.bf16.msra.mxu1 %v1675_v34 }
  0x6f   :  { %1058 = vmatprep.subr.bf16.mxu0 %v1658_v35  ;;  %1101 = vmatprep.subr.bf16.mxu1 %v1660_v36 }
  0x72   :  { %1059 = vmatpush1.bf16.msra.mxu0 %v1657_v40  ;;  %1102 = vmatpush1.bf16.msra.mxu1 %v1659_v41 }
  0x73   :  { %1060 = vmatprep.subr.bf16.mxu0 %v1642_v42  ;;  %1103 = vmatprep.subr.bf16.mxu1 %v1644_v43 }
  0x76   :  { %1061 = vmatpush1.bf16.msra.mxu0 %v1641_v48  ;;  %1104 = vmatpush1.bf16.msra.mxu1 %v1643_v49 }
  0x77   :  { %1062 = vmatprep.subr.bf16.mxu0 %v1626_v50  ;;  %1105 = vmatprep.subr.bf16.mxu1 %v1628_v51 }
  0x7a   :  { %1063 = vmatpush1.bf16.msra.mxu0 %v1625_v56  ;;  %1106 = vmatpush1.bf16.msra.mxu1 %v1627_v57 }
  0x7b   :  { %1064 = vmatprep.subr.bf16.mxu0 %v1610_v58  ;;  %1107 = vmatprep.subr.bf16.mxu1 %v1612_v59 }
  0x7e   :  { %1065 = vmatpush1.bf16.msra.mxu0 %v1609_v0  ;;  %1108 = vmatpush1.bf16.msra.mxu1 %v1611_v1 }
  0x7f   :  { %1066 = vmatprep.subr.bf16.mxu0 %v1594_v2  ;;  %1109 = vmatprep.subr.bf16.mxu1 %v1596_v4 }
  0x82   :  { %1067 = vmatpush1.bf16.msra.mxu0 %v1593_v5  ;;  %1110 = vmatpush1.bf16.msra.mxu1 %v1595_v6 }
  0x85   :  { %1085 = vmatmul.mubr.bf16.vlgmr.msra.gmra.mxu0 %v1896_v10  ;;  %1128 = vmatmul.mubr.bf16.vlgmr.msra.gmra.mxu1 %v1896_v10 }
  0xe5   :  { %v2182_v7 = vpop.f32.mrf.mxu0  ;;  %v2186_v9 = vpop.f32.mrf.mxu1 }
  0xe7   :  { %v2184_v8 = vpop.f32.mrf.mxu0  ;;  %v2192_v13 = vpop.f32.mrf.mxu1 }
  0xe8   :  { %v1138_v12 = vadd.f32 %v2184_v8, %v2182_v7 }
  0xe9   :  { %v2188_v11 = vpop.f32.mrf.mxu0  ;;  %v2199_v10 = vpop.f32.mrf.mxu1 }
  0xea   :  { %v1139_v16 = vadd.f32 %v1138_v12, %v2186_v9 }
  0xeb   :  { %v2194_v14 = vpop.f32.mrf.mxu0  ;;  %v2206_v20 = vpop.f32.mrf.mxu1 }
  0xec   :  { %v1155_v17 = vadd.f32 %v2194_v14, %v2188_v11  ;;  %v1140_v19 = vadd.f32 %v1139_v16, %v2192_v13 }
  0xee   :  { %v1156_v21 = vadd.f32 %v1155_v17, %v2199_v10 }
  0xf0   :  { %v1157_v25 = vadd.f32 %v1156_v21, %v2206_v20 }
 0x105   :  { %v2196_v15 = vpop.f32.mrf.mxu0  ;;  %v2210_v23 = vpop.f32.mrf.mxu1 }
 0x106   :  { %v1141_v22 = vadd.f32 %v1140_v19, %v2196_v15 }
 0x107   :  { %v2203_v18 = vpop.f32.mrf.mxu0  ;;  %v2216_v27 = vpop.f32.mrf.mxu1 }
 0x108   :  { %v1142_v26 = vadd.f32 %v1141_v22, %v2203_v18 }
 0x109   :  { %v2212_v24 = vpop.f32.mrf.mxu0  ;;  %v2224_v32 = vpop.f32.mrf.mxu1 }
 0x10a   :  { %v1158_v28 = vadd.f32 %v1157_v25, %v2212_v24  ;;  %v1143_v31 = vadd.f32 %v1142_v26, %v2210_v23 }
 0x10b   :  { %v2219_v29 = vpop.f32.mrf.mxu0  ;;  %v2230_v36 = vpop.f32.mrf.mxu1 }
 0x10c   :  { %v1159_v33 = vadd.f32 %v1158_v28, %v2219_v29  ;;  %v1144_v35 = vadd.f32 %v1143_v31, %v2216_v27 }
 0x10e   :  { %v1160_v37 = vadd.f32 %v1159_v33, %v2224_v32 }
 0x110   :  { %v1161_v40 = vadd.f32 %v1160_v37, %v2230_v36 }
 0x125   :  { %v2221_v30 = vpop.f32.mrf.mxu0  ;;  %v2234_v3 = vpop.f32.mrf.mxu1 }
 0x126   :  { %v1145_v38 = vadd.f32 %v1144_v35, %v2221_v30 }
 0x127   :  { %v2227_v34 = vpop.f32.mrf.mxu0  ;;  %v2240_v42 = vpop.f32.mrf.mxu1 }
 0x128   :  { %v1146_v41 = vadd.f32 %v1145_v38, %v2227_v34 }
 0x129   :  { %v2236_v39 = vpop.f32.mrf.mxu0  ;;  %v2246_v46 = vpop.f32.mrf.mxu1 }
 0x12a   :  { %v1162_v43 = vadd.f32 %v1161_v40, %v2236_v39  ;;  %v1147_v45 = vadd.f32 %v1146_v41, %v2234_v3 }
 0x12b   :  { %v2243_v44 = vpop.f32.mrf.mxu0  ;;  %v2250_v49 = vpop.f32.mrf.mxu1 }
 0x12c   :  { %v1163_v47 = vadd.f32 %v1162_v43, %v2243_v44  ;;  %v1148_v48 = vadd.f32 %v1147_v45, %v2240_v42 }
 0x12e   :  { %v1164_v50 = vadd.f32 %v1163_v47, %v2246_v46 }
 0x130   :  { %v1165_v55 = vadd.f32 %v1164_v50, %v2250_v49 }
 0x145   :  { %v2253_v51 = vpop.f32.mrf.mxu0  ;;  %v2256_v53 = vpop.f32.mrf.mxu1 }
 0x146   :  { %v1149_v52 = vadd.f32 %v1148_v48, %v2253_v51 }
 0x147   :  { %v2258_v54 = vpop.f32.mrf.mxu0  ;;  %v2262_v57 = vpop.f32.mrf.mxu1 }
 0x148   :  { %v1150_v56 = vadd.f32 %v1149_v52, %v2258_v54 }
 0x149   :  { %v2264_v58 = vpop.f32.mrf.mxu0  ;;  %v2268_v61 = vpop.f32.mrf.mxu1 }
 0x14a   :  { %v1166_v59 = vadd.f32 %v1165_v55, %v2264_v58  ;;  %v1151_v60 = vadd.f32 %v1150_v56, %v2256_v53 }
 0x14b   :  { %v2270_v62 = vpop.f32.mrf.mxu0  ;;  %v2275_v2 = vpop.f32.mrf.mxu1 }
 0x14c   :  { %v1167_v63 = vadd.f32 %v1166_v59, %v2270_v62  ;;  %v1152_v0 = vadd.f32 %v1151_v60, %v2262_v57 }
 0x14e   :  { %v1168_v1 = vadd.f32 %v1167_v63, %v2268_v61  ;;  %1153 = vadd.xlane.f32.xlu0 %v1152_v0 }
 0x150   :  { %v1169_v4 = vadd.f32 %v1168_v1, %v2275_v2 }
 0x152   :  { %1170 = vadd.xlane.f32.xlu0 %v1169_v4 }
 0x1d7   :  { %v1154_v5 = vpop.xlane.xlu0 %1153 }
 0x1d8   :  { %v2278_v6 = vmul.f32 0.00048828125, %v1154_v5 }
 0x1da   :  { %v2282_v12 = vsub.f32 %v2182_v7, %v2278_v6  ;;  %v2286_v16 = vsub.f32 %v2184_v8, %v2278_v6  ;;  %v2290_v19 = vsub.f32 %v2186_v9, %v2278_v6  ;;  %v2300_v7 = vsub.f32 %v2192_v13, %v2278_v6 }
 0x1db   :  { %v1171_v17 = vpop.xlane.xlu0 %1170  ;;  %v2304_v8 = vsub.f32 %v2196_v15, %v2278_v6  ;;  %v2318_v13 = vsub.f32 %v2203_v18, %v2278_v6  ;;  %v2324_v35 = vsub.f32 %v2210_v23, %v2278_v6  ;;  %v2338_v40 = vsub.f32 %v2216_v27, %v2278_v6 }
 0x1dc   :  { %v1206_v21 = vmul.f32 %v2282_v12, %v2282_v12  ;;  %v1207_v22 = vmul.f32 %v2286_v16, %v2286_v16  ;;  %v2296_v25 = vmul.f32 0.00048828125, %v1171_v17  ;;  %v1208_v9 = vmul.f32 %v2290_v19, %v2290_v19 }
 0x1dd   :  { %v1209_v15 = vmul.f32 %v2300_v7, %v2300_v7  ;;  %v1211_v23 = vmul.f32 %v2318_v13, %v2318_v13  ;;  %v1212_v45 = vmul.f32 %v2324_v35, %v2324_v35  ;;  %v2372_v59 = vsub.f32 %v2234_v3, %v2278_v6 }
 0x1de   :  { %v1238_v26 = vadd.f32 %v1207_v22, %v1206_v21  ;;  %v2310_v28 = vsub.f32 %v2188_v11, %v2296_v25  ;;  %v2314_v31 = vsub.f32 %v2194_v14, %v2296_v25  ;;  %v1210_v11 = vmul.f32 %v2304_v8, %v2304_v8 }
 0x1df   :  { %v2330_v14 = vsub.f32 %v2199_v10, %v2296_v25  ;;  %v2344_v43 = vsub.f32 %v2206_v20, %v2296_v25  ;;  %v2348_v10 = vsub.f32 %v2221_v30, %v2278_v6  ;;  %v2354_v27 = vsub.f32 %v2212_v24, %v2296_v25 }
 0x1e0   :  { %v1239_v33 = vadd.f32 %v1238_v26, %v1208_v9  ;;  %v1222_v18 = vmul.f32 %v2310_v28, %v2310_v28  ;;  %v1223_v38 = vmul.f32 %v2314_v31, %v2314_v31  ;;  %v2360_v20 = vsub.f32 %v2227_v34, %v2278_v6 }
 0x1e1   :  { %v1224_v48 = vmul.f32 %v2330_v14, %v2330_v14  ;;  %v1213_v30 = vmul.f32 %v2338_v40, %v2338_v40  ;;  %v2366_v55 = vsub.f32 %v2219_v29, %v2296_v25  ;;  %v1225_v24 = vmul.f32 %v2344_v43, %v2344_v43 }
 0x1e2   :  { %v1240_v37 = vadd.f32 %v1239_v33, %v1209_v15  ;;  %v1255_v50 = vadd.f32 %v1223_v38, %v1222_v18  ;;  %v1214_v34 = vmul.f32 %v2348_v10, %v2348_v10  ;;  %v2378_v63 = vsub.f32 %v2224_v32, %v2296_v25 }
 0x1e3   :  { %v1226_v29 = vmul.f32 %v2354_v27, %v2354_v27  ;;  %v2384_v1 = vsub.f32 %v2240_v42, %v2278_v6  ;;  %v1215_v3 = vmul.f32 %v2360_v20, %v2360_v20  ;;  %v2390_v5 = vsub.f32 %v2230_v36, %v2296_v25 }
 0x1e4   :  { %v1241_v41 = vadd.f32 %v1240_v37, %v1210_v11  ;;  %v1256_v56 = vadd.f32 %v1255_v50, %v1224_v48  ;;  %v1227_v32 = vmul.f32 %v2366_v55, %v2366_v55  ;;  %v2396_v21 = vsub.f32 %v2253_v51, %v2278_v6 }
 0x1e5   :  { %v1216_v42 = vmul.f32 %v2372_v59, %v2372_v59  ;;  %v2402_v9 = vsub.f32 %v2236_v39, %v2296_v25  ;;  %v1228_v36 = vmul.f32 %v2378_v63, %v2378_v63  ;;  %v2408_v15 = vsub.f32 %v2258_v54, %v2278_v6 }
 0x1e6   :  { %v1242_v47 = vadd.f32 %v1241_v41, %v1211_v23  ;;  %v1257_v0 = vadd.f32 %v1256_v56, %v1225_v24  ;;  %v1217_v51 = vmul.f32 %v2384_v1, %v2384_v1  ;;  %v2414_v11 = vsub.f32 %v2243_v44, %v2296_v25 }
 0x1e7   :  { %v1229_v39 = vmul.f32 %v2390_v5, %v2390_v5  ;;  %v2420_v18 = vsub.f32 %v2256_v53, %v2278_v6  ;;  %v1218_v54 = vmul.f32 %v2396_v21, %v2396_v21  ;;  %v2426_v23 = vsub.f32 %v2246_v46, %v2296_v25 }
 0x1e8   :  { %v1243_v52 = vadd.f32 %v1242_v47, %v1212_v45  ;;  %v1258_v17 = vadd.f32 %v1257_v0, %v1226_v29  ;;  %v1230_v44 = vmul.f32 %v2402_v9, %v2402_v9  ;;  %v2432_v45 = vsub.f32 %v2262_v57, %v2278_v6 }
 0x1e9   :  { %v1219_v53 = vmul.f32 %v2408_v15, %v2408_v15  ;;  %v2438_v48 = vsub.f32 %v2250_v49, %v2296_v25  ;;  %v1231_v46 = vmul.f32 %v2414_v11, %v2414_v11  ;;  %v2446_v57 = vsub.f32 %v2264_v58, %v2296_v25 }
 0x1ea   :  { %v1244_v60 = vadd.f32 %v1243_v52, %v1213_v30  ;;  %v1259_v26 = vadd.f32 %v1258_v17, %v1227_v32  ;;  %v1220_v30 = vmul.f32 %v2420_v18, %v2420_v18  ;;  %v1232_v6 = vmul.f32 %v2426_v23, %v2426_v23 }
 0x1eb   :  { %v1221_v49 = vmul.f32 %v2432_v45, %v2432_v45  ;;  %v2460_v58 = vsub.f32 %v2268_v61, %v2296_v25  ;;  %v2466_v32 = vsub.f32 %v2275_v2, %v2296_v25 }
 0x1ec   :  { %v1245_v4 = vadd.f32 %v1244_v60, %v1214_v34  ;;  %v1260_v37 = vadd.f32 %v1259_v26, %v1228_v36  ;;  %v2454_v34 = vsub.f32 %v2270_v62, %v2296_v25  ;;  %v1233_v60 = vmul.f32 %v2438_v48, %v2438_v48 }
 0x1ed   :  { %v1237_v61 = vmul.f32 %v2466_v32, %v2466_v32 }
 0x1ee   :  { %v1246_v22 = vadd.f32 %v1245_v4, %v1215_v3  ;;  %v1261_v41 = vadd.f32 %v1260_v37, %v1229_v39  ;;  %v1234_v3 = vmul.f32 %v2446_v57, %v2446_v57  ;;  %v1235_v62 = vmul.f32 %v2454_v34, %v2454_v34 }
 0x1f0   :  { %v1247_v33 = vadd.f32 %v1246_v22, %v1216_v42  ;;  %v1262_v50 = vadd.f32 %v1261_v41, %v1230_v44  ;;  %v1236_v42 = vmul.f32 %v2460_v58, %v2460_v58 }
 0x1f2   :  { %v1248_v38 = vadd.f32 %v1247_v33, %v1217_v51  ;;  %v1263_v24 = vadd.f32 %v1262_v50, %v1231_v46  ;;  %v1324_v51 = vld [vmem:[%s2621_s3] sm:$0xff]  ;;  %v1325_v50 = vld [vmem:[%s2621_s3 + $0x8] sm:$0xff] }
 0x1f4   :  { %v1249_v47 = vadd.f32 %v1248_v38, %v1218_v54  ;;  %v1264_v29 = vadd.f32 %v1263_v24, %v1232_v6  ;;  %v1274_v38 = vld [vmem:[%s2622_s2] sm:$0xff] }
 0x1f6   :  { %v1250_v52 = vadd.f32 %v1249_v47, %v1219_v53  ;;  %v1265_v4 = vadd.f32 %v1264_v29, %v1233_v60  ;;  %v1275_v53 = vld [vmem:[%s2622_s2 + $0x8] sm:$0xff] }
 0x1f8   :  { %v1251_v56 = vadd.f32 %v1250_v52, %v1220_v30  ;;  %v1266_v17 = vadd.f32 %v1265_v4, %v1234_v3 }
 0x1fa   :  { %v1252_v0 = vadd.f32 %v1251_v56, %v1221_v49  ;;  %v1267_v22 = vadd.f32 %v1266_v17, %v1235_v62 }
 0x1fc   :  { %1253 = vadd.xlane.f32.xlu1 %v1252_v0  ;;  %v1268_v36 = vadd.f32 %v1267_v22, %v1236_v42 }
 0x1fe   :  { %v1269_v26 = vadd.f32 %v1268_v36, %v1237_v61 }
 0x200   :  { %1270 = vadd.xlane.f32.xlu1 %v1269_v26 }
 0x211   :  { %1328 = vperm.xlu1 %1743, %v1324_v51  }
 0x285   :  { %v1254_v2 = vpop.xlane.xlu1 %1253 }
 0x286   :  { %v1272_v25 = vmul.f32 0.00048828125, %v1254_v2 }
 0x288   :  { %v1276_v33 = vadd.f32 1e-05, %v1272_v25 }
 0x289   :  { %v1271_v39 = vpop.xlane.xlu1 %1270 }
 0x28a   :  { %1745 = vrsqrt.f32 %v1276_v33  ;;  %v1273_v37 = vmul.f32 0.00048828125, %v1271_v39 }
 0x28c   :  { %v1277_v54 = vadd.f32 1e-05, %v1273_v37 }
 0x28d   :  { %v1329_v62 = vpop.permute.xlu1 %1328 }
 0x28e   :  { %1747 = vrsqrt.f32 %v1277_v54 }
 0x297   :  { %v1746_v44 = vpop.eup %1745 }
 0x298   :  { %v1280_v41 = vmul.f32 %v1746_v44, %v1274_v38 }
 0x29a   :  { %1284 = vperm.xlu0 %1742, %v1280_v41  }
 0x29b   :  { %v1748_v47 = vpop.eup %1747 }
 0x29c   :  { %v1281_v46 = vmul.f32 %v1748_v47, %v1275_v53 }
 0x29e   :  { %1289 = vperm.xlu1 %1743, %v1281_v46  }
 0x2a2   :  { %1333 = vperm.xlu1 %1743, %v1325_v50  }
 0x315   :  { %v1285_v30 = vpop.permute.xlu0 %1284 }
 0x316   :  { %v1292_v52 = vmul.f32 %v1285_v30, %v2282_v12  ;;  %v1293_v6 = vmul.f32 %v1285_v30, %v2286_v16  ;;  %v1294_v24 = vmul.f32 %v1285_v30, %v2290_v19  ;;  %v1295_v49 = vmul.f32 %v1285_v30, %v2300_v7 }
 0x317   :  { %v1296_v56 = vmul.f32 %v1285_v30, %v2304_v8  ;;  %v1297_v60 = vmul.f32 %v1285_v30, %v2318_v13  ;;  %v1298_v29 = vmul.f32 %v1285_v30, %v2324_v35  ;;  %v1299_v0 = vmul.f32 %v1285_v30, %v2338_v40 }
 0x318   :  { %v1300_v3 = vmul.f32 %v1285_v30, %v2348_v10  ;;  %v1301_v4 = vmul.f32 %v1285_v30, %v2360_v20  ;;  %v1302_v12 = vmul.f32 %v1285_v30, %v2372_v59  ;;  %v1303_v16 = vmul.f32 %v1285_v30, %v2384_v1 }
 0x319   :  { %v1304_v19 = vmul.f32 %v1285_v30, %v2396_v21  ;;  %v1305_v7 = vmul.f32 %v1285_v30, %v2408_v15  ;;  %v1306_v8 = vmul.f32 %v1285_v30, %v2420_v18  ;;  %v1307_v13 = vmul.f32 %v1285_v30, %v2432_v45  ;;  %v2502_v18 = vpop.permute.xlu1 %1289 }
 0x31a   :  { %v1336_v35 = vadd.f32 %v1329_v62, %v1292_v52  ;;  %v1337_v17 = vadd.f32 %v1329_v62, %v1293_v6  ;;  %v1338_v40 = vadd.f32 %v1329_v62, %v1294_v24  ;;  %v1339_v42 = vadd.f32 %v1329_v62, %v1295_v49 }
 0x31b   :  { %v1340_v10 = vadd.f32 %v1329_v62, %v1296_v56  ;;  %v1341_v22 = vadd.f32 %v1329_v62, %v1297_v60  ;;  %v1342_v20 = vadd.f32 %v1329_v62, %v1298_v29  ;;  %v1343_v61 = vadd.f32 %v1329_v62, %v1299_v0 }
 0x31c   :  { %v1344_v59 = vadd.f32 %v1329_v62, %v1300_v3  ;;  %v1345_v36 = vadd.f32 %v1329_v62, %v1301_v4  ;;  %v1346_v1 = vadd.f32 %v1329_v62, %v1302_v12  ;;  %v1347_v26 = vadd.f32 %v1329_v62, %v1303_v16 }
 0x31d   :  { %v1348_v51 = vadd.f32 %v1329_v62, %v1304_v19  ;;  %v1349_v21 = vadd.f32 %v1329_v62, %v1305_v7  ;;  %v1350_v2 = vadd.f32 %v1329_v62, %v1306_v8  ;;  %v1351_v15 = vadd.f32 %v1329_v62, %v1307_v13 }
 0x31e   :  { %vm1368_vm0 = vcmp.ge.f32.partialorder %v1336_v35, 0.0  ;;  %vm1369_vm1 = vcmp.ge.f32.partialorder %v1337_v17, 0.0  ;;  %vm1370_vm2 = vcmp.ge.f32.partialorder %v1338_v40, 0.0  ;;  %vm1371_vm3 = vcmp.ge.f32.partialorder %v1339_v42, 0.0 }
 0x31f   :  { %vm1372_vm4 = vcmp.ge.f32.partialorder %v1340_v10, 0.0  ;;  %vm1373_vm5 = vcmp.ge.f32.partialorder %v1341_v22, 0.0  ;;  %vm1374_vm6 = vcmp.ge.f32.partialorder %v1342_v20, 0.0  ;;  %vm1375_vm7 = vcmp.ge.f32.partialorder %v1343_v61, 0.0 }
 0x320   :  { %vm1376_vm8 = vcmp.ge.f32.partialorder %v1344_v59, 0.0  ;;  %vm1377_vm9 = vcmp.ge.f32.partialorder %v1345_v36, 0.0  ;;  %vm1378_vm10 = vcmp.ge.f32.partialorder %v1346_v1, 0.0  ;;  %vm1379_vm11 = vcmp.ge.f32.partialorder %v1347_v26, 0.0 }
 0x321   :  { %vm1380_vm12 = vcmp.ge.f32.partialorder %v1348_v51, 0.0  ;;  %vm1381_vm13 = vcmp.ge.f32.partialorder %v1349_v21, 0.0  ;;  %vm1382_vm14 = vcmp.ge.f32.partialorder %v1350_v2, 0.0  ;;  %vm1383_vm15 = vcmp.ge.f32.partialorder %v1351_v15, 0.0 }
 0x322   :  { %v1400_v45 = vmul.f32 0.2, %v1336_v35  ;;  %v1401_v25 = vmul.f32 0.2, %v1337_v17  ;;  %v1402_v33 = vmul.f32 0.2, %v1338_v40  ;;  %v2506_v39 = vmul.f32 %v2502_v18, %v2310_v28 }
 0x323   :  { %v1403_v37 = vmul.f32 0.2, %v1339_v42  ;;  %v1404_v54 = vmul.f32 0.2, %v1340_v10  ;;  %v1405_v38 = vmul.f32 0.2, %v1341_v22  ;;  %v1309_v44 = vmul.f32 %v2502_v18, %v2314_v31 }
 0x324   :  { %v1406_v41 = vmul.f32 0.2, %v1342_v20  ;;  %v1407_v53 = vmul.f32 0.2, %v1343_v61  ;;  %v1408_v47 = vmul.f32 0.2, %v1344_v59  ;;  %v1432_v46 = vsel %vm1368_vm0, %v1336_v35, %v1400_v45 }
 0x325   :  { %v1409_v50 = vmul.f32 0.2, %v1345_v36  ;;  %v1410_v30 = vmul.f32 0.2, %v1346_v1  ;;  %v1411_v52 = vmul.f32 0.2, %v1347_v26  ;;  %v1433_v6 = vsel %vm1369_vm1, %v1337_v17, %v1401_v25 }
 0x326   :  { %v1412_v24 = vmul.f32 0.2, %v1348_v51  ;;  %v1413_v49 = vmul.f32 0.2, %v1349_v21  ;;  %v1414_v28 = vmul.f32 0.2, %v1350_v2  ;;  %v1434_v56 = vsel %vm1370_vm2, %v1338_v40, %v1402_v33 }
 0x327   :  { %v1415_v60 = vmul.f32 0.2, %v1351_v15  ;;  %v1435_v29 = vsel %vm1371_vm3, %v1339_v42, %v1403_v37  ;;  %v1436_v31 = vsel %vm1372_vm4, %v1340_v10, %v1404_v54  ;;  %v1437_v0 = vsel %vm1373_vm5, %v1341_v22, %v1405_v38 }
 0x328   :  { %v1438_v3 = vsel %vm1374_vm6, %v1342_v20, %v1406_v41  ;;  %v1439_v4 = vsel %vm1375_vm7, %v1343_v61, %v1407_v53  ;;  %v1440_v12 = vsel %vm1376_vm8, %v1344_v59, %v1408_v47  ;;  %v1441_v16 = vsel %vm1377_vm9, %v1345_v36, %v1409_v50 }
 0x329   :  { %v1442_v62 = vsel %vm1378_vm10, %v1346_v1, %v1410_v30  ;;  %v1443_v19 = vsel %vm1379_vm11, %v1347_v26, %v1411_v52  ;;  %v1444_v7 = vsel %vm1380_vm12, %v1348_v51, %v1412_v24  ;;  %v1445_v8 = vsel %vm1381_vm13, %v1349_v21, %v1413_v49  ;;  %v1334_v21 = vpop.permute.xlu1 %1333 }
 0x32a   :  { %v1446_v13 = vsel %vm1382_vm14, %v1350_v2, %v1414_v28  ;;  %v1447_v35 = vsel %vm1383_vm15, %v1351_v15, %v1415_v60  ;;  %v1725_v17 = vpack.c.bf16 %v1433_v6, %v1432_v46  ;;  %v1726_v40 = vpack.c.bf16 %v1435_v29, %v1434_v56 }
 0x32b   :  { %v1727_v42 = vpack.c.bf16 %v1437_v0, %v1436_v31  ;;  %v1728_v10 = vpack.c.bf16 %v1439_v4, %v1438_v3  ;;  %v1729_v22 = vpack.c.bf16 %v1441_v16, %v1440_v12  ;;  %v1730_v20 = vpack.c.bf16 %v1443_v19, %v1442_v62 }
 0x32c   :  { %v1731_v61 = vpack.c.bf16 %v1445_v8, %v1444_v7  ;;  %v1732_v59 = vpack.c.bf16 %v1447_v35, %v1446_v13  ;;  %1560 = vst [vmem:[%s2623_s4] sm:$0xff] %v1725_v17  ;;  %1561 = vst [vmem:[%s2623_s4 + $0x8] sm:$0xff] %v1726_v40  ;;  %v1310_v36 = vmul.f32 %v2502_v18, %v2330_v14 }
 0x32d   :  { %v1311_v1 = vmul.f32 %v2502_v18, %v2344_v43  ;;  %1562 = vst [vmem:[%s2623_s4 + $0x10] sm:$0xff] %v1727_v42  ;;  %1563 = vst [vmem:[%s2623_s4 + $0x18] sm:$0xff] %v1728_v10  ;;  %v1312_v14 = vmul.f32 %v2502_v18, %v2354_v27  ;;  %v1313_v43 = vmul.f32 %v2502_v18, %v2366_v55 }
 0x32e   :  { %1564 = vst [vmem:[%s2623_s4 + $0x20] sm:$0xff] %v1729_v22  ;;  %1565 = vst [vmem:[%s2623_s4 + $0x28] sm:$0xff] %v1730_v20  ;;  %v1314_v26 = vmul.f32 %v2502_v18, %v2378_v63  ;;  %v1315_v51 = vmul.f32 %v2502_v18, %v2390_v5  ;;  %v1316_v27 = vmul.f32 %v2502_v18, %v2402_v9 }
 0x32f   :  { %1566 = vst [vmem:[%s2623_s4 + $0x30] sm:$0xff] %v1731_v61  ;;  %1567 = vst [vmem:[%s2623_s4 + $0x38] sm:$0xff] %v1732_v59  ;;  %v1317_v55 = vmul.f32 %v2502_v18, %v2414_v11  ;;  %v1318_v63 = vmul.f32 %v2502_v18, %v2426_v23  ;;  %v1319_v5 = vmul.f32 %v2502_v18, %v2438_v48 }
 0x330   :  { %v1320_v2 = vmul.f32 %v2502_v18, %v2446_v57  ;;  %v1321_v15 = vmul.f32 %v2502_v18, %v2454_v34  ;;  %v1322_v45 = vmul.f32 %v2502_v18, %v2460_v58  ;;  %v1323_v9 = vmul.f32 %v2502_v18, %v2466_v32 }
 0x331   :  { %v1352_v11 = vadd.f32 %v1334_v21, %v2506_v39  ;;  %v1353_v25 = vadd.f32 %v1334_v21, %v1309_v44  ;;  %v1354_v33 = vadd.f32 %v1334_v21, %v1310_v36  ;;  %v1355_v23 = vadd.f32 %v1334_v21, %v1311_v1 }
 0x332   :  { %v1356_v37 = vadd.f32 %v1334_v21, %v1312_v14  ;;  %v1357_v54 = vadd.f32 %v1334_v21, %v1313_v43  ;;  %v1358_v48 = vadd.f32 %v1334_v21, %v1314_v26  ;;  %v1359_v38 = vadd.f32 %v1334_v21, %v1315_v51 }
 0x333   :  { %v1360_v41 = vadd.f32 %v1334_v21, %v1316_v27  ;;  %v1361_v57 = vadd.f32 %v1334_v21, %v1317_v55  ;;  %v1362_v53 = vadd.f32 %v1334_v21, %v1318_v63  ;;  %v1363_v47 = vadd.f32 %v1334_v21, %v1319_v5 }
 0x334   :  { %v1364_v34 = vadd.f32 %v1334_v21, %v1320_v2  ;;  %v1365_v46 = vadd.f32 %v1334_v21, %v1321_v15  ;;  %v1366_v50 = vadd.f32 %v1334_v21, %v1322_v45  ;;  %v1367_v58 = vadd.f32 %v1334_v21, %v1323_v9 }
 0x335   :  { %vm1384_vm0 = vcmp.ge.f32.partialorder %v1352_v11, 0.0  ;;  %vm1385_vm1 = vcmp.ge.f32.partialorder %v1353_v25, 0.0  ;;  %vm1386_vm2 = vcmp.ge.f32.partialorder %v1354_v33, 0.0  ;;  %vm1387_vm3 = vcmp.ge.f32.partialorder %v1355_v23, 0.0 }
 0x336   :  { %vm1388_vm4 = vcmp.ge.f32.partialorder %v1356_v37, 0.0  ;;  %vm1389_vm5 = vcmp.ge.f32.partialorder %v1357_v54, 0.0  ;;  %vm1390_vm6 = vcmp.ge.f32.partialorder %v1358_v48, 0.0  ;;  %vm1391_vm7 = vcmp.ge.f32.partialorder %v1359_v38, 0.0 }
 0x337   :  { %vm1392_vm8 = vcmp.ge.f32.partialorder %v1360_v41, 0.0  ;;  %vm1393_vm9 = vcmp.ge.f32.partialorder %v1361_v57, 0.0  ;;  %vm1394_vm10 = vcmp.ge.f32.partialorder %v1362_v53, 0.0  ;;  %vm1395_vm11 = vcmp.ge.f32.partialorder %v1363_v47, 0.0 }
 0x338   :  { %vm1396_vm12 = vcmp.ge.f32.partialorder %v1364_v34, 0.0  ;;  %vm1397_vm13 = vcmp.ge.f32.partialorder %v1365_v46, 0.0  ;;  %vm1398_vm14 = vcmp.ge.f32.partialorder %v1366_v50, 0.0  ;;  %vm1399_vm15 = vcmp.ge.f32.partialorder %v1367_v58, 0.0 }
 0x339   :  { %v1416_v32 = vmul.f32 0.2, %v1352_v11  ;;  %v1417_v18 = vmul.f32 0.2, %v1353_v25  ;;  %v1418_v39 = vmul.f32 0.2, %v1354_v33 }
 0x33a   :  { %v1419_v44 = vmul.f32 0.2, %v1355_v23  ;;  %v1420_v30 = vmul.f32 0.2, %v1356_v37  ;;  %v1421_v52 = vmul.f32 0.2, %v1357_v54 }
 0x33b   :  { %v1422_v6 = vmul.f32 0.2, %v1358_v48  ;;  %v1423_v24 = vmul.f32 0.2, %v1359_v38  ;;  %v1424_v49 = vmul.f32 0.2, %v1360_v41  ;;  %v1448_v28 = vsel %vm1384_vm0, %v1352_v11, %v1416_v32 }
 0x33c   :  { %v1425_v56 = vmul.f32 0.2, %v1361_v57  ;;  %v1426_v60 = vmul.f32 0.2, %v1362_v53  ;;  %v1427_v29 = vmul.f32 0.2, %v1363_v47  ;;  %v1449_v31 = vsel %vm1385_vm1, %v1353_v25, %v1417_v18 }
 0x33d   :  { %v1428_v0 = vmul.f32 0.2, %v1364_v34  ;;  %v1429_v3 = vmul.f32 0.2, %v1365_v46  ;;  %v1430_v4 = vmul.f32 0.2, %v1366_v50  ;;  %v1450_v12 = vsel %vm1386_vm2, %v1354_v33, %v1418_v39 }
 0x33e   :  { %v1431_v16 = vmul.f32 0.2, %v1367_v58  ;;  %v1451_v62 = vsel %vm1387_vm3, %v1355_v23, %v1419_v44  ;;  %v1452_v19 = vsel %vm1388_vm4, %v1356_v37, %v1420_v30  ;;  %v1453_v7 = vsel %vm1389_vm5, %v1357_v54, %v1421_v52 }
 0x33f   :  { %v1454_v8 = vsel %vm1390_vm6, %v1358_v48, %v1422_v6  ;;  %v1455_v13 = vsel %vm1391_vm7, %v1359_v38, %v1423_v24  ;;  %v1456_v35 = vsel %vm1392_vm8, %v1360_v41, %v1424_v49  ;;  %v1457_v17 = vsel %vm1393_vm9, %v1361_v57, %v1425_v56 }
 0x340   :  { %v1458_v40 = vsel %vm1394_vm10, %v1362_v53, %v1426_v60  ;;  %v1459_v42 = vsel %vm1395_vm11, %v1363_v47, %v1427_v29  ;;  %v1460_v10 = vsel %vm1396_vm12, %v1364_v34, %v1428_v0  ;;  %v1461_v22 = vsel %vm1397_vm13, %v1365_v46, %v1429_v3 }
 0x341   :  { %v1462_v20 = vsel %vm1398_vm14, %v1366_v50, %v1430_v4  ;;  %v1463_v61 = vsel %vm1399_vm15, %v1367_v58, %v1431_v16  ;;  %v1733_v59 = vpack.c.bf16 %v1449_v31, %v1448_v28  ;;  %v1734_v36 = vpack.c.bf16 %v1451_v62, %v1450_v12 }
 0x342   :  { %v1735_v1 = vpack.c.bf16 %v1453_v7, %v1452_v19  ;;  %v1736_v14 = vpack.c.bf16 %v1455_v13, %v1454_v8  ;;  %v1737_v43 = vpack.c.bf16 %v1457_v17, %v1456_v35  ;;  %v1738_v26 = vpack.c.bf16 %v1459_v42, %v1458_v40 }
 0x343   :  { %v1739_v51 = vpack.c.bf16 %v1461_v22, %v1460_v10  ;;  %v1740_v21 = vpack.c.bf16 %v1463_v61, %v1462_v20  ;;  %1568 = vst [vmem:[%s2623_s4 + $0x40] sm:$0xff] %v1733_v59  ;;  %1569 = vst [vmem:[%s2623_s4 + $0x48] sm:$0xff] %v1734_v36 }
 0x344   :  { %1570 = vst [vmem:[%s2623_s4 + $0x50] sm:$0xff] %v1735_v1  ;;  %1571 = vst [vmem:[%s2623_s4 + $0x58] sm:$0xff] %v1736_v14 }
 0x345   :  { %1572 = vst [vmem:[%s2623_s4 + $0x60] sm:$0xff] %v1737_v43  ;;  %1573 = vst [vmem:[%s2623_s4 + $0x68] sm:$0xff] %v1738_v26 }
 0x346   :  { %1574 = vst [vmem:[%s2623_s4 + $0x70] sm:$0xff] %v1739_v51  ;;  %1575 = vst [vmem:[%s2623_s4 + $0x78] sm:$0xff] %v1740_v21 }

// kernel: discriminator_forward.8
= control target key start
LH: loop header
LB: loop body
LE: loop exit
PB: predicated region body
PF: predicated region fallthrough
CT: control target
= control target key end

     0   :  { %s1366_s0 = inlined_call_operand.vmem [shape: bf16[256,512], index: 0, kind: input, shape index: {}]   ;;  %s1367_s1 = inlined_call_operand.vmem [shape: bf16[32,256], index: 1, kind: input, shape index: {}]   ;;  %s1368_s3 = inlined_call_operand.vmem [shape: f32[32,1], index: 3, kind: input, shape index: {}]   ;;  %s1369_s2 = inlined_call_operand.vmem [shape: f32[32,1], index: 2, kind: input, shape index: {}]   ;;  %s1370_s4 = inlined_call_operand.vmem [shape: bf16[32,512], index: 4, kind: output, shape index: {}]  }
   0x1   :  { %v898_v0 = vld [vmem:[%s1366_s0 + $0xe4] ss:$16 sps:$4 sm:$0xff]   ;;  %v900_v1 = vld [vmem:[%s1366_s0 + $0xec] ss:$16 sps:$4 sm:$0xff]   ;;  %v902_v2 = vld [vmem:[%s1366_s0 + $0xe0] ss:$16 sps:$4 sm:$0xff]  }
   0x2   :  { %425 = vmatprep.subr.bf16.mxu0 %v898_v0  ;;  %v903_v3 = vld [vmem:[%s1366_s0 + $0xe8] ss:$16 sps:$4 sm:$0xff]   ;;  %478 = vmatprep.subr.bf16.mxu1 %v900_v1  ;;  %v904_v4 = vld [vmem:[%s1366_s0 + $0xc4] ss:$16 sps:$4 sm:$0xff]   ;;  %v906_v5 = vld [vmem:[%s1366_s0 + $0xcc] ss:$16 sps:$4 sm:$0xff]  }
   0x3   :  { %426 = vmatpush1.bf16.msra.mxu0 %v902_v2  ;;  %479 = vmatpush1.bf16.msra.mxu1 %v903_v3  ;;  %v908_v6 = vld [vmem:[%s1366_s0 + $0xc0] ss:$16 sps:$4 sm:$0xff]   ;;  %v909_v7 = vld [vmem:[%s1366_s0 + $0xc8] ss:$16 sps:$4 sm:$0xff]   ;;  %v910_v8 = vld [vmem:[%s1366_s0 + $0xa4] ss:$16 sps:$4 sm:$0xff]  }
   0x4   :  { %427 = vmatprep.subr.bf16.mxu0 %v904_v4  ;;  %480 = vmatprep.subr.bf16.mxu1 %v906_v5  ;;  %v912_v9 = vld [vmem:[%s1366_s0 + $0xac] ss:$16 sps:$4 sm:$0xff]   ;;  %v914_v10 = vld [vmem:[%s1366_s0 + $0xa0] ss:$16 sps:$4 sm:$0xff]   ;;  %v915_v11 = vld [vmem:[%s1366_s0 + $0xa8] ss:$16 sps:$4 sm:$0xff]  }
   0x5   :  { %v916_v12 = vld [vmem:[%s1366_s0 + $0x84] ss:$16 sps:$4 sm:$0xff]   ;;  %v918_v13 = vld [vmem:[%s1366_s0 + $0x8c] ss:$16 sps:$4 sm:$0xff]   ;;  %v920_v14 = vld [vmem:[%s1366_s0 + $0x80] ss:$16 sps:$4 sm:$0xff]  }
   0x6   :  { %v921_v15 = vld [vmem:[%s1366_s0 + $0x88] ss:$16 sps:$4 sm:$0xff]   ;;  %v922_v16 = vld [vmem:[%s1366_s0 + $0x64] ss:$16 sps:$4 sm:$0xff]   ;;  %v924_v17 = vld [vmem:[%s1366_s0 + $0x6c] ss:$16 sps:$4 sm:$0xff]  }
   0x7   :  { %428 = vmatpush1.bf16.msra.mxu0 %v908_v6  ;;  %481 = vmatpush1.bf16.msra.mxu1 %v909_v7  ;;  %v926_v18 = vld [vmem:[%s1366_s0 + $0x60] ss:$16 sps:$4 sm:$0xff]   ;;  %v927_v19 = vld [vmem:[%s1366_s0 + $0x68] ss:$16 sps:$4 sm:$0xff]   ;;  %v928_v20 = vld [vmem:[%s1366_s0 + $0x44] ss:$16 sps:$4 sm:$0xff]  }
   0x8   :  { %429 = vmatprep.subr.bf16.mxu0 %v910_v8  ;;  %482 = vmatprep.subr.bf16.mxu1 %v912_v9  ;;  %v930_v21 = vld [vmem:[%s1366_s0 + $0x4c] ss:$16 sps:$4 sm:$0xff]   ;;  %v932_v22 = vld [vmem:[%s1366_s0 + $0x40] ss:$16 sps:$4 sm:$0xff]   ;;  %v933_v23 = vld [vmem:[%s1366_s0 + $0x48] ss:$16 sps:$4 sm:$0xff]  }
   0x9   :  { %v934_v24 = vld [vmem:[%s1366_s0 + $0x24] ss:$16 sps:$4 sm:$0xff]   ;;  %v936_v25 = vld [vmem:[%s1366_s0 + $0x2c] ss:$16 sps:$4 sm:$0xff]   ;;  %v938_v26 = vld [vmem:[%s1366_s0 + $0x20] ss:$16 sps:$4 sm:$0xff]  }
   0xa   :  { %v939_v27 = vld [vmem:[%s1366_s0 + $0x28] ss:$16 sps:$4 sm:$0xff]   ;;  %v940_v28 = vld [vmem:[%s1366_s0 + $0x4] ss:$16 sps:$4 sm:$0xff]   ;;  %v942_v29 = vld [vmem:[%s1366_s0 + $0xc] ss:$16 sps:$4 sm:$0xff]  }
   0xb   :  { %430 = vmatpush1.bf16.msra.mxu0 %v914_v10  ;;  %483 = vmatpush1.bf16.msra.mxu1 %v915_v11  ;;  %v944_v30 = vld [vmem:[%s1366_s0] ss:$16 sps:$4 sm:$0xff]   ;;  %v945_v31 = vld [vmem:[%s1366_s0 + $0x8] ss:$16 sps:$4 sm:$0xff]   ;;  %v946_v32 = vld [vmem:[%s1366_s0 + $0x1e4] ss:$16 sps:$4 sm:$0xff]  }
   0xc   :  { %431 = vmatprep.subr.bf16.mxu0 %v916_v12  ;;  %484 = vmatprep.subr.bf16.mxu1 %v918_v13  ;;  %v948_v33 = vld [vmem:[%s1366_s0 + $0x1ec] ss:$16 sps:$4 sm:$0xff]   ;;  %v950_v34 = vld [vmem:[%s1366_s0 + $0x1e0] ss:$16 sps:$4 sm:$0xff]   ;;  %v951_v35 = vld [vmem:[%s1366_s0 + $0x1e8] ss:$16 sps:$4 sm:$0xff]  }
   0xd   :  { %v952_v36 = vld [vmem:[%s1366_s0 + $0x1c4] ss:$16 sps:$4 sm:$0xff]   ;;  %v954_v37 = vld [vmem:[%s1366_s0 + $0x1cc] ss:$16 sps:$4 sm:$0xff]   ;;  %v956_v38 = vld [vmem:[%s1366_s0 + $0x1c0] ss:$16 sps:$4 sm:$0xff]  }
   0xe   :  { %v957_v39 = vld [vmem:[%s1366_s0 + $0x1c8] ss:$16 sps:$4 sm:$0xff]   ;;  %v958_v40 = vld [vmem:[%s1366_s0 + $0x1a4] ss:$16 sps:$4 sm:$0xff]   ;;  %v960_v41 = vld [vmem:[%s1366_s0 + $0x1ac] ss:$16 sps:$4 sm:$0xff]  }
   0xf   :  { %432 = vmatpush1.bf16.msra.mxu0 %v920_v14  ;;  %485 = vmatpush1.bf16.msra.mxu1 %v921_v15  ;;  %v962_v42 = vld [vmem:[%s1366_s0 + $0x1a0] ss:$16 sps:$4 sm:$0xff]   ;;  %v963_v43 = vld [vmem:[%s1366_s0 + $0x1a8] ss:$16 sps:$4 sm:$0xff]   ;;  %v964_v44 = vld [vmem:[%s1366_s0 + $0x184] ss:$16 sps:$4 sm:$0xff]  }
  0x10   :  { %433 = vmatprep.subr.bf16.mxu0 %v922_v16  ;;  %486 = vmatprep.subr.bf16.mxu1 %v924_v17  ;;  %v966_v45 = vld [vmem:[%s1366_s0 + $0x18c] ss:$16 sps:$4 sm:$0xff]   ;;  %v968_v46 = vld [vmem:[%s1366_s0 + $0x180] ss:$16 sps:$4 sm:$0xff]   ;;  %v969_v48 = vld [vmem:[%s1366_s0 + $0x188] ss:$16 sps:$4 sm:$0xff]  }
  0x11   :  { %v996_v47 = vld [vmem:[%s1367_s1 + $0x4] ss:$8 sps:$4 sm:$0xff]   ;;  %v974_v51 = vld [vmem:[%s1366_s0 + $0x160] ss:$16 sps:$4 sm:$0xff]   ;;  %v975_v52 = vld [vmem:[%s1366_s0 + $0x168] ss:$16 sps:$4 sm:$0xff]  }
  0x12   :  { %v970_v49 = vld [vmem:[%s1366_s0 + $0x164] ss:$16 sps:$4 sm:$0xff]   ;;  %v972_v50 = vld [vmem:[%s1366_s0 + $0x16c] ss:$16 sps:$4 sm:$0xff]   ;;  %457 = vmatprep.mubr.bf16.mxu0 %v996_v47  ;;  %510 = vmatprep.mubr.bf16.mxu1 %v996_v47  ;;  %v980_v55 = vld [vmem:[%s1366_s0 + $0x140] ss:$16 sps:$4 sm:$0xff]  }
  0x13   :  { %434 = vmatpush1.bf16.msra.mxu0 %v926_v18  ;;  %487 = vmatpush1.bf16.msra.mxu1 %v927_v19  ;;  %v976_v53 = vld [vmem:[%s1366_s0 + $0x144] ss:$16 sps:$4 sm:$0xff]   ;;  %v978_v54 = vld [vmem:[%s1366_s0 + $0x14c] ss:$16 sps:$4 sm:$0xff]   ;;  %v981_v56 = vld [vmem:[%s1366_s0 + $0x148] ss:$16 sps:$4 sm:$0xff]  }
  0x14   :  { %435 = vmatprep.subr.bf16.mxu0 %v928_v20  ;;  %488 = vmatprep.subr.bf16.mxu1 %v930_v21  ;;  %v982_v57 = vld [vmem:[%s1366_s0 + $0x124] ss:$16 sps:$4 sm:$0xff]   ;;  %v984_v58 = vld [vmem:[%s1366_s0 + $0x12c] ss:$16 sps:$4 sm:$0xff]   ;;  %v986_v59 = vld [vmem:[%s1366_s0 + $0x120] ss:$16 sps:$4 sm:$0xff]  }
  0x15   :  { %v987_v60 = vld [vmem:[%s1366_s0 + $0x128] ss:$16 sps:$4 sm:$0xff]   ;;  %v988_v61 = vld [vmem:[%s1366_s0 + $0x104] ss:$16 sps:$4 sm:$0xff]   ;;  %v990_v62 = vld [vmem:[%s1366_s0 + $0x10c] ss:$16 sps:$4 sm:$0xff]  }
  0x16   :  { %v992_v63 = vld [vmem:[%s1366_s0 + $0x100] ss:$16 sps:$4 sm:$0xff]   ;;  %v993_v0 = vld [vmem:[%s1366_s0 + $0x108] ss:$16 sps:$4 sm:$0xff]   ;;  %v997_v2 = vld [vmem:[%s1367_s1 + $0x14] ss:$8 sps:$4 sm:$0xff]  }
  0x17   :  { %436 = vmatpush1.bf16.msra.mxu0 %v932_v22  ;;  %489 = vmatpush1.bf16.msra.mxu1 %v933_v23  ;;  %v994_v1 = vld [vmem:[%s1367_s1] ss:$8 sps:$4 sm:$0xff]   ;;  %v999_v3 = vld [vmem:[%s1367_s1 + $0x10] ss:$8 sps:$4 sm:$0xff]  }
  0x18   :  { %437 = vmatprep.subr.bf16.mxu0 %v934_v24  ;;  %490 = vmatprep.subr.bf16.mxu1 %v936_v25 }
  0x1b   :  { %438 = vmatpush1.bf16.msra.mxu0 %v938_v26  ;;  %491 = vmatpush1.bf16.msra.mxu1 %v939_v27 }
  0x1c   :  { %439 = vmatprep.subr.bf16.mxu0 %v940_v28  ;;  %492 = vmatprep.subr.bf16.mxu1 %v942_v29 }
  0x1f   :  { %440 = vmatpush1.bf16.msra.mxu0 %v944_v30  ;;  %493 = vmatpush1.bf16.msra.mxu1 %v945_v31 }
  0x20   :  { %441 = vmatprep.subr.bf16.mxu0 %v946_v32  ;;  %494 = vmatprep.subr.bf16.mxu1 %v948_v33 }
  0x23   :  { %442 = vmatpush2.bf16.msra.mxu0 %v950_v34  ;;  %495 = vmatpush2.bf16.msra.mxu1 %v951_v35 }
  0x24   :  { %443 = vmatprep.subr.bf16.mxu0 %v952_v36  ;;  %496 = vmatprep.subr.bf16.mxu1 %v954_v37 }
  0x27   :  { %444 = vmatpush2.bf16.msra.mxu0 %v956_v38  ;;  %497 = vmatpush2.bf16.msra.mxu1 %v957_v39 }
  0x28   :  { %445 = vmatprep.subr.bf16.mxu0 %v958_v40  ;;  %498 = vmatprep.subr.bf16.mxu1 %v960_v41 }
  0x2b   :  { %446 = vmatpush2.bf16.msra.mxu0 %v962_v42  ;;  %499 = vmatpush2.bf16.msra.mxu1 %v963_v43 }
  0x2c   :  { %447 = vmatprep.subr.bf16.mxu0 %v964_v44  ;;  %500 = vmatprep.subr.bf16.mxu1 %v966_v45 }
  0x2f   :  { %448 = vmatpush2.bf16.msra.mxu0 %v968_v46  ;;  %501 = vmatpush2.bf16.msra.mxu1 %v969_v48 }
  0x30   :  { %449 = vmatprep.subr.bf16.mxu0 %v970_v49  ;;  %502 = vmatprep.subr.bf16.mxu1 %v972_v50 }
  0x33   :  { %450 = vmatpush2.bf16.msra.mxu0 %v974_v51  ;;  %503 = vmatpush2.bf16.msra.mxu1 %v975_v52 }
  0x34   :  { %451 = vmatprep.subr.bf16.mxu0 %v976_v53  ;;  %504 = vmatprep.subr.bf16.mxu1 %v978_v54 }
  0x37   :  { %452 = vmatpush2.bf16.msra.mxu0 %v980_v55  ;;  %505 = vmatpush2.bf16.msra.mxu1 %v981_v56 }
  0x38   :  { %453 = vmatprep.subr.bf16.mxu0 %v982_v57  ;;  %506 = vmatprep.subr.bf16.mxu1 %v984_v58 }
  0x3b   :  { %454 = vmatpush2.bf16.msra.mxu0 %v986_v59  ;;  %507 = vmatpush2.bf16.msra.mxu1 %v987_v60 }
  0x3c   :  { %455 = vmatprep.subr.bf16.mxu0 %v988_v61  ;;  %508 = vmatprep.subr.bf16.mxu1 %v990_v62 }
  0x3f   :  { %456 = vmatpush2.bf16.msra.mxu0 %v992_v63  ;;  %509 = vmatpush2.bf16.msra.mxu1 %v993_v0 }
  0x42   :  { %458 = vmatmul.mubr.bf16.vlgmr.msra.gmra.mxu0 %v994_v1  ;;  %511 = vmatmul.mubr.bf16.vlgmr.msra.gmra.mxu1 %v994_v1 }
  0x43   :  { %467 = vmatprep.mubr.bf16.mxu0 %v997_v2  ;;  %520 = vmatprep.mubr.bf16.mxu1 %v997_v2 }
  0x4a   :  { %468 = vmatmul.mubr.bf16.gmra.mxu0 %v999_v3  ;;  %521 = vmatmul.mubr.bf16.gmra.mxu1 %v999_v3 }
 0x102   :  { %v459_v4 = vpop.f32.mrf.mxu0  ;;  %v512_v5 = vpop.f32.mrf.mxu1 }
 0x104   :  { %v461_v6 = vpop.f32.mrf.mxu0  ;;  %v514_v7 = vpop.f32.mrf.mxu1 }
 0x105   :  { %v531_v8 = vadd.f32 %v461_v6, %v459_v4 }
 0x106   :  { %v463_v9 = vpop.f32.mrf.mxu0  ;;  %v516_v10 = vpop.f32.mrf.mxu1 }
 0x107   :  { %v532_v11 = vadd.f32 %v531_v8, %v512_v5 }
 0x108   :  { %v465_v12 = vpop.f32.mrf.mxu0  ;;  %v518_v13 = vpop.f32.mrf.mxu1 }
 0x109   :  { %v536_v14 = vadd.f32 %v465_v12, %v463_v9  ;;  %v533_v15 = vadd.f32 %v532_v11, %v514_v7 }
 0x10a   :  { %v469_v16 = vpop.f32.mrf.mxu0  ;;  %v522_v17 = vpop.f32.mrf.mxu1 }
 0x10b   :  { %534 = vadd.xlane.f32.xlu0 %v533_v15  ;;  %v537_v18 = vadd.f32 %v536_v14, %v516_v10 }
 0x10c   :  { %v471_v19 = vpop.f32.mrf.mxu0  ;;  %v524_v20 = vpop.f32.mrf.mxu1 }
 0x10d   :  { %v541_v21 = vadd.f32 %v471_v19, %v469_v16  ;;  %v538_v22 = vadd.f32 %v537_v18, %v518_v13 }
 0x10e   :  { %v473_v23 = vpop.f32.mrf.mxu0  ;;  %v526_v25 = vpop.f32.mrf.mxu1 }
 0x10f   :  { %539 = vadd.xlane.f32.xlu0 %v538_v22  ;;  %v542_v24 = vadd.f32 %v541_v21, %v522_v17  ;;  %v663_v21 = vld [vmem:[%s1368_s3] sm:$0xff]  ;;  %v664_v22 = vld [vmem:[%s1368_s3 + $0x8] sm:$0xff] }
 0x110   :  { %v475_v26 = vpop.f32.mrf.mxu0  ;;  %v528_v30 = vpop.f32.mrf.mxu1 }
 0x111   :  { %v546_v27 = vadd.f32 %v475_v26, %v473_v23  ;;  %v543_v28 = vadd.f32 %v542_v24, %v524_v20 }
 0x113   :  { %v547_v29 = vadd.f32 %v546_v27, %v526_v25  ;;  %544 = vadd.xlane.f32.xlu1 %v543_v28 }
 0x115   :  { %v548_v31 = vadd.f32 %v547_v29, %v528_v30 }
 0x117   :  { %549 = vadd.xlane.f32.xlu1 %v548_v31 }
 0x194   :  { %v535_v32 = vpop.xlane.xlu0 %534 }
 0x195   :  { %v551_v33 = vmul.f32 0.001953125, %v535_v32 }
 0x197   :  { %v1238_v34 = vsub.f32 %v459_v4, %v551_v33  ;;  %v1240_v35 = vsub.f32 %v461_v6, %v551_v33  ;;  %v1242_v36 = vsub.f32 %v512_v5, %v551_v33  ;;  %v1244_v38 = vsub.f32 %v514_v7, %v551_v33 }
 0x198   :  { %v540_v37 = vpop.xlane.xlu0 %539 }
 0x199   :  { %v552_v39 = vmul.f32 0.001953125, %v540_v37  ;;  %v571_v40 = vmul.f32 %v1238_v34, %v1238_v34  ;;  %v572_v41 = vmul.f32 %v1240_v35, %v1240_v35  ;;  %v573_v42 = vmul.f32 %v1242_v36, %v1242_v36 }
 0x19a   :  { %v574_v48 = vmul.f32 %v1244_v38, %v1244_v38 }
 0x19b   :  { %v1252_v43 = vsub.f32 %v463_v9, %v552_v39  ;;  %v1254_v44 = vsub.f32 %v465_v12, %v552_v39  ;;  %v587_v45 = vadd.f32 %v572_v41, %v571_v40  ;;  %v1256_v46 = vsub.f32 %v516_v10, %v552_v39  ;;  %v611_v40 = vld [vmem:[%s1369_s2] sm:$0xff] }
 0x19c   :  { %v545_v47 = vpop.xlane.xlu1 %544  ;;  %v1260_v49 = vsub.f32 %v518_v13, %v552_v39 }
 0x19d   :  { %v553_v50 = vmul.f32 0.001953125, %v545_v47  ;;  %v588_v51 = vadd.f32 %v587_v45, %v573_v42  ;;  %v575_v52 = vmul.f32 %v1252_v43, %v1252_v43  ;;  %v576_v53 = vmul.f32 %v1254_v44, %v1254_v44  ;;  %v612_v45 = vld [vmem:[%s1369_s2 + $0x8] sm:$0xff] }
 0x19e   :  { %v577_v54 = vmul.f32 %v1256_v46, %v1256_v46  ;;  %v578_v60 = vmul.f32 %v1260_v49, %v1260_v49 }
 0x19f   :  { %v1268_v55 = vsub.f32 %v469_v16, %v553_v50  ;;  %v1270_v56 = vsub.f32 %v471_v19, %v553_v50  ;;  %v589_v57 = vadd.f32 %v588_v51, %v574_v48  ;;  %v592_v58 = vadd.f32 %v576_v53, %v575_v52  ;;  %v614_v53 = vld [vmem:[%s1369_s2 + $0x18] sm:$0xff] }
 0x1a0   :  { %v550_v59 = vpop.xlane.xlu1 %549  ;;  %v1274_v61 = vsub.f32 %v522_v17, %v553_v50  ;;  %v1276_v62 = vsub.f32 %v524_v20, %v553_v50  ;;  %v1008_v20 = vmov 0   ;;  %v613_v50 = vld [vmem:[%s1369_s2 + $0x10] sm:$0xff] }
 0x1a1   :  { %v554_v63 = vmul.f32 0.001953125, %v550_v59  ;;  %590 = vadd.xlane.f32.xlu0 %v589_v57  ;;  %v593_v0 = vadd.f32 %v592_v58, %v577_v54  ;;  %v579_v1 = vmul.f32 %v1268_v55, %v1268_v55  ;;  %v580_v2 = vmul.f32 %v1270_v56, %v1270_v56  ;;  %897 = vset.pattern.permute.xlu1 %v1008_v20  ;;  %v666_v58 = vld [vmem:[%s1368_s3 + $0x18] sm:$0xff] }
 0x1a2   :  { %v581_v3 = vmul.f32 %v1274_v61, %v1274_v61  ;;  %v582_v8 = vmul.f32 %v1276_v62, %v1276_v62  ;;  %896 = vset.pattern.permute.xlu0 %v1008_v20 }
 0x1a3   :  { %v1284_v4 = vsub.f32 %v473_v23, %v554_v63  ;;  %v1286_v5 = vsub.f32 %v475_v26, %v554_v63  ;;  %v594_v6 = vadd.f32 %v593_v0, %v578_v60  ;;  %v597_v7 = vadd.f32 %v580_v2, %v579_v1  ;;  %v665_v23 = vld [vmem:[%s1368_s3 + $0x10] sm:$0xff] }
 0x1a4   :  { %v1290_v9 = vsub.f32 %v526_v25, %v554_v63  ;;  %v1292_v11 = vsub.f32 %v528_v30, %v554_v63 }
 0x1a5   :  { %595 = vadd.xlane.f32.xlu1 %v594_v6  ;;  %v598_v10 = vadd.f32 %v597_v7, %v581_v3  ;;  %v583_v12 = vmul.f32 %v1284_v4, %v1284_v4  ;;  %v584_v13 = vmul.f32 %v1286_v5, %v1286_v5 }
 0x1a6   :  { %v585_v15 = vmul.f32 %v1290_v9, %v1290_v9  ;;  %v586_v17 = vmul.f32 %v1292_v11, %v1292_v11 }
 0x1a7   :  { %v599_v14 = vadd.f32 %v598_v10, %v582_v8  ;;  %v602_v16 = vadd.f32 %v584_v13, %v583_v12 }
 0x1a9   :  { %600 = vadd.xlane.f32.xlu0 %v599_v14  ;;  %v603_v18 = vadd.f32 %v602_v16, %v585_v15 }
 0x1ab   :  { %v604_v19 = vadd.f32 %v603_v18, %v586_v17 }
 0x1ad   :  { %605 = vadd.xlane.f32.xlu1 %v604_v19 }
 0x1be   :  { %669 = vperm.xlu1 %897, %v663_v21  }
 0x1c2   :  { %674 = vperm.xlu1 %897, %v664_v22  }
 0x1c6   :  { %679 = vperm.xlu1 %897, %v665_v23  }
 0x22a   :  { %v591_v24 = vpop.xlane.xlu0 %590 }
 0x22b   :  { %v607_v25 = vmul.f32 0.001953125, %v591_v24 }
 0x22d   :  { %v615_v26 = vadd.f32 1e-05, %v607_v25 }
 0x22e   :  { %v596_v27 = vpop.xlane.xlu1 %595 }
 0x22f   :  { %1000 = vrsqrt.f32 %v615_v26  ;;  %v608_v28 = vmul.f32 0.001953125, %v596_v27 }
 0x231   :  { %v616_v29 = vadd.f32 1e-05, %v608_v28 }
 0x232   :  { %v601_v30 = vpop.xlane.xlu0 %600 }
 0x233   :  { %1002 = vrsqrt.f32 %v616_v29  ;;  %v609_v31 = vmul.f32 0.001953125, %v601_v30 }
 0x235   :  { %v617_v32 = vadd.f32 1e-05, %v609_v31 }
 0x236   :  { %v606_v33 = vpop.xlane.xlu1 %605 }
 0x237   :  { %1004 = vrsqrt.f32 %v617_v32  ;;  %v610_v37 = vmul.f32 0.001953125, %v606_v33 }
 0x239   :  { %v618_v39 = vadd.f32 1e-05, %v610_v37 }
 0x23a   :  { %v670_v59 = vpop.permute.xlu1 %669 }
 0x23b   :  { %1006 = vrsqrt.f32 %v618_v39 }
 0x23c   :  { %v1001_v41 = vpop.eup %1000 }
 0x23d   :  { %v623_v42 = vmul.f32 %v1001_v41, %v611_v40 }
 0x23e   :  { %v675_v60 = vpop.permute.xlu1 %674 }
 0x23f   :  { %629 = vperm.xlu0 %896, %v623_v42  }
 0x240   :  { %v1003_v47 = vpop.eup %1002 }
 0x241   :  { %v624_v48 = vmul.f32 %v1003_v47, %v612_v45 }
 0x242   :  { %v680_v63 = vpop.permute.xlu1 %679 }
 0x243   :  { %634 = vperm.xlu1 %897, %v624_v48  }
 0x244   :  { %v1005_v51 = vpop.eup %1004 }
 0x245   :  { %v625_v52 = vmul.f32 %v1005_v51, %v613_v50 }
 0x247   :  { %639 = vperm.xlu1 %897, %v625_v52  }
 0x248   :  { %v1007_v54 = vpop.eup %1006 }
 0x249   :  { %v626_v57 = vmul.f32 %v1007_v54, %v614_v53 }
 0x24b   :  { %644 = vperm.xlu1 %897, %v626_v57  }
 0x24f   :  { %684 = vperm.xlu1 %897, %v666_v58  }
 0x2ba   :  { %v630_v0 = vpop.permute.xlu0 %629 }
 0x2bb   :  { %v647_v1 = vmul.f32 %v630_v0, %v1238_v34  ;;  %v648_v2 = vmul.f32 %v630_v0, %v1240_v35  ;;  %v649_v3 = vmul.f32 %v630_v0, %v1242_v36  ;;  %v650_v6 = vmul.f32 %v630_v0, %v1244_v38 }
 0x2bd   :  { %v687_v7 = vadd.f32 %v670_v59, %v647_v1  ;;  %v688_v8 = vadd.f32 %v670_v59, %v648_v2  ;;  %v689_v10 = vadd.f32 %v670_v59, %v649_v3  ;;  %v690_v12 = vadd.f32 %v670_v59, %v650_v6 }
 0x2be   :  { %v635_v13 = vpop.permute.xlu1 %634 }
 0x2bf   :  { %vm703_vm0 = vcmp.ge.f32.partialorder %v687_v7, 0.0  ;;  %vm704_vm1 = vcmp.ge.f32.partialorder %v688_v8, 0.0  ;;  %vm705_vm2 = vcmp.ge.f32.partialorder %v689_v10, 0.0  ;;  %vm706_vm3 = vcmp.ge.f32.partialorder %v690_v12, 0.0 }
 0x2c0   :  { %v719_v14 = vmul.f32 0.2, %v687_v7  ;;  %v720_v15 = vmul.f32 0.2, %v688_v8  ;;  %v721_v16 = vmul.f32 0.2, %v689_v10  ;;  %v651_v34 = vmul.f32 %v635_v13, %v1252_v43 }
 0x2c1   :  { %v722_v17 = vmul.f32 0.2, %v690_v12  ;;  %v652_v35 = vmul.f32 %v635_v13, %v1254_v44  ;;  %v653_v36 = vmul.f32 %v635_v13, %v1256_v46  ;;  %v654_v38 = vmul.f32 %v635_v13, %v1260_v49 }
 0x2c2   :  { %v735_v18 = vsel %vm703_vm0, %v687_v7, %v719_v14  ;;  %v736_v19 = vsel %vm704_vm1, %v688_v8, %v720_v15  ;;  %v737_v20 = vsel %vm705_vm2, %v689_v10, %v721_v16  ;;  %v691_v21 = vadd.f32 %v675_v60, %v651_v34  ;;  %v640_v22 = vpop.permute.xlu1 %639 }
 0x2c3   :  { %v738_v23 = vsel %vm706_vm3, %v690_v12, %v722_v17  ;;  %v887_v24 = vpack.c.bf16 %v736_v19, %v735_v18  ;;  %v692_v25 = vadd.f32 %v675_v60, %v652_v35  ;;  %v693_v26 = vadd.f32 %v675_v60, %v653_v36 }
 0x2c4   :  { %v888_v27 = vpack.c.bf16 %v738_v23, %v737_v20  ;;  %v694_v28 = vadd.f32 %v675_v60, %v654_v38  ;;  %vm707_vm4 = vcmp.ge.f32.partialorder %v691_v21, 0.0  ;;  %v723_v43 = vmul.f32 0.2, %v691_v21 }
 0x2c5   :  { %799 = vst [vmem:[%s1370_s4] sm:$0xff] %v887_v24  ;;  %vm708_vm5 = vcmp.ge.f32.partialorder %v692_v25, 0.0  ;;  %vm709_vm6 = vcmp.ge.f32.partialorder %v693_v26, 0.0  ;;  %v724_v44 = vmul.f32 0.2, %v692_v25  ;;  %v725_v46 = vmul.f32 0.2, %v693_v26 }
 0x2c6   :  { %800 = vst [vmem:[%s1370_s4 + $0x8] sm:$0xff] %v888_v27  ;;  %vm710_vm7 = vcmp.ge.f32.partialorder %v694_v28, 0.0  ;;  %v726_v49 = vmul.f32 0.2, %v694_v28  ;;  %v739_v29 = vsel %vm707_vm4, %v691_v21, %v723_v43  ;;  %v655_v30 = vmul.f32 %v640_v22, %v1268_v55  ;;  %v645_v31 = vpop.permute.xlu1 %644 }
 0x2c7   :  { %v740_v32 = vsel %vm708_vm5, %v692_v25, %v724_v44  ;;  %v741_v33 = vsel %vm709_vm6, %v693_v26, %v725_v46  ;;  %v656_v37 = vmul.f32 %v640_v22, %v1270_v56  ;;  %v657_v39 = vmul.f32 %v640_v22, %v1274_v61 }
 0x2c8   :  { %v742_v40 = vsel %vm710_vm7, %v694_v28, %v726_v49  ;;  %v889_v41 = vpack.c.bf16 %v740_v32, %v739_v29  ;;  %v658_v42 = vmul.f32 %v640_v22, %v1276_v62  ;;  %v695_v45 = vadd.f32 %v680_v63, %v655_v30 }
 0x2c9   :  { %v890_v47 = vpack.c.bf16 %v742_v40, %v741_v33  ;;  %v696_v48 = vadd.f32 %v680_v63, %v656_v37  ;;  %v697_v50 = vadd.f32 %v680_v63, %v657_v39  ;;  %v659_v51 = vmul.f32 %v645_v31, %v1284_v4 }
 0x2ca   :  { %801 = vst [vmem:[%s1370_s4 + $0x10] sm:$0xff] %v889_v41  ;;  %v698_v55 = vadd.f32 %v680_v63, %v658_v42  ;;  %vm711_vm8 = vcmp.ge.f32.partialorder %v695_v45, 0.0  ;;  %v727_v52 = vmul.f32 0.2, %v695_v45  ;;  %v660_v56 = vmul.f32 %v645_v31, %v1286_v5  ;;  %v685_v61 = vpop.permute.xlu1 %684 }
 0x2cb   :  { %802 = vst [vmem:[%s1370_s4 + $0x18] sm:$0xff] %v890_v47  ;;  %vm712_vm9 = vcmp.ge.f32.partialorder %v696_v48, 0.0  ;;  %vm713_vm10 = vcmp.ge.f32.partialorder %v697_v50, 0.0  ;;  %v728_v62 = vmul.f32 0.2, %v696_v48  ;;  %v661_v57 = vmul.f32 %v645_v31, %v1290_v9 }
 0x2cc   :  { %v729_v53 = vmul.f32 0.2, %v697_v50  ;;  %vm714_vm11 = vcmp.ge.f32.partialorder %v698_v55, 0.0  ;;  %v730_v4 = vmul.f32 0.2, %v698_v55  ;;  %v743_v54 = vsel %vm711_vm8, %v695_v45, %v727_v52 }
 0x2cd   :  { %v744_v58 = vsel %vm712_vm9, %v696_v48, %v728_v62  ;;  %v662_v60 = vmul.f32 %v645_v31, %v1292_v11  ;;  %v699_v63 = vadd.f32 %v685_v61, %v659_v51  ;;  %v700_v1 = vadd.f32 %v685_v61, %v660_v56 }
 0x2ce   :  { %v745_v59 = vsel %vm713_vm10, %v697_v50, %v729_v53  ;;  %v746_v5 = vsel %vm714_vm11, %v698_v55, %v730_v4  ;;  %v891_v0 = vpack.c.bf16 %v744_v58, %v743_v54  ;;  %v701_v2 = vadd.f32 %v685_v61, %v661_v57 }
 0x2cf   :  { %v892_v3 = vpack.c.bf16 %v746_v5, %v745_v59  ;;  %v702_v6 = vadd.f32 %v685_v61, %v662_v60  ;;  %vm715_vm12 = vcmp.ge.f32.partialorder %v699_v63, 0.0  ;;  %v731_v7 = vmul.f32 0.2, %v699_v63 }
 0x2d0   :  { %803 = vst [vmem:[%s1370_s4 + $0x20] sm:$0xff] %v891_v0  ;;  %vm716_vm13 = vcmp.ge.f32.partialorder %v700_v1, 0.0  ;;  %vm717_vm14 = vcmp.ge.f32.partialorder %v701_v2, 0.0  ;;  %v732_v9 = vmul.f32 0.2, %v700_v1 }
 0x2d1   :  { %v733_v8 = vmul.f32 0.2, %v701_v2  ;;  %804 = vst [vmem:[%s1370_s4 + $0x28] sm:$0xff] %v892_v3  ;;  %vm718_vm15 = vcmp.ge.f32.partialorder %v702_v6, 0.0  ;;  %v734_v11 = vmul.f32 0.2, %v702_v6  ;;  %v747_v10 = vsel %vm715_vm12, %v699_v63, %v731_v7 }
 0x2d2   :  { %v748_v12 = vsel %vm716_vm13, %v700_v1, %v732_v9 }
 0x2d3   :  { %v749_v13 = vsel %vm717_vm14, %v701_v2, %v733_v8  ;;  %v750_v14 = vsel %vm718_vm15, %v702_v6, %v734_v11  ;;  %v893_v15 = vpack.c.bf16 %v748_v12, %v747_v10 }
 0x2d4   :  { %v894_v16 = vpack.c.bf16 %v750_v14, %v749_v13 }
 0x2d5   :  { %805 = vst [vmem:[%s1370_s4 + $0x30] sm:$0xff] %v893_v15 }
 0x2d6   :  { %806 = vst [vmem:[%s1370_s4 + $0x38] sm:$0xff] %v894_v16 }

// kernel: discriminator_forward.9
= control target key start
LH: loop header
LB: loop body
LE: loop exit
PB: predicated region body
PF: predicated region fallthrough
CT: control target
= control target key end

     0   :  { %v743_v38 = vmov 1966171168   ;;  %v92_v40 = vlaneseq  ;;  %s971_s0 = inlined_call_operand.vmem [shape: bf16[512,256], index: 0, kind: input, shape index: {}]   ;;  %s972_s1 = inlined_call_operand.vmem [shape: bf16[1,512], index: 1, kind: input, shape index: {}]   ;;  %s973_s2 = inlined_call_operand.vmem [shape: f32[1,256], index: 2, kind: input, shape index: {}]   ;;  %s974_s3 = inlined_call_operand.hbm [shape: f32[1,1], index: 3, kind: output, shape index: {}]  }
   0x1   :  { %v621_v0 = vld [vmem:[%s971_s0 + $0x74] ss:$8 sps:$4 sm:$0xff]   ;;  %v625_v2 = vld [vmem:[%s971_s0 + $0x70] ss:$8 sps:$4 sm:$0xff]   ;;  %v627_v4 = vld [vmem:[%s971_s0 + $0x64] ss:$8 sps:$4 sm:$0xff]   ;;  %v90_v39 = vunpack.c.l.s4 %v743_v38 }
   0x2   :  { %v623_v1 = vld [vmem:[%s971_s0 + $0x174] ss:$8 sps:$4 sm:$0xff]   ;;  %429 = vmatprep.subr.bf16.mxu0 %v621_v0  ;;  %v626_v3 = vld [vmem:[%s971_s0 + $0x170] ss:$8 sps:$4 sm:$0xff]   ;;  %v629_v5 = vld [vmem:[%s971_s0 + $0x164] ss:$8 sps:$4 sm:$0xff]  }
   0x3   :  { %470 = vmatprep.subr.bf16.mxu1 %v623_v1  ;;  %430 = vmatpush1.bf16.msra.mxu0 %v625_v2  ;;  %v631_v6 = vld [vmem:[%s971_s0 + $0x60] ss:$8 sps:$4 sm:$0xff]   ;;  %v633_v8 = vld [vmem:[%s971_s0 + $0x54] ss:$8 sps:$4 sm:$0xff]   ;;  %v637_v10 = vld [vmem:[%s971_s0 + $0x50] ss:$8 sps:$4 sm:$0xff]   ;;  %v91_v45 = vunpack.c.0.s8 %v90_v39 }
   0x4   :  { %471 = vmatpush1.bf16.msra.mxu1 %v626_v3  ;;  %431 = vmatprep.subr.bf16.mxu0 %v627_v4  ;;  %v632_v7 = vld [vmem:[%s971_s0 + $0x160] ss:$8 sps:$4 sm:$0xff]   ;;  %v635_v9 = vld [vmem:[%s971_s0 + $0x154] ss:$8 sps:$4 sm:$0xff]   ;;  %v638_v11 = vld [vmem:[%s971_s0 + $0x150] ss:$8 sps:$4 sm:$0xff]  }
   0x5   :  { %472 = vmatprep.subr.bf16.mxu1 %v629_v5  ;;  %v639_v12 = vld [vmem:[%s971_s0 + $0x44] ss:$8 sps:$4 sm:$0xff]   ;;  %v643_v14 = vld [vmem:[%s971_s0 + $0x40] ss:$8 sps:$4 sm:$0xff]   ;;  %v645_v16 = vld [vmem:[%s971_s0 + $0x34] ss:$8 sps:$4 sm:$0xff]  }
   0x6   :  { %v641_v13 = vld [vmem:[%s971_s0 + $0x144] ss:$8 sps:$4 sm:$0xff]   ;;  %v644_v15 = vld [vmem:[%s971_s0 + $0x140] ss:$8 sps:$4 sm:$0xff]   ;;  %v647_v17 = vld [vmem:[%s971_s0 + $0x134] ss:$8 sps:$4 sm:$0xff]  }
   0x7   :  { %432 = vmatpush1.bf16.msra.mxu0 %v631_v6  ;;  %v649_v18 = vld [vmem:[%s971_s0 + $0x30] ss:$8 sps:$4 sm:$0xff]   ;;  %v651_v20 = vld [vmem:[%s971_s0 + $0x24] ss:$8 sps:$4 sm:$0xff]   ;;  %v655_v22 = vld [vmem:[%s971_s0 + $0x20] ss:$8 sps:$4 sm:$0xff]  }
   0x8   :  { %473 = vmatpush1.bf16.msra.mxu1 %v632_v7  ;;  %433 = vmatprep.subr.bf16.mxu0 %v633_v8  ;;  %v650_v19 = vld [vmem:[%s971_s0 + $0x130] ss:$8 sps:$4 sm:$0xff]   ;;  %v653_v21 = vld [vmem:[%s971_s0 + $0x124] ss:$8 sps:$4 sm:$0xff]   ;;  %v656_v23 = vld [vmem:[%s971_s0 + $0x120] ss:$8 sps:$4 sm:$0xff]  }
   0x9   :  { %474 = vmatprep.subr.bf16.mxu1 %v635_v9  ;;  %v657_v24 = vld [vmem:[%s971_s0 + $0x14] ss:$8 sps:$4 sm:$0xff]   ;;  %v661_v26 = vld [vmem:[%s971_s0 + $0x10] ss:$8 sps:$4 sm:$0xff]   ;;  %v663_v28 = vld [vmem:[%s971_s0 + $0x4] ss:$8 sps:$4 sm:$0xff]  }
   0xa   :  { %v659_v25 = vld [vmem:[%s971_s0 + $0x114] ss:$8 sps:$4 sm:$0xff]   ;;  %v662_v27 = vld [vmem:[%s971_s0 + $0x110] ss:$8 sps:$4 sm:$0xff]   ;;  %v665_v29 = vld [vmem:[%s971_s0 + $0x104] ss:$8 sps:$4 sm:$0xff]  }
   0xb   :  { %434 = vmatpush1.bf16.msra.mxu0 %v637_v10  ;;  %v667_v30 = vld [vmem:[%s971_s0] ss:$8 sps:$4 sm:$0xff]   ;;  %v669_v32 = vld [vmem:[%s971_s0 + $0xf4] ss:$8 sps:$4 sm:$0xff]   ;;  %v673_v34 = vld [vmem:[%s971_s0 + $0xf0] ss:$8 sps:$4 sm:$0xff]  }
   0xc   :  { %475 = vmatpush1.bf16.msra.mxu1 %v638_v11  ;;  %435 = vmatprep.subr.bf16.mxu0 %v639_v12  ;;  %v668_v31 = vld [vmem:[%s971_s0 + $0x100] ss:$8 sps:$4 sm:$0xff]   ;;  %v671_v33 = vld [vmem:[%s971_s0 + $0x1f4] ss:$8 sps:$4 sm:$0xff]   ;;  %v674_v35 = vld [vmem:[%s971_s0 + $0x1f0] ss:$8 sps:$4 sm:$0xff]  }
   0xd   :  { %476 = vmatprep.subr.bf16.mxu1 %v641_v13  ;;  %v675_v36 = vld [vmem:[%s971_s0 + $0xe4] ss:$8 sps:$4 sm:$0xff]   ;;  %v679_v41 = vld [vmem:[%s971_s0 + $0xe0] ss:$8 sps:$4 sm:$0xff]   ;;  %v681_v43 = vld [vmem:[%s971_s0 + $0xd4] ss:$8 sps:$4 sm:$0xff]  }
   0xe   :  { %v677_v37 = vld [vmem:[%s971_s0 + $0x1e4] ss:$8 sps:$4 sm:$0xff]   ;;  %v680_v42 = vld [vmem:[%s971_s0 + $0x1e0] ss:$8 sps:$4 sm:$0xff]   ;;  %v683_v44 = vld [vmem:[%s971_s0 + $0x1d4] ss:$8 sps:$4 sm:$0xff]  }
   0xf   :  { %436 = vmatpush1.bf16.msra.mxu0 %v643_v14  ;;  %v891_v46 = vshrl.u32 %v92_v40, 7  ;;  %v685_v47 = vld [vmem:[%s971_s0 + $0xd0] ss:$8 sps:$4 sm:$0xff]   ;;  %v687_v49 = vld [vmem:[%s971_s0 + $0xc4] ss:$8 sps:$4 sm:$0xff]  }
  0x10   :  { %477 = vmatpush1.bf16.msra.mxu1 %v644_v15  ;;  %437 = vmatprep.subr.bf16.mxu0 %v645_v16  ;;  %v686_v48 = vld [vmem:[%s971_s0 + $0x1d0] ss:$8 sps:$4 sm:$0xff]   ;;  %v689_v50 = vld [vmem:[%s971_s0 + $0x1c4] ss:$8 sps:$4 sm:$0xff]  }
  0x11   :  { %478 = vmatprep.subr.bf16.mxu1 %v647_v17  ;;  %v94_v51 = vsub.s32 %v91_v45, %v891_v46 }
  0x13   :  { %438 = vmatpush1.bf16.msra.mxu0 %v649_v18 }
  0x14   :  { %479 = vmatpush1.bf16.msra.mxu1 %v650_v19  ;;  %439 = vmatprep.subr.bf16.mxu0 %v651_v20 }
  0x15   :  { %480 = vmatprep.subr.bf16.mxu1 %v653_v21 }
  0x17   :  { %440 = vmatpush1.bf16.msra.mxu0 %v655_v22 }
  0x18   :  { %481 = vmatpush1.bf16.msra.mxu1 %v656_v23  ;;  %441 = vmatprep.subr.bf16.mxu0 %v657_v24 }
  0x19   :  { %482 = vmatprep.subr.bf16.mxu1 %v659_v25 }
  0x1b   :  { %442 = vmatpush1.bf16.msra.mxu0 %v661_v26 }
  0x1c   :  { %483 = vmatpush1.bf16.msra.mxu1 %v662_v27  ;;  %443 = vmatprep.subr.bf16.mxu0 %v663_v28 }
  0x1d   :  { %484 = vmatprep.subr.bf16.mxu1 %v665_v29 }
  0x1f   :  { %444 = vmatpush1.bf16.msra.mxu0 %v667_v30 }
  0x20   :  { %485 = vmatpush1.bf16.msra.mxu1 %v668_v31  ;;  %445 = vmatprep.subr.bf16.mxu0 %v669_v32 }
  0x21   :  { %486 = vmatprep.subr.bf16.mxu1 %v671_v33 }
  0x23   :  { %446 = vmatpush2.bf16.msra.mxu0 %v673_v34 }
  0x24   :  { %487 = vmatpush2.bf16.msra.mxu1 %v674_v35  ;;  %447 = vmatprep.subr.bf16.mxu0 %v675_v36 }
  0x25   :  { %488 = vmatprep.subr.bf16.mxu1 %v677_v37 }
  0x27   :  { %448 = vmatpush2.bf16.msra.mxu0 %v679_v41 }
  0x28   :  { %489 = vmatpush2.bf16.msra.mxu1 %v680_v42  ;;  %449 = vmatprep.subr.bf16.mxu0 %v681_v43 }
  0x29   :  { %490 = vmatprep.subr.bf16.mxu1 %v683_v44 }
  0x2a   :  { %8 = vsyncpa [#allocation3], 0  ;;  %v553_v52 = vld.sshfl [vmem:[%s972_s1] sm:$0x33 pattern:$0x75316420] }
  0x2b   :  { %450 = vmatpush2.bf16.msra.mxu0 %v685_v47  ;;  %v691_v53 = vld [vmem:[%s971_s0 + $0xc0] ss:$8 sps:$4 sm:$0xff]   ;;  %v88_v55 = vcombine.high %v553_v52, %v553_v52  ;;  %v693_v56 = vld [vmem:[%s971_s0 + $0xb4] ss:$8 sps:$4 sm:$0xff]   ;;  %v697_v59 = vld [vmem:[%s971_s0 + $0xb0] ss:$8 sps:$4 sm:$0xff]   ;;  %v95_v8 = vrot.slane %v553_v52, %v94_v51 }
  0x2c   :  { %491 = vmatpush2.bf16.msra.mxu1 %v686_v48  ;;  %v692_v54 = vld [vmem:[%s971_s0 + $0x1c0] ss:$8 sps:$4 sm:$0xff]   ;;  %451 = vmatprep.subr.bf16.mxu0 %v687_v49  ;;  %v695_v57 = vld [vmem:[%s971_s0 + $0x1b4] ss:$8 sps:$4 sm:$0xff]   ;;  %v698_v60 = vld [vmem:[%s971_s0 + $0x1b0] ss:$8 sps:$4 sm:$0xff]  }
  0x2d   :  { %492 = vmatprep.subr.bf16.mxu1 %v689_v50  ;;  %v102_v58 = vrot.slane %v88_v55, %v94_v51  ;;  %v699_v62 = vld [vmem:[%s971_s0 + $0xa4] ss:$8 sps:$4 sm:$0xff]   ;;  %v703_v0 = vld [vmem:[%s971_s0 + $0xa0] ss:$8 sps:$4 sm:$0xff]   ;;  %v705_v2 = vld [vmem:[%s971_s0 + $0x94] ss:$8 sps:$4 sm:$0xff]   ;;  %v103_v11 = vcombine.high %v95_v8, %v95_v8 }
  0x2e   :  { %v701_v63 = vld [vmem:[%s971_s0 + $0x1a4] ss:$8 sps:$4 sm:$0xff]   ;;  %v704_v1 = vld [vmem:[%s971_s0 + $0x1a0] ss:$8 sps:$4 sm:$0xff]   ;;  %v707_v3 = vld [vmem:[%s971_s0 + $0x194] ss:$8 sps:$4 sm:$0xff]  }
  0x2f   :  { %452 = vmatpush2.bf16.msra.mxu0 %v691_v53  ;;  %v104_v61 = vcombine.high %v102_v58, %v102_v58  ;;  %461 = vmatprep.mubr.bf16.mxu0 %v102_v58  ;;  %v709_v4 = vld [vmem:[%s971_s0 + $0x90] ss:$8 sps:$4 sm:$0xff]   ;;  %v711_v6 = vld [vmem:[%s971_s0 + $0x84] ss:$8 sps:$4 sm:$0xff]   ;;  %v715_v9 = vld [vmem:[%s971_s0 + $0x80] ss:$8 sps:$4 sm:$0xff]  }
  0x30   :  { %493 = vmatpush2.bf16.msra.mxu1 %v692_v54  ;;  %453 = vmatprep.subr.bf16.mxu0 %v693_v56  ;;  %v710_v5 = vld [vmem:[%s971_s0 + $0x190] ss:$8 sps:$4 sm:$0xff]   ;;  %v713_v7 = vld [vmem:[%s971_s0 + $0x184] ss:$8 sps:$4 sm:$0xff]   ;;  %v716_v10 = vld [vmem:[%s971_s0 + $0x180] ss:$8 sps:$4 sm:$0xff]  }
  0x31   :  { %494 = vmatprep.subr.bf16.mxu1 %v695_v57  ;;  %502 = vmatprep.mubr.bf16.mxu1 %v104_v61  ;;  %v515_v12 = vsub.s32 0, %v891_v46  ;;  %v511_v13 = vld [vmem:[%s973_s2] sm:$0x3]  ;;  %v519_v14 = vsub.s32 1, %v891_v46  ;;  %vm525_vm0 = vcmask 1040384   ;;  %s744_s0 = smov [#allocation2]  }
  0x32   :  { %s545_s2 = sshll.u32 %s744_s0, 4  ;;  %vm537_vm1 = vcmask 0   ;;  %s546_s2 = int_to_ptr.vmem [resolvable:$true] %s545_s2 }
  0x33   :  { %454 = vmatpush2.bf16.msra.mxu0 %v697_v59  ;;  %v516_v15 = vrot.slane %v511_v13, %v515_v12  ;;  %v520_v19 = vrot.slane %v511_v13, %v519_v14  ;;  %s721_s7 = scalar_lea.vmem %s546_s2, 16  ;;  %s725_s8 = scalar_lea.vmem %s546_s2, 32 }
  0x34   :  { %495 = vmatpush2.bf16.msra.mxu1 %v698_v60  ;;  %455 = vmatprep.subr.bf16.mxu0 %v699_v62  ;;  %p722_p0 = scmp.ne.s32.totalorder %s546_s2, %s721_s7  ;;  %p726_p1 = scmp.lt.s32.totalorder %s546_s2, %s546_s2 }
  0x35   :  { %496 = vmatprep.subr.bf16.mxu1 %v701_v63  ;;  %p727_p2 = scmp.lt.s32.totalorder %s725_s8, %s721_s7 }
  0x37   :  { %456 = vmatpush2.bf16.msra.mxu0 %v703_v0  ;;  %p728_p3 = por %p727_p2, %p726_p1 }
  0x38   :  { %497 = vmatpush2.bf16.msra.mxu1 %v704_v1  ;;  %457 = vmatprep.subr.bf16.mxu0 %v705_v2 }
  0x39   :  { %498 = vmatprep.subr.bf16.mxu1 %v707_v3  ;;  %p729_p4 = pnand %p728_p3, %p722_p0 }
  0x3b   :  { %458 = vmatpush2.bf16.msra.mxu0 %v709_v4 }
  0x3c   :  { %499 = vmatpush2.bf16.msra.mxu1 %v710_v5  ;;  %459 = vmatprep.subr.bf16.mxu0 %v711_v6 }
  0x3d   :  { %500 = vmatprep.subr.bf16.mxu1 %v713_v7 }
  0x3f   :  { %460 = vmatpush2.bf16.msra.mxu0 %v715_v9 }
  0x40   :  { %501 = vmatpush2.bf16.msra.mxu1 %v716_v10 }
  0x42   :  { %462 = vmatmul.mubr.bf16.vlgmr.msra.gmra.mxu0 %v95_v8 }
  0x43   :  { %503 = vmatmul.mubr.bf16.vlgmr.msra.gmra.mxu1 %v103_v11 }
 0x102   :  { %v463_v16 = vpop.f32.mrf.mxu0 }
 0x103   :  { %v504_v17 = vpop.f32.mrf.mxu1 }
 0x104   :  { %v505_v18 = vadd.f32 %v504_v17, %v463_v16  ;;  %v465_v20 = vpop.f32.mrf.mxu0 }
 0x105   :  { %v506_v21 = vpop.f32.mrf.mxu1 }
 0x106   :  { %v523_v22 = vmul.f32 %v516_v15, %v505_v18  ;;  %v507_v23 = vadd.f32 %v506_v21, %v465_v20  ;;  %v467_v24 = vpop.f32.mrf.mxu0 }
 0x107   :  { %v508_v25 = vpop.f32.mrf.mxu1 }
 0x108   :  { %v524_v26 = vmul.f32 %v520_v19, %v507_v23  ;;  %v468_v27 = vpop.f32.mrf.mxu0  ;;  %v526_v29 = vsel %vm525_vm0, %v523_v22, 0.0 }
 0x109   :  { %v509_v28 = vpop.f32.mrf.mxu1 }
 0x10a   :  { %v527_v30 = vsel %vm525_vm0, %v524_v26, 0.0 }
 0x10b   :  { %v528_v31 = vadd.f32 %v527_v30, %v526_v29 }
 0x10d   :  { %529 = vadd.xlane.f32.xlu0 %v528_v31 }
 0x196   :  { %v530_v32 = vpop.xlane.xlu0 %529 }
 0x197   :  { %v618_v33 = vmul.f32 -1.442695, %v530_v32 }
 0x199   :  { %717 = vpow2.f32 %v618_v33 }
 0x1a6   :  { %v718_v34 = vpop.eup %717 }
 0x1a7   :  { %v534_v35 = vadd.f32 1.0, %v718_v34 }
 0x1a9   :  { %719 = vrcp.f32 %v534_v35 }
 0x1b6   :  { %v720_v36 = vpop.eup %719 }
 0x1b7   :  { %538 = vst.msk [vmem:[#allocation2] sm:$0x1] %vm537_vm1, %v720_v36 }
 0x1b8   :  { %732 = shalt.err (!%p729_p4)
}
 0x1b9   :  { %548 = dma.vmem_to_hbm [thread:$0]  %s546_s2, 16, %s974_s3, [#allocation3]  }
 0x1ba   :  { %741 = dma.done.wait [#allocation3], 16  }
 0x1bb   :  { %742 = vsyncadd [#allocation3], 4294967280 }
 0x1bc   :  { %552 = vsyncpa [#allocation3], 1 }

</bundles_post_ra>
